<compile_context>
chip_gen: v6e
topology: v6e:2x2x1
jax: 0.10.0
libtpu: 0.0.40
codegen_flags: <defaults>
</compile_context>

<pallas_src>
import functools

import jax
import jax.numpy as jnp
from jax import lax
from jax.experimental import pallas as pl
from jax.experimental.pallas import tpu as pltpu

# ----------------------------- model dims (small) -----------------------------
B = 2              # batch
N_MELS = 8         # mel channels (real Whisper: 80)
T_IN = 32          # audio frames
T_ENC = T_IN // 2  # encoder length after the stride-2 conv
D = 32             # d_model
H = 4              # heads
DH = D // H        # head dim
FFN = 64           # mlp hidden
VOCAB = 64         # vocab size
VPAD = 128         # vocab padded to one full 128-lane vreg for the LM head / loss
T_DEC = 8          # decoder / label length
N_ENC_LAYERS = 1
N_DEC_LAYERS = 1
PAD_ID = 1         # whisper model config pad token (model-side, not the wrapper's)
START_ID = 2       # decoder_start_token_id
IGNORE = -100      # WhisperAsrWrapperConfig.pad_token_id / CE ignore_index
LN_EPS = 1e-5
NEG_BIG = -1e30

# encoder static-slab row offsets (conv weights, positions, final LN, conv biases)
C1W = 0                     # conv1 taps: 3 x (N_MELS, D)
C2W = C1W + 3 * N_MELS      # conv2 taps: 3 x (D, D)
POSR = C2W + 3 * D          # sinusoidal positions (T_ENC, D)
C1B = POSR + T_ENC          # conv1 bias row
C2B = C1B + 1               # conv2 bias row
LNFG = C2B + 1              # encoder final-LN gamma row
LNFB = LNFG + 1             # encoder final-LN beta row
STAT_ROWS = LNFB + 1


# ----------------------------- in-kernel helpers -------------------------------
def _bf(x):
    return x.astype(jnp.bfloat16)


def _mm(a, b):
    """(M,K) @ (K,N) with bf16 operands, f32 accumulation."""
    return lax.dot_general(_bf(a), _bf(b), (((1,), (0,)), ((), ())),
                           preferred_element_type=jnp.float32)


def _mm_t(w, x):
    """Transposed projection: w:(K,N), x:(M,K) -> (N,M) (contract over K)."""
    return lax.dot_general(_bf(w), _bf(x), (((0,), (1,)), ((), ())),
                           preferred_element_type=jnp.float32)


def _gelu(x):
    # TODO(synk): PyTorch nn.GELU uses exact erf; tanh approximation used here
    #             (erf lowering inside Mosaic is not guaranteed).
    return 0.5 * x * (1.0 + jnp.tanh(0.7978845608028654 * (x + 0.044715 * x * x * x)))


def _ln(x, gamma, beta, eps=LN_EPS):
    """x: (M, D) f32, gamma/beta: (1, D) -> LayerNorm over the last dim (f32)."""
    mu = jnp.mean(x, axis=-1, keepdims=True)
    var = jnp.mean((x - mu) ** 2, axis=-1, keepdims=True)
    return (x - mu) * lax.rsqrt(var + eps) * gamma + beta


def _mha_t(q_t, k_t, v_t, w_o, *, heads, dh, causal):
    """Multi-head attention with transposed projections.

    q_t: (D, Tq), k_t/v_t: (D, Tk) — heads live on aligned 8-row sublane groups,
    so every per-head slice below is a cheap sublane slice (no lane relayout).
    Returns (Tq, D) = concat-head attention folded into the output projection W_o
    (bias added by the caller). Matmuls use bf16 operands / f32 accumulation;
    softmax math stays f32.
    """
    scale = float(dh) ** -0.5
    tq, tk = q_t.shape[1], k_t.shape[1]
    if causal:
        rows = lax.broadcasted_iota(jnp.int32, (tq, tk), 0)
        cols = lax.broadcasted_iota(jnp.int32, (tq, tk), 1)
        causal_bias = jnp.where(rows >= cols, 0.0, -1e9).astype(jnp.float32)
    out = None
    for hd in range(heads):
        r0 = hd * dh
        qh = q_t[r0:r0 + dh, :]                                   # (dh, Tq)
        kh = k_t[r0:r0 + dh, :]                                   # (dh, Tk)
        vh = v_t[r0:r0 + dh, :]                                   # (dh, Tk)
        s = lax.dot_general(_bf(qh), _bf(kh), (((0,), (0,)), ((), ())),
                            preferred_element_type=jnp.float32)  # (Tq, Tk)
        s = s * scale
        if causal:
            s = s + causal_bias
        s = s - jnp.max(s, axis=-1, keepdims=True)
        p = jnp.exp(s)
        # approx reciprocal is a deliberate perf choice (EUP slot); tiny numerics
        # deviation vs. the PyTorch reference.
        p = p * pl.reciprocal(jnp.sum(p, axis=-1, keepdims=True), approx=True)
        o_t = lax.dot_general(_bf(vh), _bf(p), (((1,), (1,)), ((), ())),
                              preferred_element_type=jnp.float32)   # (dh, Tq)
        woh = w_o[r0:r0 + dh, :]                                     # (dh, D)
        contrib = lax.dot_general(_bf(o_t), _bf(woh), (((0,), (0,)), ((), ())),
                                  preferred_element_type=jnp.float32)  # (Tq, D)
        out = contrib if out is None else out + contrib
    return out


# ----------------------------- encoder kernel ----------------------------------
def _encoder_kernel(x_in_ref, stat_ref, wqkv_ref, wo_ref, fc1_ref, fc2_ref,
                    vec_ref, bcol_ref, o_ref, *, heads, dh):
    l = pl.program_id(0)
    is_last = l == pl.num_programs(0) - 1
    stat = stat_ref[...]                                          # (STAT_ROWS, D)

    # ---- fused conv stem + positional add (first grid step only) ----
    @pl.when(l == 0)
    def _():
        w1 = [stat[C1W + k * N_MELS:C1W + (k + 1) * N_MELS, :] for k in range(3)]
        w2 = [stat[C2W + k * D:C2W + (k + 1) * D, :] for k in range(3)]
        pos = stat[POSR:POSR + T_ENC, :]
        b1 = stat[C1B:C1B + 1, :]
        b2 = stat[C2B:C2B + 1, :]
        # shift / strided-sampling selection matrices (exact 0/1, MXU-friendly)
        ri = lax.broadcasted_iota(jnp.int32, (T_IN, T_IN), 0)
        ci = lax.broadcasted_iota(jnp.int32, (T_IN, T_IN), 1)
        a_prev = (ci == ri - 1).astype(jnp.float32)               # picks x[i-1]
        a_next = (ci == ri + 1).astype(jnp.float32)               # picks x[i+1]
        rs = lax.broadcasted_iota(jnp.int32, (T_ENC, T_IN), 0)
        cs = lax.broadcasted_iota(jnp.int32, (T_ENC, T_IN), 1)
        s0 = (cs == 2 * rs - 1).astype(jnp.float32)               # h1[2t-1]
        s1 = (cs == 2 * rs).astype(jnp.float32)                   # h1[2t]
        s2 = (cs == 2 * rs + 1).astype(jnp.float32)               # h1[2t+1]
        for b in range(B):
            xb = x_in_ref[b]                                      # (T_IN, N_MELS)
            # conv1: kernel 3, stride 1, pad 1  -> GELU
            h1 = _gelu(_mm(_mm(a_prev, xb), w1[0]) + _mm(xb, w1[1])
                       + _mm(_mm(a_next, xb), w1[2]) + b1)        # (T_IN, D)
            # conv2: kernel 3, stride 2, pad 1  -> GELU
            h2 = _gelu(_mm(_mm(s0, h1), w2[0]) + _mm(_mm(s1, h1), w2[1])
                       + _mm(_mm(s2, h1), w2[2]) + b2)            # (T_ENC, D)
            o_ref[b] = h2 + pos

    # ---- one pre-norm encoder layer on the resident stream (o_ref) ----
    wqkv = wqkv_ref[...]                                          # (D, 3D)
    wo = wo_ref[...]                                              # (D, D)
    fc1 = fc1_ref[...]                                            # (D, FFN)
    fc2 = fc2_ref[...]                                            # (FFN, D)
    vec = vec_ref[...]                                            # (8, FFN) row slab
    bqkv = bcol_ref[...]                                          # (3D, 1)

    for b in range(B):
        x = o_ref[b]                                              # (T_ENC, D)
        # self attention
        h = _ln(x, vec[0:1, :D], vec[1:2, :D])
        qkv_t = _mm_t(wqkv, h) + bqkv                             # (3D, T_ENC)
        attn = _mha_t(qkv_t[0:D], qkv_t[D:2 * D], qkv_t[2 * D:],
                      wo, heads=heads, dh=dh, causal=False)
        x = x + attn + vec[4:5, :D]                               # + b_o
        # MLP
        h = _ln(x, vec[2:3, :D], vec[3:4, :D])
        ffn = _gelu(_mm(h, fc1) + vec[5:6, :FFN])
        x = x + _mm(ffn, fc2) + vec[6:7, :D]

        @pl.when(is_last)
        def _():
            # encoder final LayerNorm fused into the last layer step
            o_ref[b] = _ln(x, stat[LNFG:LNFG + 1, :], stat[LNFB:LNFB + 1, :])

        @pl.when(jnp.logical_not(is_last))
        def _():
            o_ref[b] = x


def encoder_forward(enc, x_in):
    n_layers = enc["w_qkv"].shape[0]
    const3 = lambda s: pl.BlockSpec(s, lambda l: (0, 0, 0))
    const2 = lambda s: pl.BlockSpec(s, lambda l: (0, 0))
    per = lambda a: pl.BlockSpec((None,) + a.shape[1:], lambda l: (l, 0, 0))
    return pl.pallas_call(
        functools.partial(_encoder_kernel, heads=H, dh=DH),
        out_shape=jax.ShapeDtypeStruct((B, T_ENC, D), jnp.float32),
        grid=(n_layers,),
        in_specs=[const3(x_in.shape), const2(enc["static"].shape),
                  per(enc["w_qkv"]), per(enc["w_o"]),
                  per(enc["fc1_w"]), per(enc["fc2_w"]),
                  per(enc["vec"]), per(enc["bcol"])],
        out_specs=const3((B, T_ENC, D)),
        compiler_params=pltpu.CompilerParams(dimension_semantics=("arbitrary",)),
    )(x_in, enc["static"], enc["w_qkv"], enc["w_o"], enc["fc1_w"], enc["fc2_w"],
      enc["vec"], enc["bcol"])


# ----------------------------- decoder (+LM head / loss) kernel ----------------
def _decoder_kernel(y0_ref, enc_ref, wqkv_ref, wosa_ref, wqca_ref, wkvca_ref,
                    woca_ref, fc1_ref, fc2_ref, vec_ref, bcol_ref,
                    lnf_ref, wlm_ref, lab_ref,
                    loss_ref, preds_ref, y_scr, *, heads, dh, vocab, ignore_id):
    l = pl.program_id(0)
    is_last = l == pl.num_programs(0) - 1

    @pl.when(l == 0)
    def _():
        y_scr[...] = y0_ref[...]

    wqkv = wqkv_ref[...]                                          # (D, 3D)
    wosa = wosa_ref[...]                                          # (D, D)
    wqca = wqca_ref[...]                                          # (D, D)
    wkvca = wkvca_ref[...]                                        # (D, 2D)
    woca = woca_ref[...]                                          # (D, D)
    fc1 = fc1_ref[...]                                            # (D, FFN)
    fc2 = fc2_ref[...]                                            # (FFN, D)
    vec = vec_ref[...]                                            # (16, FFN) row slab
    bcol = bcol_ref[...]                                          # (6D, 1) column slab

    for b in range(B):
        y = y_scr[b]                                              # (T_DEC, D)
        enc = enc_ref[b]                                          # (T_ENC, D)
        # --- masked (causal) self attention ---
        h = _ln(y, vec[0:1, :D], vec[1:2, :D])
        qkv_t = _mm_t(wqkv, h) + bcol[0:3 * D]                    # (3D, T_DEC)
        y = y + _mha_t(qkv_t[0:D], qkv_t[D:2 * D], qkv_t[2 * D:],
                       wosa, heads=heads, dh=dh, causal=True) + vec[6:7, :D]
        # --- cross attention (kv from the final-LN'ed encoder output) ---
        h = _ln(y, vec[2:3, :D], vec[3:4, :D])
        q_t = _mm_t(wqca, h) + bcol[3 * D:4 * D]                  # (D, T_DEC)
        kv_t = _mm_t(wkvca, enc) + bcol[4 * D:6 * D]              # (2D, T_ENC)
        y = y + _mha_t(q_t, kv_t[0:D], kv_t[D:2 * D],
                       woca, heads=heads, dh=dh, causal=False) + vec[7:8, :D]
        # --- MLP ---
        h = _ln(y, vec[4:5, :D], vec[5:6, :D])
        ffn = _gelu(_mm(h, fc1) + vec[8:9, :FFN])
        y = y + _mm(ffn, fc2) + vec[9:10, :D]
        y_scr[b] = y

    # ---- final LN + tied LM head + masked CE + argmax (last layer only) ----
    @pl.when(is_last)
    def _():
        y2 = y_scr[...].reshape(B * T_DEC, D)                     # (M, D)
        h = _ln(y2, lnf_ref[0:1, :], lnf_ref[1:2, :])
        # transposed logits (VPAD, M): vocab on sublanes so per-token results
        # (argmax / lse) come out lane-dense (1, M).
        logits_t = _mm_t(wlm_ref[...], h)                         # (VPAD, M) f32
        vrow = lax.broadcasted_iota(jnp.int32, logits_t.shape, 0)
        logits_t = jnp.where(vrow < vocab, logits_t, NEG_BIG)     # mask padded rows
        mx = jnp.max(logits_t, axis=0, keepdims=True)             # (1, M)
        # first index achieving the max (matches torch.argmax tie behavior)
        preds_ref[...] = jnp.min(jnp.where(logits_t == mx, vrow, logits_t.shape[0]),
                                 axis=0, keepdims=True).astype(jnp.int32)
        lse = jnp.log(jnp.sum(jnp.exp(logits_t - mx), axis=0, keepdims=True)) + mx
        labels = lab_ref[...]                                     # (1, M) i32
        valid = labels != ignore_id
        safe = jnp.where(valid, labels, 0)
        picked = jnp.sum(jnp.where(vrow == safe, logits_t, 0.0), axis=0, keepdims=True)
        nll = lse - picked                                        # (1, M)
        vf = valid.astype(jnp.float32)
        total = jnp.sum(nll * vf, axis=1, keepdims=True)          # (1, 1)
        cnt = jnp.sum(vf, axis=1, keepdims=True)                  # (1, 1)
        # NOTE: if every label is ignore_index torch returns NaN; here we return 0.
        loss_ref[...] = total / jnp.maximum(cnt, 1.0)


def decoder_forward(dec, y0, enc_out, labels2):
    n_layers = dec["w_qkv"].shape[0]
    const3 = lambda s: pl.BlockSpec(s, lambda l: (0, 0, 0))
    const2 = lambda s: pl.BlockSpec(s, lambda l: (0, 0))
    per = lambda a: pl.BlockSpec((None,) + a.shape[1:], lambda l: (l, 0, 0))
    return pl.pallas_call(
        functools.partial(_decoder_kernel, heads=H, dh=DH,
                          vocab=VOCAB, ignore_id=IGNORE),
        out_shape=(jax.ShapeDtypeStruct((1, 1), jnp.float32),
                   jax.ShapeDtypeStruct((1, B * T_DEC), jnp.int32)),
        grid=(n_layers,),
        in_specs=[const3(y0.shape), const3(enc_out.shape),
                  per(dec["w_qkv"]), per(dec["wo_sa"]),
                  per(dec["wq_ca"]), per(dec["wkv_ca"]), per(dec["wo_ca"]),
                  per(dec["fc1_w"]), per(dec["fc2_w"]),
                  per(dec["vec"]), per(dec["bcol"]),
                  const2(dec["ln_f"].shape), const2(dec["w_lm"].shape),
                  const2(labels2.shape)],
        out_specs=(const2((1, 1)), const2((1, B * T_DEC))),
        scratch_shapes=[pltpu.VMEM((B, T_DEC, D), jnp.float32)],
        compiler_params=pltpu.CompilerParams(dimension_semantics=("arbitrary",)),
    )(y0, enc_out, dec["w_qkv"], dec["wo_sa"], dec["wq_ca"], dec["wkv_ca"],
      dec["wo_ca"], dec["fc1_w"], dec["fc2_w"], dec["vec"], dec["bcol"],
      dec["ln_f"], dec["w_lm"], labels2)


# ----------------------------- glue (plain JAX) --------------------------------
def sinusoids(length, channels, max_timescale=10000.0):
    half = channels // 2
    log_inc = jnp.log(max_timescale) / (half - 1)
    inv = jnp.exp(-log_inc * jnp.arange(half, dtype=jnp.float32))
    t = jnp.arange(length, dtype=jnp.float32)[:, None] * inv[None, :]
    return jnp.concatenate([jnp.sin(t), jnp.cos(t)], axis=1)


def shift_tokens_right(labels, pad_id, start_id):
    shifted = jnp.roll(labels, 1, axis=-1)
    shifted = shifted.at[:, 0].set(start_id)
    return jnp.where(shifted == IGNORE, pad_id, shifted)


# ----------------------------- forward (the wrapper) ---------------------------
def whisper_asr_wrapper_forward(params, input_features, attention_mask, labels):
    # attention_mask is accepted for API compatibility but ignored, matching
    # HF WhisperEncoder semantics ("Whisper does not support masking of input_features").
    del attention_mask

    x_in = jnp.transpose(input_features, (0, 2, 1)).astype(jnp.float32)  # (B, T_IN, n_mels)
    enc_out = encoder_forward(params["enc"], x_in)                       # 1 pallas_call

    dec = params["dec"]
    dec_ids = shift_tokens_right(labels, PAD_ID, START_ID)
    tok = jnp.take(dec["embed_tokens"], dec_ids, axis=0)                 # XLA gather
    y0 = tok + dec["embed_positions"][None, :T_DEC]
    labels2 = labels.reshape(1, B * T_DEC).astype(jnp.int32)
    loss, preds = decoder_forward(dec, y0, enc_out, labels2)             # 1 pallas_call

    return {
        "loss": loss[0, 0],
        "predictions": preds.reshape(B, T_DEC),
        "labels": labels,
    }


# ----------------------------- deterministic params ----------------------------
def init_params(key):
    # TODO(synk): torch Conv1d / Linear weight layouts differ from these synthetic
    #             layouts; loading real checkpoints needs a permutation.
    keys = iter(jax.random.split(key, 32))

    def nrm(shape, scale=0.02):
        return scale * jax.random.normal(next(keys), shape, jnp.float32)

    # ---- encoder: static slab (conv taps, positions, final LN, conv biases) ----
    stat = jnp.zeros((STAT_ROWS, D), jnp.float32)
    stat = stat.at[C1W:C1W + 3 * N_MELS].set(nrm((3 * N_MELS, D)))
    stat = stat.at[C2W:C2W + 3 * D].set(nrm((3 * D, D)))
    stat = stat.at[POSR:POSR + T_ENC].set(sinusoids(T_ENC, D))   # precomputed at init
    stat = stat.at[LNFG].set(jnp.ones((D,), jnp.float32))        # final-LN gamma
    # conv biases (rows C1B/C2B) and final-LN beta (row LNFB) stay zero

    le = N_ENC_LAYERS
    enc_vec = jnp.zeros((le, 8, FFN), jnp.float32)               # row slab (small params)
    enc_vec = enc_vec.at[:, 0, :D].set(1.0)                      # ln1 gamma
    enc_vec = enc_vec.at[:, 2, :D].set(1.0)                      # ln2 gamma
    # rows: 0 ln1_g, 1 ln1_b, 2 ln2_g, 3 ln2_b, 4 b_o, 5 fc1_b, 6 fc2_b (biases zero)
    enc = dict(static=stat,
               w_qkv=nrm((le, D, 3 * D)),                        # fused QKV (k bias-free)
               w_o=nrm((le, D, D)),
               fc1_w=nrm((le, D, FFN)), fc2_w=nrm((le, FFN, D)),
               vec=enc_vec,
               bcol=jnp.zeros((le, 3 * D, 1), jnp.float32))      # qkv bias column

    # ---- decoder ----
    ld = N_DEC_LAYERS
    dec_vec = jnp.zeros((ld, 16, FFN), jnp.float32)
    for r in (0, 2, 4):                                          # the three LN gammas
        dec_vec = dec_vec.at[:, r, :D].set(1.0)
    # rows: 0/1 ln_sa, 2/3 ln_ca, 4/5 ln_mlp, 6 bo_sa, 7 bo_ca, 8 fc1_b, 9 fc2_b
    embed = nrm((VOCAB, D))
    dec = dict(
        embed_tokens=embed,
        embed_positions=nrm((T_DEC, D)),
        # tied LM head: pre-transposed and lane-padded ONCE at init (no per-step work)
        w_lm=jnp.pad(embed.T, ((0, 0), (0, VPAD - VOCAB))),
        ln_f=jnp.stack([jnp.ones((D,), jnp.float32), jnp.zeros((D,), jnp.float32)]),
        w_qkv=nrm((ld, D, 3 * D)), wo_sa=nrm((ld, D, D)),
        wq_ca=nrm((ld, D, D)), wkv_ca=nrm((ld, D, 2 * D)), wo_ca=nrm((ld, D, D)),
        fc1_w=nrm((ld, D, FFN)), fc2_w=nrm((ld, FFN, D)),
        vec=dec_vec,
        bcol=jnp.zeros((ld, 6 * D, 1), jnp.float32))             # [b_qkv | b_q_ca | b_kv_ca]
    return dict(enc=enc, dec=dec)


# ----------------------------- main ---------------------------------------------
if __name__ == "__main__":
    key = jax.random.PRNGKey(0)
    k_feat, k_lbl, k_par = jax.random.split(key, 3)

    input_features = jax.random.normal(k_feat, (B, N_MELS, T_IN), jnp.float32)  # NCW like torch
    attention_mask = jnp.ones((B, T_IN), jnp.int32)
    labels = jax.random.randint(k_lbl, (B, T_DEC), 0, VOCAB, dtype=jnp.int32)
    labels = labels.at[0, -2:].set(IGNORE)   # exercise ignore_index = -100
    labels = labels.at[1, -1:].set(IGNORE)

    params = init_params(k_par)

    fwd = jax.jit(whisper_asr_wrapper_forward)
    out = fwd(params, input_features, attention_mask, labels)
    out = jax.block_until_ready(out)

    assert out["loss"].shape == ()
    assert out["predictions"].shape == (B, T_DEC)
    assert out["labels"].shape == (B, T_DEC)
    assert bool(jnp.isfinite(out["loss"]))
    print("KERNEL_OK")
</pallas_src>

<mosaic_0001>
module attributes {stable_mosaic.version = 11 : i64} {
  func.func @_encoder_kernel(%arg0: i32, %arg1: memref<2x32x8xf32, #tpu.memory_space<vmem>>, %arg2: memref<140x32xf32, #tpu.memory_space<vmem>>, %arg3: memref<1x32x96xf32, #tpu.memory_space<vmem>>, %arg4: memref<1x32x32xf32, #tpu.memory_space<vmem>>, %arg5: memref<1x32x64xf32, #tpu.memory_space<vmem>>, %arg6: memref<1x64x32xf32, #tpu.memory_space<vmem>>, %arg7: memref<1x8x64xf32, #tpu.memory_space<vmem>>, %arg8: memref<1x96x1xf32, #tpu.memory_space<vmem>>, %arg9: memref<2x16x32xf32, #tpu.memory_space<vmem>>) attributes {dimension_semantics = [#tpu.dimension_semantics<arbitrary>], iteration_bounds = array<i64: 1>, scalar_prefetch = 0 : i64, scratch_operands = 0 : i64, tpu.core_type = #tpu.core_type<tc>, window_params = [{pipeline_mode = #tpu.pipeline_mode<synchronous>, transform_indices = @transform_0, window_bounds = array<i64: 2, 32, 8>}, {pipeline_mode = #tpu.pipeline_mode<synchronous>, transform_indices = @transform_1, window_bounds = array<i64: 140, 32>}, {transform_indices = @transform_2, window_bounds = array<i64: 1, 32, 96>}, {transform_indices = @transform_3, window_bounds = array<i64: 1, 32, 32>}, {transform_indices = @transform_4, window_bounds = array<i64: 1, 32, 64>}, {transform_indices = @transform_5, window_bounds = array<i64: 1, 64, 32>}, {transform_indices = @transform_6, window_bounds = array<i64: 1, 8, 64>}, {transform_indices = @transform_7, window_bounds = array<i64: 1, 96, 1>}, {pipeline_mode = #tpu.pipeline_mode<synchronous>, transform_indices = @transform_8, window_bounds = array<i64: 2, 16, 32>}]} {
    %c0_i32 = arith.constant 0 : i32
    %0 = arith.cmpi eq, %arg0, %c0_i32 : i32
    %c0 = arith.constant 0 : index
    %c0_0 = arith.constant 0 : index
    %1 = vector.load %arg2[%c0, %c0_0] : memref<140x32xf32, #tpu.memory_space<vmem>>, vector<140x32xf32>
    %c0_i32_1 = arith.constant 0 : i32
    %2 = arith.cmpi eq, %arg0, %c0_i32_1 : i32
    %3 = arith.extui %2 : i1 to i32
    %c0_i32_2 = arith.constant 0 : i32
    %4 = arith.cmpi ne, %3, %c0_i32_2 : i32
    scf.if %4 {
      %409 = vector.extract_strided_slice %1 {offsets = [0, 0], sizes = [8, 32], strides = [1, 1]} : vector<140x32xf32> to vector<8x32xf32>
      %410 = vector.extract_strided_slice %1 {offsets = [8, 0], sizes = [8, 32], strides = [1, 1]} : vector<140x32xf32> to vector<8x32xf32>
      %411 = vector.extract_strided_slice %1 {offsets = [16, 0], sizes = [8, 32], strides = [1, 1]} : vector<140x32xf32> to vector<8x32xf32>
      %412 = vector.extract_strided_slice %1 {offsets = [24, 0], sizes = [32, 32], strides = [1, 1]} : vector<140x32xf32> to vector<32x32xf32>
      %413 = vector.extract_strided_slice %1 {offsets = [56, 0], sizes = [32, 32], strides = [1, 1]} : vector<140x32xf32> to vector<32x32xf32>
      %414 = vector.extract_strided_slice %1 {offsets = [88, 0], sizes = [32, 32], strides = [1, 1]} : vector<140x32xf32> to vector<32x32xf32>
      %415 = vector.extract_strided_slice %1 {offsets = [120, 0], sizes = [16, 32], strides = [1, 1]} : vector<140x32xf32> to vector<16x32xf32>
      %416 = vector.extract_strided_slice %1 {offsets = [136, 0], sizes = [1, 32], strides = [1, 1]} : vector<140x32xf32> to vector<1x32xf32>
      %417 = vector.extract_strided_slice %1 {offsets = [137, 0], sizes = [1, 32], strides = [1, 1]} : vector<140x32xf32> to vector<1x32xf32>
      %418 = tpu.iota {dimensions = array<i32: 0>} : vector<32x32xi32>
      %419 = tpu.iota {dimensions = array<i32: 1>} : vector<32x32xi32>
      %c1_i32 = arith.constant 1 : i32
      %420 = vector.broadcast %c1_i32 : i32 to vector<32x32xi32>
      %421 = arith.subi %418, %420 : vector<32x32xi32>
      %422 = arith.cmpi eq, %419, %421 : vector<32x32xi32>
      %423 = arith.extui %422 : vector<32x32xi1> to vector<32x32xi32>
      %424 = arith.sitofp %423 : vector<32x32xi32> to vector<32x32xf32>
      %c1_i32_112 = arith.constant 1 : i32
      %425 = vector.broadcast %c1_i32_112 : i32 to vector<32x32xi32>
      %426 = arith.addi %418, %425 : vector<32x32xi32>
      %427 = arith.cmpi eq, %419, %426 : vector<32x32xi32>
      %428 = arith.extui %427 : vector<32x32xi1> to vector<32x32xi32>
      %429 = arith.sitofp %428 : vector<32x32xi32> to vector<32x32xf32>
      %430 = tpu.iota {dimensions = array<i32: 0>} : vector<16x32xi32>
      %431 = tpu.iota {dimensions = array<i32: 1>} : vector<16x32xi32>
      %c2_i32 = arith.constant 2 : i32
      %432 = vector.broadcast %c2_i32 : i32 to vector<16x32xi32>
      %433 = arith.muli %432, %430 : vector<16x32xi32>
      %c1_i32_113 = arith.constant 1 : i32
      %434 = vector.broadcast %c1_i32_113 : i32 to vector<16x32xi32>
      %435 = arith.subi %433, %434 : vector<16x32xi32>
      %436 = arith.cmpi eq, %431, %435 : vector<16x32xi32>
      %437 = arith.extui %436 : vector<16x32xi1> to vector<16x32xi32>
      %438 = arith.sitofp %437 : vector<16x32xi32> to vector<16x32xf32>
      %c2_i32_114 = arith.constant 2 : i32
      %439 = vector.broadcast %c2_i32_114 : i32 to vector<16x32xi32>
      %440 = arith.muli %439, %430 : vector<16x32xi32>
      %441 = arith.cmpi eq, %431, %440 : vector<16x32xi32>
      %442 = arith.extui %441 : vector<16x32xi1> to vector<16x32xi32>
      %443 = arith.sitofp %442 : vector<16x32xi32> to vector<16x32xf32>
      %c2_i32_115 = arith.constant 2 : i32
      %444 = vector.broadcast %c2_i32_115 : i32 to vector<16x32xi32>
      %445 = arith.muli %444, %430 : vector<16x32xi32>
      %c1_i32_116 = arith.constant 1 : i32
      %446 = vector.broadcast %c1_i32_116 : i32 to vector<16x32xi32>
      %447 = arith.addi %445, %446 : vector<16x32xi32>
      %448 = arith.cmpi eq, %431, %447 : vector<16x32xi32>
      %449 = arith.extui %448 : vector<16x32xi1> to vector<16x32xi32>
      %450 = arith.sitofp %449 : vector<16x32xi32> to vector<16x32xf32>
      %c0_117 = arith.constant 0 : index
      %c0_118 = arith.constant 0 : index
      %c0_119 = arith.constant 0 : index
      %451 = vector.load %arg1[%c0_117, %c0_118, %c0_119] : memref<2x32x8xf32, #tpu.memory_space<vmem>>, vector<1x32x8xf32>
      %452 = vector.shape_cast %451 : vector<1x32x8xf32> to vector<32x8xf32>
      %453 = arith.truncf %424 : vector<32x32xf32> to vector<32x32xbf16>
      %454 = arith.truncf %452 : vector<32x8xf32> to vector<32x8xbf16>
      %cst_120 = arith.constant dense<0.000000e+00> : vector<32x8xf32>
      %455 = tpu.matmul %453, %454, %cst_120 {dimension_numbers = #tpu.dot_dimension_numbers<[1], [0], [0], [1], [0, 0, 1, 1], [], []>} : vector<32x32xbf16>, vector<32x8xbf16>, vector<32x8xf32> -> vector<32x8xf32>
      %456 = arith.truncf %455 : vector<32x8xf32> to vector<32x8xbf16>
      %457 = arith.truncf %409 : vector<8x32xf32> to vector<8x32xbf16>
      %cst_121 = arith.constant dense<0.000000e+00> : vector<32x32xf32>
      %458 = tpu.matmul %456, %457, %cst_121 {dimension_numbers = #tpu.dot_dimension_numbers<[1], [0], [0], [1], [0, 0, 1, 1], [], []>} : vector<32x8xbf16>, vector<8x32xbf16>, vector<32x32xf32> -> vector<32x32xf32>
      %459 = arith.truncf %452 : vector<32x8xf32> to vector<32x8xbf16>
      %460 = arith.truncf %410 : vector<8x32xf32> to vector<8x32xbf16>
      %cst_122 = arith.constant dense<0.000000e+00> : vector<32x32xf32>
      %461 = tpu.matmul %459, %460, %cst_122 {dimension_numbers = #tpu.dot_dimension_numbers<[1], [0], [0], [1], [0, 0, 1, 1], [], []>} : vector<32x8xbf16>, vector<8x32xbf16>, vector<32x32xf32> -> vector<32x32xf32>
      %462 = arith.addf %458, %461 : vector<32x32xf32>
      %463 = arith.truncf %429 : vector<32x32xf32> to vector<32x32xbf16>
      %464 = arith.truncf %452 : vector<32x8xf32> to vector<32x8xbf16>
      %cst_123 = arith.constant dense<0.000000e+00> : vector<32x8xf32>
      %465 = tpu.matmul %463, %464, %cst_123 {dimension_numbers = #tpu.dot_dimension_numbers<[1], [0], [0], [1], [0, 0, 1, 1], [], []>} : vector<32x32xbf16>, vector<32x8xbf16>, vector<32x8xf32> -> vector<32x8xf32>
      %466 = arith.truncf %465 : vector<32x8xf32> to vector<32x8xbf16>
      %467 = arith.truncf %411 : vector<8x32xf32> to vector<8x32xbf16>
      %cst_124 = arith.constant dense<0.000000e+00> : vector<32x32xf32>
      %468 = tpu.matmul %466, %467, %cst_124 {dimension_numbers = #tpu.dot_dimension_numbers<[1], [0], [0], [1], [0, 0, 1, 1], [], []>} : vector<32x8xbf16>, vector<8x32xbf16>, vector<32x32xf32> -> vector<32x32xf32>
      %469 = arith.addf %462, %468 : vector<32x32xf32>
      %470 = vector.broadcast %416 : vector<1x32xf32> to vector<32x32xf32>
      %471 = arith.addf %469, %470 : vector<32x32xf32>
      %cst_125 = arith.constant 5.000000e-01 : f32
      %472 = vector.broadcast %cst_125 : f32 to vector<32x32xf32>
      %473 = arith.mulf %472, %471 : vector<32x32xf32>
      %cst_126 = arith.constant 4.471500e-02 : f32
      %474 = vector.broadcast %cst_126 : f32 to vector<32x32xf32>
      %475 = arith.mulf %474, %471 : vector<32x32xf32>
      %476 = arith.mulf %475, %471 : vector<32x32xf32>
      %477 = arith.mulf %476, %471 : vector<32x32xf32>
      %478 = arith.addf %471, %477 : vector<32x32xf32>
      %cst_127 = arith.constant 0.797884583 : f32
      %479 = vector.broadcast %cst_127 : f32 to vector<32x32xf32>
      %480 = arith.mulf %479, %478 : vector<32x32xf32>
      %481 = math.tanh %480 : vector<32x32xf32>
      %cst_128 = arith.constant 1.000000e+00 : f32
      %482 = vector.broadcast %cst_128 : f32 to vector<32x32xf32>
      %483 = arith.addf %482, %481 : vector<32x32xf32>
      %484 = arith.mulf %473, %483 : vector<32x32xf32>
      %485 = arith.truncf %438 : vector<16x32xf32> to vector<16x32xbf16>
      %486 = arith.truncf %484 : vector<32x32xf32> to vector<32x32xbf16>
      %cst_129 = arith.constant dense<0.000000e+00> : vector<16x32xf32>
      %487 = tpu.matmul %485, %486, %cst_129 {dimension_numbers = #tpu.dot_dimension_numbers<[1], [0], [0], [1], [0, 0, 1, 1], [], []>} : vector<16x32xbf16>, vector<32x32xbf16>, vector<16x32xf32> -> vector<16x32xf32>
      %488 = arith.truncf %487 : vector<16x32xf32> to vector<16x32xbf16>
      %489 = arith.truncf %412 : vector<32x32xf32> to vector<32x32xbf16>
      %cst_130 = arith.constant dense<0.000000e+00> : vector<16x32xf32>
      %490 = tpu.matmul %488, %489, %cst_130 {dimension_numbers = #tpu.dot_dimension_numbers<[1], [0], [0], [1], [0, 0, 1, 1], [], []>} : vector<16x32xbf16>, vector<32x32xbf16>, vector<16x32xf32> -> vector<16x32xf32>
      %491 = arith.truncf %443 : vector<16x32xf32> to vector<16x32xbf16>
      %492 = arith.truncf %484 : vector<32x32xf32> to vector<32x32xbf16>
      %cst_131 = arith.constant dense<0.000000e+00> : vector<16x32xf32>
      %493 = tpu.matmul %491, %492, %cst_131 {dimension_numbers = #tpu.dot_dimension_numbers<[1], [0], [0], [1], [0, 0, 1, 1], [], []>} : vector<16x32xbf16>, vector<32x32xbf16>, vector<16x32xf32> -> vector<16x32xf32>
      %494 = arith.truncf %493 : vector<16x32xf32> to vector<16x32xbf16>
      %495 = arith.truncf %413 : vector<32x32xf32> to vector<32x32xbf16>
      %cst_132 = arith.constant dense<0.000000e+00> : vector<16x32xf32>
      %496 = tpu.matmul %494, %495, %cst_132 {dimension_numbers = #tpu.dot_dimension_numbers<[1], [0], [0], [1], [0, 0, 1, 1], [], []>} : vector<16x32xbf16>, vector<32x32xbf16>, vector<16x32xf32> -> vector<16x32xf32>
      %497 = arith.addf %490, %496 : vector<16x32xf32>
      %498 = arith.truncf %450 : vector<16x32xf32> to vector<16x32xbf16>
      %499 = arith.truncf %484 : vector<32x32xf32> to vector<32x32xbf16>
      %cst_133 = arith.constant dense<0.000000e+00> : vector<16x32xf32>
      %500 = tpu.matmul %498, %499, %cst_133 {dimension_numbers = #tpu.dot_dimension_numbers<[1], [0], [0], [1], [0, 0, 1, 1], [], []>} : vector<16x32xbf16>, vector<32x32xbf16>, vector<16x32xf32> -> vector<16x32xf32>
      %501 = arith.truncf %500 : vector<16x32xf32> to vector<16x32xbf16>
      %502 = arith.truncf %414 : vector<32x32xf32> to vector<32x32xbf16>
      %cst_134 = arith.constant dense<0.000000e+00> : vector<16x32xf32>
      %503 = tpu.matmul %501, %502, %cst_134 {dimension_numbers = #tpu.dot_dimension_numbers<[1], [0], [0], [1], [0, 0, 1, 1], [], []>} : vector<16x32xbf16>, vector<32x32xbf16>, vector<16x32xf32> -> vector<16x32xf32>
      %504 = arith.addf %497, %503 : vector<16x32xf32>
      %505 = vector.broadcast %417 : vector<1x32xf32> to vector<16x32xf32>
      %506 = arith.addf %504, %505 : vector<16x32xf32>
      %cst_135 = arith.constant 5.000000e-01 : f32
      %507 = vector.broadcast %cst_135 : f32 to vector<16x32xf32>
      %508 = arith.mulf %507, %506 : vector<16x32xf32>
      %cst_136 = arith.constant 4.471500e-02 : f32
      %509 = vector.broadcast %cst_136 : f32 to vector<16x32xf32>
      %510 = arith.mulf %509, %506 : vector<16x32xf32>
      %511 = arith.mulf %510, %506 : vector<16x32xf32>
      %512 = arith.mulf %511, %506 : vector<16x32xf32>
      %513 = arith.addf %506, %512 : vector<16x32xf32>
      %cst_137 = arith.constant 0.797884583 : f32
      %514 = vector.broadcast %cst_137 : f32 to vector<16x32xf32>
      %515 = arith.mulf %514, %513 : vector<16x32xf32>
      %516 = math.tanh %515 : vector<16x32xf32>
      %cst_138 = arith.constant 1.000000e+00 : f32
      %517 = vector.broadcast %cst_138 : f32 to vector<16x32xf32>
      %518 = arith.addf %517, %516 : vector<16x32xf32>
      %519 = arith.mulf %508, %518 : vector<16x32xf32>
      %520 = arith.addf %519, %415 : vector<16x32xf32>
      %c0_139 = arith.constant 0 : index
      %c0_140 = arith.constant 0 : index
      %c0_141 = arith.constant 0 : index
      %521 = vector.load %arg9[%c0_139, %c0_140, %c0_141] : memref<2x16x32xf32, #tpu.memory_space<vmem>>, vector<1x16x32xf32>
      %522 = vector.shape_cast %521 : vector<1x16x32xf32> to vector<16x32xf32>
      %523 = vector.shape_cast %520 : vector<16x32xf32> to vector<1x16x32xf32>
      tpu.vector_store %arg9[%c0_139, %c0_140, %c0_141], %523 {strides = array<i32>} : memref<2x16x32xf32, #tpu.memory_space<vmem>>, vector<1x16x32xf32>,
      %c1_142 = arith.constant 1 : index
      %c0_143 = arith.constant 0 : index
      %c0_144 = arith.constant 0 : index
      %524 = vector.load %arg1[%c1_142, %c0_143, %c0_144] : memref<2x32x8xf32, #tpu.memory_space<vmem>>, vector<1x32x8xf32>
      %525 = vector.shape_cast %524 : vector<1x32x8xf32> to vector<32x8xf32>
      %526 = arith.truncf %424 : vector<32x32xf32> to vector<32x32xbf16>
      %527 = arith.truncf %525 : vector<32x8xf32> to vector<32x8xbf16>
      %cst_145 = arith.constant dense<0.000000e+00> : vector<32x8xf32>
      %528 = tpu.matmul %526, %527, %cst_145 {dimension_numbers = #tpu.dot_dimension_numbers<[1], [0], [0], [1], [0, 0, 1, 1], [], []>} : vector<32x32xbf16>, vector<32x8xbf16>, vector<32x8xf32> -> vector<32x8xf32>
      %529 = arith.truncf %528 : vector<32x8xf32> to vector<32x8xbf16>
      %530 = arith.truncf %409 : vector<8x32xf32> to vector<8x32xbf16>
      %cst_146 = arith.constant dense<0.000000e+00> : vector<32x32xf32>
      %531 = tpu.matmul %529, %530, %cst_146 {dimension_numbers = #tpu.dot_dimension_numbers<[1], [0], [0], [1], [0, 0, 1, 1], [], []>} : vector<32x8xbf16>, vector<8x32xbf16>, vector<32x32xf32> -> vector<32x32xf32>
      %532 = arith.truncf %525 : vector<32x8xf32> to vector<32x8xbf16>
      %533 = arith.truncf %410 : vector<8x32xf32> to vector<8x32xbf16>
      %cst_147 = arith.constant dense<0.000000e+00> : vector<32x32xf32>
      %534 = tpu.matmul %532, %533, %cst_147 {dimension_numbers = #tpu.dot_dimension_numbers<[1], [0], [0], [1], [0, 0, 1, 1], [], []>} : vector<32x8xbf16>, vector<8x32xbf16>, vector<32x32xf32> -> vector<32x32xf32>
      %535 = arith.addf %531, %534 : vector<32x32xf32>
      %536 = arith.truncf %429 : vector<32x32xf32> to vector<32x32xbf16>
      %537 = arith.truncf %525 : vector<32x8xf32> to vector<32x8xbf16>
      %cst_148 = arith.constant dense<0.000000e+00> : vector<32x8xf32>
      %538 = tpu.matmul %536, %537, %cst_148 {dimension_numbers = #tpu.dot_dimension_numbers<[1], [0], [0], [1], [0, 0, 1, 1], [], []>} : vector<32x32xbf16>, vector<32x8xbf16>, vector<32x8xf32> -> vector<32x8xf32>
      %539 = arith.truncf %538 : vector<32x8xf32> to vector<32x8xbf16>
      %540 = arith.truncf %411 : vector<8x32xf32> to vector<8x32xbf16>
      %cst_149 = arith.constant dense<0.000000e+00> : vector<32x32xf32>
      %541 = tpu.matmul %539, %540, %cst_149 {dimension_numbers = #tpu.dot_dimension_numbers<[1], [0], [0], [1], [0, 0, 1, 1], [], []>} : vector<32x8xbf16>, vector<8x32xbf16>, vector<32x32xf32> -> vector<32x32xf32>
      %542 = arith.addf %535, %541 : vector<32x32xf32>
      %543 = vector.broadcast %416 : vector<1x32xf32> to vector<32x32xf32>
      %544 = arith.addf %542, %543 : vector<32x32xf32>
      %cst_150 = arith.constant 5.000000e-01 : f32
      %545 = vector.broadcast %cst_150 : f32 to vector<32x32xf32>
      %546 = arith.mulf %545, %544 : vector<32x32xf32>
      %cst_151 = arith.constant 4.471500e-02 : f32
      %547 = vector.broadcast %cst_151 : f32 to vector<32x32xf32>
      %548 = arith.mulf %547, %544 : vector<32x32xf32>
      %549 = arith.mulf %548, %544 : vector<32x32xf32>
      %550 = arith.mulf %549, %544 : vector<32x32xf32>
      %551 = arith.addf %544, %550 : vector<32x32xf32>
      %cst_152 = arith.constant 0.797884583 : f32
      %552 = vector.broadcast %cst_152 : f32 to vector<32x32xf32>
      %553 = arith.mulf %552, %551 : vector<32x32xf32>
      %554 = math.tanh %553 : vector<32x32xf32>
      %cst_153 = arith.constant 1.000000e+00 : f32
      %555 = vector.broadcast %cst_153 : f32 to vector<32x32xf32>
      %556 = arith.addf %555, %554 : vector<32x32xf32>
      %557 = arith.mulf %546, %556 : vector<32x32xf32>
      %558 = arith.truncf %438 : vector<16x32xf32> to vector<16x32xbf16>
      %559 = arith.truncf %557 : vector<32x32xf32> to vector<32x32xbf16>
      %cst_154 = arith.constant dense<0.000000e+00> : vector<16x32xf32>
      %560 = tpu.matmul %558, %559, %cst_154 {dimension_numbers = #tpu.dot_dimension_numbers<[1], [0], [0], [1], [0, 0, 1, 1], [], []>} : vector<16x32xbf16>, vector<32x32xbf16>, vector<16x32xf32> -> vector<16x32xf32>
      %561 = arith.truncf %560 : vector<16x32xf32> to vector<16x32xbf16>
      %562 = arith.truncf %412 : vector<32x32xf32> to vector<32x32xbf16>
      %cst_155 = arith.constant dense<0.000000e+00> : vector<16x32xf32>
      %563 = tpu.matmul %561, %562, %cst_155 {dimension_numbers = #tpu.dot_dimension_numbers<[1], [0], [0], [1], [0, 0, 1, 1], [], []>} : vector<16x32xbf16>, vector<32x32xbf16>, vector<16x32xf32> -> vector<16x32xf32>
      %564 = arith.truncf %443 : vector<16x32xf32> to vector<16x32xbf16>
      %565 = arith.truncf %557 : vector<32x32xf32> to vector<32x32xbf16>
      %cst_156 = arith.constant dense<0.000000e+00> : vector<16x32xf32>
      %566 = tpu.matmul %564, %565, %cst_156 {dimension_numbers = #tpu.dot_dimension_numbers<[1], [0], [0], [1], [0, 0, 1, 1], [], []>} : vector<16x32xbf16>, vector<32x32xbf16>, vector<16x32xf32> -> vector<16x32xf32>
      %567 = arith.truncf %566 : vector<16x32xf32> to vector<16x32xbf16>
      %568 = arith.truncf %413 : vector<32x32xf32> to vector<32x32xbf16>
      %cst_157 = arith.constant dense<0.000000e+00> : vector<16x32xf32>
      %569 = tpu.matmul %567, %568, %cst_157 {dimension_numbers = #tpu.dot_dimension_numbers<[1], [0], [0], [1], [0, 0, 1, 1], [], []>} : vector<16x32xbf16>, vector<32x32xbf16>, vector<16x32xf32> -> vector<16x32xf32>
      %570 = arith.addf %563, %569 : vector<16x32xf32>
      %571 = arith.truncf %450 : vector<16x32xf32> to vector<16x32xbf16>
      %572 = arith.truncf %557 : vector<32x32xf32> to vector<32x32xbf16>
      %cst_158 = arith.constant dense<0.000000e+00> : vector<16x32xf32>
      %573 = tpu.matmul %571, %572, %cst_158 {dimension_numbers = #tpu.dot_dimension_numbers<[1], [0], [0], [1], [0, 0, 1, 1], [], []>} : vector<16x32xbf16>, vector<32x32xbf16>, vector<16x32xf32> -> vector<16x32xf32>
      %574 = arith.truncf %573 : vector<16x32xf32> to vector<16x32xbf16>
      %575 = arith.truncf %414 : vector<32x32xf32> to vector<32x32xbf16>
      %cst_159 = arith.constant dense<0.000000e+00> : vector<16x32xf32>
      %576 = tpu.matmul %574, %575, %cst_159 {dimension_numbers = #tpu.dot_dimension_numbers<[1], [0], [0], [1], [0, 0, 1, 1], [], []>} : vector<16x32xbf16>, vector<32x32xbf16>, vector<16x32xf32> -> vector<16x32xf32>
      %577 = arith.addf %570, %576 : vector<16x32xf32>
      %578 = vector.broadcast %417 : vector<1x32xf32> to vector<16x32xf32>
      %579 = arith.addf %577, %578 : vector<16x32xf32>
      %cst_160 = arith.constant 5.000000e-01 : f32
      %580 = vector.broadcast %cst_160 : f32 to vector<16x32xf32>
      %581 = arith.mulf %580, %579 : vector<16x32xf32>
      %cst_161 = arith.constant 4.471500e-02 : f32
      %582 = vector.broadcast %cst_161 : f32 to vector<16x32xf32>
      %583 = arith.mulf %582, %579 : vector<16x32xf32>
      %584 = arith.mulf %583, %579 : vector<16x32xf32>
      %585 = arith.mulf %584, %579 : vector<16x32xf32>
      %586 = arith.addf %579, %585 : vector<16x32xf32>
      %cst_162 = arith.constant 0.797884583 : f32
      %587 = vector.broadcast %cst_162 : f32 to vector<16x32xf32>
      %588 = arith.mulf %587, %586 : vector<16x32xf32>
      %589 = math.tanh %588 : vector<16x32xf32>
      %cst_163 = arith.constant 1.000000e+00 : f32
      %590 = vector.broadcast %cst_163 : f32 to vector<16x32xf32>
      %591 = arith.addf %590, %589 : vector<16x32xf32>
      %592 = arith.mulf %581, %591 : vector<16x32xf32>
      %593 = arith.addf %592, %415 : vector<16x32xf32>
      %c1_164 = arith.constant 1 : index
      %c0_165 = arith.constant 0 : index
      %c0_166 = arith.constant 0 : index
      %594 = vector.load %arg9[%c1_164, %c0_165, %c0_166] : memref<2x16x32xf32, #tpu.memory_space<vmem>>, vector<1x16x32xf32>
      %595 = vector.shape_cast %594 : vector<1x16x32xf32> to vector<16x32xf32>
      %596 = vector.shape_cast %593 : vector<16x32xf32> to vector<1x16x32xf32>
      tpu.vector_store %arg9[%c1_164, %c0_165, %c0_166], %596 {strides = array<i32>} : memref<2x16x32xf32, #tpu.memory_space<vmem>>, vector<1x16x32xf32>,
    } else {
    }
    %c0_3 = arith.constant 0 : index
    %c0_4 = arith.constant 0 : index
    %c0_5 = arith.constant 0 : index
    %5 = vector.load %arg3[%c0_3, %c0_4, %c0_5] : memref<1x32x96xf32, #tpu.memory_space<vmem>>, vector<1x32x96xf32>
    %6 = vector.shape_cast %5 : vector<1x32x96xf32> to vector<32x96xf32>
    %c0_6 = arith.constant 0 : index
    %c0_7 = arith.constant 0 : index
    %c0_8 = arith.constant 0 : index
    %7 = vector.load %arg4[%c0_6, %c0_7, %c0_8] : memref<1x32x32xf32, #tpu.memory_space<vmem>>, vector<1x32x32xf32>
    %8 = vector.shape_cast %7 : vector<1x32x32xf32> to vector<32x32xf32>
    %c0_9 = arith.constant 0 : index
    %c0_10 = arith.constant 0 : index
    %c0_11 = arith.constant 0 : index
    %9 = vector.load %arg5[%c0_9, %c0_10, %c0_11] : memref<1x32x64xf32, #tpu.memory_space<vmem>>, vector<1x32x64xf32>
    %10 = vector.shape_cast %9 : vector<1x32x64xf32> to vector<32x64xf32>
    %c0_12 = arith.constant 0 : index
    %c0_13 = arith.constant 0 : index
    %c0_14 = arith.constant 0 : index
    %11 = vector.load %arg6[%c0_12, %c0_13, %c0_14] : memref<1x64x32xf32, #tpu.memory_space<vmem>>, vector<1x64x32xf32>
    %12 = vector.shape_cast %11 : vector<1x64x32xf32> to vector<64x32xf32>
    %c0_15 = arith.constant 0 : index
    %c0_16 = arith.constant 0 : index
    %c0_17 = arith.constant 0 : index
    %13 = vector.load %arg7[%c0_15, %c0_16, %c0_17] : memref<1x8x64xf32, #tpu.memory_space<vmem>>, vector<1x8x64xf32>
    %14 = vector.shape_cast %13 : vector<1x8x64xf32> to vector<8x64xf32>
    %c0_18 = arith.constant 0 : index
    %c0_19 = arith.constant 0 : index
    %c0_20 = arith.constant 0 : index
    %15 = vector.load %arg8[%c0_18, %c0_19, %c0_20] : memref<1x96x1xf32, #tpu.memory_space<vmem>>, vector<1x96x1xf32>
    %16 = vector.shape_cast %15 : vector<1x96x1xf32> to vector<96x1xf32>
    %c0_21 = arith.constant 0 : index
    %c0_22 = arith.constant 0 : index
    %c0_23 = arith.constant 0 : index
    %17 = vector.load %arg9[%c0_21, %c0_22, %c0_23] : memref<2x16x32xf32, #tpu.memory_space<vmem>>, vector<1x16x32xf32>
    %18 = vector.shape_cast %17 : vector<1x16x32xf32> to vector<16x32xf32>
    %19 = vector.extract_strided_slice %14 {offsets = [0, 0], sizes = [1, 32], strides = [1, 1]} : vector<8x64xf32> to vector<1x32xf32>
    %20 = vector.extract_strided_slice %14 {offsets = [1, 0], sizes = [1, 32], strides = [1, 1]} : vector<8x64xf32> to vector<1x32xf32>
    %cst = arith.constant dense<0.000000e+00> : vector<16xf32>
    %21 = vector.multi_reduction <add>, %18, %cst [1] : vector<16x32xf32> to vector<16xf32>
    %22 = vector.shape_cast %21 : vector<16xf32> to vector<16x1xf32>
    %cst_24 = arith.constant 3.200000e+01 : f32
    %23 = vector.broadcast %cst_24 : f32 to vector<16x1xf32>
    %24 = arith.divf %22, %23 : vector<16x1xf32>
    %25 = vector.broadcast %24 : vector<16x1xf32> to vector<16x32xf32>
    %26 = arith.subf %18, %25 : vector<16x32xf32>
    %27 = arith.mulf %26, %26 : vector<16x32xf32>
    %cst_25 = arith.constant dense<0.000000e+00> : vector<16xf32>
    %28 = vector.multi_reduction <add>, %27, %cst_25 [1] : vector<16x32xf32> to vector<16xf32>
    %29 = vector.shape_cast %28 : vector<16xf32> to vector<16x1xf32>
    %cst_26 = arith.constant 3.200000e+01 : f32
    %30 = vector.broadcast %cst_26 : f32 to vector<16x1xf32>
    %31 = arith.divf %29, %30 : vector<16x1xf32>
    %32 = vector.broadcast %24 : vector<16x1xf32> to vector<16x32xf32>
    %33 = arith.subf %18, %32 : vector<16x32xf32>
    %cst_27 = arith.constant 9.99999974E-6 : f32
    %34 = vector.broadcast %cst_27 : f32 to vector<16x1xf32>
    %35 = arith.addf %31, %34 : vector<16x1xf32>
    %36 = math.rsqrt %35 : vector<16x1xf32>
    %37 = vector.broadcast %36 : vector<16x1xf32> to vector<16x32xf32>
    %38 = arith.mulf %33, %37 : vector<16x32xf32>
    %39 = vector.broadcast %19 : vector<1x32xf32> to vector<16x32xf32>
    %40 = arith.mulf %38, %39 : vector<16x32xf32>
    %41 = vector.broadcast %20 : vector<1x32xf32> to vector<16x32xf32>
    %42 = arith.addf %40, %41 : vector<16x32xf32>
    %43 = arith.truncf %6 : vector<32x96xf32> to vector<32x96xbf16>
    %44 = arith.truncf %42 : vector<16x32xf32> to vector<16x32xbf16>
    %cst_28 = arith.constant dense<0.000000e+00> : vector<96x16xf32>
    %45 = tpu.matmul %43, %44, %cst_28 {dimension_numbers = #tpu.dot_dimension_numbers<[0], [1], [1], [0], [0, 1, 1, 0], [], []>} : vector<32x96xbf16>, vector<16x32xbf16>, vector<96x16xf32> -> vector<96x16xf32>
    %46 = vector.broadcast %16 : vector<96x1xf32> to vector<96x16xf32>
    %47 = arith.addf %45, %46 : vector<96x16xf32>
    %48 = vector.extract_strided_slice %47 {offsets = [0, 0], sizes = [32, 16], strides = [1, 1]} : vector<96x16xf32> to vector<32x16xf32>
    %49 = vector.extract_strided_slice %47 {offsets = [32, 0], sizes = [32, 16], strides = [1, 1]} : vector<96x16xf32> to vector<32x16xf32>
    %50 = vector.extract_strided_slice %47 {offsets = [64, 0], sizes = [32, 16], strides = [1, 1]} : vector<96x16xf32> to vector<32x16xf32>
    %51 = vector.extract_strided_slice %48 {offsets = [0, 0], sizes = [8, 16], strides = [1, 1]} : vector<32x16xf32> to vector<8x16xf32>
    %52 = vector.extract_strided_slice %49 {offsets = [0, 0], sizes = [8, 16], strides = [1, 1]} : vector<32x16xf32> to vector<8x16xf32>
    %53 = vector.extract_strided_slice %50 {offsets = [0, 0], sizes = [8, 16], strides = [1, 1]} : vector<32x16xf32> to vector<8x16xf32>
    %54 = arith.truncf %51 : vector<8x16xf32> to vector<8x16xbf16>
    %55 = arith.truncf %52 : vector<8x16xf32> to vector<8x16xbf16>
    %cst_29 = arith.constant dense<0.000000e+00> : vector<16x16xf32>
    %56 = tpu.matmul %54, %55, %cst_29 {dimension_numbers = #tpu.dot_dimension_numbers<[0], [0], [1], [1], [0, 1, 1, 1], [], []>} : vector<8x16xbf16>, vector<8x16xbf16>, vector<16x16xf32> -> vector<16x16xf32>
    %cst_30 = arith.constant 0.353553385 : f32
    %57 = vector.broadcast %cst_30 : f32 to vector<16x16xf32>
    %58 = arith.mulf %56, %57 : vector<16x16xf32>
    %cst_31 = arith.constant dense<0xFF800000> : vector<16xf32>
    %59 = vector.multi_reduction <maximumf>, %58, %cst_31 [1] : vector<16x16xf32> to vector<16xf32>
    %60 = vector.shape_cast %59 : vector<16xf32> to vector<16x1xf32>
    %61 = vector.broadcast %60 : vector<16x1xf32> to vector<16x16xf32>
    %62 = arith.subf %58, %61 : vector<16x16xf32>
    %63 = math.exp %62 : vector<16x16xf32>
    %cst_32 = arith.constant dense<0.000000e+00> : vector<16xf32>
    %64 = vector.multi_reduction <add>, %63, %cst_32 [1] : vector<16x16xf32> to vector<16xf32>
    %65 = vector.shape_cast %64 : vector<16xf32> to vector<16x1xf32>
    %66 = tpu.reciprocal %65 {approx = true} : vector<16x1xf32> -> vector<16x1xf32>
    %67 = vector.broadcast %66 : vector<16x1xf32> to vector<16x16xf32>
    %68 = arith.mulf %63, %67 : vector<16x16xf32>
    %69 = arith.truncf %53 : vector<8x16xf32> to vector<8x16xbf16>
    %70 = arith.truncf %68 : vector<16x16xf32> to vector<16x16xbf16>
    %cst_33 = arith.constant dense<0.000000e+00> : vector<8x16xf32>
    %71 = tpu.matmul %69, %70, %cst_33 {dimension_numbers = #tpu.dot_dimension_numbers<[1], [1], [0], [0], [0, 0, 1, 0], [], []>} : vector<8x16xbf16>, vector<16x16xbf16>, vector<8x16xf32> -> vector<8x16xf32>
    %72 = vector.extract_strided_slice %8 {offsets = [0, 0], sizes = [8, 32], strides = [1, 1]} : vector<32x32xf32> to vector<8x32xf32>
    %73 = arith.truncf %71 : vector<8x16xf32> to vector<8x16xbf16>
    %74 = arith.truncf %72 : vector<8x32xf32> to vector<8x32xbf16>
    %cst_34 = arith.constant dense<0.000000e+00> : vector<16x32xf32>
    %75 = tpu.matmul %73, %74, %cst_34 {dimension_numbers = #tpu.dot_dimension_numbers<[0], [0], [1], [1], [0, 1, 1, 1], [], []>} : vector<8x16xbf16>, vector<8x32xbf16>, vector<16x32xf32> -> vector<16x32xf32>
    %76 = vector.extract_strided_slice %48 {offsets = [8, 0], sizes = [8, 16], strides = [1, 1]} : vector<32x16xf32> to vector<8x16xf32>
    %77 = vector.extract_strided_slice %49 {offsets = [8, 0], sizes = [8, 16], strides = [1, 1]} : vector<32x16xf32> to vector<8x16xf32>
    %78 = vector.extract_strided_slice %50 {offsets = [8, 0], sizes = [8, 16], strides = [1, 1]} : vector<32x16xf32> to vector<8x16xf32>
    %79 = arith.truncf %76 : vector<8x16xf32> to vector<8x16xbf16>
    %80 = arith.truncf %77 : vector<8x16xf32> to vector<8x16xbf16>
    %cst_35 = arith.constant dense<0.000000e+00> : vector<16x16xf32>
    %81 = tpu.matmul %79, %80, %cst_35 {dimension_numbers = #tpu.dot_dimension_numbers<[0], [0], [1], [1], [0, 1, 1, 1], [], []>} : vector<8x16xbf16>, vector<8x16xbf16>, vector<16x16xf32> -> vector<16x16xf32>
    %cst_36 = arith.constant 0.353553385 : f32
    %82 = vector.broadcast %cst_36 : f32 to vector<16x16xf32>
    %83 = arith.mulf %81, %82 : vector<16x16xf32>
    %cst_37 = arith.constant dense<0xFF800000> : vector<16xf32>
    %84 = vector.multi_reduction <maximumf>, %83, %cst_37 [1] : vector<16x16xf32> to vector<16xf32>
    %85 = vector.shape_cast %84 : vector<16xf32> to vector<16x1xf32>
    %86 = vector.broadcast %85 : vector<16x1xf32> to vector<16x16xf32>
    %87 = arith.subf %83, %86 : vector<16x16xf32>
    %88 = math.exp %87 : vector<16x16xf32>
    %cst_38 = arith.constant dense<0.000000e+00> : vector<16xf32>
    %89 = vector.multi_reduction <add>, %88, %cst_38 [1] : vector<16x16xf32> to vector<16xf32>
    %90 = vector.shape_cast %89 : vector<16xf32> to vector<16x1xf32>
    %91 = tpu.reciprocal %90 {approx = true} : vector<16x1xf32> -> vector<16x1xf32>
    %92 = vector.broadcast %91 : vector<16x1xf32> to vector<16x16xf32>
    %93 = arith.mulf %88, %92 : vector<16x16xf32>
    %94 = arith.truncf %78 : vector<8x16xf32> to vector<8x16xbf16>
    %95 = arith.truncf %93 : vector<16x16xf32> to vector<16x16xbf16>
    %cst_39 = arith.constant dense<0.000000e+00> : vector<8x16xf32>
    %96 = tpu.matmul %94, %95, %cst_39 {dimension_numbers = #tpu.dot_dimension_numbers<[1], [1], [0], [0], [0, 0, 1, 0], [], []>} : vector<8x16xbf16>, vector<16x16xbf16>, vector<8x16xf32> -> vector<8x16xf32>
    %97 = vector.extract_strided_slice %8 {offsets = [8, 0], sizes = [8, 32], strides = [1, 1]} : vector<32x32xf32> to vector<8x32xf32>
    %98 = arith.truncf %96 : vector<8x16xf32> to vector<8x16xbf16>
    %99 = arith.truncf %97 : vector<8x32xf32> to vector<8x32xbf16>
    %cst_40 = arith.constant dense<0.000000e+00> : vector<16x32xf32>
    %100 = tpu.matmul %98, %99, %cst_40 {dimension_numbers = #tpu.dot_dimension_numbers<[0], [0], [1], [1], [0, 1, 1, 1], [], []>} : vector<8x16xbf16>, vector<8x32xbf16>, vector<16x32xf32> -> vector<16x32xf32>
    %101 = arith.addf %75, %100 : vector<16x32xf32>
    %102 = vector.extract_strided_slice %48 {offsets = [16, 0], sizes = [8, 16], strides = [1, 1]} : vector<32x16xf32> to vector<8x16xf32>
    %103 = vector.extract_strided_slice %49 {offsets = [16, 0], sizes = [8, 16], strides = [1, 1]} : vector<32x16xf32> to vector<8x16xf32>
    %104 = vector.extract_strided_slice %50 {offsets = [16, 0], sizes = [8, 16], strides = [1, 1]} : vector<32x16xf32> to vector<8x16xf32>
    %105 = arith.truncf %102 : vector<8x16xf32> to vector<8x16xbf16>
    %106 = arith.truncf %103 : vector<8x16xf32> to vector<8x16xbf16>
    %cst_41 = arith.constant dense<0.000000e+00> : vector<16x16xf32>
    %107 = tpu.matmul %105, %106, %cst_41 {dimension_numbers = #tpu.dot_dimension_numbers<[0], [0], [1], [1], [0, 1, 1, 1], [], []>} : vector<8x16xbf16>, vector<8x16xbf16>, vector<16x16xf32> -> vector<16x16xf32>
    %cst_42 = arith.constant 0.353553385 : f32
    %108 = vector.broadcast %cst_42 : f32 to vector<16x16xf32>
    %109 = arith.mulf %107, %108 : vector<16x16xf32>
    %cst_43 = arith.constant dense<0xFF800000> : vector<16xf32>
    %110 = vector.multi_reduction <maximumf>, %109, %cst_43 [1] : vector<16x16xf32> to vector<16xf32>
    %111 = vector.shape_cast %110 : vector<16xf32> to vector<16x1xf32>
    %112 = vector.broadcast %111 : vector<16x1xf32> to vector<16x16xf32>
    %113 = arith.subf %109, %112 : vector<16x16xf32>
    %114 = math.exp %113 : vector<16x16xf32>
    %cst_44 = arith.constant dense<0.000000e+00> : vector<16xf32>
    %115 = vector.multi_reduction <add>, %114, %cst_44 [1] : vector<16x16xf32> to vector<16xf32>
    %116 = vector.shape_cast %115 : vector<16xf32> to vector<16x1xf32>
    %117 = tpu.reciprocal %116 {approx = true} : vector<16x1xf32> -> vector<16x1xf32>
    %118 = vector.broadcast %117 : vector<16x1xf32> to vector<16x16xf32>
    %119 = arith.mulf %114, %118 : vector<16x16xf32>
    %120 = arith.truncf %104 : vector<8x16xf32> to vector<8x16xbf16>
    %121 = arith.truncf %119 : vector<16x16xf32> to vector<16x16xbf16>
    %cst_45 = arith.constant dense<0.000000e+00> : vector<8x16xf32>
    %122 = tpu.matmul %120, %121, %cst_45 {dimension_numbers = #tpu.dot_dimension_numbers<[1], [1], [0], [0], [0, 0, 1, 0], [], []>} : vector<8x16xbf16>, vector<16x16xbf16>, vector<8x16xf32> -> vector<8x16xf32>
    %123 = vector.extract_strided_slice %8 {offsets = [16, 0], sizes = [8, 32], strides = [1, 1]} : vector<32x32xf32> to vector<8x32xf32>
    %124 = arith.truncf %122 : vector<8x16xf32> to vector<8x16xbf16>
    %125 = arith.truncf %123 : vector<8x32xf32> to vector<8x32xbf16>
    %cst_46 = arith.constant dense<0.000000e+00> : vector<16x32xf32>
    %126 = tpu.matmul %124, %125, %cst_46 {dimension_numbers = #tpu.dot_dimension_numbers<[0], [0], [1], [1], [0, 1, 1, 1], [], []>} : vector<8x16xbf16>, vector<8x32xbf16>, vector<16x32xf32> -> vector<16x32xf32>
    %127 = arith.addf %101, %126 : vector<16x32xf32>
    %128 = vector.extract_strided_slice %48 {offsets = [24, 0], sizes = [8, 16], strides = [1, 1]} : vector<32x16xf32> to vector<8x16xf32>
    %129 = vector.extract_strided_slice %49 {offsets = [24, 0], sizes = [8, 16], strides = [1, 1]} : vector<32x16xf32> to vector<8x16xf32>
    %130 = vector.extract_strided_slice %50 {offsets = [24, 0], sizes = [8, 16], strides = [1, 1]} : vector<32x16xf32> to vector<8x16xf32>
    %131 = arith.truncf %128 : vector<8x16xf32> to vector<8x16xbf16>
    %132 = arith.truncf %129 : vector<8x16xf32> to vector<8x16xbf16>
    %cst_47 = arith.constant dense<0.000000e+00> : vector<16x16xf32>
    %133 = tpu.matmul %131, %132, %cst_47 {dimension_numbers = #tpu.dot_dimension_numbers<[0], [0], [1], [1], [0, 1, 1, 1], [], []>} : vector<8x16xbf16>, vector<8x16xbf16>, vector<16x16xf32> -> vector<16x16xf32>
    %cst_48 = arith.constant 0.353553385 : f32
    %134 = vector.broadcast %cst_48 : f32 to vector<16x16xf32>
    %135 = arith.mulf %133, %134 : vector<16x16xf32>
    %cst_49 = arith.constant dense<0xFF800000> : vector<16xf32>
    %136 = vector.multi_reduction <maximumf>, %135, %cst_49 [1] : vector<16x16xf32> to vector<16xf32>
    %137 = vector.shape_cast %136 : vector<16xf32> to vector<16x1xf32>
    %138 = vector.broadcast %137 : vector<16x1xf32> to vector<16x16xf32>
    %139 = arith.subf %135, %138 : vector<16x16xf32>
    %140 = math.exp %139 : vector<16x16xf32>
    %cst_50 = arith.constant dense<0.000000e+00> : vector<16xf32>
    %141 = vector.multi_reduction <add>, %140, %cst_50 [1] : vector<16x16xf32> to vector<16xf32>
    %142 = vector.shape_cast %141 : vector<16xf32> to vector<16x1xf32>
    %143 = tpu.reciprocal %142 {approx = true} : vector<16x1xf32> -> vector<16x1xf32>
    %144 = vector.broadcast %143 : vector<16x1xf32> to vector<16x16xf32>
    %145 = arith.mulf %140, %144 : vector<16x16xf32>
    %146 = arith.truncf %130 : vector<8x16xf32> to vector<8x16xbf16>
    %147 = arith.truncf %145 : vector<16x16xf32> to vector<16x16xbf16>
    %cst_51 = arith.constant dense<0.000000e+00> : vector<8x16xf32>
    %148 = tpu.matmul %146, %147, %cst_51 {dimension_numbers = #tpu.dot_dimension_numbers<[1], [1], [0], [0], [0, 0, 1, 0], [], []>} : vector<8x16xbf16>, vector<16x16xbf16>, vector<8x16xf32> -> vector<8x16xf32>
    %149 = vector.extract_strided_slice %8 {offsets = [24, 0], sizes = [8, 32], strides = [1, 1]} : vector<32x32xf32> to vector<8x32xf32>
    %150 = arith.truncf %148 : vector<8x16xf32> to vector<8x16xbf16>
    %151 = arith.truncf %149 : vector<8x32xf32> to vector<8x32xbf16>
    %cst_52 = arith.constant dense<0.000000e+00> : vector<16x32xf32>
    %152 = tpu.matmul %150, %151, %cst_52 {dimension_numbers = #tpu.dot_dimension_numbers<[0], [0], [1], [1], [0, 1, 1, 1], [], []>} : vector<8x16xbf16>, vector<8x32xbf16>, vector<16x32xf32> -> vector<16x32xf32>
    %153 = arith.addf %127, %152 : vector<16x32xf32>
    %154 = arith.addf %18, %153 : vector<16x32xf32>
    %155 = vector.extract_strided_slice %14 {offsets = [4, 0], sizes = [1, 32], strides = [1, 1]} : vector<8x64xf32> to vector<1x32xf32>
    %156 = vector.broadcast %155 : vector<1x32xf32> to vector<16x32xf32>
    %157 = arith.addf %154, %156 : vector<16x32xf32>
    %158 = vector.extract_strided_slice %14 {offsets = [2, 0], sizes = [1, 32], strides = [1, 1]} : vector<8x64xf32> to vector<1x32xf32>
    %159 = vector.extract_strided_slice %14 {offsets = [3, 0], sizes = [1, 32], strides = [1, 1]} : vector<8x64xf32> to vector<1x32xf32>
    %cst_53 = arith.constant dense<0.000000e+00> : vector<16xf32>
    %160 = vector.multi_reduction <add>, %157, %cst_53 [1] : vector<16x32xf32> to vector<16xf32>
    %161 = vector.shape_cast %160 : vector<16xf32> to vector<16x1xf32>
    %cst_54 = arith.constant 3.200000e+01 : f32
    %162 = vector.broadcast %cst_54 : f32 to vector<16x1xf32>
    %163 = arith.divf %161, %162 : vector<16x1xf32>
    %164 = vector.broadcast %163 : vector<16x1xf32> to vector<16x32xf32>
    %165 = arith.subf %157, %164 : vector<16x32xf32>
    %166 = arith.mulf %165, %165 : vector<16x32xf32>
    %cst_55 = arith.constant dense<0.000000e+00> : vector<16xf32>
    %167 = vector.multi_reduction <add>, %166, %cst_55 [1] : vector<16x32xf32> to vector<16xf32>
    %168 = vector.shape_cast %167 : vector<16xf32> to vector<16x1xf32>
    %cst_56 = arith.constant 3.200000e+01 : f32
    %169 = vector.broadcast %cst_56 : f32 to vector<16x1xf32>
    %170 = arith.divf %168, %169 : vector<16x1xf32>
    %171 = vector.broadcast %163 : vector<16x1xf32> to vector<16x32xf32>
    %172 = arith.subf %157, %171 : vector<16x32xf32>
    %cst_57 = arith.constant 9.99999974E-6 : f32
    %173 = vector.broadcast %cst_57 : f32 to vector<16x1xf32>
    %174 = arith.addf %170, %173 : vector<16x1xf32>
    %175 = math.rsqrt %174 : vector<16x1xf32>
    %176 = vector.broadcast %175 : vector<16x1xf32> to vector<16x32xf32>
    %177 = arith.mulf %172, %176 : vector<16x32xf32>
    %178 = vector.broadcast %158 : vector<1x32xf32> to vector<16x32xf32>
    %179 = arith.mulf %177, %178 : vector<16x32xf32>
    %180 = vector.broadcast %159 : vector<1x32xf32> to vector<16x32xf32>
    %181 = arith.addf %179, %180 : vector<16x32xf32>
    %182 = arith.truncf %181 : vector<16x32xf32> to vector<16x32xbf16>
    %183 = arith.truncf %10 : vector<32x64xf32> to vector<32x64xbf16>
    %cst_58 = arith.constant dense<0.000000e+00> : vector<16x64xf32>
    %184 = tpu.matmul %182, %183, %cst_58 {dimension_numbers = #tpu.dot_dimension_numbers<[1], [0], [0], [1], [0, 0, 1, 1], [], []>} : vector<16x32xbf16>, vector<32x64xbf16>, vector<16x64xf32> -> vector<16x64xf32>
    %185 = vector.extract_strided_slice %14 {offsets = [5, 0], sizes = [1, 64], strides = [1, 1]} : vector<8x64xf32> to vector<1x64xf32>
    %186 = vector.broadcast %185 : vector<1x64xf32> to vector<16x64xf32>
    %187 = arith.addf %184, %186 : vector<16x64xf32>
    %cst_59 = arith.constant 5.000000e-01 : f32
    %188 = vector.broadcast %cst_59 : f32 to vector<16x64xf32>
    %189 = arith.mulf %188, %187 : vector<16x64xf32>
    %cst_60 = arith.constant 4.471500e-02 : f32
    %190 = vector.broadcast %cst_60 : f32 to vector<16x64xf32>
    %191 = arith.mulf %190, %187 : vector<16x64xf32>
    %192 = arith.mulf %191, %187 : vector<16x64xf32>
    %193 = arith.mulf %192, %187 : vector<16x64xf32>
    %194 = arith.addf %187, %193 : vector<16x64xf32>
    %cst_61 = arith.constant 0.797884583 : f32
    %195 = vector.broadcast %cst_61 : f32 to vector<16x64xf32>
    %196 = arith.mulf %195, %194 : vector<16x64xf32>
    %197 = math.tanh %196 : vector<16x64xf32>
    %cst_62 = arith.constant 1.000000e+00 : f32
    %198 = vector.broadcast %cst_62 : f32 to vector<16x64xf32>
    %199 = arith.addf %198, %197 : vector<16x64xf32>
    %200 = arith.mulf %189, %199 : vector<16x64xf32>
    %201 = arith.truncf %200 : vector<16x64xf32> to vector<16x64xbf16>
    %202 = arith.truncf %12 : vector<64x32xf32> to vector<64x32xbf16>
    %cst_63 = arith.constant dense<0.000000e+00> : vector<16x32xf32>
    %203 = tpu.matmul %201, %202, %cst_63 {dimension_numbers = #tpu.dot_dimension_numbers<[1], [0], [0], [1], [0, 0, 1, 1], [], []>} : vector<16x64xbf16>, vector<64x32xbf16>, vector<16x32xf32> -> vector<16x32xf32>
    %204 = arith.addf %157, %203 : vector<16x32xf32>
    %205 = vector.extract_strided_slice %14 {offsets = [6, 0], sizes = [1, 32], strides = [1, 1]} : vector<8x64xf32> to vector<1x32xf32>
    %206 = vector.broadcast %205 : vector<1x32xf32> to vector<16x32xf32>
    %207 = arith.addf %204, %206 : vector<16x32xf32>
    %208 = arith.extui %0 : i1 to i32
    %c0_i32_64 = arith.constant 0 : i32
    %209 = arith.cmpi ne, %208, %c0_i32_64 : i32
    scf.if %209 {
      %409 = vector.extract_strided_slice %1 {offsets = [138, 0], sizes = [1, 32], strides = [1, 1]} : vector<140x32xf32> to vector<1x32xf32>
      %410 = vector.extract_strided_slice %1 {offsets = [139, 0], sizes = [1, 32], strides = [1, 1]} : vector<140x32xf32> to vector<1x32xf32>
      %cst_112 = arith.constant dense<0.000000e+00> : vector<16xf32>
      %411 = vector.multi_reduction <add>, %207, %cst_112 [1] : vector<16x32xf32> to vector<16xf32>
      %412 = vector.shape_cast %411 : vector<16xf32> to vector<16x1xf32>
      %cst_113 = arith.constant 3.200000e+01 : f32
      %413 = vector.broadcast %cst_113 : f32 to vector<16x1xf32>
      %414 = arith.divf %412, %413 : vector<16x1xf32>
      %415 = vector.broadcast %414 : vector<16x1xf32> to vector<16x32xf32>
      %416 = arith.subf %207, %415 : vector<16x32xf32>
      %417 = arith.mulf %416, %416 : vector<16x32xf32>
      %cst_114 = arith.constant dense<0.000000e+00> : vector<16xf32>
      %418 = vector.multi_reduction <add>, %417, %cst_114 [1] : vector<16x32xf32> to vector<16xf32>
      %419 = vector.shape_cast %418 : vector<16xf32> to vector<16x1xf32>
      %cst_115 = arith.constant 3.200000e+01 : f32
      %420 = vector.broadcast %cst_115 : f32 to vector<16x1xf32>
      %421 = arith.divf %419, %420 : vector<16x1xf32>
      %422 = vector.broadcast %414 : vector<16x1xf32> to vector<16x32xf32>
      %423 = arith.subf %207, %422 : vector<16x32xf32>
      %cst_116 = arith.constant 9.99999974E-6 : f32
      %424 = vector.broadcast %cst_116 : f32 to vector<16x1xf32>
      %425 = arith.addf %421, %424 : vector<16x1xf32>
      %426 = math.rsqrt %425 : vector<16x1xf32>
      %427 = vector.broadcast %426 : vector<16x1xf32> to vector<16x32xf32>
      %428 = arith.mulf %423, %427 : vector<16x32xf32>
      %429 = vector.broadcast %409 : vector<1x32xf32> to vector<16x32xf32>
      %430 = arith.mulf %428, %429 : vector<16x32xf32>
      %431 = vector.broadcast %410 : vector<1x32xf32> to vector<16x32xf32>
      %432 = arith.addf %430, %431 : vector<16x32xf32>
      %c0_117 = arith.constant 0 : index
      %c0_118 = arith.constant 0 : index
      %c0_119 = arith.constant 0 : index
      %433 = vector.load %arg9[%c0_117, %c0_118, %c0_119] : memref<2x16x32xf32, #tpu.memory_space<vmem>>, vector<1x16x32xf32>
      %434 = vector.shape_cast %433 : vector<1x16x32xf32> to vector<16x32xf32>
      %435 = vector.shape_cast %432 : vector<16x32xf32> to vector<1x16x32xf32>
      tpu.vector_store %arg9[%c0_117, %c0_118, %c0_119], %435 {strides = array<i32>} : memref<2x16x32xf32, #tpu.memory_space<vmem>>, vector<1x16x32xf32>,
    } else {
    }
    %true = arith.constant true
    %210 = arith.xori %0, %true : i1
    %211 = arith.extui %210 : i1 to i32
    %c0_i32_65 = arith.constant 0 : i32
    %212 = arith.cmpi ne, %211, %c0_i32_65 : i32
    scf.if %212 {
      %c0_112 = arith.constant 0 : index
      %c0_113 = arith.constant 0 : index
      %c0_114 = arith.constant 0 : index
      %409 = vector.load %arg9[%c0_112, %c0_113, %c0_114] : memref<2x16x32xf32, #tpu.memory_space<vmem>>, vector<1x16x32xf32>
      %410 = vector.shape_cast %409 : vector<1x16x32xf32> to vector<16x32xf32>
      %411 = vector.shape_cast %207 : vector<16x32xf32> to vector<1x16x32xf32>
      tpu.vector_store %arg9[%c0_112, %c0_113, %c0_114], %411 {strides = array<i32>} : memref<2x16x32xf32, #tpu.memory_space<vmem>>, vector<1x16x32xf32>,
    } else {
    }
    %c1 = arith.constant 1 : index
    %c0_66 = arith.constant 0 : index
    %c0_67 = arith.constant 0 : index
    %213 = vector.load %arg9[%c1, %c0_66, %c0_67] : memref<2x16x32xf32, #tpu.memory_space<vmem>>, vector<1x16x32xf32>
    %214 = vector.shape_cast %213 : vector<1x16x32xf32> to vector<16x32xf32>
    %215 = vector.extract_strided_slice %14 {offsets = [0, 0], sizes = [1, 32], strides = [1, 1]} : vector<8x64xf32> to vector<1x32xf32>
    %216 = vector.extract_strided_slice %14 {offsets = [1, 0], sizes = [1, 32], strides = [1, 1]} : vector<8x64xf32> to vector<1x32xf32>
    %cst_68 = arith.constant dense<0.000000e+00> : vector<16xf32>
    %217 = vector.multi_reduction <add>, %214, %cst_68 [1] : vector<16x32xf32> to vector<16xf32>
    %218 = vector.shape_cast %217 : vector<16xf32> to vector<16x1xf32>
    %cst_69 = arith.constant 3.200000e+01 : f32
    %219 = vector.broadcast %cst_69 : f32 to vector<16x1xf32>
    %220 = arith.divf %218, %219 : vector<16x1xf32>
    %221 = vector.broadcast %220 : vector<16x1xf32> to vector<16x32xf32>
    %222 = arith.subf %214, %221 : vector<16x32xf32>
    %223 = arith.mulf %222, %222 : vector<16x32xf32>
    %cst_70 = arith.constant dense<0.000000e+00> : vector<16xf32>
    %224 = vector.multi_reduction <add>, %223, %cst_70 [1] : vector<16x32xf32> to vector<16xf32>
    %225 = vector.shape_cast %224 : vector<16xf32> to vector<16x1xf32>
    %cst_71 = arith.constant 3.200000e+01 : f32
    %226 = vector.broadcast %cst_71 : f32 to vector<16x1xf32>
    %227 = arith.divf %225, %226 : vector<16x1xf32>
    %228 = vector.broadcast %220 : vector<16x1xf32> to vector<16x32xf32>
    %229 = arith.subf %214, %228 : vector<16x32xf32>
    %cst_72 = arith.constant 9.99999974E-6 : f32
    %230 = vector.broadcast %cst_72 : f32 to vector<16x1xf32>
    %231 = arith.addf %227, %230 : vector<16x1xf32>
    %232 = math.rsqrt %231 : vector<16x1xf32>
    %233 = vector.broadcast %232 : vector<16x1xf32> to vector<16x32xf32>
    %234 = arith.mulf %229, %233 : vector<16x32xf32>
    %235 = vector.broadcast %215 : vector<1x32xf32> to vector<16x32xf32>
    %236 = arith.mulf %234, %235 : vector<16x32xf32>
    %237 = vector.broadcast %216 : vector<1x32xf32> to vector<16x32xf32>
    %238 = arith.addf %236, %237 : vector<16x32xf32>
    %239 = arith.truncf %6 : vector<32x96xf32> to vector<32x96xbf16>
    %240 = arith.truncf %238 : vector<16x32xf32> to vector<16x32xbf16>
    %cst_73 = arith.constant dense<0.000000e+00> : vector<96x16xf32>
    %241 = tpu.matmul %239, %240, %cst_73 {dimension_numbers = #tpu.dot_dimension_numbers<[0], [1], [1], [0], [0, 1, 1, 0], [], []>} : vector<32x96xbf16>, vector<16x32xbf16>, vector<96x16xf32> -> vector<96x16xf32>
    %242 = vector.broadcast %16 : vector<96x1xf32> to vector<96x16xf32>
    %243 = arith.addf %241, %242 : vector<96x16xf32>
    %244 = vector.extract_strided_slice %243 {offsets = [0, 0], sizes = [32, 16], strides = [1, 1]} : vector<96x16xf32> to vector<32x16xf32>
    %245 = vector.extract_strided_slice %243 {offsets = [32, 0], sizes = [32, 16], strides = [1, 1]} : vector<96x16xf32> to vector<32x16xf32>
    %246 = vector.extract_strided_slice %243 {offsets = [64, 0], sizes = [32, 16], strides = [1, 1]} : vector<96x16xf32> to vector<32x16xf32>
    %247 = vector.extract_strided_slice %244 {offsets = [0, 0], sizes = [8, 16], strides = [1, 1]} : vector<32x16xf32> to vector<8x16xf32>
    %248 = vector.extract_strided_slice %245 {offsets = [0, 0], sizes = [8, 16], strides = [1, 1]} : vector<32x16xf32> to vector<8x16xf32>
    %249 = vector.extract_strided_slice %246 {offsets = [0, 0], sizes = [8, 16], strides = [1, 1]} : vector<32x16xf32> to vector<8x16xf32>
    %250 = arith.truncf %247 : vector<8x16xf32> to vector<8x16xbf16>
    %251 = arith.truncf %248 : vector<8x16xf32> to vector<8x16xbf16>
    %cst_74 = arith.constant dense<0.000000e+00> : vector<16x16xf32>
    %252 = tpu.matmul %250, %251, %cst_74 {dimension_numbers = #tpu.dot_dimension_numbers<[0], [0], [1], [1], [0, 1, 1, 1], [], []>} : vector<8x16xbf16>, vector<8x16xbf16>, vector<16x16xf32> -> vector<16x16xf32>
    %cst_75 = arith.constant 0.353553385 : f32
    %253 = vector.broadcast %cst_75 : f32 to vector<16x16xf32>
    %254 = arith.mulf %252, %253 : vector<16x16xf32>
    %cst_76 = arith.constant dense<0xFF800000> : vector<16xf32>
    %255 = vector.multi_reduction <maximumf>, %254, %cst_76 [1] : vector<16x16xf32> to vector<16xf32>
    %256 = vector.shape_cast %255 : vector<16xf32> to vector<16x1xf32>
    %257 = vector.broadcast %256 : vector<16x1xf32> to vector<16x16xf32>
    %258 = arith.subf %254, %257 : vector<16x16xf32>
    %259 = math.exp %258 : vector<16x16xf32>
    %cst_77 = arith.constant dense<0.000000e+00> : vector<16xf32>
    %260 = vector.multi_reduction <add>, %259, %cst_77 [1] : vector<16x16xf32> to vector<16xf32>
    %261 = vector.shape_cast %260 : vector<16xf32> to vector<16x1xf32>
    %262 = tpu.reciprocal %261 {approx = true} : vector<16x1xf32> -> vector<16x1xf32>
    %263 = vector.broadcast %262 : vector<16x1xf32> to vector<16x16xf32>
    %264 = arith.mulf %259, %263 : vector<16x16xf32>
    %265 = arith.truncf %249 : vector<8x16xf32> to vector<8x16xbf16>
    %266 = arith.truncf %264 : vector<16x16xf32> to vector<16x16xbf16>
    %cst_78 = arith.constant dense<0.000000e+00> : vector<8x16xf32>
    %267 = tpu.matmul %265, %266, %cst_78 {dimension_numbers = #tpu.dot_dimension_numbers<[1], [1], [0], [0], [0, 0, 1, 0], [], []>} : vector<8x16xbf16>, vector<16x16xbf16>, vector<8x16xf32> -> vector<8x16xf32>
    %268 = vector.extract_strided_slice %8 {offsets = [0, 0], sizes = [8, 32], strides = [1, 1]} : vector<32x32xf32> to vector<8x32xf32>
    %269 = arith.truncf %267 : vector<8x16xf32> to vector<8x16xbf16>
    %270 = arith.truncf %268 : vector<8x32xf32> to vector<8x32xbf16>
    %cst_79 = arith.constant dense<0.000000e+00> : vector<16x32xf32>
    %271 = tpu.matmul %269, %270, %cst_79 {dimension_numbers = #tpu.dot_dimension_numbers<[0], [0], [1], [1], [0, 1, 1, 1], [], []>} : vector<8x16xbf16>, vector<8x32xbf16>, vector<16x32xf32> -> vector<16x32xf32>
    %272 = vector.extract_strided_slice %244 {offsets = [8, 0], sizes = [8, 16], strides = [1, 1]} : vector<32x16xf32> to vector<8x16xf32>
    %273 = vector.extract_strided_slice %245 {offsets = [8, 0], sizes = [8, 16], strides = [1, 1]} : vector<32x16xf32> to vector<8x16xf32>
    %274 = vector.extract_strided_slice %246 {offsets = [8, 0], sizes = [8, 16], strides = [1, 1]} : vector<32x16xf32> to vector<8x16xf32>
    %275 = arith.truncf %272 : vector<8x16xf32> to vector<8x16xbf16>
    %276 = arith.truncf %273 : vector<8x16xf32> to vector<8x16xbf16>
    %cst_80 = arith.constant dense<0.000000e+00> : vector<16x16xf32>
    %277 = tpu.matmul %275, %276, %cst_80 {dimension_numbers = #tpu.dot_dimension_numbers<[0], [0], [1], [1], [0, 1, 1, 1], [], []>} : vector<8x16xbf16>, vector<8x16xbf16>, vector<16x16xf32> -> vector<16x16xf32>
    %cst_81 = arith.constant 0.353553385 : f32
    %278 = vector.broadcast %cst_81 : f32 to vector<16x16xf32>
    %279 = arith.mulf %277, %278 : vector<16x16xf32>
    %cst_82 = arith.constant dense<0xFF800000> : vector<16xf32>
    %280 = vector.multi_reduction <maximumf>, %279, %cst_82 [1] : vector<16x16xf32> to vector<16xf32>
    %281 = vector.shape_cast %280 : vector<16xf32> to vector<16x1xf32>
    %282 = vector.broadcast %281 : vector<16x1xf32> to vector<16x16xf32>
    %283 = arith.subf %279, %282 : vector<16x16xf32>
    %284 = math.exp %283 : vector<16x16xf32>
    %cst_83 = arith.constant dense<0.000000e+00> : vector<16xf32>
    %285 = vector.multi_reduction <add>, %284, %cst_83 [1] : vector<16x16xf32> to vector<16xf32>
    %286 = vector.shape_cast %285 : vector<16xf32> to vector<16x1xf32>
    %287 = tpu.reciprocal %286 {approx = true} : vector<16x1xf32> -> vector<16x1xf32>
    %288 = vector.broadcast %287 : vector<16x1xf32> to vector<16x16xf32>
    %289 = arith.mulf %284, %288 : vector<16x16xf32>
    %290 = arith.truncf %274 : vector<8x16xf32> to vector<8x16xbf16>
    %291 = arith.truncf %289 : vector<16x16xf32> to vector<16x16xbf16>
    %cst_84 = arith.constant dense<0.000000e+00> : vector<8x16xf32>
    %292 = tpu.matmul %290, %291, %cst_84 {dimension_numbers = #tpu.dot_dimension_numbers<[1], [1], [0], [0], [0, 0, 1, 0], [], []>} : vector<8x16xbf16>, vector<16x16xbf16>, vector<8x16xf32> -> vector<8x16xf32>
    %293 = vector.extract_strided_slice %8 {offsets = [8, 0], sizes = [8, 32], strides = [1, 1]} : vector<32x32xf32> to vector<8x32xf32>
    %294 = arith.truncf %292 : vector<8x16xf32> to vector<8x16xbf16>
    %295 = arith.truncf %293 : vector<8x32xf32> to vector<8x32xbf16>
    %cst_85 = arith.constant dense<0.000000e+00> : vector<16x32xf32>
    %296 = tpu.matmul %294, %295, %cst_85 {dimension_numbers = #tpu.dot_dimension_numbers<[0], [0], [1], [1], [0, 1, 1, 1], [], []>} : vector<8x16xbf16>, vector<8x32xbf16>, vector<16x32xf32> -> vector<16x32xf32>
    %297 = arith.addf %271, %296 : vector<16x32xf32>
    %298 = vector.extract_strided_slice %244 {offsets = [16, 0], sizes = [8, 16], strides = [1, 1]} : vector<32x16xf32> to vector<8x16xf32>
    %299 = vector.extract_strided_slice %245 {offsets = [16, 0], sizes = [8, 16], strides = [1, 1]} : vector<32x16xf32> to vector<8x16xf32>
    %300 = vector.extract_strided_slice %246 {offsets = [16, 0], sizes = [8, 16], strides = [1, 1]} : vector<32x16xf32> to vector<8x16xf32>
    %301 = arith.truncf %298 : vector<8x16xf32> to vector<8x16xbf16>
    %302 = arith.truncf %299 : vector<8x16xf32> to vector<8x16xbf16>
    %cst_86 = arith.constant dense<0.000000e+00> : vector<16x16xf32>
    %303 = tpu.matmul %301, %302, %cst_86 {dimension_numbers = #tpu.dot_dimension_numbers<[0], [0], [1], [1], [0, 1, 1, 1], [], []>} : vector<8x16xbf16>, vector<8x16xbf16>, vector<16x16xf32> -> vector<16x16xf32>
    %cst_87 = arith.constant 0.353553385 : f32
    %304 = vector.broadcast %cst_87 : f32 to vector<16x16xf32>
    %305 = arith.mulf %303, %304 : vector<16x16xf32>
    %cst_88 = arith.constant dense<0xFF800000> : vector<16xf32>
    %306 = vector.multi_reduction <maximumf>, %305, %cst_88 [1] : vector<16x16xf32> to vector<16xf32>
    %307 = vector.shape_cast %306 : vector<16xf32> to vector<16x1xf32>
    %308 = vector.broadcast %307 : vector<16x1xf32> to vector<16x16xf32>
    %309 = arith.subf %305, %308 : vector<16x16xf32>
    %310 = math.exp %309 : vector<16x16xf32>
    %cst_89 = arith.constant dense<0.000000e+00> : vector<16xf32>
    %311 = vector.multi_reduction <add>, %310, %cst_89 [1] : vector<16x16xf32> to vector<16xf32>
    %312 = vector.shape_cast %311 : vector<16xf32> to vector<16x1xf32>
    %313 = tpu.reciprocal %312 {approx = true} : vector<16x1xf32> -> vector<16x1xf32>
    %314 = vector.broadcast %313 : vector<16x1xf32> to vector<16x16xf32>
    %315 = arith.mulf %310, %314 : vector<16x16xf32>
    %316 = arith.truncf %300 : vector<8x16xf32> to vector<8x16xbf16>
    %317 = arith.truncf %315 : vector<16x16xf32> to vector<16x16xbf16>
    %cst_90 = arith.constant dense<0.000000e+00> : vector<8x16xf32>
    %318 = tpu.matmul %316, %317, %cst_90 {dimension_numbers = #tpu.dot_dimension_numbers<[1], [1], [0], [0], [0, 0, 1, 0], [], []>} : vector<8x16xbf16>, vector<16x16xbf16>, vector<8x16xf32> -> vector<8x16xf32>
    %319 = vector.extract_strided_slice %8 {offsets = [16, 0], sizes = [8, 32], strides = [1, 1]} : vector<32x32xf32> to vector<8x32xf32>
    %320 = arith.truncf %318 : vector<8x16xf32> to vector<8x16xbf16>
    %321 = arith.truncf %319 : vector<8x32xf32> to vector<8x32xbf16>
    %cst_91 = arith.constant dense<0.000000e+00> : vector<16x32xf32>
    %322 = tpu.matmul %320, %321, %cst_91 {dimension_numbers = #tpu.dot_dimension_numbers<[0], [0], [1], [1], [0, 1, 1, 1], [], []>} : vector<8x16xbf16>, vector<8x32xbf16>, vector<16x32xf32> -> vector<16x32xf32>
    %323 = arith.addf %297, %322 : vector<16x32xf32>
    %324 = vector.extract_strided_slice %244 {offsets = [24, 0], sizes = [8, 16], strides = [1, 1]} : vector<32x16xf32> to vector<8x16xf32>
    %325 = vector.extract_strided_slice %245 {offsets = [24, 0], sizes = [8, 16], strides = [1, 1]} : vector<32x16xf32> to vector<8x16xf32>
    %326 = vector.extract_strided_slice %246 {offsets = [24, 0], sizes = [8, 16], strides = [1, 1]} : vector<32x16xf32> to vector<8x16xf32>
    %327 = arith.truncf %324 : vector<8x16xf32> to vector<8x16xbf16>
    %328 = arith.truncf %325 : vector<8x16xf32> to vector<8x16xbf16>
    %cst_92 = arith.constant dense<0.000000e+00> : vector<16x16xf32>
    %329 = tpu.matmul %327, %328, %cst_92 {dimension_numbers = #tpu.dot_dimension_numbers<[0], [0], [1], [1], [0, 1, 1, 1], [], []>} : vector<8x16xbf16>, vector<8x16xbf16>, vector<16x16xf32> -> vector<16x16xf32>
    %cst_93 = arith.constant 0.353553385 : f32
    %330 = vector.broadcast %cst_93 : f32 to vector<16x16xf32>
    %331 = arith.mulf %329, %330 : vector<16x16xf32>
    %cst_94 = arith.constant dense<0xFF800000> : vector<16xf32>
    %332 = vector.multi_reduction <maximumf>, %331, %cst_94 [1] : vector<16x16xf32> to vector<16xf32>
    %333 = vector.shape_cast %332 : vector<16xf32> to vector<16x1xf32>
    %334 = vector.broadcast %333 : vector<16x1xf32> to vector<16x16xf32>
    %335 = arith.subf %331, %334 : vector<16x16xf32>
    %336 = math.exp %335 : vector<16x16xf32>
    %cst_95 = arith.constant dense<0.000000e+00> : vector<16xf32>
    %337 = vector.multi_reduction <add>, %336, %cst_95 [1] : vector<16x16xf32> to vector<16xf32>
    %338 = vector.shape_cast %337 : vector<16xf32> to vector<16x1xf32>
    %339 = tpu.reciprocal %338 {approx = true} : vector<16x1xf32> -> vector<16x1xf32>
    %340 = vector.broadcast %339 : vector<16x1xf32> to vector<16x16xf32>
    %341 = arith.mulf %336, %340 : vector<16x16xf32>
    %342 = arith.truncf %326 : vector<8x16xf32> to vector<8x16xbf16>
    %343 = arith.truncf %341 : vector<16x16xf32> to vector<16x16xbf16>
    %cst_96 = arith.constant dense<0.000000e+00> : vector<8x16xf32>
    %344 = tpu.matmul %342, %343, %cst_96 {dimension_numbers = #tpu.dot_dimension_numbers<[1], [1], [0], [0], [0, 0, 1, 0], [], []>} : vector<8x16xbf16>, vector<16x16xbf16>, vector<8x16xf32> -> vector<8x16xf32>
    %345 = vector.extract_strided_slice %8 {offsets = [24, 0], sizes = [8, 32], strides = [1, 1]} : vector<32x32xf32> to vector<8x32xf32>
    %346 = arith.truncf %344 : vector<8x16xf32> to vector<8x16xbf16>
    %347 = arith.truncf %345 : vector<8x32xf32> to vector<8x32xbf16>
    %cst_97 = arith.constant dense<0.000000e+00> : vector<16x32xf32>
    %348 = tpu.matmul %346, %347, %cst_97 {dimension_numbers = #tpu.dot_dimension_numbers<[0], [0], [1], [1], [0, 1, 1, 1], [], []>} : vector<8x16xbf16>, vector<8x32xbf16>, vector<16x32xf32> -> vector<16x32xf32>
    %349 = arith.addf %323, %348 : vector<16x32xf32>
    %350 = arith.addf %214, %349 : vector<16x32xf32>
    %351 = vector.extract_strided_slice %14 {offsets = [4, 0], sizes = [1, 32], strides = [1, 1]} : vector<8x64xf32> to vector<1x32xf32>
    %352 = vector.broadcast %351 : vector<1x32xf32> to vector<16x32xf32>
    %353 = arith.addf %350, %352 : vector<16x32xf32>
    %354 = vector.extract_strided_slice %14 {offsets = [2, 0], sizes = [1, 32], strides = [1, 1]} : vector<8x64xf32> to vector<1x32xf32>
    %355 = vector.extract_strided_slice %14 {offsets = [3, 0], sizes = [1, 32], strides = [1, 1]} : vector<8x64xf32> to vector<1x32xf32>
    %cst_98 = arith.constant dense<0.000000e+00> : vector<16xf32>
    %356 = vector.multi_reduction <add>, %353, %cst_98 [1] : vector<16x32xf32> to vector<16xf32>
    %357 = vector.shape_cast %356 : vector<16xf32> to vector<16x1xf32>
    %cst_99 = arith.constant 3.200000e+01 : f32
    %358 = vector.broadcast %cst_99 : f32 to vector<16x1xf32>
    %359 = arith.divf %357, %358 : vector<16x1xf32>
    %360 = vector.broadcast %359 : vector<16x1xf32> to vector<16x32xf32>
    %361 = arith.subf %353, %360 : vector<16x32xf32>
    %362 = arith.mulf %361, %361 : vector<16x32xf32>
    %cst_100 = arith.constant dense<0.000000e+00> : vector<16xf32>
    %363 = vector.multi_reduction <add>, %362, %cst_100 [1] : vector<16x32xf32> to vector<16xf32>
    %364 = vector.shape_cast %363 : vector<16xf32> to vector<16x1xf32>
    %cst_101 = arith.constant 3.200000e+01 : f32
    %365 = vector.broadcast %cst_101 : f32 to vector<16x1xf32>
    %366 = arith.divf %364, %365 : vector<16x1xf32>
    %367 = vector.broadcast %359 : vector<16x1xf32> to vector<16x32xf32>
    %368 = arith.subf %353, %367 : vector<16x32xf32>
    %cst_102 = arith.constant 9.99999974E-6 : f32
    %369 = vector.broadcast %cst_102 : f32 to vector<16x1xf32>
    %370 = arith.addf %366, %369 : vector<16x1xf32>
    %371 = math.rsqrt %370 : vector<16x1xf32>
    %372 = vector.broadcast %371 : vector<16x1xf32> to vector<16x32xf32>
    %373 = arith.mulf %368, %372 : vector<16x32xf32>
    %374 = vector.broadcast %354 : vector<1x32xf32> to vector<16x32xf32>
    %375 = arith.mulf %373, %374 : vector<16x32xf32>
    %376 = vector.broadcast %355 : vector<1x32xf32> to vector<16x32xf32>
    %377 = arith.addf %375, %376 : vector<16x32xf32>
    %378 = arith.truncf %377 : vector<16x32xf32> to vector<16x32xbf16>
    %379 = arith.truncf %10 : vector<32x64xf32> to vector<32x64xbf16>
    %cst_103 = arith.constant dense<0.000000e+00> : vector<16x64xf32>
    %380 = tpu.matmul %378, %379, %cst_103 {dimension_numbers = #tpu.dot_dimension_numbers<[1], [0], [0], [1], [0, 0, 1, 1], [], []>} : vector<16x32xbf16>, vector<32x64xbf16>, vector<16x64xf32> -> vector<16x64xf32>
    %381 = vector.extract_strided_slice %14 {offsets = [5, 0], sizes = [1, 64], strides = [1, 1]} : vector<8x64xf32> to vector<1x64xf32>
    %382 = vector.broadcast %381 : vector<1x64xf32> to vector<16x64xf32>
    %383 = arith.addf %380, %382 : vector<16x64xf32>
    %cst_104 = arith.constant 5.000000e-01 : f32
    %384 = vector.broadcast %cst_104 : f32 to vector<16x64xf32>
    %385 = arith.mulf %384, %383 : vector<16x64xf32>
    %cst_105 = arith.constant 4.471500e-02 : f32
    %386 = vector.broadcast %cst_105 : f32 to vector<16x64xf32>
    %387 = arith.mulf %386, %383 : vector<16x64xf32>
    %388 = arith.mulf %387, %383 : vector<16x64xf32>
    %389 = arith.mulf %388, %383 : vector<16x64xf32>
    %390 = arith.addf %383, %389 : vector<16x64xf32>
    %cst_106 = arith.constant 0.797884583 : f32
    %391 = vector.broadcast %cst_106 : f32 to vector<16x64xf32>
    %392 = arith.mulf %391, %390 : vector<16x64xf32>
    %393 = math.tanh %392 : vector<16x64xf32>
    %cst_107 = arith.constant 1.000000e+00 : f32
    %394 = vector.broadcast %cst_107 : f32 to vector<16x64xf32>
    %395 = arith.addf %394, %393 : vector<16x64xf32>
    %396 = arith.mulf %385, %395 : vector<16x64xf32>
    %397 = arith.truncf %396 : vector<16x64xf32> to vector<16x64xbf16>
    %398 = arith.truncf %12 : vector<64x32xf32> to vector<64x32xbf16>
    %cst_108 = arith.constant dense<0.000000e+00> : vector<16x32xf32>
    %399 = tpu.matmul %397, %398, %cst_108 {dimension_numbers = #tpu.dot_dimension_numbers<[1], [0], [0], [1], [0, 0, 1, 1], [], []>} : vector<16x64xbf16>, vector<64x32xbf16>, vector<16x32xf32> -> vector<16x32xf32>
    %400 = arith.addf %353, %399 : vector<16x32xf32>
    %401 = vector.extract_strided_slice %14 {offsets = [6, 0], sizes = [1, 32], strides = [1, 1]} : vector<8x64xf32> to vector<1x32xf32>
    %402 = vector.broadcast %401 : vector<1x32xf32> to vector<16x32xf32>
    %403 = arith.addf %400, %402 : vector<16x32xf32>
    %404 = arith.extui %0 : i1 to i32
    %c0_i32_109 = arith.constant 0 : i32
    %405 = arith.cmpi ne, %404, %c0_i32_109 : i32
    scf.if %405 {
      %409 = vector.extract_strided_slice %1 {offsets = [138, 0], sizes = [1, 32], strides = [1, 1]} : vector<140x32xf32> to vector<1x32xf32>
      %410 = vector.extract_strided_slice %1 {offsets = [139, 0], sizes = [1, 32], strides = [1, 1]} : vector<140x32xf32> to vector<1x32xf32>
      %cst_112 = arith.constant dense<0.000000e+00> : vector<16xf32>
      %411 = vector.multi_reduction <add>, %403, %cst_112 [1] : vector<16x32xf32> to vector<16xf32>
      %412 = vector.shape_cast %411 : vector<16xf32> to vector<16x1xf32>
      %cst_113 = arith.constant 3.200000e+01 : f32
      %413 = vector.broadcast %cst_113 : f32 to vector<16x1xf32>
      %414 = arith.divf %412, %413 : vector<16x1xf32>
      %415 = vector.broadcast %414 : vector<16x1xf32> to vector<16x32xf32>
      %416 = arith.subf %403, %415 : vector<16x32xf32>
      %417 = arith.mulf %416, %416 : vector<16x32xf32>
      %cst_114 = arith.constant dense<0.000000e+00> : vector<16xf32>
      %418 = vector.multi_reduction <add>, %417, %cst_114 [1] : vector<16x32xf32> to vector<16xf32>
      %419 = vector.shape_cast %418 : vector<16xf32> to vector<16x1xf32>
      %cst_115 = arith.constant 3.200000e+01 : f32
      %420 = vector.broadcast %cst_115 : f32 to vector<16x1xf32>
      %421 = arith.divf %419, %420 : vector<16x1xf32>
      %422 = vector.broadcast %414 : vector<16x1xf32> to vector<16x32xf32>
      %423 = arith.subf %403, %422 : vector<16x32xf32>
      %cst_116 = arith.constant 9.99999974E-6 : f32
      %424 = vector.broadcast %cst_116 : f32 to vector<16x1xf32>
      %425 = arith.addf %421, %424 : vector<16x1xf32>
      %426 = math.rsqrt %425 : vector<16x1xf32>
      %427 = vector.broadcast %426 : vector<16x1xf32> to vector<16x32xf32>
      %428 = arith.mulf %423, %427 : vector<16x32xf32>
      %429 = vector.broadcast %409 : vector<1x32xf32> to vector<16x32xf32>
      %430 = arith.mulf %428, %429 : vector<16x32xf32>
      %431 = vector.broadcast %410 : vector<1x32xf32> to vector<16x32xf32>
      %432 = arith.addf %430, %431 : vector<16x32xf32>
      %c1_117 = arith.constant 1 : index
      %c0_118 = arith.constant 0 : index
      %c0_119 = arith.constant 0 : index
      %433 = vector.load %arg9[%c1_117, %c0_118, %c0_119] : memref<2x16x32xf32, #tpu.memory_space<vmem>>, vector<1x16x32xf32>
      %434 = vector.shape_cast %433 : vector<1x16x32xf32> to vector<16x32xf32>
      %435 = vector.shape_cast %432 : vector<16x32xf32> to vector<1x16x32xf32>
      tpu.vector_store %arg9[%c1_117, %c0_118, %c0_119], %435 {strides = array<i32>} : memref<2x16x32xf32, #tpu.memory_space<vmem>>, vector<1x16x32xf32>,
    } else {
    }
    %true_110 = arith.constant true
    %406 = arith.xori %0, %true_110 : i1
    %407 = arith.extui %406 : i1 to i32
    %c0_i32_111 = arith.constant 0 : i32
    %408 = arith.cmpi ne, %407, %c0_i32_111 : i32
    scf.if %408 {
      %c1_112 = arith.constant 1 : index
      %c0_113 = arith.constant 0 : index
      %c0_114 = arith.constant 0 : index
      %409 = vector.load %arg9[%c1_112, %c0_113, %c0_114] : memref<2x16x32xf32, #tpu.memory_space<vmem>>, vector<1x16x32xf32>
      %410 = vector.shape_cast %409 : vector<1x16x32xf32> to vector<16x32xf32>
      %411 = vector.shape_cast %403 : vector<16x32xf32> to vector<1x16x32xf32>
      tpu.vector_store %arg9[%c1_112, %c0_113, %c0_114], %411 {strides = array<i32>} : memref<2x16x32xf32, #tpu.memory_space<vmem>>, vector<1x16x32xf32>,
    } else {
    }
    return
  }
  func.func @transform_0(%arg0: i32) -> (i32, i32, i32) {
    %c0_i32 = arith.constant 0 : i32
    %c0_i32_0 = arith.constant 0 : i32
    %c0_i32_1 = arith.constant 0 : i32
    %c0_i32_2 = arith.constant 0 : i32
    return %c0_i32, %c0_i32_0, %c0_i32_1 : i32, i32, i32
  }
  func.func @transform_1(%arg0: i32) -> (i32, i32) {
    %c0_i32 = arith.constant 0 : i32
    %c0_i32_0 = arith.constant 0 : i32
    %c0_i32_1 = arith.constant 0 : i32
    return %c0_i32, %c0_i32_0 : i32, i32
  }
  func.func @transform_2(%arg0: i32) -> (i32, i32, i32) {
    %c0_i32 = arith.constant 0 : i32
    %c0_i32_0 = arith.constant 0 : i32
    %c0_i32_1 = arith.constant 0 : i32
    return %arg0, %c0_i32, %c0_i32_0 : i32, i32, i32
  }
  func.func @transform_3(%arg0: i32) -> (i32, i32, i32) {
    %c0_i32 = arith.constant 0 : i32
    %c0_i32_0 = arith.constant 0 : i32
    %c0_i32_1 = arith.constant 0 : i32
    return %arg0, %c0_i32, %c0_i32_0 : i32, i32, i32
  }
  func.func @transform_4(%arg0: i32) -> (i32, i32, i32) {
    %c0_i32 = arith.constant 0 : i32
    %c0_i32_0 = arith.constant 0 : i32
    %c0_i32_1 = arith.constant 0 : i32
    return %arg0, %c0_i32, %c0_i32_0 : i32, i32, i32
  }
  func.func @transform_5(%arg0: i32) -> (i32, i32, i32) {
    %c0_i32 = arith.constant 0 : i32
    %c0_i32_0 = arith.constant 0 : i32
    %c0_i32_1 = arith.constant 0 : i32
    return %arg0, %c0_i32, %c0_i32_0 : i32, i32, i32
  }
  func.func @transform_6(%arg0: i32) -> (i32, i32, i32) {
    %c0_i32 = arith.constant 0 : i32
    %c0_i32_0 = arith.constant 0 : i32
    %c0_i32_1 = arith.constant 0 : i32
    return %arg0, %c0_i32, %c0_i32_0 : i32, i32, i32
  }
  func.func @transform_7(%arg0: i32) -> (i32, i32, i32) {
    %c0_i32 = arith.constant 0 : i32
    %c0_i32_0 = arith.constant 0 : i32
    %c0_i32_1 = arith.constant 0 : i32
    return %arg0, %c0_i32, %c0_i32_0 : i32, i32, i32
  }
  func.func @transform_8(%arg0: i32) -> (i32, i32, i32) {
    %c0_i32 = arith.constant 0 : i32
    %c0_i32_0 = arith.constant 0 : i32
    %c0_i32_1 = arith.constant 0 : i32
    %c0_i32_2 = arith.constant 0 : i32
    return %c0_i32, %c0_i32_0, %c0_i32_1 : i32, i32, i32
  }
}

module attributes {stable_mosaic.version = 11 : i64} {
  func.func @_decoder_kernel(%arg0: i32, %arg1: memref<2x8x32xf32, #tpu.memory_space<vmem>>, %arg2: memref<2x16x32xf32, #tpu.memory_space<vmem>>, %arg3: memref<1x32x96xf32, #tpu.memory_space<vmem>>, %arg4: memref<1x32x32xf32, #tpu.memory_space<vmem>>, %arg5: memref<1x32x32xf32, #tpu.memory_space<vmem>>, %arg6: memref<1x32x64xf32, #tpu.memory_space<vmem>>, %arg7: memref<1x32x32xf32, #tpu.memory_space<vmem>>, %arg8: memref<1x32x64xf32, #tpu.memory_space<vmem>>, %arg9: memref<1x64x32xf32, #tpu.memory_space<vmem>>, %arg10: memref<1x16x64xf32, #tpu.memory_space<vmem>>, %arg11: memref<1x192x1xf32, #tpu.memory_space<vmem>>, %arg12: memref<2x32xf32, #tpu.memory_space<vmem>>, %arg13: memref<32x128xf32, #tpu.memory_space<vmem>>, %arg14: memref<1x16xi32, #tpu.memory_space<vmem>>, %arg15: memref<1x1xf32, #tpu.memory_space<vmem>>, %arg16: memref<1x16xi32, #tpu.memory_space<vmem>>, %arg17: memref<2x8x32xf32, #tpu.memory_space<vmem>>) attributes {dimension_semantics = [#tpu.dimension_semantics<arbitrary>], iteration_bounds = array<i64: 1>, scalar_prefetch = 0 : i64, scratch_operands = 1 : i64, tpu.core_type = #tpu.core_type<tc>, window_params = [{pipeline_mode = #tpu.pipeline_mode<synchronous>, transform_indices = @transform_0, window_bounds = array<i64: 2, 8, 32>}, {pipeline_mode = #tpu.pipeline_mode<synchronous>, transform_indices = @transform_1, window_bounds = array<i64: 2, 16, 32>}, {transform_indices = @transform_2, window_bounds = array<i64: 1, 32, 96>}, {transform_indices = @transform_3, window_bounds = array<i64: 1, 32, 32>}, {transform_indices = @transform_4, window_bounds = array<i64: 1, 32, 32>}, {transform_indices = @transform_5, window_bounds = array<i64: 1, 32, 64>}, {transform_indices = @transform_6, window_bounds = array<i64: 1, 32, 32>}, {transform_indices = @transform_7, window_bounds = array<i64: 1, 32, 64>}, {transform_indices = @transform_8, window_bounds = array<i64: 1, 64, 32>}, {transform_indices = @transform_9, window_bounds = array<i64: 1, 16, 64>}, {transform_indices = @transform_10, window_bounds = array<i64: 1, 192, 1>}, {pipeline_mode = #tpu.pipeline_mode<synchronous>, transform_indices = @transform_11, window_bounds = array<i64: 2, 32>}, {pipeline_mode = #tpu.pipeline_mode<synchronous>, transform_indices = @transform_12, window_bounds = array<i64: 32, 128>}, {pipeline_mode = #tpu.pipeline_mode<synchronous>, transform_indices = @transform_13, window_bounds = array<i64: 1, 16>}, {pipeline_mode = #tpu.pipeline_mode<synchronous>, transform_indices = @transform_14, window_bounds = array<i64: 1, 1>}, {pipeline_mode = #tpu.pipeline_mode<synchronous>, transform_indices = @transform_15, window_bounds = array<i64: 1, 16>}]} {
    %c0_i32 = arith.constant 0 : i32
    %0 = arith.cmpi eq, %arg0, %c0_i32 : i32
    %c0_i32_0 = arith.constant 0 : i32
    %1 = arith.cmpi eq, %arg0, %c0_i32_0 : i32
    %2 = arith.extui %1 : i1 to i32
    %c0_i32_1 = arith.constant 0 : i32
    %3 = arith.cmpi ne, %2, %c0_i32_1 : i32
    scf.if %3 {
      %c0_193 = arith.constant 0 : index
      %c0_194 = arith.constant 0 : index
      %c0_195 = arith.constant 0 : index
      %728 = vector.load %arg1[%c0_193, %c0_194, %c0_195] : memref<2x8x32xf32, #tpu.memory_space<vmem>>, vector<2x8x32xf32>
      %c0_196 = arith.constant 0 : index
      %c0_197 = arith.constant 0 : index
      %c0_198 = arith.constant 0 : index
      %729 = vector.load %arg17[%c0_196, %c0_197, %c0_198] : memref<2x8x32xf32, #tpu.memory_space<vmem>>, vector<2x8x32xf32>
      tpu.vector_store %arg17[%c0_196, %c0_197, %c0_198], %728 {strides = array<i32>} : memref<2x8x32xf32, #tpu.memory_space<vmem>>, vector<2x8x32xf32>,
    } else {
    }
    %c0 = arith.constant 0 : index
    %c0_2 = arith.constant 0 : index
    %c0_3 = arith.constant 0 : index
    %4 = vector.load %arg3[%c0, %c0_2, %c0_3] : memref<1x32x96xf32, #tpu.memory_space<vmem>>, vector<1x32x96xf32>
    %5 = vector.shape_cast %4 : vector<1x32x96xf32> to vector<32x96xf32>
    %c0_4 = arith.constant 0 : index
    %c0_5 = arith.constant 0 : index
    %c0_6 = arith.constant 0 : index
    %6 = vector.load %arg4[%c0_4, %c0_5, %c0_6] : memref<1x32x32xf32, #tpu.memory_space<vmem>>, vector<1x32x32xf32>
    %7 = vector.shape_cast %6 : vector<1x32x32xf32> to vector<32x32xf32>
    %c0_7 = arith.constant 0 : index
    %c0_8 = arith.constant 0 : index
    %c0_9 = arith.constant 0 : index
    %8 = vector.load %arg5[%c0_7, %c0_8, %c0_9] : memref<1x32x32xf32, #tpu.memory_space<vmem>>, vector<1x32x32xf32>
    %9 = vector.shape_cast %8 : vector<1x32x32xf32> to vector<32x32xf32>
    %c0_10 = arith.constant 0 : index
    %c0_11 = arith.constant 0 : index
    %c0_12 = arith.constant 0 : index
    %10 = vector.load %arg6[%c0_10, %c0_11, %c0_12] : memref<1x32x64xf32, #tpu.memory_space<vmem>>, vector<1x32x64xf32>
    %11 = vector.shape_cast %10 : vector<1x32x64xf32> to vector<32x64xf32>
    %c0_13 = arith.constant 0 : index
    %c0_14 = arith.constant 0 : index
    %c0_15 = arith.constant 0 : index
    %12 = vector.load %arg7[%c0_13, %c0_14, %c0_15] : memref<1x32x32xf32, #tpu.memory_space<vmem>>, vector<1x32x32xf32>
    %13 = vector.shape_cast %12 : vector<1x32x32xf32> to vector<32x32xf32>
    %c0_16 = arith.constant 0 : index
    %c0_17 = arith.constant 0 : index
    %c0_18 = arith.constant 0 : index
    %14 = vector.load %arg8[%c0_16, %c0_17, %c0_18] : memref<1x32x64xf32, #tpu.memory_space<vmem>>, vector<1x32x64xf32>
    %15 = vector.shape_cast %14 : vector<1x32x64xf32> to vector<32x64xf32>
    %c0_19 = arith.constant 0 : index
    %c0_20 = arith.constant 0 : index
    %c0_21 = arith.constant 0 : index
    %16 = vector.load %arg9[%c0_19, %c0_20, %c0_21] : memref<1x64x32xf32, #tpu.memory_space<vmem>>, vector<1x64x32xf32>
    %17 = vector.shape_cast %16 : vector<1x64x32xf32> to vector<64x32xf32>
    %c0_22 = arith.constant 0 : index
    %c0_23 = arith.constant 0 : index
    %c0_24 = arith.constant 0 : index
    %18 = vector.load %arg10[%c0_22, %c0_23, %c0_24] : memref<1x16x64xf32, #tpu.memory_space<vmem>>, vector<1x16x64xf32>
    %19 = vector.shape_cast %18 : vector<1x16x64xf32> to vector<16x64xf32>
    %c0_25 = arith.constant 0 : index
    %c0_26 = arith.constant 0 : index
    %c0_27 = arith.constant 0 : index
    %20 = vector.load %arg11[%c0_25, %c0_26, %c0_27] : memref<1x192x1xf32, #tpu.memory_space<vmem>>, vector<1x192x1xf32>
    %21 = vector.shape_cast %20 : vector<1x192x1xf32> to vector<192x1xf32>
    %c0_28 = arith.constant 0 : index
    %c0_29 = arith.constant 0 : index
    %c0_30 = arith.constant 0 : index
    %22 = vector.load %arg17[%c0_28, %c0_29, %c0_30] : memref<2x8x32xf32, #tpu.memory_space<vmem>>, vector<1x8x32xf32>
    %23 = vector.shape_cast %22 : vector<1x8x32xf32> to vector<8x32xf32>
    %c0_31 = arith.constant 0 : index
    %c0_32 = arith.constant 0 : index
    %c0_33 = arith.constant 0 : index
    %24 = vector.load %arg2[%c0_31, %c0_32, %c0_33] : memref<2x16x32xf32, #tpu.memory_space<vmem>>, vector<1x16x32xf32>
    %25 = vector.shape_cast %24 : vector<1x16x32xf32> to vector<16x32xf32>
    %26 = vector.extract_strided_slice %19 {offsets = [0, 0], sizes = [1, 32], strides = [1, 1]} : vector<16x64xf32> to vector<1x32xf32>
    %27 = vector.extract_strided_slice %19 {offsets = [1, 0], sizes = [1, 32], strides = [1, 1]} : vector<16x64xf32> to vector<1x32xf32>
    %cst = arith.constant dense<0.000000e+00> : vector<8xf32>
    %28 = vector.multi_reduction <add>, %23, %cst [1] : vector<8x32xf32> to vector<8xf32>
    %29 = vector.shape_cast %28 : vector<8xf32> to vector<8x1xf32>
    %cst_34 = arith.constant 3.200000e+01 : f32
    %30 = vector.broadcast %cst_34 : f32 to vector<8x1xf32>
    %31 = arith.divf %29, %30 : vector<8x1xf32>
    %32 = vector.broadcast %31 : vector<8x1xf32> to vector<8x32xf32>
    %33 = arith.subf %23, %32 : vector<8x32xf32>
    %34 = arith.mulf %33, %33 : vector<8x32xf32>
    %cst_35 = arith.constant dense<0.000000e+00> : vector<8xf32>
    %35 = vector.multi_reduction <add>, %34, %cst_35 [1] : vector<8x32xf32> to vector<8xf32>
    %36 = vector.shape_cast %35 : vector<8xf32> to vector<8x1xf32>
    %cst_36 = arith.constant 3.200000e+01 : f32
    %37 = vector.broadcast %cst_36 : f32 to vector<8x1xf32>
    %38 = arith.divf %36, %37 : vector<8x1xf32>
    %39 = vector.broadcast %31 : vector<8x1xf32> to vector<8x32xf32>
    %40 = arith.subf %23, %39 : vector<8x32xf32>
    %cst_37 = arith.constant 9.99999974E-6 : f32
    %41 = vector.broadcast %cst_37 : f32 to vector<8x1xf32>
    %42 = arith.addf %38, %41 : vector<8x1xf32>
    %43 = math.rsqrt %42 : vector<8x1xf32>
    %44 = vector.broadcast %43 : vector<8x1xf32> to vector<8x32xf32>
    %45 = arith.mulf %40, %44 : vector<8x32xf32>
    %46 = vector.broadcast %26 : vector<1x32xf32> to vector<8x32xf32>
    %47 = arith.mulf %45, %46 : vector<8x32xf32>
    %48 = vector.broadcast %27 : vector<1x32xf32> to vector<8x32xf32>
    %49 = arith.addf %47, %48 : vector<8x32xf32>
    %50 = arith.truncf %5 : vector<32x96xf32> to vector<32x96xbf16>
    %51 = arith.truncf %49 : vector<8x32xf32> to vector<8x32xbf16>
    %cst_38 = arith.constant dense<0.000000e+00> : vector<96x8xf32>
    %52 = tpu.matmul %50, %51, %cst_38 {dimension_numbers = #tpu.dot_dimension_numbers<[0], [1], [1], [0], [0, 1, 1, 0], [], []>} : vector<32x96xbf16>, vector<8x32xbf16>, vector<96x8xf32> -> vector<96x8xf32>
    %53 = vector.extract_strided_slice %21 {offsets = [0, 0], sizes = [96, 1], strides = [1, 1]} : vector<192x1xf32> to vector<96x1xf32>
    %54 = vector.broadcast %53 : vector<96x1xf32> to vector<96x8xf32>
    %55 = arith.addf %52, %54 : vector<96x8xf32>
    %56 = vector.extract_strided_slice %55 {offsets = [0, 0], sizes = [32, 8], strides = [1, 1]} : vector<96x8xf32> to vector<32x8xf32>
    %57 = vector.extract_strided_slice %55 {offsets = [32, 0], sizes = [32, 8], strides = [1, 1]} : vector<96x8xf32> to vector<32x8xf32>
    %58 = vector.extract_strided_slice %55 {offsets = [64, 0], sizes = [32, 8], strides = [1, 1]} : vector<96x8xf32> to vector<32x8xf32>
    %59 = tpu.iota {dimensions = array<i32: 0>} : vector<8x8xi32>
    %60 = tpu.iota {dimensions = array<i32: 1>} : vector<8x8xi32>
    %61 = arith.cmpi sge, %59, %60 : vector<8x8xi32>
    %cst_39 = arith.constant 0.000000e+00 : f32
    %cst_40 = arith.constant -1.000000e+09 : f32
    %62 = vector.broadcast %cst_39 : f32 to vector<8x8xf32>
    %63 = vector.broadcast %cst_40 : f32 to vector<8x8xf32>
    %64 = arith.select %61, %62, %63 : vector<8x8xi1>, vector<8x8xf32>
    %65 = vector.extract_strided_slice %56 {offsets = [0, 0], sizes = [8, 8], strides = [1, 1]} : vector<32x8xf32> to vector<8x8xf32>
    %66 = vector.extract_strided_slice %57 {offsets = [0, 0], sizes = [8, 8], strides = [1, 1]} : vector<32x8xf32> to vector<8x8xf32>
    %67 = vector.extract_strided_slice %58 {offsets = [0, 0], sizes = [8, 8], strides = [1, 1]} : vector<32x8xf32> to vector<8x8xf32>
    %68 = arith.truncf %65 : vector<8x8xf32> to vector<8x8xbf16>
    %69 = arith.truncf %66 : vector<8x8xf32> to vector<8x8xbf16>
    %cst_41 = arith.constant dense<0.000000e+00> : vector<8x8xf32>
    %70 = tpu.matmul %68, %69, %cst_41 {dimension_numbers = #tpu.dot_dimension_numbers<[0], [0], [1], [1], [0, 1, 1, 1], [], []>} : vector<8x8xbf16>, vector<8x8xbf16>, vector<8x8xf32> -> vector<8x8xf32>
    %cst_42 = arith.constant 0.353553385 : f32
    %71 = vector.broadcast %cst_42 : f32 to vector<8x8xf32>
    %72 = arith.mulf %70, %71 : vector<8x8xf32>
    %73 = arith.addf %72, %64 : vector<8x8xf32>
    %cst_43 = arith.constant dense<0xFF800000> : vector<8xf32>
    %74 = vector.multi_reduction <maximumf>, %73, %cst_43 [1] : vector<8x8xf32> to vector<8xf32>
    %75 = vector.shape_cast %74 : vector<8xf32> to vector<8x1xf32>
    %76 = vector.broadcast %75 : vector<8x1xf32> to vector<8x8xf32>
    %77 = arith.subf %73, %76 : vector<8x8xf32>
    %78 = math.exp %77 : vector<8x8xf32>
    %cst_44 = arith.constant dense<0.000000e+00> : vector<8xf32>
    %79 = vector.multi_reduction <add>, %78, %cst_44 [1] : vector<8x8xf32> to vector<8xf32>
    %80 = vector.shape_cast %79 : vector<8xf32> to vector<8x1xf32>
    %81 = tpu.reciprocal %80 {approx = true} : vector<8x1xf32> -> vector<8x1xf32>
    %82 = vector.broadcast %81 : vector<8x1xf32> to vector<8x8xf32>
    %83 = arith.mulf %78, %82 : vector<8x8xf32>
    %84 = arith.truncf %67 : vector<8x8xf32> to vector<8x8xbf16>
    %85 = arith.truncf %83 : vector<8x8xf32> to vector<8x8xbf16>
    %cst_45 = arith.constant dense<0.000000e+00> : vector<8x8xf32>
    %86 = tpu.matmul %84, %85, %cst_45 {dimension_numbers = #tpu.dot_dimension_numbers<[1], [1], [0], [0], [0, 0, 1, 0], [], []>} : vector<8x8xbf16>, vector<8x8xbf16>, vector<8x8xf32> -> vector<8x8xf32>
    %87 = vector.extract_strided_slice %7 {offsets = [0, 0], sizes = [8, 32], strides = [1, 1]} : vector<32x32xf32> to vector<8x32xf32>
    %88 = arith.truncf %86 : vector<8x8xf32> to vector<8x8xbf16>
    %89 = arith.truncf %87 : vector<8x32xf32> to vector<8x32xbf16>
    %cst_46 = arith.constant dense<0.000000e+00> : vector<8x32xf32>
    %90 = tpu.matmul %88, %89, %cst_46 {dimension_numbers = #tpu.dot_dimension_numbers<[0], [0], [1], [1], [0, 1, 1, 1], [], []>} : vector<8x8xbf16>, vector<8x32xbf16>, vector<8x32xf32> -> vector<8x32xf32>
    %91 = vector.extract_strided_slice %56 {offsets = [8, 0], sizes = [8, 8], strides = [1, 1]} : vector<32x8xf32> to vector<8x8xf32>
    %92 = vector.extract_strided_slice %57 {offsets = [8, 0], sizes = [8, 8], strides = [1, 1]} : vector<32x8xf32> to vector<8x8xf32>
    %93 = vector.extract_strided_slice %58 {offsets = [8, 0], sizes = [8, 8], strides = [1, 1]} : vector<32x8xf32> to vector<8x8xf32>
    %94 = arith.truncf %91 : vector<8x8xf32> to vector<8x8xbf16>
    %95 = arith.truncf %92 : vector<8x8xf32> to vector<8x8xbf16>
    %cst_47 = arith.constant dense<0.000000e+00> : vector<8x8xf32>
    %96 = tpu.matmul %94, %95, %cst_47 {dimension_numbers = #tpu.dot_dimension_numbers<[0], [0], [1], [1], [0, 1, 1, 1], [], []>} : vector<8x8xbf16>, vector<8x8xbf16>, vector<8x8xf32> -> vector<8x8xf32>
    %cst_48 = arith.constant 0.353553385 : f32
    %97 = vector.broadcast %cst_48 : f32 to vector<8x8xf32>
    %98 = arith.mulf %96, %97 : vector<8x8xf32>
    %99 = arith.addf %98, %64 : vector<8x8xf32>
    %cst_49 = arith.constant dense<0xFF800000> : vector<8xf32>
    %100 = vector.multi_reduction <maximumf>, %99, %cst_49 [1] : vector<8x8xf32> to vector<8xf32>
    %101 = vector.shape_cast %100 : vector<8xf32> to vector<8x1xf32>
    %102 = vector.broadcast %101 : vector<8x1xf32> to vector<8x8xf32>
    %103 = arith.subf %99, %102 : vector<8x8xf32>
    %104 = math.exp %103 : vector<8x8xf32>
    %cst_50 = arith.constant dense<0.000000e+00> : vector<8xf32>
    %105 = vector.multi_reduction <add>, %104, %cst_50 [1] : vector<8x8xf32> to vector<8xf32>
    %106 = vector.shape_cast %105 : vector<8xf32> to vector<8x1xf32>
    %107 = tpu.reciprocal %106 {approx = true} : vector<8x1xf32> -> vector<8x1xf32>
    %108 = vector.broadcast %107 : vector<8x1xf32> to vector<8x8xf32>
    %109 = arith.mulf %104, %108 : vector<8x8xf32>
    %110 = arith.truncf %93 : vector<8x8xf32> to vector<8x8xbf16>
    %111 = arith.truncf %109 : vector<8x8xf32> to vector<8x8xbf16>
    %cst_51 = arith.constant dense<0.000000e+00> : vector<8x8xf32>
    %112 = tpu.matmul %110, %111, %cst_51 {dimension_numbers = #tpu.dot_dimension_numbers<[1], [1], [0], [0], [0, 0, 1, 0], [], []>} : vector<8x8xbf16>, vector<8x8xbf16>, vector<8x8xf32> -> vector<8x8xf32>
    %113 = vector.extract_strided_slice %7 {offsets = [8, 0], sizes = [8, 32], strides = [1, 1]} : vector<32x32xf32> to vector<8x32xf32>
    %114 = arith.truncf %112 : vector<8x8xf32> to vector<8x8xbf16>
    %115 = arith.truncf %113 : vector<8x32xf32> to vector<8x32xbf16>
    %cst_52 = arith.constant dense<0.000000e+00> : vector<8x32xf32>
    %116 = tpu.matmul %114, %115, %cst_52 {dimension_numbers = #tpu.dot_dimension_numbers<[0], [0], [1], [1], [0, 1, 1, 1], [], []>} : vector<8x8xbf16>, vector<8x32xbf16>, vector<8x32xf32> -> vector<8x32xf32>
    %117 = arith.addf %90, %116 : vector<8x32xf32>
    %118 = vector.extract_strided_slice %56 {offsets = [16, 0], sizes = [8, 8], strides = [1, 1]} : vector<32x8xf32> to vector<8x8xf32>
    %119 = vector.extract_strided_slice %57 {offsets = [16, 0], sizes = [8, 8], strides = [1, 1]} : vector<32x8xf32> to vector<8x8xf32>
    %120 = vector.extract_strided_slice %58 {offsets = [16, 0], sizes = [8, 8], strides = [1, 1]} : vector<32x8xf32> to vector<8x8xf32>
    %121 = arith.truncf %118 : vector<8x8xf32> to vector<8x8xbf16>
    %122 = arith.truncf %119 : vector<8x8xf32> to vector<8x8xbf16>
    %cst_53 = arith.constant dense<0.000000e+00> : vector<8x8xf32>
    %123 = tpu.matmul %121, %122, %cst_53 {dimension_numbers = #tpu.dot_dimension_numbers<[0], [0], [1], [1], [0, 1, 1, 1], [], []>} : vector<8x8xbf16>, vector<8x8xbf16>, vector<8x8xf32> -> vector<8x8xf32>
    %cst_54 = arith.constant 0.353553385 : f32
    %124 = vector.broadcast %cst_54 : f32 to vector<8x8xf32>
    %125 = arith.mulf %123, %124 : vector<8x8xf32>
    %126 = arith.addf %125, %64 : vector<8x8xf32>
    %cst_55 = arith.constant dense<0xFF800000> : vector<8xf32>
    %127 = vector.multi_reduction <maximumf>, %126, %cst_55 [1] : vector<8x8xf32> to vector<8xf32>
    %128 = vector.shape_cast %127 : vector<8xf32> to vector<8x1xf32>
    %129 = vector.broadcast %128 : vector<8x1xf32> to vector<8x8xf32>
    %130 = arith.subf %126, %129 : vector<8x8xf32>
    %131 = math.exp %130 : vector<8x8xf32>
    %cst_56 = arith.constant dense<0.000000e+00> : vector<8xf32>
    %132 = vector.multi_reduction <add>, %131, %cst_56 [1] : vector<8x8xf32> to vector<8xf32>
    %133 = vector.shape_cast %132 : vector<8xf32> to vector<8x1xf32>
    %134 = tpu.reciprocal %133 {approx = true} : vector<8x1xf32> -> vector<8x1xf32>
    %135 = vector.broadcast %134 : vector<8x1xf32> to vector<8x8xf32>
    %136 = arith.mulf %131, %135 : vector<8x8xf32>
    %137 = arith.truncf %120 : vector<8x8xf32> to vector<8x8xbf16>
    %138 = arith.truncf %136 : vector<8x8xf32> to vector<8x8xbf16>
    %cst_57 = arith.constant dense<0.000000e+00> : vector<8x8xf32>
    %139 = tpu.matmul %137, %138, %cst_57 {dimension_numbers = #tpu.dot_dimension_numbers<[1], [1], [0], [0], [0, 0, 1, 0], [], []>} : vector<8x8xbf16>, vector<8x8xbf16>, vector<8x8xf32> -> vector<8x8xf32>
    %140 = vector.extract_strided_slice %7 {offsets = [16, 0], sizes = [8, 32], strides = [1, 1]} : vector<32x32xf32> to vector<8x32xf32>
    %141 = arith.truncf %139 : vector<8x8xf32> to vector<8x8xbf16>
    %142 = arith.truncf %140 : vector<8x32xf32> to vector<8x32xbf16>
    %cst_58 = arith.constant dense<0.000000e+00> : vector<8x32xf32>
    %143 = tpu.matmul %141, %142, %cst_58 {dimension_numbers = #tpu.dot_dimension_numbers<[0], [0], [1], [1], [0, 1, 1, 1], [], []>} : vector<8x8xbf16>, vector<8x32xbf16>, vector<8x32xf32> -> vector<8x32xf32>
    %144 = arith.addf %117, %143 : vector<8x32xf32>
    %145 = vector.extract_strided_slice %56 {offsets = [24, 0], sizes = [8, 8], strides = [1, 1]} : vector<32x8xf32> to vector<8x8xf32>
    %146 = vector.extract_strided_slice %57 {offsets = [24, 0], sizes = [8, 8], strides = [1, 1]} : vector<32x8xf32> to vector<8x8xf32>
    %147 = vector.extract_strided_slice %58 {offsets = [24, 0], sizes = [8, 8], strides = [1, 1]} : vector<32x8xf32> to vector<8x8xf32>
    %148 = arith.truncf %145 : vector<8x8xf32> to vector<8x8xbf16>
    %149 = arith.truncf %146 : vector<8x8xf32> to vector<8x8xbf16>
    %cst_59 = arith.constant dense<0.000000e+00> : vector<8x8xf32>
    %150 = tpu.matmul %148, %149, %cst_59 {dimension_numbers = #tpu.dot_dimension_numbers<[0], [0], [1], [1], [0, 1, 1, 1], [], []>} : vector<8x8xbf16>, vector<8x8xbf16>, vector<8x8xf32> -> vector<8x8xf32>
    %cst_60 = arith.constant 0.353553385 : f32
    %151 = vector.broadcast %cst_60 : f32 to vector<8x8xf32>
    %152 = arith.mulf %150, %151 : vector<8x8xf32>
    %153 = arith.addf %152, %64 : vector<8x8xf32>
    %cst_61 = arith.constant dense<0xFF800000> : vector<8xf32>
    %154 = vector.multi_reduction <maximumf>, %153, %cst_61 [1] : vector<8x8xf32> to vector<8xf32>
    %155 = vector.shape_cast %154 : vector<8xf32> to vector<8x1xf32>
    %156 = vector.broadcast %155 : vector<8x1xf32> to vector<8x8xf32>
    %157 = arith.subf %153, %156 : vector<8x8xf32>
    %158 = math.exp %157 : vector<8x8xf32>
    %cst_62 = arith.constant dense<0.000000e+00> : vector<8xf32>
    %159 = vector.multi_reduction <add>, %158, %cst_62 [1] : vector<8x8xf32> to vector<8xf32>
    %160 = vector.shape_cast %159 : vector<8xf32> to vector<8x1xf32>
    %161 = tpu.reciprocal %160 {approx = true} : vector<8x1xf32> -> vector<8x1xf32>
    %162 = vector.broadcast %161 : vector<8x1xf32> to vector<8x8xf32>
    %163 = arith.mulf %158, %162 : vector<8x8xf32>
    %164 = arith.truncf %147 : vector<8x8xf32> to vector<8x8xbf16>
    %165 = arith.truncf %163 : vector<8x8xf32> to vector<8x8xbf16>
    %cst_63 = arith.constant dense<0.000000e+00> : vector<8x8xf32>
    %166 = tpu.matmul %164, %165, %cst_63 {dimension_numbers = #tpu.dot_dimension_numbers<[1], [1], [0], [0], [0, 0, 1, 0], [], []>} : vector<8x8xbf16>, vector<8x8xbf16>, vector<8x8xf32> -> vector<8x8xf32>
    %167 = vector.extract_strided_slice %7 {offsets = [24, 0], sizes = [8, 32], strides = [1, 1]} : vector<32x32xf32> to vector<8x32xf32>
    %168 = arith.truncf %166 : vector<8x8xf32> to vector<8x8xbf16>
    %169 = arith.truncf %167 : vector<8x32xf32> to vector<8x32xbf16>
    %cst_64 = arith.constant dense<0.000000e+00> : vector<8x32xf32>
    %170 = tpu.matmul %168, %169, %cst_64 {dimension_numbers = #tpu.dot_dimension_numbers<[0], [0], [1], [1], [0, 1, 1, 1], [], []>} : vector<8x8xbf16>, vector<8x32xbf16>, vector<8x32xf32> -> vector<8x32xf32>
    %171 = arith.addf %144, %170 : vector<8x32xf32>
    %172 = arith.addf %23, %171 : vector<8x32xf32>
    %173 = vector.extract_strided_slice %19 {offsets = [6, 0], sizes = [1, 32], strides = [1, 1]} : vector<16x64xf32> to vector<1x32xf32>
    %174 = vector.broadcast %173 : vector<1x32xf32> to vector<8x32xf32>
    %175 = arith.addf %172, %174 : vector<8x32xf32>
    %176 = vector.extract_strided_slice %19 {offsets = [2, 0], sizes = [1, 32], strides = [1, 1]} : vector<16x64xf32> to vector<1x32xf32>
    %177 = vector.extract_strided_slice %19 {offsets = [3, 0], sizes = [1, 32], strides = [1, 1]} : vector<16x64xf32> to vector<1x32xf32>
    %cst_65 = arith.constant dense<0.000000e+00> : vector<8xf32>
    %178 = vector.multi_reduction <add>, %175, %cst_65 [1] : vector<8x32xf32> to vector<8xf32>
    %179 = vector.shape_cast %178 : vector<8xf32> to vector<8x1xf32>
    %cst_66 = arith.constant 3.200000e+01 : f32
    %180 = vector.broadcast %cst_66 : f32 to vector<8x1xf32>
    %181 = arith.divf %179, %180 : vector<8x1xf32>
    %182 = vector.broadcast %181 : vector<8x1xf32> to vector<8x32xf32>
    %183 = arith.subf %175, %182 : vector<8x32xf32>
    %184 = arith.mulf %183, %183 : vector<8x32xf32>
    %cst_67 = arith.constant dense<0.000000e+00> : vector<8xf32>
    %185 = vector.multi_reduction <add>, %184, %cst_67 [1] : vector<8x32xf32> to vector<8xf32>
    %186 = vector.shape_cast %185 : vector<8xf32> to vector<8x1xf32>
    %cst_68 = arith.constant 3.200000e+01 : f32
    %187 = vector.broadcast %cst_68 : f32 to vector<8x1xf32>
    %188 = arith.divf %186, %187 : vector<8x1xf32>
    %189 = vector.broadcast %181 : vector<8x1xf32> to vector<8x32xf32>
    %190 = arith.subf %175, %189 : vector<8x32xf32>
    %cst_69 = arith.constant 9.99999974E-6 : f32
    %191 = vector.broadcast %cst_69 : f32 to vector<8x1xf32>
    %192 = arith.addf %188, %191 : vector<8x1xf32>
    %193 = math.rsqrt %192 : vector<8x1xf32>
    %194 = vector.broadcast %193 : vector<8x1xf32> to vector<8x32xf32>
    %195 = arith.mulf %190, %194 : vector<8x32xf32>
    %196 = vector.broadcast %176 : vector<1x32xf32> to vector<8x32xf32>
    %197 = arith.mulf %195, %196 : vector<8x32xf32>
    %198 = vector.broadcast %177 : vector<1x32xf32> to vector<8x32xf32>
    %199 = arith.addf %197, %198 : vector<8x32xf32>
    %200 = arith.truncf %9 : vector<32x32xf32> to vector<32x32xbf16>
    %201 = arith.truncf %199 : vector<8x32xf32> to vector<8x32xbf16>
    %cst_70 = arith.constant dense<0.000000e+00> : vector<32x8xf32>
    %202 = tpu.matmul %200, %201, %cst_70 {dimension_numbers = #tpu.dot_dimension_numbers<[0], [1], [1], [0], [0, 1, 1, 0], [], []>} : vector<32x32xbf16>, vector<8x32xbf16>, vector<32x8xf32> -> vector<32x8xf32>
    %203 = vector.extract_strided_slice %21 {offsets = [96, 0], sizes = [32, 1], strides = [1, 1]} : vector<192x1xf32> to vector<32x1xf32>
    %204 = vector.broadcast %203 : vector<32x1xf32> to vector<32x8xf32>
    %205 = arith.addf %202, %204 : vector<32x8xf32>
    %206 = arith.truncf %11 : vector<32x64xf32> to vector<32x64xbf16>
    %207 = arith.truncf %25 : vector<16x32xf32> to vector<16x32xbf16>
    %cst_71 = arith.constant dense<0.000000e+00> : vector<64x16xf32>
    %208 = tpu.matmul %206, %207, %cst_71 {dimension_numbers = #tpu.dot_dimension_numbers<[0], [1], [1], [0], [0, 1, 1, 0], [], []>} : vector<32x64xbf16>, vector<16x32xbf16>, vector<64x16xf32> -> vector<64x16xf32>
    %209 = vector.extract_strided_slice %21 {offsets = [128, 0], sizes = [64, 1], strides = [1, 1]} : vector<192x1xf32> to vector<64x1xf32>
    %210 = vector.broadcast %209 : vector<64x1xf32> to vector<64x16xf32>
    %211 = arith.addf %208, %210 : vector<64x16xf32>
    %212 = vector.extract_strided_slice %211 {offsets = [0, 0], sizes = [32, 16], strides = [1, 1]} : vector<64x16xf32> to vector<32x16xf32>
    %213 = vector.extract_strided_slice %211 {offsets = [32, 0], sizes = [32, 16], strides = [1, 1]} : vector<64x16xf32> to vector<32x16xf32>
    %214 = vector.extract_strided_slice %205 {offsets = [0, 0], sizes = [8, 8], strides = [1, 1]} : vector<32x8xf32> to vector<8x8xf32>
    %215 = vector.extract_strided_slice %212 {offsets = [0, 0], sizes = [8, 16], strides = [1, 1]} : vector<32x16xf32> to vector<8x16xf32>
    %216 = vector.extract_strided_slice %213 {offsets = [0, 0], sizes = [8, 16], strides = [1, 1]} : vector<32x16xf32> to vector<8x16xf32>
    %217 = arith.truncf %214 : vector<8x8xf32> to vector<8x8xbf16>
    %218 = arith.truncf %215 : vector<8x16xf32> to vector<8x16xbf16>
    %cst_72 = arith.constant dense<0.000000e+00> : vector<8x16xf32>
    %219 = tpu.matmul %217, %218, %cst_72 {dimension_numbers = #tpu.dot_dimension_numbers<[0], [0], [1], [1], [0, 1, 1, 1], [], []>} : vector<8x8xbf16>, vector<8x16xbf16>, vector<8x16xf32> -> vector<8x16xf32>
    %cst_73 = arith.constant 0.353553385 : f32
    %220 = vector.broadcast %cst_73 : f32 to vector<8x16xf32>
    %221 = arith.mulf %219, %220 : vector<8x16xf32>
    %cst_74 = arith.constant dense<0xFF800000> : vector<8xf32>
    %222 = vector.multi_reduction <maximumf>, %221, %cst_74 [1] : vector<8x16xf32> to vector<8xf32>
    %223 = vector.shape_cast %222 : vector<8xf32> to vector<8x1xf32>
    %224 = vector.broadcast %223 : vector<8x1xf32> to vector<8x16xf32>
    %225 = arith.subf %221, %224 : vector<8x16xf32>
    %226 = math.exp %225 : vector<8x16xf32>
    %cst_75 = arith.constant dense<0.000000e+00> : vector<8xf32>
    %227 = vector.multi_reduction <add>, %226, %cst_75 [1] : vector<8x16xf32> to vector<8xf32>
    %228 = vector.shape_cast %227 : vector<8xf32> to vector<8x1xf32>
    %229 = tpu.reciprocal %228 {approx = true} : vector<8x1xf32> -> vector<8x1xf32>
    %230 = vector.broadcast %229 : vector<8x1xf32> to vector<8x16xf32>
    %231 = arith.mulf %226, %230 : vector<8x16xf32>
    %232 = arith.truncf %216 : vector<8x16xf32> to vector<8x16xbf16>
    %233 = arith.truncf %231 : vector<8x16xf32> to vector<8x16xbf16>
    %cst_76 = arith.constant dense<0.000000e+00> : vector<8x8xf32>
    %234 = tpu.matmul %232, %233, %cst_76 {dimension_numbers = #tpu.dot_dimension_numbers<[1], [1], [0], [0], [0, 0, 1, 0], [], []>} : vector<8x16xbf16>, vector<8x16xbf16>, vector<8x8xf32> -> vector<8x8xf32>
    %235 = vector.extract_strided_slice %13 {offsets = [0, 0], sizes = [8, 32], strides = [1, 1]} : vector<32x32xf32> to vector<8x32xf32>
    %236 = arith.truncf %234 : vector<8x8xf32> to vector<8x8xbf16>
    %237 = arith.truncf %235 : vector<8x32xf32> to vector<8x32xbf16>
    %cst_77 = arith.constant dense<0.000000e+00> : vector<8x32xf32>
    %238 = tpu.matmul %236, %237, %cst_77 {dimension_numbers = #tpu.dot_dimension_numbers<[0], [0], [1], [1], [0, 1, 1, 1], [], []>} : vector<8x8xbf16>, vector<8x32xbf16>, vector<8x32xf32> -> vector<8x32xf32>
    %239 = vector.extract_strided_slice %205 {offsets = [8, 0], sizes = [8, 8], strides = [1, 1]} : vector<32x8xf32> to vector<8x8xf32>
    %240 = vector.extract_strided_slice %212 {offsets = [8, 0], sizes = [8, 16], strides = [1, 1]} : vector<32x16xf32> to vector<8x16xf32>
    %241 = vector.extract_strided_slice %213 {offsets = [8, 0], sizes = [8, 16], strides = [1, 1]} : vector<32x16xf32> to vector<8x16xf32>
    %242 = arith.truncf %239 : vector<8x8xf32> to vector<8x8xbf16>
    %243 = arith.truncf %240 : vector<8x16xf32> to vector<8x16xbf16>
    %cst_78 = arith.constant dense<0.000000e+00> : vector<8x16xf32>
    %244 = tpu.matmul %242, %243, %cst_78 {dimension_numbers = #tpu.dot_dimension_numbers<[0], [0], [1], [1], [0, 1, 1, 1], [], []>} : vector<8x8xbf16>, vector<8x16xbf16>, vector<8x16xf32> -> vector<8x16xf32>
    %cst_79 = arith.constant 0.353553385 : f32
    %245 = vector.broadcast %cst_79 : f32 to vector<8x16xf32>
    %246 = arith.mulf %244, %245 : vector<8x16xf32>
    %cst_80 = arith.constant dense<0xFF800000> : vector<8xf32>
    %247 = vector.multi_reduction <maximumf>, %246, %cst_80 [1] : vector<8x16xf32> to vector<8xf32>
    %248 = vector.shape_cast %247 : vector<8xf32> to vector<8x1xf32>
    %249 = vector.broadcast %248 : vector<8x1xf32> to vector<8x16xf32>
    %250 = arith.subf %246, %249 : vector<8x16xf32>
    %251 = math.exp %250 : vector<8x16xf32>
    %cst_81 = arith.constant dense<0.000000e+00> : vector<8xf32>
    %252 = vector.multi_reduction <add>, %251, %cst_81 [1] : vector<8x16xf32> to vector<8xf32>
    %253 = vector.shape_cast %252 : vector<8xf32> to vector<8x1xf32>
    %254 = tpu.reciprocal %253 {approx = true} : vector<8x1xf32> -> vector<8x1xf32>
    %255 = vector.broadcast %254 : vector<8x1xf32> to vector<8x16xf32>
    %256 = arith.mulf %251, %255 : vector<8x16xf32>
    %257 = arith.truncf %241 : vector<8x16xf32> to vector<8x16xbf16>
    %258 = arith.truncf %256 : vector<8x16xf32> to vector<8x16xbf16>
    %cst_82 = arith.constant dense<0.000000e+00> : vector<8x8xf32>
    %259 = tpu.matmul %257, %258, %cst_82 {dimension_numbers = #tpu.dot_dimension_numbers<[1], [1], [0], [0], [0, 0, 1, 0], [], []>} : vector<8x16xbf16>, vector<8x16xbf16>, vector<8x8xf32> -> vector<8x8xf32>
    %260 = vector.extract_strided_slice %13 {offsets = [8, 0], sizes = [8, 32], strides = [1, 1]} : vector<32x32xf32> to vector<8x32xf32>
    %261 = arith.truncf %259 : vector<8x8xf32> to vector<8x8xbf16>
    %262 = arith.truncf %260 : vector<8x32xf32> to vector<8x32xbf16>
    %cst_83 = arith.constant dense<0.000000e+00> : vector<8x32xf32>
    %263 = tpu.matmul %261, %262, %cst_83 {dimension_numbers = #tpu.dot_dimension_numbers<[0], [0], [1], [1], [0, 1, 1, 1], [], []>} : vector<8x8xbf16>, vector<8x32xbf16>, vector<8x32xf32> -> vector<8x32xf32>
    %264 = arith.addf %238, %263 : vector<8x32xf32>
    %265 = vector.extract_strided_slice %205 {offsets = [16, 0], sizes = [8, 8], strides = [1, 1]} : vector<32x8xf32> to vector<8x8xf32>
    %266 = vector.extract_strided_slice %212 {offsets = [16, 0], sizes = [8, 16], strides = [1, 1]} : vector<32x16xf32> to vector<8x16xf32>
    %267 = vector.extract_strided_slice %213 {offsets = [16, 0], sizes = [8, 16], strides = [1, 1]} : vector<32x16xf32> to vector<8x16xf32>
    %268 = arith.truncf %265 : vector<8x8xf32> to vector<8x8xbf16>
    %269 = arith.truncf %266 : vector<8x16xf32> to vector<8x16xbf16>
    %cst_84 = arith.constant dense<0.000000e+00> : vector<8x16xf32>
    %270 = tpu.matmul %268, %269, %cst_84 {dimension_numbers = #tpu.dot_dimension_numbers<[0], [0], [1], [1], [0, 1, 1, 1], [], []>} : vector<8x8xbf16>, vector<8x16xbf16>, vector<8x16xf32> -> vector<8x16xf32>
    %cst_85 = arith.constant 0.353553385 : f32
    %271 = vector.broadcast %cst_85 : f32 to vector<8x16xf32>
    %272 = arith.mulf %270, %271 : vector<8x16xf32>
    %cst_86 = arith.constant dense<0xFF800000> : vector<8xf32>
    %273 = vector.multi_reduction <maximumf>, %272, %cst_86 [1] : vector<8x16xf32> to vector<8xf32>
    %274 = vector.shape_cast %273 : vector<8xf32> to vector<8x1xf32>
    %275 = vector.broadcast %274 : vector<8x1xf32> to vector<8x16xf32>
    %276 = arith.subf %272, %275 : vector<8x16xf32>
    %277 = math.exp %276 : vector<8x16xf32>
    %cst_87 = arith.constant dense<0.000000e+00> : vector<8xf32>
    %278 = vector.multi_reduction <add>, %277, %cst_87 [1] : vector<8x16xf32> to vector<8xf32>
    %279 = vector.shape_cast %278 : vector<8xf32> to vector<8x1xf32>
    %280 = tpu.reciprocal %279 {approx = true} : vector<8x1xf32> -> vector<8x1xf32>
    %281 = vector.broadcast %280 : vector<8x1xf32> to vector<8x16xf32>
    %282 = arith.mulf %277, %281 : vector<8x16xf32>
    %283 = arith.truncf %267 : vector<8x16xf32> to vector<8x16xbf16>
    %284 = arith.truncf %282 : vector<8x16xf32> to vector<8x16xbf16>
    %cst_88 = arith.constant dense<0.000000e+00> : vector<8x8xf32>
    %285 = tpu.matmul %283, %284, %cst_88 {dimension_numbers = #tpu.dot_dimension_numbers<[1], [1], [0], [0], [0, 0, 1, 0], [], []>} : vector<8x16xbf16>, vector<8x16xbf16>, vector<8x8xf32> -> vector<8x8xf32>
    %286 = vector.extract_strided_slice %13 {offsets = [16, 0], sizes = [8, 32], strides = [1, 1]} : vector<32x32xf32> to vector<8x32xf32>
    %287 = arith.truncf %285 : vector<8x8xf32> to vector<8x8xbf16>
    %288 = arith.truncf %286 : vector<8x32xf32> to vector<8x32xbf16>
    %cst_89 = arith.constant dense<0.000000e+00> : vector<8x32xf32>
    %289 = tpu.matmul %287, %288, %cst_89 {dimension_numbers = #tpu.dot_dimension_numbers<[0], [0], [1], [1], [0, 1, 1, 1], [], []>} : vector<8x8xbf16>, vector<8x32xbf16>, vector<8x32xf32> -> vector<8x32xf32>
    %290 = arith.addf %264, %289 : vector<8x32xf32>
    %291 = vector.extract_strided_slice %205 {offsets = [24, 0], sizes = [8, 8], strides = [1, 1]} : vector<32x8xf32> to vector<8x8xf32>
    %292 = vector.extract_strided_slice %212 {offsets = [24, 0], sizes = [8, 16], strides = [1, 1]} : vector<32x16xf32> to vector<8x16xf32>
    %293 = vector.extract_strided_slice %213 {offsets = [24, 0], sizes = [8, 16], strides = [1, 1]} : vector<32x16xf32> to vector<8x16xf32>
    %294 = arith.truncf %291 : vector<8x8xf32> to vector<8x8xbf16>
    %295 = arith.truncf %292 : vector<8x16xf32> to vector<8x16xbf16>
    %cst_90 = arith.constant dense<0.000000e+00> : vector<8x16xf32>
    %296 = tpu.matmul %294, %295, %cst_90 {dimension_numbers = #tpu.dot_dimension_numbers<[0], [0], [1], [1], [0, 1, 1, 1], [], []>} : vector<8x8xbf16>, vector<8x16xbf16>, vector<8x16xf32> -> vector<8x16xf32>
    %cst_91 = arith.constant 0.353553385 : f32
    %297 = vector.broadcast %cst_91 : f32 to vector<8x16xf32>
    %298 = arith.mulf %296, %297 : vector<8x16xf32>
    %cst_92 = arith.constant dense<0xFF800000> : vector<8xf32>
    %299 = vector.multi_reduction <maximumf>, %298, %cst_92 [1] : vector<8x16xf32> to vector<8xf32>
    %300 = vector.shape_cast %299 : vector<8xf32> to vector<8x1xf32>
    %301 = vector.broadcast %300 : vector<8x1xf32> to vector<8x16xf32>
    %302 = arith.subf %298, %301 : vector<8x16xf32>
    %303 = math.exp %302 : vector<8x16xf32>
    %cst_93 = arith.constant dense<0.000000e+00> : vector<8xf32>
    %304 = vector.multi_reduction <add>, %303, %cst_93 [1] : vector<8x16xf32> to vector<8xf32>
    %305 = vector.shape_cast %304 : vector<8xf32> to vector<8x1xf32>
    %306 = tpu.reciprocal %305 {approx = true} : vector<8x1xf32> -> vector<8x1xf32>
    %307 = vector.broadcast %306 : vector<8x1xf32> to vector<8x16xf32>
    %308 = arith.mulf %303, %307 : vector<8x16xf32>
    %309 = arith.truncf %293 : vector<8x16xf32> to vector<8x16xbf16>
    %310 = arith.truncf %308 : vector<8x16xf32> to vector<8x16xbf16>
    %cst_94 = arith.constant dense<0.000000e+00> : vector<8x8xf32>
    %311 = tpu.matmul %309, %310, %cst_94 {dimension_numbers = #tpu.dot_dimension_numbers<[1], [1], [0], [0], [0, 0, 1, 0], [], []>} : vector<8x16xbf16>, vector<8x16xbf16>, vector<8x8xf32> -> vector<8x8xf32>
    %312 = vector.extract_strided_slice %13 {offsets = [24, 0], sizes = [8, 32], strides = [1, 1]} : vector<32x32xf32> to vector<8x32xf32>
    %313 = arith.truncf %311 : vector<8x8xf32> to vector<8x8xbf16>
    %314 = arith.truncf %312 : vector<8x32xf32> to vector<8x32xbf16>
    %cst_95 = arith.constant dense<0.000000e+00> : vector<8x32xf32>
    %315 = tpu.matmul %313, %314, %cst_95 {dimension_numbers = #tpu.dot_dimension_numbers<[0], [0], [1], [1], [0, 1, 1, 1], [], []>} : vector<8x8xbf16>, vector<8x32xbf16>, vector<8x32xf32> -> vector<8x32xf32>
    %316 = arith.addf %290, %315 : vector<8x32xf32>
    %317 = arith.addf %175, %316 : vector<8x32xf32>
    %318 = vector.extract_strided_slice %19 {offsets = [7, 0], sizes = [1, 32], strides = [1, 1]} : vector<16x64xf32> to vector<1x32xf32>
    %319 = vector.broadcast %318 : vector<1x32xf32> to vector<8x32xf32>
    %320 = arith.addf %317, %319 : vector<8x32xf32>
    %321 = vector.extract_strided_slice %19 {offsets = [4, 0], sizes = [1, 32], strides = [1, 1]} : vector<16x64xf32> to vector<1x32xf32>
    %322 = vector.extract_strided_slice %19 {offsets = [5, 0], sizes = [1, 32], strides = [1, 1]} : vector<16x64xf32> to vector<1x32xf32>
    %cst_96 = arith.constant dense<0.000000e+00> : vector<8xf32>
    %323 = vector.multi_reduction <add>, %320, %cst_96 [1] : vector<8x32xf32> to vector<8xf32>
    %324 = vector.shape_cast %323 : vector<8xf32> to vector<8x1xf32>
    %cst_97 = arith.constant 3.200000e+01 : f32
    %325 = vector.broadcast %cst_97 : f32 to vector<8x1xf32>
    %326 = arith.divf %324, %325 : vector<8x1xf32>
    %327 = vector.broadcast %326 : vector<8x1xf32> to vector<8x32xf32>
    %328 = arith.subf %320, %327 : vector<8x32xf32>
    %329 = arith.mulf %328, %328 : vector<8x32xf32>
    %cst_98 = arith.constant dense<0.000000e+00> : vector<8xf32>
    %330 = vector.multi_reduction <add>, %329, %cst_98 [1] : vector<8x32xf32> to vector<8xf32>
    %331 = vector.shape_cast %330 : vector<8xf32> to vector<8x1xf32>
    %cst_99 = arith.constant 3.200000e+01 : f32
    %332 = vector.broadcast %cst_99 : f32 to vector<8x1xf32>
    %333 = arith.divf %331, %332 : vector<8x1xf32>
    %334 = vector.broadcast %326 : vector<8x1xf32> to vector<8x32xf32>
    %335 = arith.subf %320, %334 : vector<8x32xf32>
    %cst_100 = arith.constant 9.99999974E-6 : f32
    %336 = vector.broadcast %cst_100 : f32 to vector<8x1xf32>
    %337 = arith.addf %333, %336 : vector<8x1xf32>
    %338 = math.rsqrt %337 : vector<8x1xf32>
    %339 = vector.broadcast %338 : vector<8x1xf32> to vector<8x32xf32>
    %340 = arith.mulf %335, %339 : vector<8x32xf32>
    %341 = vector.broadcast %321 : vector<1x32xf32> to vector<8x32xf32>
    %342 = arith.mulf %340, %341 : vector<8x32xf32>
    %343 = vector.broadcast %322 : vector<1x32xf32> to vector<8x32xf32>
    %344 = arith.addf %342, %343 : vector<8x32xf32>
    %345 = arith.truncf %344 : vector<8x32xf32> to vector<8x32xbf16>
    %346 = arith.truncf %15 : vector<32x64xf32> to vector<32x64xbf16>
    %cst_101 = arith.constant dense<0.000000e+00> : vector<8x64xf32>
    %347 = tpu.matmul %345, %346, %cst_101 {dimension_numbers = #tpu.dot_dimension_numbers<[1], [0], [0], [1], [0, 0, 1, 1], [], []>} : vector<8x32xbf16>, vector<32x64xbf16>, vector<8x64xf32> -> vector<8x64xf32>
    %348 = vector.extract_strided_slice %19 {offsets = [8, 0], sizes = [1, 64], strides = [1, 1]} : vector<16x64xf32> to vector<1x64xf32>
    %349 = vector.broadcast %348 : vector<1x64xf32> to vector<8x64xf32>
    %350 = arith.addf %347, %349 : vector<8x64xf32>
    %cst_102 = arith.constant 5.000000e-01 : f32
    %351 = vector.broadcast %cst_102 : f32 to vector<8x64xf32>
    %352 = arith.mulf %351, %350 : vector<8x64xf32>
    %cst_103 = arith.constant 4.471500e-02 : f32
    %353 = vector.broadcast %cst_103 : f32 to vector<8x64xf32>
    %354 = arith.mulf %353, %350 : vector<8x64xf32>
    %355 = arith.mulf %354, %350 : vector<8x64xf32>
    %356 = arith.mulf %355, %350 : vector<8x64xf32>
    %357 = arith.addf %350, %356 : vector<8x64xf32>
    %cst_104 = arith.constant 0.797884583 : f32
    %358 = vector.broadcast %cst_104 : f32 to vector<8x64xf32>
    %359 = arith.mulf %358, %357 : vector<8x64xf32>
    %360 = math.tanh %359 : vector<8x64xf32>
    %cst_105 = arith.constant 1.000000e+00 : f32
    %361 = vector.broadcast %cst_105 : f32 to vector<8x64xf32>
    %362 = arith.addf %361, %360 : vector<8x64xf32>
    %363 = arith.mulf %352, %362 : vector<8x64xf32>
    %364 = arith.truncf %363 : vector<8x64xf32> to vector<8x64xbf16>
    %365 = arith.truncf %17 : vector<64x32xf32> to vector<64x32xbf16>
    %cst_106 = arith.constant dense<0.000000e+00> : vector<8x32xf32>
    %366 = tpu.matmul %364, %365, %cst_106 {dimension_numbers = #tpu.dot_dimension_numbers<[1], [0], [0], [1], [0, 0, 1, 1], [], []>} : vector<8x64xbf16>, vector<64x32xbf16>, vector<8x32xf32> -> vector<8x32xf32>
    %367 = arith.addf %320, %366 : vector<8x32xf32>
    %368 = vector.extract_strided_slice %19 {offsets = [9, 0], sizes = [1, 32], strides = [1, 1]} : vector<16x64xf32> to vector<1x32xf32>
    %369 = vector.broadcast %368 : vector<1x32xf32> to vector<8x32xf32>
    %370 = arith.addf %367, %369 : vector<8x32xf32>
    %c0_107 = arith.constant 0 : index
    %c0_108 = arith.constant 0 : index
    %c0_109 = arith.constant 0 : index
    %371 = vector.load %arg17[%c0_107, %c0_108, %c0_109] : memref<2x8x32xf32, #tpu.memory_space<vmem>>, vector<1x8x32xf32>
    %372 = vector.shape_cast %371 : vector<1x8x32xf32> to vector<8x32xf32>
    %373 = vector.shape_cast %370 : vector<8x32xf32> to vector<1x8x32xf32>
    tpu.vector_store %arg17[%c0_107, %c0_108, %c0_109], %373 {strides = array<i32>} : memref<2x8x32xf32, #tpu.memory_space<vmem>>, vector<1x8x32xf32>,
    %c1 = arith.constant 1 : index
    %c0_110 = arith.constant 0 : index
    %c0_111 = arith.constant 0 : index
    %374 = vector.load %arg17[%c1, %c0_110, %c0_111] : memref<2x8x32xf32, #tpu.memory_space<vmem>>, vector<1x8x32xf32>
    %375 = vector.shape_cast %374 : vector<1x8x32xf32> to vector<8x32xf32>
    %c1_112 = arith.constant 1 : index
    %c0_113 = arith.constant 0 : index
    %c0_114 = arith.constant 0 : index
    %376 = vector.load %arg2[%c1_112, %c0_113, %c0_114] : memref<2x16x32xf32, #tpu.memory_space<vmem>>, vector<1x16x32xf32>
    %377 = vector.shape_cast %376 : vector<1x16x32xf32> to vector<16x32xf32>
    %378 = vector.extract_strided_slice %19 {offsets = [0, 0], sizes = [1, 32], strides = [1, 1]} : vector<16x64xf32> to vector<1x32xf32>
    %379 = vector.extract_strided_slice %19 {offsets = [1, 0], sizes = [1, 32], strides = [1, 1]} : vector<16x64xf32> to vector<1x32xf32>
    %cst_115 = arith.constant dense<0.000000e+00> : vector<8xf32>
    %380 = vector.multi_reduction <add>, %375, %cst_115 [1] : vector<8x32xf32> to vector<8xf32>
    %381 = vector.shape_cast %380 : vector<8xf32> to vector<8x1xf32>
    %cst_116 = arith.constant 3.200000e+01 : f32
    %382 = vector.broadcast %cst_116 : f32 to vector<8x1xf32>
    %383 = arith.divf %381, %382 : vector<8x1xf32>
    %384 = vector.broadcast %383 : vector<8x1xf32> to vector<8x32xf32>
    %385 = arith.subf %375, %384 : vector<8x32xf32>
    %386 = arith.mulf %385, %385 : vector<8x32xf32>
    %cst_117 = arith.constant dense<0.000000e+00> : vector<8xf32>
    %387 = vector.multi_reduction <add>, %386, %cst_117 [1] : vector<8x32xf32> to vector<8xf32>
    %388 = vector.shape_cast %387 : vector<8xf32> to vector<8x1xf32>
    %cst_118 = arith.constant 3.200000e+01 : f32
    %389 = vector.broadcast %cst_118 : f32 to vector<8x1xf32>
    %390 = arith.divf %388, %389 : vector<8x1xf32>
    %391 = vector.broadcast %383 : vector<8x1xf32> to vector<8x32xf32>
    %392 = arith.subf %375, %391 : vector<8x32xf32>
    %cst_119 = arith.constant 9.99999974E-6 : f32
    %393 = vector.broadcast %cst_119 : f32 to vector<8x1xf32>
    %394 = arith.addf %390, %393 : vector<8x1xf32>
    %395 = math.rsqrt %394 : vector<8x1xf32>
    %396 = vector.broadcast %395 : vector<8x1xf32> to vector<8x32xf32>
    %397 = arith.mulf %392, %396 : vector<8x32xf32>
    %398 = vector.broadcast %378 : vector<1x32xf32> to vector<8x32xf32>
    %399 = arith.mulf %397, %398 : vector<8x32xf32>
    %400 = vector.broadcast %379 : vector<1x32xf32> to vector<8x32xf32>
    %401 = arith.addf %399, %400 : vector<8x32xf32>
    %402 = arith.truncf %5 : vector<32x96xf32> to vector<32x96xbf16>
    %403 = arith.truncf %401 : vector<8x32xf32> to vector<8x32xbf16>
    %cst_120 = arith.constant dense<0.000000e+00> : vector<96x8xf32>
    %404 = tpu.matmul %402, %403, %cst_120 {dimension_numbers = #tpu.dot_dimension_numbers<[0], [1], [1], [0], [0, 1, 1, 0], [], []>} : vector<32x96xbf16>, vector<8x32xbf16>, vector<96x8xf32> -> vector<96x8xf32>
    %405 = vector.extract_strided_slice %21 {offsets = [0, 0], sizes = [96, 1], strides = [1, 1]} : vector<192x1xf32> to vector<96x1xf32>
    %406 = vector.broadcast %405 : vector<96x1xf32> to vector<96x8xf32>
    %407 = arith.addf %404, %406 : vector<96x8xf32>
    %408 = vector.extract_strided_slice %407 {offsets = [0, 0], sizes = [32, 8], strides = [1, 1]} : vector<96x8xf32> to vector<32x8xf32>
    %409 = vector.extract_strided_slice %407 {offsets = [32, 0], sizes = [32, 8], strides = [1, 1]} : vector<96x8xf32> to vector<32x8xf32>
    %410 = vector.extract_strided_slice %407 {offsets = [64, 0], sizes = [32, 8], strides = [1, 1]} : vector<96x8xf32> to vector<32x8xf32>
    %411 = tpu.iota {dimensions = array<i32: 0>} : vector<8x8xi32>
    %412 = tpu.iota {dimensions = array<i32: 1>} : vector<8x8xi32>
    %413 = arith.cmpi sge, %411, %412 : vector<8x8xi32>
    %cst_121 = arith.constant 0.000000e+00 : f32
    %cst_122 = arith.constant -1.000000e+09 : f32
    %414 = vector.broadcast %cst_121 : f32 to vector<8x8xf32>
    %415 = vector.broadcast %cst_122 : f32 to vector<8x8xf32>
    %416 = arith.select %413, %414, %415 : vector<8x8xi1>, vector<8x8xf32>
    %417 = vector.extract_strided_slice %408 {offsets = [0, 0], sizes = [8, 8], strides = [1, 1]} : vector<32x8xf32> to vector<8x8xf32>
    %418 = vector.extract_strided_slice %409 {offsets = [0, 0], sizes = [8, 8], strides = [1, 1]} : vector<32x8xf32> to vector<8x8xf32>
    %419 = vector.extract_strided_slice %410 {offsets = [0, 0], sizes = [8, 8], strides = [1, 1]} : vector<32x8xf32> to vector<8x8xf32>
    %420 = arith.truncf %417 : vector<8x8xf32> to vector<8x8xbf16>
    %421 = arith.truncf %418 : vector<8x8xf32> to vector<8x8xbf16>
    %cst_123 = arith.constant dense<0.000000e+00> : vector<8x8xf32>
    %422 = tpu.matmul %420, %421, %cst_123 {dimension_numbers = #tpu.dot_dimension_numbers<[0], [0], [1], [1], [0, 1, 1, 1], [], []>} : vector<8x8xbf16>, vector<8x8xbf16>, vector<8x8xf32> -> vector<8x8xf32>
    %cst_124 = arith.constant 0.353553385 : f32
    %423 = vector.broadcast %cst_124 : f32 to vector<8x8xf32>
    %424 = arith.mulf %422, %423 : vector<8x8xf32>
    %425 = arith.addf %424, %416 : vector<8x8xf32>
    %cst_125 = arith.constant dense<0xFF800000> : vector<8xf32>
    %426 = vector.multi_reduction <maximumf>, %425, %cst_125 [1] : vector<8x8xf32> to vector<8xf32>
    %427 = vector.shape_cast %426 : vector<8xf32> to vector<8x1xf32>
    %428 = vector.broadcast %427 : vector<8x1xf32> to vector<8x8xf32>
    %429 = arith.subf %425, %428 : vector<8x8xf32>
    %430 = math.exp %429 : vector<8x8xf32>
    %cst_126 = arith.constant dense<0.000000e+00> : vector<8xf32>
    %431 = vector.multi_reduction <add>, %430, %cst_126 [1] : vector<8x8xf32> to vector<8xf32>
    %432 = vector.shape_cast %431 : vector<8xf32> to vector<8x1xf32>
    %433 = tpu.reciprocal %432 {approx = true} : vector<8x1xf32> -> vector<8x1xf32>
    %434 = vector.broadcast %433 : vector<8x1xf32> to vector<8x8xf32>
    %435 = arith.mulf %430, %434 : vector<8x8xf32>
    %436 = arith.truncf %419 : vector<8x8xf32> to vector<8x8xbf16>
    %437 = arith.truncf %435 : vector<8x8xf32> to vector<8x8xbf16>
    %cst_127 = arith.constant dense<0.000000e+00> : vector<8x8xf32>
    %438 = tpu.matmul %436, %437, %cst_127 {dimension_numbers = #tpu.dot_dimension_numbers<[1], [1], [0], [0], [0, 0, 1, 0], [], []>} : vector<8x8xbf16>, vector<8x8xbf16>, vector<8x8xf32> -> vector<8x8xf32>
    %439 = vector.extract_strided_slice %7 {offsets = [0, 0], sizes = [8, 32], strides = [1, 1]} : vector<32x32xf32> to vector<8x32xf32>
    %440 = arith.truncf %438 : vector<8x8xf32> to vector<8x8xbf16>
    %441 = arith.truncf %439 : vector<8x32xf32> to vector<8x32xbf16>
    %cst_128 = arith.constant dense<0.000000e+00> : vector<8x32xf32>
    %442 = tpu.matmul %440, %441, %cst_128 {dimension_numbers = #tpu.dot_dimension_numbers<[0], [0], [1], [1], [0, 1, 1, 1], [], []>} : vector<8x8xbf16>, vector<8x32xbf16>, vector<8x32xf32> -> vector<8x32xf32>
    %443 = vector.extract_strided_slice %408 {offsets = [8, 0], sizes = [8, 8], strides = [1, 1]} : vector<32x8xf32> to vector<8x8xf32>
    %444 = vector.extract_strided_slice %409 {offsets = [8, 0], sizes = [8, 8], strides = [1, 1]} : vector<32x8xf32> to vector<8x8xf32>
    %445 = vector.extract_strided_slice %410 {offsets = [8, 0], sizes = [8, 8], strides = [1, 1]} : vector<32x8xf32> to vector<8x8xf32>
    %446 = arith.truncf %443 : vector<8x8xf32> to vector<8x8xbf16>
    %447 = arith.truncf %444 : vector<8x8xf32> to vector<8x8xbf16>
    %cst_129 = arith.constant dense<0.000000e+00> : vector<8x8xf32>
    %448 = tpu.matmul %446, %447, %cst_129 {dimension_numbers = #tpu.dot_dimension_numbers<[0], [0], [1], [1], [0, 1, 1, 1], [], []>} : vector<8x8xbf16>, vector<8x8xbf16>, vector<8x8xf32> -> vector<8x8xf32>
    %cst_130 = arith.constant 0.353553385 : f32
    %449 = vector.broadcast %cst_130 : f32 to vector<8x8xf32>
    %450 = arith.mulf %448, %449 : vector<8x8xf32>
    %451 = arith.addf %450, %416 : vector<8x8xf32>
    %cst_131 = arith.constant dense<0xFF800000> : vector<8xf32>
    %452 = vector.multi_reduction <maximumf>, %451, %cst_131 [1] : vector<8x8xf32> to vector<8xf32>
    %453 = vector.shape_cast %452 : vector<8xf32> to vector<8x1xf32>
    %454 = vector.broadcast %453 : vector<8x1xf32> to vector<8x8xf32>
    %455 = arith.subf %451, %454 : vector<8x8xf32>
    %456 = math.exp %455 : vector<8x8xf32>
    %cst_132 = arith.constant dense<0.000000e+00> : vector<8xf32>
    %457 = vector.multi_reduction <add>, %456, %cst_132 [1] : vector<8x8xf32> to vector<8xf32>
    %458 = vector.shape_cast %457 : vector<8xf32> to vector<8x1xf32>
    %459 = tpu.reciprocal %458 {approx = true} : vector<8x1xf32> -> vector<8x1xf32>
    %460 = vector.broadcast %459 : vector<8x1xf32> to vector<8x8xf32>
    %461 = arith.mulf %456, %460 : vector<8x8xf32>
    %462 = arith.truncf %445 : vector<8x8xf32> to vector<8x8xbf16>
    %463 = arith.truncf %461 : vector<8x8xf32> to vector<8x8xbf16>
    %cst_133 = arith.constant dense<0.000000e+00> : vector<8x8xf32>
    %464 = tpu.matmul %462, %463, %cst_133 {dimension_numbers = #tpu.dot_dimension_numbers<[1], [1], [0], [0], [0, 0, 1, 0], [], []>} : vector<8x8xbf16>, vector<8x8xbf16>, vector<8x8xf32> -> vector<8x8xf32>
    %465 = vector.extract_strided_slice %7 {offsets = [8, 0], sizes = [8, 32], strides = [1, 1]} : vector<32x32xf32> to vector<8x32xf32>
    %466 = arith.truncf %464 : vector<8x8xf32> to vector<8x8xbf16>
    %467 = arith.truncf %465 : vector<8x32xf32> to vector<8x32xbf16>
    %cst_134 = arith.constant dense<0.000000e+00> : vector<8x32xf32>
    %468 = tpu.matmul %466, %467, %cst_134 {dimension_numbers = #tpu.dot_dimension_numbers<[0], [0], [1], [1], [0, 1, 1, 1], [], []>} : vector<8x8xbf16>, vector<8x32xbf16>, vector<8x32xf32> -> vector<8x32xf32>
    %469 = arith.addf %442, %468 : vector<8x32xf32>
    %470 = vector.extract_strided_slice %408 {offsets = [16, 0], sizes = [8, 8], strides = [1, 1]} : vector<32x8xf32> to vector<8x8xf32>
    %471 = vector.extract_strided_slice %409 {offsets = [16, 0], sizes = [8, 8], strides = [1, 1]} : vector<32x8xf32> to vector<8x8xf32>
    %472 = vector.extract_strided_slice %410 {offsets = [16, 0], sizes = [8, 8], strides = [1, 1]} : vector<32x8xf32> to vector<8x8xf32>
    %473 = arith.truncf %470 : vector<8x8xf32> to vector<8x8xbf16>
    %474 = arith.truncf %471 : vector<8x8xf32> to vector<8x8xbf16>
    %cst_135 = arith.constant dense<0.000000e+00> : vector<8x8xf32>
    %475 = tpu.matmul %473, %474, %cst_135 {dimension_numbers = #tpu.dot_dimension_numbers<[0], [0], [1], [1], [0, 1, 1, 1], [], []>} : vector<8x8xbf16>, vector<8x8xbf16>, vector<8x8xf32> -> vector<8x8xf32>
    %cst_136 = arith.constant 0.353553385 : f32
    %476 = vector.broadcast %cst_136 : f32 to vector<8x8xf32>
    %477 = arith.mulf %475, %476 : vector<8x8xf32>
    %478 = arith.addf %477, %416 : vector<8x8xf32>
    %cst_137 = arith.constant dense<0xFF800000> : vector<8xf32>
    %479 = vector.multi_reduction <maximumf>, %478, %cst_137 [1] : vector<8x8xf32> to vector<8xf32>
    %480 = vector.shape_cast %479 : vector<8xf32> to vector<8x1xf32>
    %481 = vector.broadcast %480 : vector<8x1xf32> to vector<8x8xf32>
    %482 = arith.subf %478, %481 : vector<8x8xf32>
    %483 = math.exp %482 : vector<8x8xf32>
    %cst_138 = arith.constant dense<0.000000e+00> : vector<8xf32>
    %484 = vector.multi_reduction <add>, %483, %cst_138 [1] : vector<8x8xf32> to vector<8xf32>
    %485 = vector.shape_cast %484 : vector<8xf32> to vector<8x1xf32>
    %486 = tpu.reciprocal %485 {approx = true} : vector<8x1xf32> -> vector<8x1xf32>
    %487 = vector.broadcast %486 : vector<8x1xf32> to vector<8x8xf32>
    %488 = arith.mulf %483, %487 : vector<8x8xf32>
    %489 = arith.truncf %472 : vector<8x8xf32> to vector<8x8xbf16>
    %490 = arith.truncf %488 : vector<8x8xf32> to vector<8x8xbf16>
    %cst_139 = arith.constant dense<0.000000e+00> : vector<8x8xf32>
    %491 = tpu.matmul %489, %490, %cst_139 {dimension_numbers = #tpu.dot_dimension_numbers<[1], [1], [0], [0], [0, 0, 1, 0], [], []>} : vector<8x8xbf16>, vector<8x8xbf16>, vector<8x8xf32> -> vector<8x8xf32>
    %492 = vector.extract_strided_slice %7 {offsets = [16, 0], sizes = [8, 32], strides = [1, 1]} : vector<32x32xf32> to vector<8x32xf32>
    %493 = arith.truncf %491 : vector<8x8xf32> to vector<8x8xbf16>
    %494 = arith.truncf %492 : vector<8x32xf32> to vector<8x32xbf16>
    %cst_140 = arith.constant dense<0.000000e+00> : vector<8x32xf32>
    %495 = tpu.matmul %493, %494, %cst_140 {dimension_numbers = #tpu.dot_dimension_numbers<[0], [0], [1], [1], [0, 1, 1, 1], [], []>} : vector<8x8xbf16>, vector<8x32xbf16>, vector<8x32xf32> -> vector<8x32xf32>
    %496 = arith.addf %469, %495 : vector<8x32xf32>
    %497 = vector.extract_strided_slice %408 {offsets = [24, 0], sizes = [8, 8], strides = [1, 1]} : vector<32x8xf32> to vector<8x8xf32>
    %498 = vector.extract_strided_slice %409 {offsets = [24, 0], sizes = [8, 8], strides = [1, 1]} : vector<32x8xf32> to vector<8x8xf32>
    %499 = vector.extract_strided_slice %410 {offsets = [24, 0], sizes = [8, 8], strides = [1, 1]} : vector<32x8xf32> to vector<8x8xf32>
    %500 = arith.truncf %497 : vector<8x8xf32> to vector<8x8xbf16>
    %501 = arith.truncf %498 : vector<8x8xf32> to vector<8x8xbf16>
    %cst_141 = arith.constant dense<0.000000e+00> : vector<8x8xf32>
    %502 = tpu.matmul %500, %501, %cst_141 {dimension_numbers = #tpu.dot_dimension_numbers<[0], [0], [1], [1], [0, 1, 1, 1], [], []>} : vector<8x8xbf16>, vector<8x8xbf16>, vector<8x8xf32> -> vector<8x8xf32>
    %cst_142 = arith.constant 0.353553385 : f32
    %503 = vector.broadcast %cst_142 : f32 to vector<8x8xf32>
    %504 = arith.mulf %502, %503 : vector<8x8xf32>
    %505 = arith.addf %504, %416 : vector<8x8xf32>
    %cst_143 = arith.constant dense<0xFF800000> : vector<8xf32>
    %506 = vector.multi_reduction <maximumf>, %505, %cst_143 [1] : vector<8x8xf32> to vector<8xf32>
    %507 = vector.shape_cast %506 : vector<8xf32> to vector<8x1xf32>
    %508 = vector.broadcast %507 : vector<8x1xf32> to vector<8x8xf32>
    %509 = arith.subf %505, %508 : vector<8x8xf32>
    %510 = math.exp %509 : vector<8x8xf32>
    %cst_144 = arith.constant dense<0.000000e+00> : vector<8xf32>
    %511 = vector.multi_reduction <add>, %510, %cst_144 [1] : vector<8x8xf32> to vector<8xf32>
    %512 = vector.shape_cast %511 : vector<8xf32> to vector<8x1xf32>
    %513 = tpu.reciprocal %512 {approx = true} : vector<8x1xf32> -> vector<8x1xf32>
    %514 = vector.broadcast %513 : vector<8x1xf32> to vector<8x8xf32>
    %515 = arith.mulf %510, %514 : vector<8x8xf32>
    %516 = arith.truncf %499 : vector<8x8xf32> to vector<8x8xbf16>
    %517 = arith.truncf %515 : vector<8x8xf32> to vector<8x8xbf16>
    %cst_145 = arith.constant dense<0.000000e+00> : vector<8x8xf32>
    %518 = tpu.matmul %516, %517, %cst_145 {dimension_numbers = #tpu.dot_dimension_numbers<[1], [1], [0], [0], [0, 0, 1, 0], [], []>} : vector<8x8xbf16>, vector<8x8xbf16>, vector<8x8xf32> -> vector<8x8xf32>
    %519 = vector.extract_strided_slice %7 {offsets = [24, 0], sizes = [8, 32], strides = [1, 1]} : vector<32x32xf32> to vector<8x32xf32>
    %520 = arith.truncf %518 : vector<8x8xf32> to vector<8x8xbf16>
    %521 = arith.truncf %519 : vector<8x32xf32> to vector<8x32xbf16>
    %cst_146 = arith.constant dense<0.000000e+00> : vector<8x32xf32>
    %522 = tpu.matmul %520, %521, %cst_146 {dimension_numbers = #tpu.dot_dimension_numbers<[0], [0], [1], [1], [0, 1, 1, 1], [], []>} : vector<8x8xbf16>, vector<8x32xbf16>, vector<8x32xf32> -> vector<8x32xf32>
    %523 = arith.addf %496, %522 : vector<8x32xf32>
    %524 = arith.addf %375, %523 : vector<8x32xf32>
    %525 = vector.extract_strided_slice %19 {offsets = [6, 0], sizes = [1, 32], strides = [1, 1]} : vector<16x64xf32> to vector<1x32xf32>
    %526 = vector.broadcast %525 : vector<1x32xf32> to vector<8x32xf32>
    %527 = arith.addf %524, %526 : vector<8x32xf32>
    %528 = vector.extract_strided_slice %19 {offsets = [2, 0], sizes = [1, 32], strides = [1, 1]} : vector<16x64xf32> to vector<1x32xf32>
    %529 = vector.extract_strided_slice %19 {offsets = [3, 0], sizes = [1, 32], strides = [1, 1]} : vector<16x64xf32> to vector<1x32xf32>
    %cst_147 = arith.constant dense<0.000000e+00> : vector<8xf32>
    %530 = vector.multi_reduction <add>, %527, %cst_147 [1] : vector<8x32xf32> to vector<8xf32>
    %531 = vector.shape_cast %530 : vector<8xf32> to vector<8x1xf32>
    %cst_148 = arith.constant 3.200000e+01 : f32
    %532 = vector.broadcast %cst_148 : f32 to vector<8x1xf32>
    %533 = arith.divf %531, %532 : vector<8x1xf32>
    %534 = vector.broadcast %533 : vector<8x1xf32> to vector<8x32xf32>
    %535 = arith.subf %527, %534 : vector<8x32xf32>
    %536 = arith.mulf %535, %535 : vector<8x32xf32>
    %cst_149 = arith.constant dense<0.000000e+00> : vector<8xf32>
    %537 = vector.multi_reduction <add>, %536, %cst_149 [1] : vector<8x32xf32> to vector<8xf32>
    %538 = vector.shape_cast %537 : vector<8xf32> to vector<8x1xf32>
    %cst_150 = arith.constant 3.200000e+01 : f32
    %539 = vector.broadcast %cst_150 : f32 to vector<8x1xf32>
    %540 = arith.divf %538, %539 : vector<8x1xf32>
    %541 = vector.broadcast %533 : vector<8x1xf32> to vector<8x32xf32>
    %542 = arith.subf %527, %541 : vector<8x32xf32>
    %cst_151 = arith.constant 9.99999974E-6 : f32
    %543 = vector.broadcast %cst_151 : f32 to vector<8x1xf32>
    %544 = arith.addf %540, %543 : vector<8x1xf32>
    %545 = math.rsqrt %544 : vector<8x1xf32>
    %546 = vector.broadcast %545 : vector<8x1xf32> to vector<8x32xf32>
    %547 = arith.mulf %542, %546 : vector<8x32xf32>
    %548 = vector.broadcast %528 : vector<1x32xf32> to vector<8x32xf32>
    %549 = arith.mulf %547, %548 : vector<8x32xf32>
    %550 = vector.broadcast %529 : vector<1x32xf32> to vector<8x32xf32>
    %551 = arith.addf %549, %550 : vector<8x32xf32>
    %552 = arith.truncf %9 : vector<32x32xf32> to vector<32x32xbf16>
    %553 = arith.truncf %551 : vector<8x32xf32> to vector<8x32xbf16>
    %cst_152 = arith.constant dense<0.000000e+00> : vector<32x8xf32>
    %554 = tpu.matmul %552, %553, %cst_152 {dimension_numbers = #tpu.dot_dimension_numbers<[0], [1], [1], [0], [0, 1, 1, 0], [], []>} : vector<32x32xbf16>, vector<8x32xbf16>, vector<32x8xf32> -> vector<32x8xf32>
    %555 = vector.extract_strided_slice %21 {offsets = [96, 0], sizes = [32, 1], strides = [1, 1]} : vector<192x1xf32> to vector<32x1xf32>
    %556 = vector.broadcast %555 : vector<32x1xf32> to vector<32x8xf32>
    %557 = arith.addf %554, %556 : vector<32x8xf32>
    %558 = arith.truncf %11 : vector<32x64xf32> to vector<32x64xbf16>
    %559 = arith.truncf %377 : vector<16x32xf32> to vector<16x32xbf16>
    %cst_153 = arith.constant dense<0.000000e+00> : vector<64x16xf32>
    %560 = tpu.matmul %558, %559, %cst_153 {dimension_numbers = #tpu.dot_dimension_numbers<[0], [1], [1], [0], [0, 1, 1, 0], [], []>} : vector<32x64xbf16>, vector<16x32xbf16>, vector<64x16xf32> -> vector<64x16xf32>
    %561 = vector.extract_strided_slice %21 {offsets = [128, 0], sizes = [64, 1], strides = [1, 1]} : vector<192x1xf32> to vector<64x1xf32>
    %562 = vector.broadcast %561 : vector<64x1xf32> to vector<64x16xf32>
    %563 = arith.addf %560, %562 : vector<64x16xf32>
    %564 = vector.extract_strided_slice %563 {offsets = [0, 0], sizes = [32, 16], strides = [1, 1]} : vector<64x16xf32> to vector<32x16xf32>
    %565 = vector.extract_strided_slice %563 {offsets = [32, 0], sizes = [32, 16], strides = [1, 1]} : vector<64x16xf32> to vector<32x16xf32>
    %566 = vector.extract_strided_slice %557 {offsets = [0, 0], sizes = [8, 8], strides = [1, 1]} : vector<32x8xf32> to vector<8x8xf32>
    %567 = vector.extract_strided_slice %564 {offsets = [0, 0], sizes = [8, 16], strides = [1, 1]} : vector<32x16xf32> to vector<8x16xf32>
    %568 = vector.extract_strided_slice %565 {offsets = [0, 0], sizes = [8, 16], strides = [1, 1]} : vector<32x16xf32> to vector<8x16xf32>
    %569 = arith.truncf %566 : vector<8x8xf32> to vector<8x8xbf16>
    %570 = arith.truncf %567 : vector<8x16xf32> to vector<8x16xbf16>
    %cst_154 = arith.constant dense<0.000000e+00> : vector<8x16xf32>
    %571 = tpu.matmul %569, %570, %cst_154 {dimension_numbers = #tpu.dot_dimension_numbers<[0], [0], [1], [1], [0, 1, 1, 1], [], []>} : vector<8x8xbf16>, vector<8x16xbf16>, vector<8x16xf32> -> vector<8x16xf32>
    %cst_155 = arith.constant 0.353553385 : f32
    %572 = vector.broadcast %cst_155 : f32 to vector<8x16xf32>
    %573 = arith.mulf %571, %572 : vector<8x16xf32>
    %cst_156 = arith.constant dense<0xFF800000> : vector<8xf32>
    %574 = vector.multi_reduction <maximumf>, %573, %cst_156 [1] : vector<8x16xf32> to vector<8xf32>
    %575 = vector.shape_cast %574 : vector<8xf32> to vector<8x1xf32>
    %576 = vector.broadcast %575 : vector<8x1xf32> to vector<8x16xf32>
    %577 = arith.subf %573, %576 : vector<8x16xf32>
    %578 = math.exp %577 : vector<8x16xf32>
    %cst_157 = arith.constant dense<0.000000e+00> : vector<8xf32>
    %579 = vector.multi_reduction <add>, %578, %cst_157 [1] : vector<8x16xf32> to vector<8xf32>
    %580 = vector.shape_cast %579 : vector<8xf32> to vector<8x1xf32>
    %581 = tpu.reciprocal %580 {approx = true} : vector<8x1xf32> -> vector<8x1xf32>
    %582 = vector.broadcast %581 : vector<8x1xf32> to vector<8x16xf32>
    %583 = arith.mulf %578, %582 : vector<8x16xf32>
    %584 = arith.truncf %568 : vector<8x16xf32> to vector<8x16xbf16>
    %585 = arith.truncf %583 : vector<8x16xf32> to vector<8x16xbf16>
    %cst_158 = arith.constant dense<0.000000e+00> : vector<8x8xf32>
    %586 = tpu.matmul %584, %585, %cst_158 {dimension_numbers = #tpu.dot_dimension_numbers<[1], [1], [0], [0], [0, 0, 1, 0], [], []>} : vector<8x16xbf16>, vector<8x16xbf16>, vector<8x8xf32> -> vector<8x8xf32>
    %587 = vector.extract_strided_slice %13 {offsets = [0, 0], sizes = [8, 32], strides = [1, 1]} : vector<32x32xf32> to vector<8x32xf32>
    %588 = arith.truncf %586 : vector<8x8xf32> to vector<8x8xbf16>
    %589 = arith.truncf %587 : vector<8x32xf32> to vector<8x32xbf16>
    %cst_159 = arith.constant dense<0.000000e+00> : vector<8x32xf32>
    %590 = tpu.matmul %588, %589, %cst_159 {dimension_numbers = #tpu.dot_dimension_numbers<[0], [0], [1], [1], [0, 1, 1, 1], [], []>} : vector<8x8xbf16>, vector<8x32xbf16>, vector<8x32xf32> -> vector<8x32xf32>
    %591 = vector.extract_strided_slice %557 {offsets = [8, 0], sizes = [8, 8], strides = [1, 1]} : vector<32x8xf32> to vector<8x8xf32>
    %592 = vector.extract_strided_slice %564 {offsets = [8, 0], sizes = [8, 16], strides = [1, 1]} : vector<32x16xf32> to vector<8x16xf32>
    %593 = vector.extract_strided_slice %565 {offsets = [8, 0], sizes = [8, 16], strides = [1, 1]} : vector<32x16xf32> to vector<8x16xf32>
    %594 = arith.truncf %591 : vector<8x8xf32> to vector<8x8xbf16>
    %595 = arith.truncf %592 : vector<8x16xf32> to vector<8x16xbf16>
    %cst_160 = arith.constant dense<0.000000e+00> : vector<8x16xf32>
    %596 = tpu.matmul %594, %595, %cst_160 {dimension_numbers = #tpu.dot_dimension_numbers<[0], [0], [1], [1], [0, 1, 1, 1], [], []>} : vector<8x8xbf16>, vector<8x16xbf16>, vector<8x16xf32> -> vector<8x16xf32>
    %cst_161 = arith.constant 0.353553385 : f32
    %597 = vector.broadcast %cst_161 : f32 to vector<8x16xf32>
    %598 = arith.mulf %596, %597 : vector<8x16xf32>
    %cst_162 = arith.constant dense<0xFF800000> : vector<8xf32>
    %599 = vector.multi_reduction <maximumf>, %598, %cst_162 [1] : vector<8x16xf32> to vector<8xf32>
    %600 = vector.shape_cast %599 : vector<8xf32> to vector<8x1xf32>
    %601 = vector.broadcast %600 : vector<8x1xf32> to vector<8x16xf32>
    %602 = arith.subf %598, %601 : vector<8x16xf32>
    %603 = math.exp %602 : vector<8x16xf32>
    %cst_163 = arith.constant dense<0.000000e+00> : vector<8xf32>
    %604 = vector.multi_reduction <add>, %603, %cst_163 [1] : vector<8x16xf32> to vector<8xf32>
    %605 = vector.shape_cast %604 : vector<8xf32> to vector<8x1xf32>
    %606 = tpu.reciprocal %605 {approx = true} : vector<8x1xf32> -> vector<8x1xf32>
    %607 = vector.broadcast %606 : vector<8x1xf32> to vector<8x16xf32>
    %608 = arith.mulf %603, %607 : vector<8x16xf32>
    %609 = arith.truncf %593 : vector<8x16xf32> to vector<8x16xbf16>
    %610 = arith.truncf %608 : vector<8x16xf32> to vector<8x16xbf16>
    %cst_164 = arith.constant dense<0.000000e+00> : vector<8x8xf32>
    %611 = tpu.matmul %609, %610, %cst_164 {dimension_numbers = #tpu.dot_dimension_numbers<[1], [1], [0], [0], [0, 0, 1, 0], [], []>} : vector<8x16xbf16>, vector<8x16xbf16>, vector<8x8xf32> -> vector<8x8xf32>
    %612 = vector.extract_strided_slice %13 {offsets = [8, 0], sizes = [8, 32], strides = [1, 1]} : vector<32x32xf32> to vector<8x32xf32>
    %613 = arith.truncf %611 : vector<8x8xf32> to vector<8x8xbf16>
    %614 = arith.truncf %612 : vector<8x32xf32> to vector<8x32xbf16>
    %cst_165 = arith.constant dense<0.000000e+00> : vector<8x32xf32>
    %615 = tpu.matmul %613, %614, %cst_165 {dimension_numbers = #tpu.dot_dimension_numbers<[0], [0], [1], [1], [0, 1, 1, 1], [], []>} : vector<8x8xbf16>, vector<8x32xbf16>, vector<8x32xf32> -> vector<8x32xf32>
    %616 = arith.addf %590, %615 : vector<8x32xf32>
    %617 = vector.extract_strided_slice %557 {offsets = [16, 0], sizes = [8, 8], strides = [1, 1]} : vector<32x8xf32> to vector<8x8xf32>
    %618 = vector.extract_strided_slice %564 {offsets = [16, 0], sizes = [8, 16], strides = [1, 1]} : vector<32x16xf32> to vector<8x16xf32>
    %619 = vector.extract_strided_slice %565 {offsets = [16, 0], sizes = [8, 16], strides = [1, 1]} : vector<32x16xf32> to vector<8x16xf32>
    %620 = arith.truncf %617 : vector<8x8xf32> to vector<8x8xbf16>
    %621 = arith.truncf %618 : vector<8x16xf32> to vector<8x16xbf16>
    %cst_166 = arith.constant dense<0.000000e+00> : vector<8x16xf32>
    %622 = tpu.matmul %620, %621, %cst_166 {dimension_numbers = #tpu.dot_dimension_numbers<[0], [0], [1], [1], [0, 1, 1, 1], [], []>} : vector<8x8xbf16>, vector<8x16xbf16>, vector<8x16xf32> -> vector<8x16xf32>
    %cst_167 = arith.constant 0.353553385 : f32
    %623 = vector.broadcast %cst_167 : f32 to vector<8x16xf32>
    %624 = arith.mulf %622, %623 : vector<8x16xf32>
    %cst_168 = arith.constant dense<0xFF800000> : vector<8xf32>
    %625 = vector.multi_reduction <maximumf>, %624, %cst_168 [1] : vector<8x16xf32> to vector<8xf32>
    %626 = vector.shape_cast %625 : vector<8xf32> to vector<8x1xf32>
    %627 = vector.broadcast %626 : vector<8x1xf32> to vector<8x16xf32>
    %628 = arith.subf %624, %627 : vector<8x16xf32>
    %629 = math.exp %628 : vector<8x16xf32>
    %cst_169 = arith.constant dense<0.000000e+00> : vector<8xf32>
    %630 = vector.multi_reduction <add>, %629, %cst_169 [1] : vector<8x16xf32> to vector<8xf32>
    %631 = vector.shape_cast %630 : vector<8xf32> to vector<8x1xf32>
    %632 = tpu.reciprocal %631 {approx = true} : vector<8x1xf32> -> vector<8x1xf32>
    %633 = vector.broadcast %632 : vector<8x1xf32> to vector<8x16xf32>
    %634 = arith.mulf %629, %633 : vector<8x16xf32>
    %635 = arith.truncf %619 : vector<8x16xf32> to vector<8x16xbf16>
    %636 = arith.truncf %634 : vector<8x16xf32> to vector<8x16xbf16>
    %cst_170 = arith.constant dense<0.000000e+00> : vector<8x8xf32>
    %637 = tpu.matmul %635, %636, %cst_170 {dimension_numbers = #tpu.dot_dimension_numbers<[1], [1], [0], [0], [0, 0, 1, 0], [], []>} : vector<8x16xbf16>, vector<8x16xbf16>, vector<8x8xf32> -> vector<8x8xf32>
    %638 = vector.extract_strided_slice %13 {offsets = [16, 0], sizes = [8, 32], strides = [1, 1]} : vector<32x32xf32> to vector<8x32xf32>
    %639 = arith.truncf %637 : vector<8x8xf32> to vector<8x8xbf16>
    %640 = arith.truncf %638 : vector<8x32xf32> to vector<8x32xbf16>
    %cst_171 = arith.constant dense<0.000000e+00> : vector<8x32xf32>
    %641 = tpu.matmul %639, %640, %cst_171 {dimension_numbers = #tpu.dot_dimension_numbers<[0], [0], [1], [1], [0, 1, 1, 1], [], []>} : vector<8x8xbf16>, vector<8x32xbf16>, vector<8x32xf32> -> vector<8x32xf32>
    %642 = arith.addf %616, %641 : vector<8x32xf32>
    %643 = vector.extract_strided_slice %557 {offsets = [24, 0], sizes = [8, 8], strides = [1, 1]} : vector<32x8xf32> to vector<8x8xf32>
    %644 = vector.extract_strided_slice %564 {offsets = [24, 0], sizes = [8, 16], strides = [1, 1]} : vector<32x16xf32> to vector<8x16xf32>
    %645 = vector.extract_strided_slice %565 {offsets = [24, 0], sizes = [8, 16], strides = [1, 1]} : vector<32x16xf32> to vector<8x16xf32>
    %646 = arith.truncf %643 : vector<8x8xf32> to vector<8x8xbf16>
    %647 = arith.truncf %644 : vector<8x16xf32> to vector<8x16xbf16>
    %cst_172 = arith.constant dense<0.000000e+00> : vector<8x16xf32>
    %648 = tpu.matmul %646, %647, %cst_172 {dimension_numbers = #tpu.dot_dimension_numbers<[0], [0], [1], [1], [0, 1, 1, 1], [], []>} : vector<8x8xbf16>, vector<8x16xbf16>, vector<8x16xf32> -> vector<8x16xf32>
    %cst_173 = arith.constant 0.353553385 : f32
    %649 = vector.broadcast %cst_173 : f32 to vector<8x16xf32>
    %650 = arith.mulf %648, %649 : vector<8x16xf32>
    %cst_174 = arith.constant dense<0xFF800000> : vector<8xf32>
    %651 = vector.multi_reduction <maximumf>, %650, %cst_174 [1] : vector<8x16xf32> to vector<8xf32>
    %652 = vector.shape_cast %651 : vector<8xf32> to vector<8x1xf32>
    %653 = vector.broadcast %652 : vector<8x1xf32> to vector<8x16xf32>
    %654 = arith.subf %650, %653 : vector<8x16xf32>
    %655 = math.exp %654 : vector<8x16xf32>
    %cst_175 = arith.constant dense<0.000000e+00> : vector<8xf32>
    %656 = vector.multi_reduction <add>, %655, %cst_175 [1] : vector<8x16xf32> to vector<8xf32>
    %657 = vector.shape_cast %656 : vector<8xf32> to vector<8x1xf32>
    %658 = tpu.reciprocal %657 {approx = true} : vector<8x1xf32> -> vector<8x1xf32>
    %659 = vector.broadcast %658 : vector<8x1xf32> to vector<8x16xf32>
    %660 = arith.mulf %655, %659 : vector<8x16xf32>
    %661 = arith.truncf %645 : vector<8x16xf32> to vector<8x16xbf16>
    %662 = arith.truncf %660 : vector<8x16xf32> to vector<8x16xbf16>
    %cst_176 = arith.constant dense<0.000000e+00> : vector<8x8xf32>
    %663 = tpu.matmul %661, %662, %cst_176 {dimension_numbers = #tpu.dot_dimension_numbers<[1], [1], [0], [0], [0, 0, 1, 0], [], []>} : vector<8x16xbf16>, vector<8x16xbf16>, vector<8x8xf32> -> vector<8x8xf32>
    %664 = vector.extract_strided_slice %13 {offsets = [24, 0], sizes = [8, 32], strides = [1, 1]} : vector<32x32xf32> to vector<8x32xf32>
    %665 = arith.truncf %663 : vector<8x8xf32> to vector<8x8xbf16>
    %666 = arith.truncf %664 : vector<8x32xf32> to vector<8x32xbf16>
    %cst_177 = arith.constant dense<0.000000e+00> : vector<8x32xf32>
    %667 = tpu.matmul %665, %666, %cst_177 {dimension_numbers = #tpu.dot_dimension_numbers<[0], [0], [1], [1], [0, 1, 1, 1], [], []>} : vector<8x8xbf16>, vector<8x32xbf16>, vector<8x32xf32> -> vector<8x32xf32>
    %668 = arith.addf %642, %667 : vector<8x32xf32>
    %669 = arith.addf %527, %668 : vector<8x32xf32>
    %670 = vector.extract_strided_slice %19 {offsets = [7, 0], sizes = [1, 32], strides = [1, 1]} : vector<16x64xf32> to vector<1x32xf32>
    %671 = vector.broadcast %670 : vector<1x32xf32> to vector<8x32xf32>
    %672 = arith.addf %669, %671 : vector<8x32xf32>
    %673 = vector.extract_strided_slice %19 {offsets = [4, 0], sizes = [1, 32], strides = [1, 1]} : vector<16x64xf32> to vector<1x32xf32>
    %674 = vector.extract_strided_slice %19 {offsets = [5, 0], sizes = [1, 32], strides = [1, 1]} : vector<16x64xf32> to vector<1x32xf32>
    %cst_178 = arith.constant dense<0.000000e+00> : vector<8xf32>
    %675 = vector.multi_reduction <add>, %672, %cst_178 [1] : vector<8x32xf32> to vector<8xf32>
    %676 = vector.shape_cast %675 : vector<8xf32> to vector<8x1xf32>
    %cst_179 = arith.constant 3.200000e+01 : f32
    %677 = vector.broadcast %cst_179 : f32 to vector<8x1xf32>
    %678 = arith.divf %676, %677 : vector<8x1xf32>
    %679 = vector.broadcast %678 : vector<8x1xf32> to vector<8x32xf32>
    %680 = arith.subf %672, %679 : vector<8x32xf32>
    %681 = arith.mulf %680, %680 : vector<8x32xf32>
    %cst_180 = arith.constant dense<0.000000e+00> : vector<8xf32>
    %682 = vector.multi_reduction <add>, %681, %cst_180 [1] : vector<8x32xf32> to vector<8xf32>
    %683 = vector.shape_cast %682 : vector<8xf32> to vector<8x1xf32>
    %cst_181 = arith.constant 3.200000e+01 : f32
    %684 = vector.broadcast %cst_181 : f32 to vector<8x1xf32>
    %685 = arith.divf %683, %684 : vector<8x1xf32>
    %686 = vector.broadcast %678 : vector<8x1xf32> to vector<8x32xf32>
    %687 = arith.subf %672, %686 : vector<8x32xf32>
    %cst_182 = arith.constant 9.99999974E-6 : f32
    %688 = vector.broadcast %cst_182 : f32 to vector<8x1xf32>
    %689 = arith.addf %685, %688 : vector<8x1xf32>
    %690 = math.rsqrt %689 : vector<8x1xf32>
    %691 = vector.broadcast %690 : vector<8x1xf32> to vector<8x32xf32>
    %692 = arith.mulf %687, %691 : vector<8x32xf32>
    %693 = vector.broadcast %673 : vector<1x32xf32> to vector<8x32xf32>
    %694 = arith.mulf %692, %693 : vector<8x32xf32>
    %695 = vector.broadcast %674 : vector<1x32xf32> to vector<8x32xf32>
    %696 = arith.addf %694, %695 : vector<8x32xf32>
    %697 = arith.truncf %696 : vector<8x32xf32> to vector<8x32xbf16>
    %698 = arith.truncf %15 : vector<32x64xf32> to vector<32x64xbf16>
    %cst_183 = arith.constant dense<0.000000e+00> : vector<8x64xf32>
    %699 = tpu.matmul %697, %698, %cst_183 {dimension_numbers = #tpu.dot_dimension_numbers<[1], [0], [0], [1], [0, 0, 1, 1], [], []>} : vector<8x32xbf16>, vector<32x64xbf16>, vector<8x64xf32> -> vector<8x64xf32>
    %700 = vector.extract_strided_slice %19 {offsets = [8, 0], sizes = [1, 64], strides = [1, 1]} : vector<16x64xf32> to vector<1x64xf32>
    %701 = vector.broadcast %700 : vector<1x64xf32> to vector<8x64xf32>
    %702 = arith.addf %699, %701 : vector<8x64xf32>
    %cst_184 = arith.constant 5.000000e-01 : f32
    %703 = vector.broadcast %cst_184 : f32 to vector<8x64xf32>
    %704 = arith.mulf %703, %702 : vector<8x64xf32>
    %cst_185 = arith.constant 4.471500e-02 : f32
    %705 = vector.broadcast %cst_185 : f32 to vector<8x64xf32>
    %706 = arith.mulf %705, %702 : vector<8x64xf32>
    %707 = arith.mulf %706, %702 : vector<8x64xf32>
    %708 = arith.mulf %707, %702 : vector<8x64xf32>
    %709 = arith.addf %702, %708 : vector<8x64xf32>
    %cst_186 = arith.constant 0.797884583 : f32
    %710 = vector.broadcast %cst_186 : f32 to vector<8x64xf32>
    %711 = arith.mulf %710, %709 : vector<8x64xf32>
    %712 = math.tanh %711 : vector<8x64xf32>
    %cst_187 = arith.constant 1.000000e+00 : f32
    %713 = vector.broadcast %cst_187 : f32 to vector<8x64xf32>
    %714 = arith.addf %713, %712 : vector<8x64xf32>
    %715 = arith.mulf %704, %714 : vector<8x64xf32>
    %716 = arith.truncf %715 : vector<8x64xf32> to vector<8x64xbf16>
    %717 = arith.truncf %17 : vector<64x32xf32> to vector<64x32xbf16>
    %cst_188 = arith.constant dense<0.000000e+00> : vector<8x32xf32>
    %718 = tpu.matmul %716, %717, %cst_188 {dimension_numbers = #tpu.dot_dimension_numbers<[1], [0], [0], [1], [0, 0, 1, 1], [], []>} : vector<8x64xbf16>, vector<64x32xbf16>, vector<8x32xf32> -> vector<8x32xf32>
    %719 = arith.addf %672, %718 : vector<8x32xf32>
    %720 = vector.extract_strided_slice %19 {offsets = [9, 0], sizes = [1, 32], strides = [1, 1]} : vector<16x64xf32> to vector<1x32xf32>
    %721 = vector.broadcast %720 : vector<1x32xf32> to vector<8x32xf32>
    %722 = arith.addf %719, %721 : vector<8x32xf32>
    %c1_189 = arith.constant 1 : index
    %c0_190 = arith.constant 0 : index
    %c0_191 = arith.constant 0 : index
    %723 = vector.load %arg17[%c1_189, %c0_190, %c0_191] : memref<2x8x32xf32, #tpu.memory_space<vmem>>, vector<1x8x32xf32>
    %724 = vector.shape_cast %723 : vector<1x8x32xf32> to vector<8x32xf32>
    %725 = vector.shape_cast %722 : vector<8x32xf32> to vector<1x8x32xf32>
    tpu.vector_store %arg17[%c1_189, %c0_190, %c0_191], %725 {strides = array<i32>} : memref<2x8x32xf32, #tpu.memory_space<vmem>>, vector<1x8x32xf32>,
    %726 = arith.extui %0 : i1 to i32
    %c0_i32_192 = arith.constant 0 : i32
    %727 = arith.cmpi ne, %726, %c0_i32_192 : i32
    scf.if %727 {
      %c0_193 = arith.constant 0 : index
      %c0_194 = arith.constant 0 : index
      %c0_195 = arith.constant 0 : index
      %728 = vector.load %arg17[%c0_193, %c0_194, %c0_195] : memref<2x8x32xf32, #tpu.memory_space<vmem>>, vector<2x8x32xf32>
      %729 = vector.shape_cast %728 : vector<2x8x32xf32> to vector<16x32xf32>
      %c0_196 = arith.constant 0 : index
      %c0_197 = arith.constant 0 : index
      %730 = vector.load %arg12[%c0_196, %c0_197] : memref<2x32xf32, #tpu.memory_space<vmem>>, vector<1x32xf32>
      %c1_198 = arith.constant 1 : index
      %c0_199 = arith.constant 0 : index
      %731 = vector.load %arg12[%c1_198, %c0_199] : memref<2x32xf32, #tpu.memory_space<vmem>>, vector<1x32xf32>
      %cst_200 = arith.constant dense<0.000000e+00> : vector<16xf32>
      %732 = vector.multi_reduction <add>, %729, %cst_200 [1] : vector<16x32xf32> to vector<16xf32>
      %733 = vector.shape_cast %732 : vector<16xf32> to vector<16x1xf32>
      %cst_201 = arith.constant 3.200000e+01 : f32
      %734 = vector.broadcast %cst_201 : f32 to vector<16x1xf32>
      %735 = arith.divf %733, %734 : vector<16x1xf32>
      %736 = vector.broadcast %735 : vector<16x1xf32> to vector<16x32xf32>
      %737 = arith.subf %729, %736 : vector<16x32xf32>
      %738 = arith.mulf %737, %737 : vector<16x32xf32>
      %cst_202 = arith.constant dense<0.000000e+00> : vector<16xf32>
      %739 = vector.multi_reduction <add>, %738, %cst_202 [1] : vector<16x32xf32> to vector<16xf32>
      %740 = vector.shape_cast %739 : vector<16xf32> to vector<16x1xf32>
      %cst_203 = arith.constant 3.200000e+01 : f32
      %741 = vector.broadcast %cst_203 : f32 to vector<16x1xf32>
      %742 = arith.divf %740, %741 : vector<16x1xf32>
      %743 = vector.broadcast %735 : vector<16x1xf32> to vector<16x32xf32>
      %744 = arith.subf %729, %743 : vector<16x32xf32>
      %cst_204 = arith.constant 9.99999974E-6 : f32
      %745 = vector.broadcast %cst_204 : f32 to vector<16x1xf32>
      %746 = arith.addf %742, %745 : vector<16x1xf32>
      %747 = math.rsqrt %746 : vector<16x1xf32>
      %748 = vector.broadcast %747 : vector<16x1xf32> to vector<16x32xf32>
      %749 = arith.mulf %744, %748 : vector<16x32xf32>
      %750 = vector.broadcast %730 : vector<1x32xf32> to vector<16x32xf32>
      %751 = arith.mulf %749, %750 : vector<16x32xf32>
      %752 = vector.broadcast %731 : vector<1x32xf32> to vector<16x32xf32>
      %753 = arith.addf %751, %752 : vector<16x32xf32>
      %c0_205 = arith.constant 0 : index
      %c0_206 = arith.constant 0 : index
      %754 = vector.load %arg13[%c0_205, %c0_206] : memref<32x128xf32, #tpu.memory_space<vmem>>, vector<32x128xf32>
      %755 = arith.truncf %754 : vector<32x128xf32> to vector<32x128xbf16>
      %756 = arith.truncf %753 : vector<16x32xf32> to vector<16x32xbf16>
      %cst_207 = arith.constant dense<0.000000e+00> : vector<128x16xf32>
      %757 = tpu.matmul %755, %756, %cst_207 {dimension_numbers = #tpu.dot_dimension_numbers<[0], [1], [1], [0], [0, 1, 1, 0], [], []>} : vector<32x128xbf16>, vector<16x32xbf16>, vector<128x16xf32> -> vector<128x16xf32>
      %758 = tpu.iota {dimensions = array<i32: 0>} : vector<128x16xi32>
      %c64_i32 = arith.constant 64 : i32
      %759 = vector.broadcast %c64_i32 : i32 to vector<128x16xi32>
      %760 = arith.cmpi slt, %758, %759 : vector<128x16xi32>
      %cst_208 = arith.constant -1.000000e+30 : f32
      %761 = vector.broadcast %cst_208 : f32 to vector<128x16xf32>
      %762 = arith.select %760, %757, %761 : vector<128x16xi1>, vector<128x16xf32>
      %cst_209 = arith.constant dense<0xFF800000> : vector<16xf32>
      %763 = vector.multi_reduction <maximumf>, %762, %cst_209 [0] : vector<128x16xf32> to vector<16xf32>
      %764 = vector.shape_cast %763 : vector<16xf32> to vector<1x16xf32>
      %765 = vector.broadcast %764 : vector<1x16xf32> to vector<128x16xf32>
      %766 = arith.cmpf oeq, %762, %765 : vector<128x16xf32>
      %c128_i32 = arith.constant 128 : i32
      %767 = vector.broadcast %c128_i32 : i32 to vector<128x16xi32>
      %768 = arith.select %766, %758, %767 : vector<128x16xi1>, vector<128x16xi32>
      %cst_210 = arith.constant dense<2147483647> : vector<16xi32>
      %769 = vector.multi_reduction <minsi>, %768, %cst_210 [0] : vector<128x16xi32> to vector<16xi32>
      %770 = vector.shape_cast %769 : vector<16xi32> to vector<1x16xi32>
      %c0_211 = arith.constant 0 : index
      %c0_212 = arith.constant 0 : index
      %771 = vector.load %arg16[%c0_211, %c0_212] : memref<1x16xi32, #tpu.memory_space<vmem>>, vector<1x16xi32>
      tpu.vector_store %arg16[%c0_211, %c0_212], %770 {strides = array<i32>} : memref<1x16xi32, #tpu.memory_space<vmem>>, vector<1x16xi32>,
      %772 = vector.broadcast %764 : vector<1x16xf32> to vector<128x16xf32>
      %773 = arith.subf %762, %772 : vector<128x16xf32>
      %774 = math.exp %773 : vector<128x16xf32>
      %cst_213 = arith.constant dense<0.000000e+00> : vector<16xf32>
      %775 = vector.multi_reduction <add>, %774, %cst_213 [0] : vector<128x16xf32> to vector<16xf32>
      %776 = vector.shape_cast %775 : vector<16xf32> to vector<1x16xf32>
      %777 = math.log %776 : vector<1x16xf32>
      %778 = arith.addf %777, %764 : vector<1x16xf32>
      %c0_214 = arith.constant 0 : index
      %c0_215 = arith.constant 0 : index
      %779 = vector.load %arg14[%c0_214, %c0_215] : memref<1x16xi32, #tpu.memory_space<vmem>>, vector<1x16xi32>
      %c-100_i32 = arith.constant -100 : i32
      %780 = vector.broadcast %c-100_i32 : i32 to vector<1x16xi32>
      %781 = arith.cmpi ne, %779, %780 : vector<1x16xi32>
      %c0_i32_216 = arith.constant 0 : i32
      %782 = vector.broadcast %c0_i32_216 : i32 to vector<1x16xi32>
      %783 = arith.select %781, %779, %782 : vector<1x16xi1>, vector<1x16xi32>
      %784 = vector.broadcast %783 : vector<1x16xi32> to vector<128x16xi32>
      %785 = arith.cmpi eq, %758, %784 : vector<128x16xi32>
      %cst_217 = arith.constant 0.000000e+00 : f32
      %786 = vector.broadcast %cst_217 : f32 to vector<128x16xf32>
      %787 = arith.select %785, %762, %786 : vector<128x16xi1>, vector<128x16xf32>
      %cst_218 = arith.constant dense<0.000000e+00> : vector<16xf32>
      %788 = vector.multi_reduction <add>, %787, %cst_218 [0] : vector<128x16xf32> to vector<16xf32>
      %789 = vector.shape_cast %788 : vector<16xf32> to vector<1x16xf32>
      %790 = arith.subf %778, %789 : vector<1x16xf32>
      %791 = arith.extui %781 : vector<1x16xi1> to vector<1x16xi32>
      %792 = arith.sitofp %791 : vector<1x16xi32> to vector<1x16xf32>
      %793 = arith.mulf %790, %792 : vector<1x16xf32>
      %cst_219 = arith.constant dense<0.000000e+00> : vector<1xf32>
      %794 = vector.multi_reduction <add>, %793, %cst_219 [1] : vector<1x16xf32> to vector<1xf32>
      %795 = vector.shape_cast %794 : vector<1xf32> to vector<1x1xf32>
      %cst_220 = arith.constant dense<0.000000e+00> : vector<1xf32>
      %796 = vector.multi_reduction <add>, %792, %cst_220 [1] : vector<1x16xf32> to vector<1xf32>
      %797 = vector.shape_cast %796 : vector<1xf32> to vector<1x1xf32>
      %cst_221 = arith.constant 1.000000e+00 : f32
      %798 = vector.broadcast %cst_221 : f32 to vector<1x1xf32>
      %799 = arith.maximumf %797, %798 : vector<1x1xf32>
      %800 = arith.divf %795, %799 : vector<1x1xf32>
      %c0_222 = arith.constant 0 : index
      %c0_223 = arith.constant 0 : index
      %801 = vector.load %arg15[%c0_222, %c0_223] : memref<1x1xf32, #tpu.memory_space<vmem>>, vector<1x1xf32>
      tpu.vector_store %arg15[%c0_222, %c0_223], %800 {strides = array<i32>} : memref<1x1xf32, #tpu.memory_space<vmem>>, vector<1x1xf32>,
    } else {
    }
    return
  }
  func.func @transform_0(%arg0: i32) -> (i32, i32, i32) {
    %c0_i32 = arith.constant 0 : i32
    %c0_i32_0 = arith.constant 0 : i32
    %c0_i32_1 = arith.constant 0 : i32
    %c0_i32_2 = arith.constant 0 : i32
    return %c0_i32, %c0_i32_0, %c0_i32_1 : i32, i32, i32
  }
  func.func @transform_1(%arg0: i32) -> (i32, i32, i32) {
    %c0_i32 = arith.constant 0 : i32
    %c0_i32_0 = arith.constant 0 : i32
    %c0_i32_1 = arith.constant 0 : i32
    %c0_i32_2 = arith.constant 0 : i32
    return %c0_i32, %c0_i32_0, %c0_i32_1 : i32, i32, i32
  }
  func.func @transform_2(%arg0: i32) -> (i32, i32, i32) {
    %c0_i32 = arith.constant 0 : i32
    %c0_i32_0 = arith.constant 0 : i32
    %c0_i32_1 = arith.constant 0 : i32
    return %arg0, %c0_i32, %c0_i32_0 : i32, i32, i32
  }
  func.func @transform_3(%arg0: i32) -> (i32, i32, i32) {
    %c0_i32 = arith.constant 0 : i32
    %c0_i32_0 = arith.constant 0 : i32
    %c0_i32_1 = arith.constant 0 : i32
    return %arg0, %c0_i32, %c0_i32_0 : i32, i32, i32
  }
  func.func @transform_4(%arg0: i32) -> (i32, i32, i32) {
    %c0_i32 = arith.constant 0 : i32
    %c0_i32_0 = arith.constant 0 : i32
    %c0_i32_1 = arith.constant 0 : i32
    return %arg0, %c0_i32, %c0_i32_0 : i32, i32, i32
  }
  func.func @transform_5(%arg0: i32) -> (i32, i32, i32) {
    %c0_i32 = arith.constant 0 : i32
    %c0_i32_0 = arith.constant 0 : i32
    %c0_i32_1 = arith.constant 0 : i32
    return %arg0, %c0_i32, %c0_i32_0 : i32, i32, i32
  }
  func.func @transform_6(%arg0: i32) -> (i32, i32, i32) {
    %c0_i32 = arith.constant 0 : i32
    %c0_i32_0 = arith.constant 0 : i32
    %c0_i32_1 = arith.constant 0 : i32
    return %arg0, %c0_i32, %c0_i32_0 : i32, i32, i32
  }
  func.func @transform_7(%arg0: i32) -> (i32, i32, i32) {
    %c0_i32 = arith.constant 0 : i32
    %c0_i32_0 = arith.constant 0 : i32
    %c0_i32_1 = arith.constant 0 : i32
    return %arg0, %c0_i32, %c0_i32_0 : i32, i32, i32
  }
  func.func @transform_8(%arg0: i32) -> (i32, i32, i32) {
    %c0_i32 = arith.constant 0 : i32
    %c0_i32_0 = arith.constant 0 : i32
    %c0_i32_1 = arith.constant 0 : i32
    return %arg0, %c0_i32, %c0_i32_0 : i32, i32, i32
  }
  func.func @transform_9(%arg0: i32) -> (i32, i32, i32) {
    %c0_i32 = arith.constant 0 : i32
    %c0_i32_0 = arith.constant 0 : i32
    %c0_i32_1 = arith.constant 0 : i32
    return %arg0, %c0_i32, %c0_i32_0 : i32, i32, i32
  }
  func.func @transform_10(%arg0: i32) -> (i32, i32, i32) {
    %c0_i32 = arith.constant 0 : i32
    %c0_i32_0 = arith.constant 0 : i32
    %c0_i32_1 = arith.constant 0 : i32
    return %arg0, %c0_i32, %c0_i32_0 : i32, i32, i32
  }
  func.func @transform_11(%arg0: i32) -> (i32, i32) {
    %c0_i32 = arith.constant 0 : i32
    %c0_i32_0 = arith.constant 0 : i32
    %c0_i32_1 = arith.constant 0 : i32
    return %c0_i32, %c0_i32_0 : i32, i32
  }
  func.func @transform_12(%arg0: i32) -> (i32, i32) {
    %c0_i32 = arith.constant 0 : i32
    %c0_i32_0 = arith.constant 0 : i32
    %c0_i32_1 = arith.constant 0 : i32
    return %c0_i32, %c0_i32_0 : i32, i32
  }
  func.func @transform_13(%arg0: i32) -> (i32, i32) {
    %c0_i32 = arith.constant 0 : i32
    %c0_i32_0 = arith.constant 0 : i32
    %c0_i32_1 = arith.constant 0 : i32
    return %c0_i32, %c0_i32_0 : i32, i32
  }
  func.func @transform_14(%arg0: i32) -> (i32, i32) {
    %c0_i32 = arith.constant 0 : i32
    %c0_i32_0 = arith.constant 0 : i32
    %c0_i32_1 = arith.constant 0 : i32
    return %c0_i32, %c0_i32_0 : i32, i32
  }
  func.func @transform_15(%arg0: i32) -> (i32, i32) {
    %c0_i32 = arith.constant 0 : i32
    %c0_i32_0 = arith.constant 0 : i32
    %c0_i32_1 = arith.constant 0 : i32
    return %c0_i32, %c0_i32_0 : i32, i32
  }
}

</mosaic_0001>

<bundles_post_ra>
// kernel: whisper_asr_wrapper_forward.2
= control target key start
LH: loop header
LB: loop body
LE: loop exit
PB: predicated region body
PF: predicated region fallthrough
CT: control target
= control target key end

     0   :  { %v52_v0 = vlaneseq  ;;  %v4550_v17 = vmov 0.0   ;;  %vm170_vm1 = vcmask 1043456   ;;  %vm103_vm4 = vcmask 261120   ;;  %s5615_s0 = inlined_call_operand.vmem [shape: f32[2,32,8], index: 0, kind: input, shape index: {}]   ;;  %s5616_s1 = inlined_call_operand.vmem [shape: f32[140,32], index: 1, kind: input, shape index: {}]   ;;  %s5617_s8 = inlined_call_operand.vmem [shape: f32[2,16,32], index: 8, kind: output, shape index: {}]   ;;  %s5618_s2 = inlined_call_operand.vmem [shape: f32[1,32,96], index: 2, kind: input, shape index: {}]   ;;  %s5619_s7 = inlined_call_operand.vmem [shape: f32[1,96,1], index: 7, kind: input, shape index: {}]   ;;  %s5620_s6 = inlined_call_operand.vmem [shape: f32[1,8,64], index: 6, kind: input, shape index: {}]   ;;  %s5621_s3 = inlined_call_operand.vmem [shape: f32[1,32,32], index: 3, kind: input, shape index: {}]   ;;  %s5622_s4 = inlined_call_operand.vmem [shape: f32[1,32,64], index: 4, kind: input, shape index: {}]   ;;  %s5623_s5 = inlined_call_operand.vmem [shape: f32[1,64,32], index: 5, kind: input, shape index: {}]  }
   0x1   :  { %v89_v1 = vld [vmem:[%s5615_s0 + $0x10] sm:$0xff]  ;;  %v90_v2 = vld [vmem:[%s5615_s0 + $0x18] sm:$0xff]  ;;  %v87_v3 = vld [vmem:[%s5615_s0] sm:$0xff]  ;;  %vm163_vm6 = vcmask 64512   ;;  %vm4551_vm11 = vmmov 0  }
   0x2   :  { %v102_v4 = vpack.c.bf16 %v90_v2, %v89_v1  ;;  %v88_v5 = vld [vmem:[%s5615_s0 + $0x8] sm:$0xff]  ;;  %v4610_v6 = vshrl.u32 %v52_v0, 7  ;;  %v4612_v7 = vand.u32 127, %v52_v0  ;;  %v31_v36 = vld [vmem:[%s5616_s1] sm:$0xff]  ;;  %v33_v39 = vld [vmem:[%s5616_s1 + $0x10] sm:$0xff] }
   0x3   :  { %v101_v8 = vpack.c.bf16 %v88_v5, %v87_v3  ;;  %v32_v9 = vld [vmem:[%s5616_s1 + $0x8] sm:$0xff]  ;;  %v4673_v37 = vpack.c.bf16 %v31_v36, %v31_v36  ;;  %v4685_v40 = vpack.c.bf16 %v33_v39, %v33_v39 }
   0x4   :  { %4037 = vmatprep.subr.bf16.mxu0 %v102_v4  ;;  %v4618_v10 = vadd.s32 8, %v4610_v6  ;;  %v3785_v11 = vadd.s32 4294967295, %v4610_v6  ;;  %v55_v12 = vadd.s32 16, %v4610_v6  ;;  %v56_v13 = vadd.s32 24, %v4610_v6  ;;  %v4707_v62 = vld [vmem:[%s5616_s1 + $0x88] sm:$0xf] }
   0x5   :  { %4038 = vmatpush3.bf16.msra.mxu0 %v102_v4  ;;  %v4625_v16 = vpack.c.bf16 %v32_v9, %v32_v9  ;;  %v67_v20 = vadd.s32 1, %v4610_v6  ;;  %4414 = vmatprep.subr.msk.bf16.mxu1 %vm170_vm1, %v4673_v37  ;;  %v4679_v38 = vsel %vm170_vm1, %v4673_v37, 0  ;;  %v4691_v48 = vsel %vm170_vm1, %v4685_v40, 0 }
   0x6   :  { %4039 = vmatprep.subr.bf16.mxu0 %v101_v8  ;;  %v3786_v14 = vadd.s32 4294967295, %v4618_v10  ;;  %vm63_vm0 = vcmp.eq.s32.totalorder %v4612_v7, %v3785_v11  ;;  %v3787_v15 = vadd.s32 4294967295, %v55_v12  ;;  %v3788_v19 = vadd.s32 4294967295, %v56_v13  ;;  %4052 = vmatpush3.bf16.msra.mxu1 %v4679_v38 }
   0x7   :  { %v3791_v18 = vsel %vm63_vm0, 1.0, %v4550_v17  ;;  %v68_v21 = vadd.s32 1, %v4618_v10  ;;  %v4644_v27 = vsel %vm170_vm1, %v4625_v16, 0  ;;  %vm71_vm7 = vcmp.eq.s32.totalorder %v4612_v7, %v67_v20  ;;  %4415 = vmatprep.subr.msk.bf16.mxu1 %vm170_vm1, %v4685_v40 }
   0x8   :  { %vm64_vm2 = vcmp.eq.s32.totalorder %v4612_v7, %v3786_v14  ;;  %vm65_vm3 = vcmp.eq.s32.totalorder %v4612_v7, %v3787_v15  ;;  %vm66_vm5 = vcmp.eq.s32.totalorder %v4612_v7, %v3788_v19  ;;  %v69_v28 = vadd.s32 1, %v55_v12 }
   0x9   :  { %4040 = vmatpush3.bf16.msra.mxu0 %v101_v8  ;;  %v3792_v22 = vsel %vm64_vm2, 1.0, %v4550_v17  ;;  %v3793_v23 = vsel %vm65_vm3, 1.0, %v4550_v17  ;;  %v3794_v25 = vsel %vm66_vm5, 1.0, %v4550_v17  ;;  %vm72_vm8 = vcmp.eq.s32.totalorder %v4612_v7, %v68_v21 }
   0xa   :  { %v4635_v24 = vpack.c.bf16 %v3792_v22, %v3791_v18  ;;  %4413 = vmatprep.subr.msk.bf16.mxu0 %vm170_vm1, %v4625_v16  ;;  %v4640_v26 = vpack.c.bf16 %v3794_v25, %v3793_v23  ;;  %v70_v29 = vadd.s32 1, %v56_v13  ;;  %v3801_v30 = vsel %vm71_vm7, 1.0, %v4550_v17 }
   0xb   :  { %v3802_v31 = vsel %vm72_vm8, 1.0, %v4550_v17  ;;  %vm73_vm9 = vcmp.eq.s32.totalorder %v4612_v7, %v69_v28  ;;  %v413_v61 = vsub.s32 0, %v4610_v6  ;;  %vm1705_vm3 = vcmask 130048  }
   0xc   :  { %4041 = vmatprep.mubr.msk.bf16.mxu0 %vm103_vm4, %v4635_v24  ;;  %v4656_v32 = vpack.c.bf16 %v3802_v31, %v3801_v30  ;;  %vm74_vm10 = vcmp.eq.s32.totalorder %v4612_v7, %v70_v29  ;;  %v3803_v33 = vsel %vm73_vm9, 1.0, %v4550_v17  ;;  %vm2571_vm5 = vcmask 523264  }
   0xd   :  { %4042 = vmatmul.mubr.msk.bf16.vlgmr.msra.gmra.mxu0 %vm103_vm4, %v4640_v26  ;;  %v3804_v34 = vsel %vm74_vm10, 1.0, %v4550_v17  ;;  %v4712_v1 = vrot.slane %v4707_v62, %v413_v61 }
   0xe   :  { %4046 = vmatpush3.bf16.msra.mxu0 %v4644_v27  ;;  %4047 = vmatprep.mubr.msk.bf16.mxu0 %vm163_vm6, %v101_v8  ;;  %v4665_v35 = vpack.c.bf16 %v3804_v34, %v3803_v33 }
   0xf   :  { %4057 = vmatprep.subr.bf16.mxu0 %v102_v4 }
  0x15   :  { %4048 = vmatmul.mubr.msk.bf16.vlgmr.msra.gmra.mxu0 %vm163_vm6, %v102_v4 }
  0x16   :  { %4058 = vmatpush3.bf16.msra.mxu0 %v102_v4  ;;  %4061 = vmatprep.mubr.msk.bf16.mxu0 %vm103_vm4, %v4656_v32 }
  0x17   :  { %4059 = vmatprep.subr.bf16.mxu0 %v101_v8 }
  0x1a   :  { %4060 = vmatpush3.bf16.msra.mxu0 %v101_v8 }
  0x1b   :  { %4071 = vmatprep.subr.bf16.mxu0 %v4550_v17 }
  0x1d   :  { %4062 = vmatmul.mubr.msk.bf16.vlgmr.msra.gmra.mxu0 %vm103_vm4, %v4665_v35 }
  0x1e   :  { %4075 = vmatprep.mubr.msk.bf16.mxu0 %vm4551_vm11, %v4550_v17 }
  0xcd   :  { %v4043_v41 = vpop.f32.mrf.mxu0 }
  0xcf   :  { %v144_v42 = vpop.f32.mrf.mxu0 }
  0xd1   :  { %v4044_v43 = vpop.f32.mrf.mxu0 }
  0xd2   :  { %v160_v46 = vpack.c.bf16 %v4044_v43, %v4043_v41 }
  0xd3   :  { %v147_v44 = vpop.f32.mrf.mxu0 }
  0xd4   :  { %v159_v45 = vpack.c.bf16 %v147_v44, %v144_v42 }
  0xd5   :  { %v4049_v47 = vpop.f32.mrf.mxu0 }
  0xd6   :  { %4053 = vmatprep.mubr.msk.bf16.mxu1 %vm163_vm6, %v159_v45 }
  0xd7   :  { %v208_v49 = vpop.f32.mrf.mxu0  ;;  %4054 = vmatmul.mubr.msk.bf16.vlgmr.msra.gmra.mxu1 %vm163_vm6, %v160_v46 }
  0xd8   :  { %4066 = vmatpush3.bf16.msra.mxu1 %v4691_v48 }
  0xd9   :  { %v4050_v50 = vpop.f32.mrf.mxu0  ;;  %4079 = vmatprep.subr.bf16.mxu1 %v4550_v17 }
  0xdb   :  { %v211_v51 = vpop.f32.mrf.mxu0 }
  0xdd   :  { %v4063_v52 = vpop.f32.mrf.mxu0 }
  0xdf   :  { %v331_v53 = vpop.f32.mrf.mxu0 }
  0xe1   :  { %v4064_v54 = vpop.f32.mrf.mxu0 }
  0xe2   :  { %v347_v57 = vpack.c.bf16 %v4064_v54, %v4063_v52 }
  0xe3   :  { %v334_v55 = vpop.f32.mrf.mxu0 }
  0xe4   :  { %v346_v56 = vpack.c.bf16 %v334_v55, %v331_v53  ;;  %v4722_v53 = vmul.u32 2, %v4618_v10 }
  0xe6   :  { %4067 = vmatprep.mubr.msk.bf16.mxu1 %vm163_vm6, %v346_v56  ;;  %vm82_vm15 = vcmp.eq.s32.totalorder %v4612_v7, %v4722_v53 }
  0xe7   :  { %4068 = vmatmul.mubr.msk.bf16.vlgmr.msra.gmra.mxu1 %vm163_vm6, %v347_v57 }
  0xe8   :  { %4083 = vmatprep.mubr.msk.bf16.mxu1 %vm4551_vm11, %v4550_v17 }
 0x197   :  { %v4055_v58 = vpop.f32.mrf.mxu1 }
 0x198   :  { %v275_v0 = vadd.f32 %v4055_v58, %v4049_v47  ;;  %v3790_v58 = vadd.s32 4294967295, %v4722_v53 }
 0x199   :  { %v266_v59 = vpop.f32.mrf.mxu1 }
 0x19a   :  { %v267_v3 = vadd.f32 %v266_v59, %v208_v49  ;;  %vm80_vm13 = vcmp.eq.s32.totalorder %v4612_v7, %v3790_v58 }
 0x19b   :  { %v4056_v60 = vpop.f32.mrf.mxu1 }
 0x19c   :  { %v278_v8 = vadd.f32 %v4056_v60, %v4050_v50 }
 0x19d   :  { %v269_v63 = vpop.f32.mrf.mxu1 }
 0x19e   :  { %v270_v13 = vadd.f32 %v269_v63, %v211_v51  ;;  %v4719_v51 = vmul.u32 2, %v4610_v6 }
 0x1a0   :  { %v3789_v54 = vadd.s32 4294967295, %v4719_v51  ;;  %vm81_vm14 = vcmp.eq.s32.totalorder %v4612_v7, %v4719_v51 }
 0x1a2   :  { %vm79_vm12 = vcmp.eq.s32.totalorder %v4612_v7, %v3789_v54 }
 0x1a7   :  { %v4069_v2 = vpop.f32.mrf.mxu1 }
 0x1a8   :  { %v409_v4 = vadd.f32 %v4069_v2, %v275_v0 }
 0x1a9   :  { %v392_v5 = vpop.f32.mrf.mxu1 }
 0x1aa   :  { %v417_v9 = vadd.f32 %v4712_v1, %v409_v4  ;;  %v407_v11 = vadd.f32 %v392_v5, %v267_v3 }
 0x1ab   :  { %v4070_v12 = vpop.f32.mrf.mxu1 }
 0x1ac   :  { %v425_v14 = vmul.f32 0.044715, %v417_v9  ;;  %v415_v15 = vadd.f32 %v4712_v1, %v407_v11  ;;  %v410_v18 = vadd.f32 %v4070_v12, %v278_v8  ;;  %v421_v59 = vmul.f32 0.5, %v417_v9 }
 0x1ad   :  { %v395_v19 = vpop.f32.mrf.mxu1  ;;  %v3809_v12 = vsel %vm79_vm12, 1.0, %v4550_v17 }
 0x1ae   :  { %v429_v20 = vmul.f32 %v425_v14, %v417_v9  ;;  %v423_v21 = vmul.f32 0.044715, %v415_v15  ;;  %v418_v22 = vadd.f32 %v4712_v1, %v410_v18  ;;  %v408_v23 = vadd.f32 %v395_v19, %v270_v13 }
 0x1af   :  { %v3810_v14 = vsel %vm80_vm13, 1.0, %v4550_v17  ;;  %v3812_v18 = vsel %vm81_vm14, 1.0, %v4550_v17  ;;  %v3813_v19 = vsel %vm82_vm15, 1.0, %v4550_v17 }
 0x1b0   :  { %v433_v25 = vmul.f32 %v429_v20, %v417_v9  ;;  %v427_v28 = vmul.f32 %v423_v21, %v415_v15  ;;  %v426_v29 = vmul.f32 0.044715, %v418_v22  ;;  %v416_v30 = vadd.f32 %v4712_v1, %v408_v23  ;;  %v41_v20 = vld [vmem:[%s5616_s1 + $0x50] sm:$0xff] }
 0x1b1   :  { %v422_v60 = vmul.f32 0.5, %v418_v22  ;;  %v4746_v23 = vpack.c.bf16 %v3813_v19, %v3812_v18 }
 0x1b2   :  { %v437_v31 = vadd.f32 %v433_v25, %v417_v9  ;;  %v431_v33 = vmul.f32 %v427_v28, %v415_v15  ;;  %v430_v34 = vmul.f32 %v426_v29, %v418_v22  ;;  %v424_v36 = vmul.f32 0.044715, %v416_v30  ;;  %v36_v28 = vld [vmem:[%s5616_s1 + $0x28] sm:$0xff]  ;;  %v37_v29 = vld [vmem:[%s5616_s1 + $0x30] sm:$0xff] }
 0x1b3   :  { %v420_v2 = vmul.f32 0.5, %v416_v30  ;;  %v419_v9 = vmul.f32 0.5, %v415_v15 }
 0x1b4   :  { %v435_v39 = vadd.f32 %v431_v33, %v415_v15  ;;  %v434_v41 = vmul.f32 %v430_v34, %v418_v22  ;;  %v428_v42 = vmul.f32 %v424_v36, %v416_v30  ;;  %v441_v43 = vmul.f32 0.7978846, %v437_v31  ;;  %v40_v15 = vld [vmem:[%s5616_s1 + $0x48] sm:$0xff]  ;;  %v38_v31 = vld [vmem:[%s5616_s1 + $0x38] sm:$0xff]  ;;  %v39_v33 = vld [vmem:[%s5616_s1 + $0x40] sm:$0xff] }
 0x1b5   :  { %v4748_v25 = vpack.c.bf16 %v41_v20, %v40_v15  ;;  %v4777_v34 = vpack.c.bf16 %v39_v33, %v38_v31  ;;  %v34_v36 = vld [vmem:[%s5616_s1 + $0x18] sm:$0xff] }
 0x1b6   :  { %v438_v44 = vadd.f32 %v434_v41, %v418_v22  ;;  %v432_v45 = vmul.f32 %v428_v42, %v416_v30  ;;  %4426 = vtanh.f32 %v441_v43  ;;  %v439_v46 = vmul.f32 0.7978846, %v435_v39  ;;  %v35_v39 = vld [vmem:[%s5616_s1 + $0x20] sm:$0xff] }
 0x1b7   :  { %v4744_v22 = vpack.c.bf16 %v3810_v14, %v3809_v12  ;;  %v4786_v41 = vpack.c.bf16 %v35_v39, %v34_v36 }
 0x1b8   :  { %v436_v47 = vadd.f32 %v432_v45, %v416_v30  ;;  %v442_v49 = vmul.f32 0.7978846, %v438_v44  ;;  %4428 = vtanh.f32 %v439_v46  ;;  %v4768_v30 = vpack.c.bf16 %v37_v29, %v36_v28 }
 0x1b9   :  { %v83_v44 = vadd.s32 1, %v4719_v51  ;;  %v84_v45 = vadd.s32 1, %v4722_v53  ;;  %v3824_v51 = vld [vmem:[%s5615_s0 + $0x38] sm:$0xff] }
 0x1ba   :  { %4430 = vtanh.f32 %v442_v49  ;;  %v440_v50 = vmul.f32 0.7978846, %v436_v47 }
 0x1bb   :  { %vm85_vm0 = vcmp.eq.s32.totalorder %v4612_v7, %v83_v44  ;;  %vm86_vm2 = vcmp.eq.s32.totalorder %v4612_v7, %v84_v45 }
 0x1bc   :  { %4432 = vtanh.f32 %v440_v50  ;;  %v3817_v7 = vsel %vm85_vm0, 1.0, %v4550_v17 }
 0x1c3   :  { %v4427_v52 = vpop.eup %4426 }
 0x1c4   :  { %v449_v56 = vadd.f32 1.0, %v4427_v52 }
 0x1c5   :  { %v4429_v55 = vpop.eup %4428 }
 0x1c6   :  { %v453_v3 = vmul.f32 %v449_v56, %v421_v59  ;;  %v447_v5 = vadd.f32 1.0, %v4429_v55  ;;  %v3823_v56 = vld [vmem:[%s5615_s0 + $0x30] sm:$0xff]  ;;  %v3821_v59 = vld [vmem:[%s5615_s0 + $0x20] sm:$0xff] }
 0x1c7   :  { %v4431_v57 = vpop.eup %4430  ;;  %v781_v58 = vpack.c.bf16 %v3824_v51, %v3823_v56 }
 0x1c8   :  { %v450_v63 = vadd.f32 1.0, %v4431_v57  ;;  %v451_v13 = vmul.f32 %v447_v5, %v419_v9  ;;  %v3818_v57 = vsel %vm86_vm2, 1.0, %v4550_v17 }
 0x1c9   :  { %v4433_v0 = vpop.eup %4432 }
 0x1ca   :  { %v454_v4 = vmul.f32 %v450_v63, %v422_v60  ;;  %v448_v8 = vadd.f32 1.0, %v4433_v0  ;;  %v3822_v60 = vld [vmem:[%s5615_s0 + $0x28] sm:$0xff]  ;;  %v4817_v63 = vpack.c.bf16 %v3818_v57, %v3817_v7 }
 0x1cb   :  { %v780_v0 = vpack.c.bf16 %v3822_v60, %v3821_v59 }
 0x1cc   :  { %v461_v10 = vpack.c.bf16 %v454_v4, %v453_v3  ;;  %v452_v11 = vmul.f32 %v448_v8, %v420_v2  ;;  %v44_v2 = vld [vmem:[%s5616_s1 + $0x68] sm:$0xff] }
 0x1ce   :  { %4072 = vmatpush3.bf16.msra.mxu0 %v461_v10  ;;  %4080 = vmatpush3.bf16.msra.mxu1 %v461_v10  ;;  %v460_v21 = vpack.c.bf16 %v452_v11, %v451_v13 }
 0x1cf   :  { %4073 = vmatprep.subr.bf16.mxu0 %v4550_v17  ;;  %4081 = vmatprep.subr.bf16.mxu1 %v4550_v17 }
 0x1d2   :  { %4074 = vmatpush3.bf16.msra.mxu0 %v460_v21  ;;  %4082 = vmatpush3.bf16.msra.mxu1 %v460_v21 }
 0x1d3   :  { %4087 = vmatprep.subr.bf16.mxu0 %v4550_v17  ;;  %4095 = vmatprep.subr.bf16.mxu1 %v4550_v17 }
 0x1d5   :  { %4076 = vmatmul.mubr.msk.bf16.vlgmr.msra.gmra.mxu0 %vm103_vm4, %v4744_v22  ;;  %4084 = vmatmul.mubr.msk.bf16.vlgmr.msra.gmra.mxu1 %vm103_vm4, %v4746_v23 }
 0x1d6   :  { %4088 = vmatpush3.bf16.msra.mxu0 %v4748_v25  ;;  %4091 = vmatprep.mubr.msk.bf16.mxu0 %vm4551_vm11, %v4550_v17 }
 0x1d7   :  { %4089 = vmatprep.subr.bf16.mxu0 %v4550_v17  ;;  %4099 = vmatprep.mubr.msk.bf16.mxu1 %vm4551_vm11, %v4550_v17 }
 0x1d8   :  { %4096 = vmatpush3.bf16.msra.mxu1 %v4768_v30 }
 0x1d9   :  { %4097 = vmatprep.subr.bf16.mxu1 %v4550_v17 }
 0x1da   :  { %4090 = vmatpush3.bf16.msra.mxu0 %v4777_v34 }
 0x1db   :  { %4103 = vmatprep.subr.bf16.mxu0 %v4550_v17 }
 0x1dc   :  { %4098 = vmatpush3.bf16.msra.mxu1 %v4786_v41 }
 0x1dd   :  { %4111 = vmatprep.subr.bf16.mxu1 %v4550_v17 }
 0x295   :  { %v499_v42 = vpop.f32.mrf.mxu0  ;;  %v551_v43 = vpop.f32.mrf.mxu1 }
 0x297   :  { %v4077_v46 = vpop.f32.mrf.mxu0  ;;  %v4085_v47 = vpop.f32.mrf.mxu1 }
 0x299   :  { %v502_v49 = vpop.f32.mrf.mxu0  ;;  %v554_v50 = vpop.f32.mrf.mxu1 }
 0x29a   :  { %v506_v52 = vpack.c.bf16 %v502_v49, %v499_v42  ;;  %v558_v54 = vpack.c.bf16 %v554_v50, %v551_v43 }
 0x29b   :  { %v4086_v55 = vpop.f32.mrf.mxu1  ;;  %v4078_v53 = vpop.f32.mrf.mxu0 }
 0x29c   :  { %4092 = vmatmul.mubr.msk.bf16.vlgmr.msra.gmra.mxu0 %vm103_vm4, %v558_v54  ;;  %4100 = vmatmul.mubr.msk.bf16.vlgmr.msra.gmra.mxu1 %vm103_vm4, %v506_v52 }
 0x29d   :  { %4104 = vmatpush3.bf16.msra.mxu0 %v461_v10  ;;  %4107 = vmatprep.mubr.msk.bf16.mxu0 %vm4551_vm11, %v4550_v17 }
 0x29e   :  { %4105 = vmatprep.subr.bf16.mxu0 %v4550_v17  ;;  %4115 = vmatprep.mubr.msk.bf16.mxu1 %vm4551_vm11, %v4550_v17 }
 0x2a1   :  { %4106 = vmatpush3.bf16.msra.mxu0 %v460_v21 }
 0x2a2   :  { %4119 = vmatprep.subr.bf16.mxu0 %v781_v58 }
 0x2a4   :  { %4108 = vmatmul.mubr.msk.bf16.vlgmr.msra.gmra.mxu0 %vm103_vm4, %v4817_v63 }
 0x2a5   :  { %4120 = vmatpush3.bf16.msra.mxu0 %v781_v58  ;;  %4123 = vmatprep.mubr.msk.bf16.mxu0 %vm103_vm4, %v4635_v24  ;;  %v45_v24 = vld [vmem:[%s5616_s1 + $0x70] sm:$0xff] }
 0x2a6   :  { %4121 = vmatprep.subr.bf16.mxu0 %v780_v0  ;;  %v4836_v3 = vpack.c.bf16 %v45_v24, %v44_v2 }
 0x2a8   :  { %4112 = vmatpush3.bf16.msra.mxu1 %v4836_v3 }
 0x2a9   :  { %4122 = vmatpush3.bf16.msra.mxu0 %v780_v0  ;;  %4113 = vmatprep.subr.bf16.mxu1 %v4550_v17 }
 0x2aa   :  { %4417 = vmatprep.subr.msk.bf16.mxu0 %vm170_vm1, %v4673_v37  ;;  %v43_v37 = vld [vmem:[%s5616_s1 + $0x60] sm:$0xff] }
 0x2ac   :  { %4124 = vmatmul.mubr.msk.bf16.vlgmr.msra.gmra.mxu0 %vm103_vm4, %v4640_v26  ;;  %v42_v26 = vld [vmem:[%s5616_s1 + $0x58] sm:$0xff] }
 0x2ad   :  { %4134 = vmatpush3.bf16.msra.mxu0 %v4679_v38  ;;  %v4846_v38 = vpack.c.bf16 %v43_v37, %v42_v26 }
 0x2ae   :  { %4418 = vmatprep.subr.msk.bf16.mxu0 %vm170_vm1, %v4685_v40 }
 0x2af   :  { %4114 = vmatpush3.bf16.msra.mxu1 %v4846_v38 }
 0x2b0   :  { %4416 = vmatprep.subr.msk.bf16.mxu1 %vm170_vm1, %v4625_v16 }
 0x35c   :  { %v598_v40 = vpop.f32.mrf.mxu0  ;;  %v642_v4 = vpop.f32.mrf.mxu1 }
 0x35d   :  { %v643_v5 = vadd.f32 %v642_v4, %v598_v40 }
 0x35e   :  { %v4093_v8 = vpop.f32.mrf.mxu0  ;;  %v4101_v10 = vpop.f32.mrf.mxu1 }
 0x35f   :  { %v4889_v8 = vld [vmem:[%s5616_s1 + $0x78] sm:$0xff] }
 0x360   :  { %v601_v9 = vpop.f32.mrf.mxu0  ;;  %v645_v11 = vpop.f32.mrf.mxu1 }
 0x361   :  { %v646_v12 = vadd.f32 %v645_v11, %v601_v9 }
 0x362   :  { %v4094_v13 = vpop.f32.mrf.mxu0  ;;  %v4102_v14 = vpop.f32.mrf.mxu1 }
 0x363   :  { %v4895_v14 = vld [vmem:[%s5616_s1 + $0x80] sm:$0xff] }
 0x364   :  { %v691_v18 = vpop.f32.mrf.mxu0 }
 0x366   :  { %v4109_v19 = vpop.f32.mrf.mxu0 }
 0x368   :  { %v694_v15 = vpop.f32.mrf.mxu0 }
 0x369   :  { %v698_v20 = vpack.c.bf16 %v694_v15, %v691_v18 }
 0x36a   :  { %v4110_v21 = vpop.f32.mrf.mxu0 }
 0x36b   :  { %4116 = vmatmul.mubr.msk.bf16.vlgmr.msra.gmra.mxu1 %vm103_vm4, %v698_v20 }
 0x36c   :  { %v4125_v28 = vpop.f32.mrf.mxu0  ;;  %4128 = vmatpush3.bf16.msra.mxu1 %v4644_v27  ;;  %4129 = vmatprep.mubr.msk.bf16.mxu1 %vm163_vm6, %v780_v0  ;;  %v749_v27 = vsub.s32 1, %v4610_v6 }
 0x36d   :  { %4139 = vmatprep.subr.bf16.mxu1 %v781_v58 }
 0x36e   :  { %v816_v16 = vpop.f32.mrf.mxu0 }
 0x370   :  { %v4126_v29 = vpop.f32.mrf.mxu0 }
 0x371   :  { %v832_v31 = vpack.c.bf16 %v4126_v29, %v4125_v28 }
 0x372   :  { %v819_v33 = vpop.f32.mrf.mxu0 }
 0x373   :  { %v831_v36 = vpack.c.bf16 %v819_v33, %v816_v16  ;;  %4130 = vmatmul.mubr.msk.bf16.vlgmr.msra.gmra.mxu1 %vm163_vm6, %v781_v58 }
 0x374   :  { %4140 = vmatpush3.bf16.msra.mxu1 %v781_v58  ;;  %4143 = vmatprep.mubr.msk.bf16.mxu1 %vm103_vm4, %v4656_v32  ;;  %v4870_v32 = vrot.slane %v4707_v62, %v749_v27 }
 0x375   :  { %4135 = vmatprep.mubr.msk.bf16.mxu0 %vm163_vm6, %v831_v36  ;;  %4141 = vmatprep.subr.bf16.mxu1 %v780_v0 }
 0x376   :  { %4136 = vmatmul.mubr.msk.bf16.vlgmr.msra.gmra.mxu0 %vm163_vm6, %v832_v31 }
 0x377   :  { %4148 = vmatpush3.bf16.msra.mxu0 %v4691_v48 }
 0x378   :  { %4142 = vmatpush3.bf16.msra.mxu1 %v780_v0  ;;  %4161 = vmatprep.subr.bf16.mxu0 %v4550_v17 }
 0x379   :  { %4153 = vmatprep.subr.bf16.mxu1 %v4550_v17 }
 0x37b   :  { %4144 = vmatmul.mubr.msk.bf16.vlgmr.msra.gmra.mxu1 %vm103_vm4, %v4665_v35 }
 0x37c   :  { %4157 = vmatprep.mubr.msk.bf16.mxu1 %vm4551_vm11, %v4550_v17 }
 0x42b   :  { %v738_v39 = vpop.f32.mrf.mxu1 }
 0x42c   :  { %v745_v48 = vadd.f32 %v738_v39, %v643_v5 }
 0x42d   :  { %v4117_v42 = vpop.f32.mrf.mxu1 }
 0x42e   :  { %v751_v43 = vadd.f32 %v4870_v32, %v745_v48 }
 0x42f   :  { %v741_v44 = vpop.f32.mrf.mxu1 }
 0x430   :  { %v755_v45 = vmul.f32 0.044715, %v751_v43  ;;  %v746_v46 = vadd.f32 %v741_v44, %v646_v12  ;;  %v753_v4 = vmul.f32 0.5, %v751_v43 }
 0x431   :  { %v4118_v47 = vpop.f32.mrf.mxu1 }
 0x432   :  { %v757_v35 = vmul.f32 %v755_v45, %v751_v43  ;;  %v752_v49 = vadd.f32 %v4870_v32, %v746_v46  ;;  %v1380_v47 = vld [vmem:[%s5618_s2] sm:$0xff] }
 0x433   :  { %v4874_v50 = vpop.f32.mrf.mxu1 }
 0x434   :  { %v759_v52 = vmul.f32 %v757_v35, %v751_v43  ;;  %v756_v54 = vmul.f32 0.044715, %v752_v49  ;;  %v754_v12 = vmul.f32 0.5, %v752_v49  ;;  %v1381_v35 = vld [vmem:[%s5618_s2 + $0x8] sm:$0xff] }
 0x435   :  { %v4876_v55 = vpop.f32.mrf.mxu1 }
 0x436   :  { %v761_v62 = vadd.f32 %v759_v52, %v751_v43  ;;  %v758_v56 = vmul.f32 %v756_v54, %v752_v49  ;;  %v4137_v45 = vpop.f32.mrf.mxu0  ;;  %v1455_v52 = vpack.c.bf16 %v1381_v35, %v1380_v47  ;;  %v1383_v54 = vld [vmem:[%s5618_s2 + $0x18] sm:$0xff] }
 0x437   :  { %v4878_v51 = vpop.f32.mrf.mxu1 }
 0x438   :  { %v763_v53 = vmul.f32 0.7978846, %v761_v62  ;;  %v760_v7 = vmul.f32 %v758_v56, %v752_v49  ;;  %v928_v46 = vpop.f32.mrf.mxu0 }
 0x439   :  { %v4880_v57 = vpop.f32.mrf.mxu1 }
 0x43a   :  { %4434 = vtanh.f32 %v763_v53  ;;  %v762_v58 = vadd.f32 %v760_v7, %v752_v49  ;;  %v1382_v49 = vld [vmem:[%s5618_s2 + $0x10] sm:$0xff]  ;;  %v4138_v56 = vpop.f32.mrf.mxu0  ;;  %v937_v7 = vadd.f32 %v4137_v45, %v4874_v50 }
 0x43b   :  { %v4145_v59 = vpop.f32.mrf.mxu1  ;;  %v1456_v62 = vpack.c.bf16 %v1383_v54, %v1382_v49 }
 0x43c   :  { %v764_v60 = vmul.f32 0.7978846, %v762_v58  ;;  %v931_v53 = vpop.f32.mrf.mxu0 }
 0x43d   :  { %v977_v0 = vpop.f32.mrf.mxu1 }
 0x43e   :  { %4436 = vtanh.f32 %v764_v60 }
 0x43f   :  { %v4146_v2 = vpop.f32.mrf.mxu1 }
 0x440   :  { %v993_v37 = vpack.c.bf16 %v4146_v2, %v4145_v59  ;;  %v929_v59 = vadd.f32 %v928_v46, %v4876_v55  ;;  %v940_v2 = vadd.f32 %v4138_v56, %v4878_v51 }
 0x441   :  { %v980_v24 = vpop.f32.mrf.mxu1 }
 0x442   :  { %v992_v26 = vpack.c.bf16 %v980_v24, %v977_v0 }
 0x444   :  { %4149 = vmatprep.mubr.msk.bf16.mxu0 %vm163_vm6, %v992_v26 }
 0x445   :  { %4150 = vmatmul.mubr.msk.bf16.vlgmr.msra.gmra.mxu0 %vm163_vm6, %v993_v37 }
 0x446   :  { %4165 = vmatprep.mubr.msk.bf16.mxu0 %vm4551_vm11, %v4550_v17 }
 0x447   :  { %v4435_v40 = vpop.eup %4434 }
 0x448   :  { %v767_v5 = vadd.f32 1.0, %v4435_v40  ;;  %v932_v40 = vadd.f32 %v931_v53, %v4880_v57 }
 0x44a   :  { %v769_v10 = vmul.f32 %v767_v5, %v753_v4 }
 0x44b   :  { %v4437_v9 = vpop.eup %4436 }
 0x44c   :  { %v771_v11 = vadd.f32 %v769_v10, %v4889_v8  ;;  %v768_v13 = vadd.f32 1.0, %v4437_v9 }
 0x44e   :  { %773 = vst.msk [vmem:[%s5617_s8] sm:$0xff] %vm103_vm4, %v771_v11  ;;  %v770_v18 = vmul.f32 %v768_v13, %v754_v12 }
 0x450   :  { %v772_v19 = vadd.f32 %v770_v18, %v4895_v14 }
 0x452   :  { %774 = vst.msk [vmem:[%s5617_s8 + $0x8] sm:$0xff] %vm103_vm4, %v772_v19 }
 0x455   :  { %v1413_v15 = vld [vmem:[%s5617_s8] sm:$0xff] }
 0x456   :  { %v1416_v20 = vsel %vm103_vm4, %v1413_v15, 0.0 }
 0x457   :  { %1417 = vadd.xlane.f32.xlu0 %v1416_v20 }
 0x459   :  { %v1414_v21 = vld [vmem:[%s5617_s8 + $0x8] sm:$0xff] }
 0x45a   :  { %v1419_v28 = vsel %vm103_vm4, %v1414_v21, 0.0 }
 0x45b   :  { %1420 = vadd.xlane.f32.xlu0 %v1419_v28 }
 0x488   :  { %1518 = vxpose.xlu0.c.b16.start [1/2] (short) (narrow) %v1455_v52, 96 }
 0x48c   :  { %1519 = vxpose.xlu0.c.b16.end [2/2] (short) (narrow) %v1456_v62, 96 }
 0x4e0   :  { %v1418_v16 = vpop.xlane.xlu0 %1417 }
 0x4e1   :  { %v1423_v29 = vmul.f32 0.03125, %v1418_v16 }
 0x4e3   :  { %v4914_v31 = vsub.f32 %v1413_v15, %v1423_v29 }
 0x4e4   :  { %v1421_v33 = vpop.xlane.xlu0 %1420 }
 0x4e5   :  { %v1424_v36 = vmul.f32 0.03125, %v1421_v33  ;;  %v1427_v39 = vmul.f32 %v4914_v31, %v4914_v31 }
 0x4e7   :  { %v4918_v48 = vsub.f32 %v1414_v21, %v1424_v36  ;;  %v1429_v42 = vsel %vm103_vm4, %v1427_v39, 0.0 }
 0x4e8   :  { %1430 = vadd.xlane.f32.xlu1 %v1429_v42 }
 0x4e9   :  { %v1428_v43 = vmul.f32 %v4918_v48, %v4918_v48 }
 0x4eb   :  { %v1432_v44 = vsel %vm103_vm4, %v1428_v43, 0.0 }
 0x4ec   :  { %1433 = vadd.xlane.f32.xlu1 %v1432_v44 }
 0x505   :  { %v4151_v58 = vpop.f32.mrf.mxu0 }
 0x506   :  { %v1051_v60 = vadd.f32 %v4151_v58, %v937_v7 }
 0x507   :  { %v1034_v0 = vpop.f32.mrf.mxu0 }
 0x508   :  { %v1055_v24 = vadd.f32 %v1051_v60, %v4712_v1  ;;  %v1049_v26 = vadd.f32 %v1034_v0, %v929_v59 }
 0x509   :  { %v4152_v37 = vpop.f32.mrf.mxu0 }
 0x50a   :  { %v1063_v4 = vmul.f32 0.044715, %v1055_v24  ;;  %v1053_v5 = vadd.f32 %v1049_v26, %v4712_v1  ;;  %v1052_v10 = vadd.f32 %v4152_v37, %v940_v2  ;;  %v1059_v49 = vmul.f32 0.5, %v1055_v24 }
 0x50b   :  { %v1037_v9 = vpop.f32.mrf.mxu0 }
 0x50c   :  { %v1067_v11 = vmul.f32 %v1063_v4, %v1055_v24  ;;  %v1061_v50 = vmul.f32 0.044715, %v1053_v5  ;;  %v1056_v12 = vadd.f32 %v1052_v10, %v4712_v1  ;;  %v1050_v55 = vadd.f32 %v1037_v9, %v932_v40  ;;  %v4981_v9 = vld [vmem:[%s5620_s6] sm:$0xff] }
 0x50d   :  { %v1057_v53 = vmul.f32 0.5, %v1053_v5 }
 0x50e   :  { %v1071_v13 = vmul.f32 %v1067_v11, %v1055_v24  ;;  %v1065_v18 = vmul.f32 %v1061_v50, %v1053_v5  ;;  %v1064_v19 = vmul.f32 0.044715, %v1056_v12  ;;  %v1054_v51 = vadd.f32 %v1050_v55, %v4712_v1 }
 0x50f   :  { %v1060_v52 = vmul.f32 0.5, %v1056_v12 }
 0x510   :  { %v1075_v15 = vadd.f32 %v1071_v13, %v1055_v24  ;;  %v1069_v20 = vmul.f32 %v1065_v18, %v1053_v5  ;;  %v1068_v21 = vmul.f32 %v1064_v19, %v1056_v12  ;;  %v1062_v28 = vmul.f32 0.044715, %v1054_v51 }
 0x511   :  { %v1058_v59 = vmul.f32 0.5, %v1054_v51  ;;  %v4988_v13 = vrot.slane %v4981_v9, %v413_v61 }
 0x512   :  { %v1073_v57 = vadd.f32 %v1069_v20, %v1053_v5  ;;  %v1072_v16 = vmul.f32 %v1068_v21, %v1056_v12  ;;  %v1066_v29 = vmul.f32 %v1062_v28, %v1054_v51  ;;  %v1079_v33 = vmul.f32 0.7978846, %v1075_v15 }
 0x513   :  { %v4994_v21 = vrot.slane %v4981_v9, %v749_v27 }
 0x514   :  { %v1076_v36 = vadd.f32 %v1072_v16, %v1056_v12  ;;  %v1070_v39 = vmul.f32 %v1066_v29, %v1054_v51  ;;  %4438 = vtanh.f32 %v1079_v33  ;;  %v1077_v42 = vmul.f32 0.7978846, %v1073_v57  ;;  %v5006_v29 = vpop.trf.xlu0 }
 0x516   :  { %v1074_v43 = vadd.f32 %v1070_v39, %v1054_v51  ;;  %v1080_v44 = vmul.f32 0.7978846, %v1076_v36  ;;  %4440 = vtanh.f32 %v1077_v42 }
 0x518   :  { %4442 = vtanh.f32 %v1080_v44  ;;  %v1078_v45 = vmul.f32 0.7978846, %v1074_v43  ;;  %v5020_v36 = vpop.trf.xlu0 }
 0x51a   :  { %4444 = vtanh.f32 %v1078_v45 }
 0x51c   :  { %v5023_v39 = vpop.trf.xlu0 }
 0x521   :  { %v4439_v46 = vpop.eup %4438 }
 0x522   :  { %v1087_v47 = vadd.f32 1.0, %v4439_v46 }
 0x523   :  { %v4441_v1 = vpop.eup %4440 }
 0x524   :  { %v1085_v62 = vadd.f32 1.0, %v4441_v1  ;;  %v1091_v7 = vmul.f32 %v1087_v47, %v1059_v49 }
 0x525   :  { %v4443_v35 = vpop.eup %4442 }
 0x526   :  { %v1088_v54 = vadd.f32 1.0, %v4443_v35  ;;  %v1089_v2 = vmul.f32 %v1085_v62, %v1057_v53 }
 0x527   :  { %v4445_v56 = vpop.eup %4444 }
 0x528   :  { %v1092_v58 = vmul.f32 %v1088_v54, %v1060_v52  ;;  %v1086_v60 = vadd.f32 1.0, %v4445_v56 }
 0x52a   :  { %v4944_v0 = vpack.c.bf16 %v1092_v58, %v1091_v7  ;;  %v1090_v26 = vmul.f32 %v1086_v60, %v1058_v59 }
 0x52c   :  { %4154 = vmatpush3.bf16.msra.mxu1 %v4944_v0  ;;  %4162 = vmatpush3.bf16.msra.mxu0 %v4944_v0  ;;  %v4948_v37 = vpack.c.bf16 %v1090_v26, %v1089_v2 }
 0x52d   :  { %4155 = vmatprep.subr.bf16.mxu1 %v4550_v17  ;;  %4163 = vmatprep.subr.bf16.mxu0 %v4550_v17 }
 0x530   :  { %4156 = vmatpush3.bf16.msra.mxu1 %v4948_v37  ;;  %4164 = vmatpush3.bf16.msra.mxu0 %v4948_v37 }
 0x531   :  { %4169 = vmatprep.subr.bf16.mxu1 %v4550_v17  ;;  %4177 = vmatprep.subr.bf16.mxu0 %v4550_v17 }
 0x533   :  { %4158 = vmatmul.mubr.msk.bf16.vlgmr.msra.gmra.mxu1 %vm103_vm4, %v4744_v22  ;;  %4166 = vmatmul.mubr.msk.bf16.vlgmr.msra.gmra.mxu0 %vm103_vm4, %v4746_v23  ;;  %v4552_v22 = vmov 0   ;;  %v1401_v23 = vld [vmem:[%s5619_s7] sm:$0xff] }
 0x534   :  { %4170 = vmatpush3.bf16.msra.mxu1 %v4748_v25  ;;  %4178 = vmatpush3.bf16.msra.mxu0 %v4768_v30  ;;  %v1405_v25 = vld [vmem:[%s5619_s7 + $0x20] sm:$0xff] }
 0x535   :  { %4171 = vmatprep.subr.bf16.mxu1 %v4550_v17  ;;  %4179 = vmatprep.subr.bf16.mxu0 %v4550_v17 }
 0x536   :  { %4173 = vmatprep.mubr.msk.bf16.mxu1 %vm4551_vm11, %v4550_v17  ;;  %4181 = vmatprep.mubr.msk.bf16.mxu0 %vm4551_vm11, %v4550_v17 }
 0x537   :  { %4424 = vset.pattern.permute.xlu1 %v4552_v22  ;;  %4425 = vset.pattern.permute.xlu0 %v4552_v22 }
 0x538   :  { %4172 = vmatpush3.bf16.msra.mxu1 %v4777_v34  ;;  %4180 = vmatpush3.bf16.msra.mxu0 %v4786_v41 }
 0x539   :  { %4185 = vmatprep.subr.bf16.mxu1 %v4550_v17  ;;  %4193 = vmatprep.subr.bf16.mxu0 %v4550_v17 }
 0x53a   :  { %1460 = vperm.xlu1 %4424, %v1401_v23  }
 0x53e   :  { %1480 = vperm.xlu1 %4424, %v1405_v25  }
 0x571   :  { %v1431_v30 = vpop.xlane.xlu1 %1430 }
 0x572   :  { %v1435_v24 = vmul.f32 0.03125, %v1431_v30 }
 0x574   :  { %v1437_v4 = vadd.f32 1e-05, %v1435_v24 }
 0x575   :  { %v1434_v34 = vpop.xlane.xlu1 %1433 }
 0x576   :  { %v1436_v41 = vmul.f32 0.03125, %v1434_v34 }
 0x578   :  { %v1438_v40 = vadd.f32 1e-05, %v1436_v41 }
 0x57a   :  { %4446 = vrsqrt.f32 %v1438_v40 }
 0x57b   :  { %4448 = vrsqrt.f32 %v1437_v4 }
 0x587   :  { %v4447_v5 = vpop.eup %4446 }
 0x588   :  { %v4449_v10 = vpop.eup %4448  ;;  %v1442_v11 = vmul.f32 %v4447_v5, %v4918_v48 }
 0x589   :  { %v1441_v55 = vmul.f32 %v4449_v10, %v4914_v31 }
 0x58a   :  { %v1448_v51 = vmul.f32 %v4988_v13, %v1442_v11 }
 0x58b   :  { %v1447_v31 = vmul.f32 %v4988_v13, %v1441_v55 }
 0x58c   :  { %v1454_v61 = vadd.f32 %v4994_v21, %v1448_v51 }
 0x58d   :  { %v1453_v27 = vadd.f32 %v4994_v21, %v1447_v31 }
 0x58f   :  { %v1457_v33 = vpack.c.bf16 %v1454_v61, %v1453_v27 }
 0x5b5   :  { %v5038_v58 = vpop.permute.xlu1 %1460 }
 0x5b9   :  { %v5047_v22 = vpop.permute.xlu1 %1480 }
 0x5f3   :  { %v1129_v50 = vpop.f32.mrf.mxu1  ;;  %v1171_v12 = vpop.f32.mrf.mxu0 }
 0x5f5   :  { %v4159_v18 = vpop.f32.mrf.mxu1  ;;  %v4167_v19 = vpop.f32.mrf.mxu0 }
 0x5f7   :  { %v1132_v15 = vpop.f32.mrf.mxu1  ;;  %v1174_v20 = vpop.f32.mrf.mxu0 }
 0x5f8   :  { %v1136_v48 = vpack.c.bf16 %v1132_v15, %v1129_v50  ;;  %v1178_v28 = vpack.c.bf16 %v1174_v20, %v1171_v12 }
 0x5f9   :  { %v4168_v57 = vpop.f32.mrf.mxu0  ;;  %v4160_v16 = vpop.f32.mrf.mxu1 }
 0x5fa   :  { %4174 = vmatmul.mubr.msk.bf16.vlgmr.msra.gmra.mxu1 %vm103_vm4, %v1178_v28  ;;  %4182 = vmatmul.mubr.msk.bf16.vlgmr.msra.gmra.mxu0 %vm103_vm4, %v1136_v48 }
 0x5fb   :  { %4186 = vmatpush3.bf16.msra.mxu1 %v4944_v0  ;;  %4189 = vmatprep.mubr.msk.bf16.mxu1 %vm4551_vm11, %v4550_v17 }
 0x5fc   :  { %4187 = vmatprep.subr.bf16.mxu1 %v4550_v17  ;;  %4194 = vmatpush3.bf16.msra.mxu0 %v4836_v3  ;;  %v1553_v3 = vsel %vm103_vm4, %v1457_v33, 0 }
 0x5fd   :  { %4195 = vmatprep.subr.bf16.mxu0 %v4550_v17  ;;  %4197 = vmatprep.mubr.msk.bf16.mxu0 %vm4551_vm11, %v4550_v17 }
 0x5ff   :  { %4188 = vmatpush3.bf16.msra.mxu1 %v4948_v37 }
 0x600   :  { %4419 = vmatprep.subr.msk.bf16.mxu1 %vm103_vm4, %v1457_v33  ;;  %4196 = vmatpush3.bf16.msra.mxu0 %v4846_v38  ;;  %v5029_v38 = vpop.trf.xlu0 }
 0x601   :  { %4215 = vmatprep.subr.bf16.mxu0 %v4550_v17 }
 0x602   :  { %4190 = vmatmul.mubr.msk.bf16.vlgmr.msra.gmra.mxu1 %vm103_vm4, %v4817_v63 }
 0x603   :  { %4202 = vmatpush3.bf16.xpose.msra.mxu1 %v1553_v3  ;;  %4203 = vmatprep.mubr.msk.bf16.mxu1 %vm103_vm4, %v5006_v29 }
 0x604   :  { %4233 = vmatprep.subr.bf16.mxu1 %v4550_v17  ;;  %v5056_v11 = vpop.trf.xlu0 }
 0x608   :  { %v5061_v51 = vpop.trf.xlu0 }
 0x60a   :  { %4204 = vmatmul.mubr.msk.bf16.vlgmr.msra.gmra.mxu1 %vm103_vm4, %v5020_v36 }
 0x60b   :  { %4207 = vmatprep.mubr.msk.bf16.mxu1 %vm103_vm4, %v5023_v39 }
 0x612   :  { %4208 = vmatmul.mubr.msk.bf16.gmra.mxu1 %vm103_vm4, %v5029_v38 }
 0x613   :  { %4211 = vmatprep.mubr.msk.bf16.mxu1 %vm103_vm4, %v5056_v11 }
 0x61a   :  { %4212 = vmatmul.mubr.msk.bf16.gmra.mxu1 %vm103_vm4, %v5061_v51 }
 0x61b   :  { %4235 = vmatprep.mubr.msk.bf16.mxu1 %vm4551_vm11, %v4550_v17 }
 0x6ba   :  { %v1216_v63 = vpop.f32.mrf.mxu1  ;;  %v1260_v42 = vpop.f32.mrf.mxu0 }
 0x6bb   :  { %v1261_v43 = vadd.f32 %v1260_v42, %v1216_v63 }
 0x6bc   :  { %v4175_v44 = vpop.f32.mrf.mxu1  ;;  %v4183_v45 = vpop.f32.mrf.mxu0 }
 0x6be   :  { %v1219_v46 = vpop.f32.mrf.mxu1  ;;  %v1263_v1 = vpop.f32.mrf.mxu0 }
 0x6bf   :  { %v1264_v47 = vadd.f32 %v1263_v1, %v1219_v46 }
 0x6c0   :  { %v4176_v35 = vpop.f32.mrf.mxu1  ;;  %v4184_v49 = vpop.f32.mrf.mxu0 }
 0x6c2   :  { %v1301_v52 = vpop.f32.mrf.mxu1 }
 0x6c4   :  { %v4191_v54 = vpop.f32.mrf.mxu1 }
 0x6c6   :  { %v1304_v62 = vpop.f32.mrf.mxu1 }
 0x6c7   :  { %v1308_v56 = vpack.c.bf16 %v1304_v62, %v1301_v52 }
 0x6c8   :  { %v4192_v53 = vpop.f32.mrf.mxu1 }
 0x6c9   :  { %4198 = vmatmul.mubr.msk.bf16.vlgmr.msra.gmra.mxu0 %vm103_vm4, %v1308_v56  ;;  %v1409_v56 = vld [vmem:[%s5619_s7 + $0x40] sm:$0xff] }
 0x6ca   :  { %v5034_v7 = vpop.f32.mrf.mxu1  ;;  %4217 = vmatprep.mubr.msk.bf16.mxu0 %vm4551_vm11, %v4550_v17 }
 0x6cc   :  { %v1589_v59 = vpop.f32.mrf.mxu1 }
 0x6cd   :  { %v1590_v60 = vadd.f32 %v1589_v59, %v5038_v58 }
 0x6ce   :  { %v5041_v0 = vpop.f32.mrf.mxu1 }
 0x6cf   :  { %v1636_v2 = vpack.c.bf16 %v1590_v60, %v1590_v60 }
 0x6d0   :  { %v5043_v26 = vpop.f32.mrf.mxu1 }
 0x6d1   :  { %1638 = vxpose.xlu1.c.b16.start.end [1/1] (short) (narrow) %v1636_v2, 16 }
 0x6d2   :  { %v5045_v37 = vpop.f32.mrf.mxu1 }
 0x6d4   :  { %v1605_v23 = vpop.f32.mrf.mxu1 }
 0x6d5   :  { %v1606_v25 = vadd.f32 %v1605_v23, %v5047_v22 }
 0x6d7   :  { %v1637_v30 = vpack.c.bf16 %v1606_v25, %v1606_v25 }
 0x6d9   :  { %v1660_v34 = vsel %vm170_vm1, %v1637_v30, 0 }
 0x6da   :  { %4216 = vmatpush3.bf16.msra.mxu0 %v1660_v34 }
 0x6db   :  { %4221 = vmatprep.subr.bf16.mxu0 %v4550_v17 }
 0x733   :  { %v1646_v41 = vpop.trf.xlu1 }
 0x734   :  { %4218 = vmatmul.mubr.msk.bf16.vlgmr.msra.gmra.mxu0 %vm163_vm6, %v1646_v41 }
 0x735   :  { %4223 = vmatprep.mubr.msk.bf16.mxu0 %vm4551_vm11, %v4550_v17 }
 0x789   :  { %v1346_v24 = vpop.f32.mrf.mxu0 }
 0x78a   :  { %v1353_v40 = vadd.f32 %v1346_v24, %v1261_v43 }
 0x78b   :  { %v4199_v4 = vpop.f32.mrf.mxu0 }
 0x78c   :  { %v1355_v5 = vadd.f32 %v1353_v40, %v4870_v32  ;;  %v1406_v40 = vld [vmem:[%s5619_s7 + $0x28] sm:$0xff] }
 0x78d   :  { %v1349_v10 = vpop.f32.mrf.mxu0 }
 0x78e   :  { %v1359_v50 = vmul.f32 0.044715, %v1355_v5  ;;  %v1354_v12 = vadd.f32 %v1349_v10, %v1264_v47 }
 0x78f   :  { %v4200_v55 = vpop.f32.mrf.mxu0 }
 0x790   :  { %v1361_v18 = vmul.f32 %v1359_v50, %v1355_v5  ;;  %v1356_v19 = vadd.f32 %v1354_v12, %v4870_v32  ;;  %v1357_v32 = vmul.f32 0.5, %v1355_v5  ;;  %v5094_v55 = vpop.f32.mrf.mxu1 }
 0x792   :  { %v1363_v15 = vmul.f32 %v1361_v18, %v1355_v5  ;;  %v1360_v20 = vmul.f32 0.044715, %v1356_v19  ;;  %v1358_v43 = vmul.f32 0.5, %v1356_v19 }
 0x794   :  { %v1365_v48 = vadd.f32 %v1363_v15, %v1355_v5  ;;  %v1362_v28 = vmul.f32 %v1360_v20, %v1356_v19  ;;  %v1608_v15 = vpop.f32.mrf.mxu1 }
 0x796   :  { %v1367_v31 = vmul.f32 0.7978846, %v1365_v48  ;;  %v1364_v57 = vmul.f32 %v1362_v28, %v1356_v19 }
 0x798   :  { %4450 = vtanh.f32 %v1367_v31  ;;  %v1366_v16 = vadd.f32 %v1364_v57, %v1356_v19  ;;  %v5098_v31 = vpop.f32.mrf.mxu1 }
 0x79a   :  { %v1368_v61 = vmul.f32 0.7978846, %v1366_v16 }
 0x79c   :  { %4452 = vtanh.f32 %v1368_v61 }
 0x7a5   :  { %v4451_v27 = vpop.eup %4450 }
 0x7a6   :  { %v1371_v33 = vadd.f32 1.0, %v4451_v27  ;;  %v1621_v27 = vpop.f32.mrf.mxu1 }
 0x7a8   :  { %v1373_v3 = vmul.f32 %v1371_v33, %v1357_v32 }
 0x7a9   :  { %v4453_v63 = vpop.eup %4452 }
 0x7aa   :  { %v1375_v42 = vadd.f32 %v1373_v3, %v4889_v8  ;;  %v1372_v44 = vadd.f32 1.0, %v4453_v63 }
 0x7ac   :  { %3841 = vst.msk [vmem:[%s5617_s8 + $0x10] sm:$0xff] %vm103_vm4, %v1375_v42  ;;  %v1374_v45 = vmul.f32 %v1372_v44, %v1358_v43 }
 0x7ae   :  { %v1376_v46 = vadd.f32 %v1374_v45, %v4895_v14  ;;  %v1402_v14 = vld [vmem:[%s5619_s7 + $0x8] sm:$0xff] }
 0x7b0   :  { %3842 = vst.msk [vmem:[%s5617_s8 + $0x18] sm:$0xff] %vm103_vm4, %v1376_v46 }
 0x7f4   :  { %v1696_v1 = vpop.f32.mrf.mxu0 }
 0x7f5   :  { %v1703_v47 = vmul.f32 0.35355338, %v1696_v1 }
 0x7f6   :  { %v4219_v35 = vpop.f32.mrf.mxu0 }
 0x7f7   :  { %v1706_v8 = vsel %vm1705_vm3, %v1703_v47, -inf }
 0x7f8   :  { %1707 = vmax.xlane.f32.xlu0 %v1706_v8  ;;  %v1699_v49 = vpop.f32.mrf.mxu0 }
 0x7f9   :  { %v1704_v52 = vmul.f32 0.35355338, %v1699_v49 }
 0x7fa   :  { %v4220_v54 = vpop.f32.mrf.mxu0 }
 0x7fb   :  { %v1709_v62 = vsel %vm1705_vm3, %v1704_v52, -inf }
 0x7fc   :  { %1710 = vmax.xlane.f32.xlu1 %v1709_v62 }
 0x80d   :  { %1465 = vperm.xlu1 %4424, %v1402_v14   ;;  %v1410_v14 = vld [vmem:[%s5619_s7 + $0x48] sm:$0xff] }
 0x80e   :  { %1500 = vperm.xlu0 %4425, %v1409_v56  }
 0x881   :  { %v1708_v53 = vpop.xlane.xlu0 %1707 }
 0x882   :  { %v1712_v59 = vsub.f32 %v1703_v47, %v1708_v53 }
 0x884   :  { %v1714_v60 = vmul.f32 1.442695, %v1712_v59 }
 0x885   :  { %v1711_v2 = vpop.xlane.xlu1 %1710 }
 0x886   :  { %4454 = vpow2.f32 %v1714_v60  ;;  %v1713_v23 = vsub.f32 %v1704_v52, %v1711_v2 }
 0x888   :  { %v1716_v25 = vmul.f32 1.442695, %v1713_v23 }
 0x889   :  { %v5090_v4 = vpop.permute.xlu1 %1465  ;;  %v5100_v16 = vpop.permute.xlu0 %1500 }
 0x88a   :  { %4456 = vpow2.f32 %v1716_v25  ;;  %v1593_v5 = vadd.f32 %v5043_v26, %v5090_v4  ;;  %v1622_v32 = vadd.f32 %v1621_v27, %v5100_v16 }
 0x88c   :  { %v1778_v10 = vpack.c.bf16 %v1593_v5, %v1593_v5  ;;  %v1728_v3 = vpack.c.bf16 %v1622_v32, %v1622_v32 }
 0x893   :  { %v4455_v30 = vpop.eup %4454 }
 0x894   :  { %v1718_v34 = vsel %vm1705_vm3, %v4455_v30, 0.0 }
 0x895   :  { %1719 = vadd.xlane.f32.xlu1 %v1718_v34 }
 0x897   :  { %v4457_v41 = vpop.eup %4456 }
 0x898   :  { %v1721_v24 = vsel %vm1705_vm3, %v4457_v41, 0.0 }
 0x899   :  { %1722 = vadd.xlane.f32.xlu1 %v1721_v24  ;;  %v1403_v24 = vld [vmem:[%s5619_s7 + $0x10] sm:$0xff] }
 0x8aa   :  { %1485 = vperm.xlu1 %4424, %v1406_v40   ;;  %v1407_v40 = vld [vmem:[%s5619_s7 + $0x30] sm:$0xff] }
 0x8cd   :  { %1780 = vxpose.xlu1.c.b16.start.end [1/1] (short) (narrow) %v1778_v10, 16 }
 0x91e   :  { %v1720_v50 = vpop.xlane.xlu1 %1719 }
 0x91f   :  { %4458 = vrcp.f32 %v1720_v50 }
 0x922   :  { %v1723_v12 = vpop.xlane.xlu1 %1722 }
 0x923   :  { %4460 = vrcp.f32 %v1723_v12 }
 0x926   :  { %v5096_v28 = vpop.permute.xlu1 %1485 }
 0x927   :  { %v1609_v26 = vadd.f32 %v1608_v15, %v5096_v28 }
 0x929   :  { %v1779_v33 = vpack.c.bf16 %v1609_v26, %v1609_v26 }
 0x92b   :  { %v1800_v63 = vsel %vm170_vm1, %v1779_v33, 0 }
 0x92c   :  { %v4459_v18 = vpop.eup %4458 }
 0x92d   :  { %v1726_v20 = vmul.f32 %v4459_v18, %v4455_v30 }
 0x92f   :  { %v1788_v42 = vpop.trf.xlu1 }
 0x930   :  { %v4461_v19 = vpop.eup %4460 }
 0x931   :  { %v1727_v48 = vmul.f32 %v4461_v19, %v4457_v41 }
 0x933   :  { %v1729_v57 = vpack.c.bf16 %v1727_v48, %v1726_v20 }
 0x935   :  { %v1734_v61 = vsel %vm1705_vm3, %v1729_v57, 0  ;;  %v5133_v57 = vpop.f32.mrf.mxu1 }
 0x936   :  { %4222 = vmatpush3.bf16.xpose.msra.mxu0 %v1734_v61 }
 0x937   :  { %4227 = vmatprep.subr.bf16.mxu0 %v4550_v17  ;;  %v1624_v32 = vpop.f32.mrf.mxu1 }
 0x93d   :  { %4224 = vmatmul.mubr.msk.bf16.vlgmr.msra.gmra.mxu0 %vm1705_vm3, %v1728_v3  ;;  %v1385_v3 = vld [vmem:[%s5621_s3 + $0x8] sm:$0xff] }
 0x93e   :  { %4228 = vmatpush3.bf16.msra.mxu0 %v1800_v63  ;;  %4229 = vmatprep.mubr.msk.bf16.mxu0 %vm4551_vm11, %v4550_v17  ;;  %v1916_v63 = vpack.c.bf16 %v1385_v3, %v1385_v3 }
 0x93f   :  { %4239 = vmatprep.subr.bf16.mxu0 %v4550_v17 }
 0x945   :  { %4230 = vmatmul.mubr.msk.bf16.vlgmr.msra.gmra.mxu0 %vm163_vm6, %v1788_v42  ;;  %v5147_v42 = vsel %vm170_vm1, %v1916_v63, 0 }
 0x946   :  { %4241 = vmatprep.mubr.msk.bf16.mxu0 %vm4551_vm11, %v4550_v17  ;;  %4240 = vmatpush3.bf16.msra.mxu0 %v5147_v42 }
 0x947   :  { %4251 = vmatprep.subr.bf16.mxu0 %v4550_v17 }
 0x9fd   :  { %v5114_v43 = vpop.f32.mrf.mxu0 }
 0x9ff   :  { %v4225_v44 = vpop.f32.mrf.mxu0 }
 0xa01   :  { %v1773_v45 = vpop.f32.mrf.mxu0 }
 0xa03   :  { %v4226_v46 = vpop.f32.mrf.mxu0 }
 0xa05   :  { %v1836_v1 = vpop.f32.mrf.mxu0 }
 0xa06   :  { %v1843_v47 = vmul.f32 0.35355338, %v1836_v1 }
 0xa07   :  { %v4231_v35 = vpop.f32.mrf.mxu0 }
 0xa08   :  { %v1845_v8 = vsel %vm1705_vm3, %v1843_v47, -inf }
 0xa09   :  { %1846 = vmax.xlane.f32.xlu0 %v1845_v8  ;;  %v1839_v49 = vpop.f32.mrf.mxu0 }
 0xa0a   :  { %v1844_v52 = vmul.f32 0.35355338, %v1839_v49 }
 0xa0b   :  { %v4232_v54 = vpop.f32.mrf.mxu0 }
 0xa0c   :  { %v1848_v62 = vsel %vm1705_vm3, %v1844_v52, -inf }
 0xa0d   :  { %1849 = vmax.xlane.f32.xlu1 %v1848_v62 }
 0xa1f   :  { %1505 = vperm.xlu0 %4425, %v1410_v14  }
 0xa92   :  { %v1847_v56 = vpop.xlane.xlu0 %1846 }
 0xa93   :  { %v1851_v53 = vsub.f32 %v1843_v47, %v1847_v56 }
 0xa95   :  { %v1853_v59 = vmul.f32 1.442695, %v1851_v53 }
 0xa96   :  { %v1850_v60 = vpop.xlane.xlu1 %1849 }
 0xa97   :  { %4462 = vpow2.f32 %v1853_v59  ;;  %v1852_v2 = vsub.f32 %v1844_v52, %v1850_v60 }
 0xa99   :  { %v1855_v23 = vmul.f32 1.442695, %v1852_v2 }
 0xa9a   :  { %v5135_v61 = vpop.permute.xlu0 %1505 }
 0xa9b   :  { %4464 = vpow2.f32 %v1855_v23  ;;  %v1625_v33 = vadd.f32 %v1624_v32, %v5135_v61 }
 0xaa4   :  { %v4463_v25 = vpop.eup %4462 }
 0xaa5   :  { %v1857_v30 = vsel %vm1705_vm3, %v4463_v25, 0.0 }
 0xaa6   :  { %1858 = vadd.xlane.f32.xlu1 %v1857_v30 }
 0xaa8   :  { %v4465_v34 = vpop.eup %4464 }
 0xaa9   :  { %v1860_v41 = vsel %vm1705_vm3, %v4465_v34, 0.0 }
 0xaaa   :  { %1861 = vadd.xlane.f32.xlu1 %v1860_v41 }
 0xabb   :  { %1470 = vperm.xlu1 %4424, %v1403_v24   ;;  %v1404_v24 = vld [vmem:[%s5619_s7 + $0x18] sm:$0xff] }
 0xabf   :  { %1490 = vperm.xlu1 %4424, %v1407_v40   ;;  %v1408_v40 = vld [vmem:[%s5619_s7 + $0x38] sm:$0xff] }
 0xb2f   :  { %v1859_v5 = vpop.xlane.xlu1 %1858 }
 0xb30   :  { %4466 = vrcp.f32 %v1859_v5  ;;  %v1384_v5 = vld [vmem:[%s5621_s3] sm:$0xff] }
 0xb33   :  { %v1862_v10 = vpop.xlane.xlu1 %1861 }
 0xb34   :  { %4468 = vrcp.f32 %v1862_v10  ;;  %v1777_v10 = vpack.c.bf16 %v1384_v5, %v1384_v5 }
 0xb37   :  { %v5129_v50 = vpop.permute.xlu1 %1470 }
 0xb38   :  { %v1598_v12 = vadd.f32 %v5034_v7, %v5129_v50  ;;  %v1867_v7 = vpack.c.bf16 %v1625_v33, %v1625_v33 }
 0xb3a   :  { %v2043_v18 = vpack.c.bf16 %v1598_v12, %v1598_v12  ;;  %v5179_v12 = vsel %vm170_vm1, %v1777_v10, 0 }
 0xb3b   :  { %v5151_v35 = vpop.permute.xlu1 %1490 }
 0xb3c   :  { %2045 = vxpose.xlu1.c.b16.start.end [1/1] (short) (narrow) %v2043_v18, 16  ;;  %v1614_v8 = vadd.f32 %v5045_v37, %v5151_v35  ;;  %v1776_v18 = vpack.c.bf16 %v5114_v43, %v5114_v43 }
 0xb3d   :  { %v4467_v19 = vpop.eup %4466 }
 0xb3e   :  { %v1865_v20 = vmul.f32 %v4467_v19, %v4463_v25  ;;  %v2044_v49 = vpack.c.bf16 %v1614_v8, %v1614_v8 }
 0xb40   :  { %v2065_v54 = vsel %vm170_vm1, %v2044_v49, 0 }
 0xb41   :  { %v4469_v15 = vpop.eup %4468 }
 0xb42   :  { %v1866_v48 = vmul.f32 %v4469_v15, %v4465_v34 }
 0xb44   :  { %v1868_v26 = vpack.c.bf16 %v1866_v48, %v1865_v20 }
 0xb46   :  { %v1873_v27 = vsel %vm1705_vm3, %v1868_v26, 0 }
 0xb47   :  { %4234 = vmatpush3.bf16.xpose.msra.mxu1 %v1873_v27 }
 0xb48   :  { %4245 = vmatprep.subr.bf16.mxu1 %v4550_v17 }
 0xb4e   :  { %4236 = vmatmul.mubr.msk.bf16.vlgmr.msra.gmra.mxu1 %vm1705_vm3, %v1867_v7 }
 0xb4f   :  { %4247 = vmatprep.mubr.msk.bf16.mxu1 %vm4551_vm11, %v4550_v17  ;;  %4246 = vmatpush3.bf16.msra.mxu1 %v5179_v12 }
 0xb50   :  { %4257 = vmatprep.subr.bf16.mxu1 %v4550_v17 }
 0xb9e   :  { %v2053_v62 = vpop.trf.xlu1 }
 0xc0e   :  { %v1909_v44 = vpop.f32.mrf.mxu1 }
 0xc0f   :  { %v1915_v45 = vpack.c.bf16 %v1909_v44, %v1909_v44 }
 0xc10   :  { %v4237_v46 = vpop.f32.mrf.mxu1 }
 0xc11   :  { %1917 = vxpose.xlu0.c.b16.start.end [1/1] (short) (narrow) %v1915_v45, 16  ;;  %v1411_v45 = vld [vmem:[%s5619_s7 + $0x50] sm:$0xff] }
 0xc12   :  { %v1912_v1 = vpop.f32.mrf.mxu1 }
 0xc14   :  { %v4238_v47 = vpop.f32.mrf.mxu1 }
 0xc73   :  { %v1925_v52 = vpop.trf.xlu0 }
 0xc74   :  { %4242 = vmatmul.mubr.msk.bf16.vlgmr.msra.gmra.mxu0 %vm163_vm6, %v1925_v52 }
 0xc75   :  { %4252 = vmatpush3.bf16.msra.mxu0 %v2065_v54  ;;  %4253 = vmatprep.mubr.msk.bf16.mxu0 %vm4551_vm11, %v4550_v17 }
 0xc76   :  { %4263 = vmatprep.subr.bf16.mxu0 %v4550_v17 }
 0xc7c   :  { %4254 = vmatmul.mubr.msk.bf16.vlgmr.msra.gmra.mxu0 %vm163_vm6, %v2053_v62 }
 0xc7d   :  { %4265 = vmatprep.mubr.msk.bf16.mxu0 %vm4551_vm11, %v4550_v17 }
 0xd34   :  { %v5163_v14 = vpop.f32.mrf.mxu0 }
 0xd36   :  { %v4243_v37 = vpop.f32.mrf.mxu0 }
 0xd38   :  { %v5165_v56 = vpop.f32.mrf.mxu0 }
 0xd3a   :  { %v4244_v53 = vpop.f32.mrf.mxu0 }
 0xd3c   :  { %v2101_v59 = vpop.f32.mrf.mxu0 }
 0xd3d   :  { %v2108_v60 = vmul.f32 0.35355338, %v2101_v59 }
 0xd3e   :  { %v4255_v2 = vpop.f32.mrf.mxu0 }
 0xd3f   :  { %v2110_v23 = vsel %vm1705_vm3, %v2108_v60, -inf }
 0xd40   :  { %2111 = vmax.xlane.f32.xlu0 %v2110_v23  ;;  %v2104_v25 = vpop.f32.mrf.mxu0 }
 0xd41   :  { %v2109_v30 = vmul.f32 0.35355338, %v2104_v25 }
 0xd42   :  { %v4256_v34 = vpop.f32.mrf.mxu0 }
 0xd43   :  { %v2113_v41 = vsel %vm1705_vm3, %v2109_v30, -inf }
 0xd44   :  { %2114 = vmax.xlane.f32.xlu1 %v2113_v41 }
 0xd55   :  { %1475 = vperm.xlu1 %4424, %v1404_v24  }
 0xd59   :  { %1495 = vperm.xlu1 %4424, %v1408_v40  }
 0xd7c   :  { %1980 = vxpose.xlu1.c.b16.start.end [1/1] (short) (narrow) %v1776_v18, 16 }
 0xdc9   :  { %v2112_v19 = vpop.xlane.xlu0 %2111 }
 0xdca   :  { %v2116_v15 = vsub.f32 %v2108_v60, %v2112_v19 }
 0xdcc   :  { %v2118_v20 = vmul.f32 1.442695, %v2116_v15 }
 0xdcd   :  { %v2115_v48 = vpop.xlane.xlu1 %2114 }
 0xdce   :  { %4470 = vpow2.f32 %v2118_v20  ;;  %v2117_v26 = vsub.f32 %v2109_v30, %v2115_v48 }
 0xdd0   :  { %v2120_v27 = vmul.f32 1.442695, %v2117_v26 }
 0xdd1   :  { %v5185_v32 = vpop.permute.xlu1 %1475 }
 0xdd2   :  { %4472 = vpow2.f32 %v2120_v27  ;;  %v1601_v46 = vadd.f32 %v5041_v0, %v5185_v32 }
 0xdd4   :  { %v2247_v1 = vpack.c.bf16 %v1601_v46, %v1601_v46 }
 0xdd5   :  { %v5187_v33 = vpop.permute.xlu1 %1495 }
 0xdd6   :  { %v1617_v59 = vadd.f32 %v5094_v55, %v5187_v33 }
 0xdd8   :  { %v2248_v2 = vpack.c.bf16 %v1617_v59, %v1617_v59 }
 0xdda   :  { %v2269_v25 = vsel %vm170_vm1, %v2248_v2, 0 }
 0xddb   :  { %v4471_v7 = vpop.eup %4470 }
 0xddc   :  { %v2122_v3 = vsel %vm1705_vm3, %v4471_v7, 0.0 }
 0xddd   :  { %2123 = vadd.xlane.f32.xlu0 %v2122_v3 }
 0xdde   :  { %v1988_v63 = vpop.trf.xlu1 }
 0xddf   :  { %v4473_v44 = vpop.eup %4472  ;;  %4248 = vmatmul.mubr.msk.bf16.vlgmr.msra.gmra.mxu1 %vm163_vm6, %v1988_v63 }
 0xde0   :  { %v2125_v43 = vsel %vm1705_vm3, %v4473_v44, 0.0  ;;  %4259 = vmatprep.mubr.msk.bf16.mxu1 %vm4551_vm11, %v4550_v17 }
 0xde1   :  { %2126 = vadd.xlane.f32.xlu0 %v2125_v43 }
 0xdf7   :  { %1510 = vperm.xlu0 %4425, %v1411_v45  }
 0xe15   :  { %2249 = vxpose.xlu0.c.b16.start.end [1/1] (short) (narrow) %v2247_v1, 16 }
 0xe66   :  { %v2124_v47 = vpop.xlane.xlu0 %2123 }
 0xe67   :  { %4474 = vrcp.f32 %v2124_v47 }
 0xe6a   :  { %v2127_v8 = vpop.xlane.xlu0 %2126 }
 0xe6b   :  { %4476 = vrcp.f32 %v2127_v8 }
 0xe72   :  { %v5199_v53 = vpop.permute.xlu0 %1510 }
 0xe73   :  { %v1630_v0 = vadd.f32 %v5098_v31, %v5199_v53 }
 0xe74   :  { %v4475_v49 = vpop.eup %4474 }
 0xe75   :  { %v2130_v54 = vmul.f32 %v4475_v49, %v4471_v7  ;;  %v2132_v23 = vpack.c.bf16 %v1630_v0, %v1630_v0 }
 0xe77   :  { %v2257_v55 = vpop.trf.xlu0 }
 0xe78   :  { %v4477_v52 = vpop.eup %4476 }
 0xe79   :  { %v2131_v62 = vmul.f32 %v4477_v52, %v4473_v44  ;;  %v1386_v52 = vld [vmem:[%s5621_s3 + $0x10] sm:$0xff] }
 0xe7b   :  { %v2133_v37 = vpack.c.bf16 %v2131_v62, %v2130_v54  ;;  %v2181_v54 = vpack.c.bf16 %v1386_v52, %v1386_v52 }
 0xe7d   :  { %v2138_v60 = vsel %vm1705_vm3, %v2133_v37, 0  ;;  %v5227_v62 = vsel %vm170_vm1, %v2181_v54, 0  ;;  %v1412_v37 = vld [vmem:[%s5619_s7 + $0x58] sm:$0xff] }
 0xe7e   :  { %4258 = vmatpush3.bf16.xpose.msra.mxu1 %v2138_v60  ;;  %4264 = vmatpush3.bf16.msra.mxu0 %v5227_v62 }
 0xe7f   :  { %4269 = vmatprep.subr.bf16.mxu1 %v4550_v17  ;;  %4275 = vmatprep.subr.bf16.mxu0 %v4550_v17 }
 0xe85   :  { %4260 = vmatmul.mubr.msk.bf16.vlgmr.msra.gmra.mxu1 %vm1705_vm3, %v2132_v23 }
 0xe86   :  { %4270 = vmatpush3.bf16.msra.mxu1 %v2269_v25  ;;  %4271 = vmatprep.mubr.msk.bf16.mxu1 %vm4551_vm11, %v4550_v17 }
 0xe87   :  { %4281 = vmatprep.subr.bf16.mxu1 %v4550_v17 }
 0xe8d   :  { %4272 = vmatmul.mubr.msk.bf16.vlgmr.msra.gmra.mxu1 %vm163_vm6, %v2257_v55 }
 0xe8e   :  { %4283 = vmatprep.mubr.msk.bf16.mxu1 %vm4551_vm11, %v4550_v17 }
 0xe9f   :  { %v5215_v31 = vpop.f32.mrf.mxu1 }
 0xea1   :  { %v4249_v30 = vpop.f32.mrf.mxu1 }
 0xea3   :  { %v5217_v34 = vpop.f32.mrf.mxu1 }
 0xea5   :  { %v4250_v41 = vpop.f32.mrf.mxu1 }
 0xf45   :  { %v2174_v24 = vpop.f32.mrf.mxu1 }
 0xf46   :  { %v2180_v59 = vpack.c.bf16 %v2174_v24, %v2174_v24 }
 0xf47   :  { %v4261_v40 = vpop.f32.mrf.mxu1 }
 0xf49   :  { %v2177_v5 = vpop.f32.mrf.mxu1 }
 0xf4b   :  { %v4262_v10 = vpop.f32.mrf.mxu1 }
 0xf4d   :  { %v2305_v18 = vpop.f32.mrf.mxu1 }
 0xf4e   :  { %v2312_v19 = vmul.f32 0.35355338, %v2305_v18  ;;  %v1387_v18 = vld [vmem:[%s5621_s3 + $0x18] sm:$0xff] }
 0xf4f   :  { %v4273_v15 = vpop.f32.mrf.mxu1 }
 0xf50   :  { %v2314_v20 = vsel %vm1705_vm3, %v2312_v19, -inf }
 0xf51   :  { %2315 = vmax.xlane.f32.xlu0 %v2314_v20  ;;  %v2308_v48 = vpop.f32.mrf.mxu1 }
 0xf52   :  { %v2313_v26 = vmul.f32 0.35355338, %v2308_v48 }
 0xf53   :  { %v4274_v27 = vpop.f32.mrf.mxu1 }
 0xf54   :  { %v2317_v7 = vsel %vm1705_vm3, %v2313_v26, -inf  ;;  %v2040_v27 = vadd.f32 %v5217_v34, %v5165_v56 }
 0xf55   :  { %2318 = vmax.xlane.f32.xlu1 %v2317_v7 }
 0xfda   :  { %v2316_v3 = vpop.xlane.xlu0 %2315 }
 0xfdb   :  { %v2320_v63 = vsub.f32 %v2312_v19, %v2316_v3  ;;  %v2385_v19 = vpack.c.bf16 %v1387_v18, %v1387_v18 }
 0xfdd   :  { %v2322_v44 = vmul.f32 1.442695, %v2320_v63  ;;  %v5250_v15 = vsel %vm170_vm1, %v2385_v19, 0 }
 0xfde   :  { %v2319_v43 = vpop.xlane.xlu1 %2318  ;;  %4282 = vmatpush3.bf16.msra.mxu1 %v5250_v15 }
 0xfdf   :  { %4478 = vpow2.f32 %v2322_v44  ;;  %v2321_v45 = vsub.f32 %v2313_v26, %v2319_v43  ;;  %4295 = vmatprep.subr.bf16.mxu1 %v4550_v17 }
 0xfe1   :  { %v2324_v46 = vmul.f32 1.442695, %v2321_v45 }
 0xfe3   :  { %4480 = vpow2.f32 %v2324_v46 }
 0xfec   :  { %v4479_v1 = vpop.eup %4478 }
 0xfed   :  { %v2326_v47 = vsel %vm1705_vm3, %v4479_v1, 0.0 }
 0xfee   :  { %2327 = vadd.xlane.f32.xlu0 %v2326_v47 }
 0xff0   :  { %v4481_v8 = vpop.eup %4480 }
 0xff1   :  { %v2329_v49 = vsel %vm1705_vm3, %v4481_v8, 0.0 }
 0xff2   :  { %2330 = vadd.xlane.f32.xlu1 %v2329_v49  ;;  %v4546_v49 = vld [vmem:[%s5617_s8] sm:$0xff] }
0x1004   :  { %1515 = vperm.xlu0 %4425, %v1412_v37  }
0x101f   :  { %2182 = vxpose.xlu1.c.b16.start.end [1/1] (short) (narrow) %v2180_v59, 16 }
0x1077   :  { %v2328_v60 = vpop.xlane.xlu0 %2327 }
0x1078   :  { %4482 = vrcp.f32 %v2328_v60 }
0x107b   :  { %v2331_v0 = vpop.xlane.xlu1 %2330 }
0x107c   :  { %4484 = vrcp.f32 %v2331_v0  ;;  %v4547_v0 = vld [vmem:[%s5617_s8 + $0x8] sm:$0xff] }
0x107f   :  { %v5237_v40 = vpop.permute.xlu0 %1515 }
0x1080   :  { %v1633_v5 = vadd.f32 %v5133_v57, %v5237_v40  ;;  %v2037_v57 = vadd.f32 %v5215_v31, %v5163_v14  ;;  %v2455_v14 = vsub.s32 4, %v4610_v6 }
0x1081   :  { %v2190_v2 = vpop.trf.xlu1 }
0x1082   :  { %4266 = vmatmul.mubr.msk.bf16.vlgmr.msra.gmra.mxu0 %vm163_vm6, %v2190_v2  ;;  %v2336_v10 = vpack.c.bf16 %v1633_v5, %v1633_v5  ;;  %v5263_v56 = vrot.slane %v4981_v9, %v2455_v14 }
0x1083   :  { %4277 = vmatprep.mubr.msk.bf16.mxu0 %vm4551_vm11, %v4550_v17 }
0x1085   :  { %v4483_v23 = vpop.eup %4482 }
0x1086   :  { %v2334_v55 = vmul.f32 %v4483_v23, %v4479_v1 }
0x1089   :  { %v4485_v25 = vpop.eup %4484 }
0x108a   :  { %v2335_v30 = vmul.f32 %v4485_v25, %v4481_v8  ;;  %v5279_v25 = vld [vmem:[%s5617_s8 + $0x10] sm:$0xff] }
0x108c   :  { %v2337_v41 = vpack.c.bf16 %v2335_v30, %v2334_v55  ;;  %v2676_v30 = vsel %vm103_vm4, %v5279_v25, 0.0 }
0x108e   :  { %v2342_v24 = vsel %vm1705_vm3, %v2337_v41, 0 }
0x108f   :  { %4276 = vmatpush3.bf16.xpose.msra.mxu0 %v2342_v24  ;;  %v5291_v24 = vld [vmem:[%s5617_s8 + $0x18] sm:$0xff] }
0x1090   :  { %4287 = vmatprep.subr.bf16.mxu0 %v4550_v17  ;;  %v2679_v5 = vsel %vm103_vm4, %v5291_v24, 0.0 }
0x1096   :  { %4278 = vmatmul.mubr.msk.bf16.vlgmr.msra.gmra.mxu0 %vm1705_vm3, %v2336_v10 }
0x1097   :  { %4291 = vmatprep.mubr.msk.bf16.mxu0 %vm4551_vm11, %v4550_v17 }
0x1142   :  { %v2238_v20 = vpop.f32.mrf.mxu0 }
0x1143   :  { %v2245_v48 = vadd.f32 %v2238_v20, %v2037_v57 }
0x1144   :  { %v4267_v26 = vpop.f32.mrf.mxu0 }
0x1146   :  { %v2241_v7 = vpop.f32.mrf.mxu0 }
0x1147   :  { %v2246_v3 = vadd.f32 %v2241_v7, %v2040_v27 }
0x1148   :  { %v4268_v63 = vpop.f32.mrf.mxu0 }
0x1156   :  { %v2378_v44 = vpop.f32.mrf.mxu0 }
0x1157   :  { %v2384_v43 = vpack.c.bf16 %v2378_v44, %v2378_v44 }
0x1158   :  { %v4279_v45 = vpop.f32.mrf.mxu0 }
0x1159   :  { %2386 = vxpose.xlu0.c.b16.start.end [1/1] (short) (narrow) %v2384_v43, 16 }
0x115a   :  { %v2381_v46 = vpop.f32.mrf.mxu0 }
0x115c   :  { %v4280_v1 = vpop.f32.mrf.mxu0 }
0x11bb   :  { %v2394_v47 = vpop.trf.xlu0 }
0x11bc   :  { %4284 = vmatmul.mubr.msk.bf16.vlgmr.msra.gmra.mxu1 %vm163_vm6, %v2394_v47 }
0x11bd   :  { %4303 = vmatprep.mubr.msk.bf16.mxu1 %vm4551_vm11, %v4550_v17 }
0x127c   :  { %v2442_v31 = vpop.f32.mrf.mxu1 }
0x127d   :  { %v2449_v8 = vadd.f32 %v2442_v31, %v2245_v48 }
0x127e   :  { %v4285_v34 = vpop.f32.mrf.mxu1 }
0x127f   :  { %v2451_v52 = vadd.f32 %v4546_v49, %v2449_v8  ;;  %v1390_v34 = vld [vmem:[%s5622_s4 + $0x10] sm:$0xff]  ;;  %v1391_v49 = vld [vmem:[%s5622_s4 + $0x18] sm:$0xff] }
0x1280   :  { %v2445_v54 = vpop.f32.mrf.mxu1 }
0x1281   :  { %v5269_v37 = vadd.f32 %v5263_v56, %v2451_v52  ;;  %v2450_v59 = vadd.f32 %v2445_v54, %v2246_v3  ;;  %v5309_v52 = vpack.c.bf16 %v1391_v49, %v1390_v34  ;;  %v1388_v54 = vld [vmem:[%s5622_s4] sm:$0xff] }
0x1282   :  { %v4286_v60 = vpop.f32.mrf.mxu1 }
0x1283   :  { %v2452_v2 = vadd.f32 %v4547_v0, %v2450_v59  ;;  %v2459_v23 = vsel %vm103_vm4, %v5269_v37, 0.0  ;;  %v1389_v59 = vld [vmem:[%s5622_s4 + $0x8] sm:$0xff]  ;;  %4288 = vmatpush3.bf16.msra.mxu0 %v5309_v52 }
0x1284   :  { %2460 = vadd.xlane.f32.xlu1 %v2459_v23  ;;  %v5318_v60 = vpack.c.bf16 %v1389_v59, %v1388_v54  ;;  %4289 = vmatprep.subr.bf16.mxu0 %v4550_v17 }
0x1285   :  { %v5282_v55 = vadd.f32 %v5263_v56, %v2452_v2 }
0x1287   :  { %v2462_v41 = vsel %vm103_vm4, %v5282_v55, 0.0  ;;  %4290 = vmatpush3.bf16.msra.mxu0 %v5318_v60 }
0x1288   :  { %2677 = vadd.xlane.f32.xlu1 %v2676_v30  ;;  %2463 = vadd.xlane.f32.xlu0 %v2462_v41 }
0x128c   :  { %2680 = vadd.xlane.f32.xlu1 %v2679_v5 }
0x130d   :  { %v2461_v10 = vpop.xlane.xlu1 %2460 }
0x130e   :  { %v2465_v18 = vmul.f32 0.03125, %v2461_v10 }
0x1310   :  { %v2467_v19 = vsub.f32 %v5269_v37, %v2465_v18 }
0x1311   :  { %v2678_v57 = vpop.xlane.xlu1 %2677  ;;  %v2464_v20 = vpop.xlane.xlu0 %2463 }
0x1312   :  { %v2682_v48 = vmul.f32 0.03125, %v2678_v57  ;;  %v2466_v26 = vmul.f32 0.03125, %v2464_v20  ;;  %v2469_v27 = vmul.f32 %v2467_v19, %v2467_v19 }
0x1314   :  { %v2684_v7 = vsub.f32 %v5279_v25, %v2682_v48  ;;  %v2468_v3 = vsub.f32 %v5282_v55, %v2466_v26  ;;  %v2471_v63 = vsel %vm103_vm4, %v2469_v27, 0.0  ;;  %v2487_v27 = vsub.s32 2, %v4610_v6 }
0x1315   :  { %v2681_v44 = vpop.xlane.xlu1 %2680  ;;  %2472 = vadd.xlane.f32.xlu0 %v2471_v63 }
0x1316   :  { %v2683_v43 = vmul.f32 0.03125, %v2681_v44  ;;  %v2686_v45 = vmul.f32 %v2684_v7, %v2684_v7  ;;  %v2470_v46 = vmul.f32 %v2468_v3, %v2468_v3 }
0x1318   :  { %v2685_v1 = vsub.f32 %v5291_v24, %v2683_v43  ;;  %v2688_v47 = vsel %vm103_vm4, %v2686_v45, 0.0  ;;  %v2474_v14 = vsel %vm103_vm4, %v2470_v46, 0.0  ;;  %v5326_v43 = vrot.slane %v4981_v9, %v2487_v27 }
0x1319   :  { %2689 = vadd.xlane.f32.xlu0 %v2688_v47  ;;  %2475 = vadd.xlane.f32.xlu1 %v2474_v14  ;;  %v2493_v45 = vsub.s32 3, %v4610_v6 }
0x131a   :  { %v2687_v31 = vmul.f32 %v2685_v1, %v2685_v1 }
0x131c   :  { %v2691_v8 = vsel %vm103_vm4, %v2687_v31, 0.0 }
0x131d   :  { %2692 = vadd.xlane.f32.xlu1 %v2691_v8  ;;  %v5333_v8 = vrot.slane %v4981_v9, %v2493_v45 }
0x139e   :  { %v2473_v0 = vpop.xlane.xlu0 %2472 }
0x139f   :  { %v2477_v2 = vmul.f32 0.03125, %v2473_v0 }
0x13a1   :  { %v2479_v23 = vadd.f32 1e-05, %v2477_v2 }
0x13a2   :  { %v2476_v30 = vpop.xlane.xlu1 %2475  ;;  %v2690_v41 = vpop.xlane.xlu0 %2689 }
0x13a3   :  { %4486 = vrsqrt.f32 %v2479_v23  ;;  %v2478_v5 = vmul.f32 0.03125, %v2476_v30  ;;  %v2694_v10 = vmul.f32 0.03125, %v2690_v41 }
0x13a5   :  { %v2480_v18 = vadd.f32 1e-05, %v2478_v5  ;;  %v2696_v57 = vadd.f32 1e-05, %v2694_v10  ;;  %v1392_v5 = vld [vmem:[%s5623_s5] sm:$0xff]  ;;  %v1393_v10 = vld [vmem:[%s5623_s5 + $0x8] sm:$0xff] }
0x13a6   :  { %v2693_v20 = vpop.xlane.xlu1 %2692 }
0x13a7   :  { %4488 = vrsqrt.f32 %v2480_v18  ;;  %v2695_v48 = vmul.f32 0.03125, %v2693_v20  ;;  %v5396_v18 = vpack.c.bf16 %v1393_v10, %v1392_v5  ;;  %v5404_v20 = vld [vmem:[%s5620_s6] sm:$0xff] }
0x13a8   :  { %4490 = vrsqrt.f32 %v2696_v57  ;;  %v2502_v57 = vsub.s32 5, %v4610_v6 }
0x13a9   :  { %v2697_v26 = vadd.f32 1e-05, %v2695_v48 }
0x13aa   :  { %v5407_v48 = vrot.slane %v5404_v20, %v2502_v57 }
0x13ab   :  { %4492 = vrsqrt.f32 %v2697_v26 }
0x13b0   :  { %v4487_v63 = vpop.eup %4486 }
0x13b1   :  { %v2483_v44 = vmul.f32 %v4487_v63, %v2467_v19 }
0x13b3   :  { %v2489_v31 = vmul.f32 %v5326_v43, %v2483_v44 }
0x13b4   :  { %v4489_v46 = vpop.eup %4488 }
0x13b5   :  { %v4491_v47 = vpop.eup %4490  ;;  %v2484_v14 = vmul.f32 %v4489_v46, %v2468_v3  ;;  %v2495_v54 = vadd.f32 %v5333_v8, %v2489_v31 }
0x13b6   :  { %v2700_v34 = vmul.f32 %v4491_v47, %v2684_v7 }
0x13b7   :  { %v2490_v19 = vmul.f32 %v5326_v43, %v2484_v14 }
0x13b8   :  { %v4493_v49 = vpop.eup %4492  ;;  %v2702_v2 = vmul.f32 %v2700_v34, %v4988_v13 }
0x13b9   :  { %v2496_v59 = vadd.f32 %v5333_v8, %v2490_v19  ;;  %v2701_v0 = vmul.f32 %v4493_v49, %v2685_v1 }
0x13ba   :  { %v2704_v30 = vadd.f32 %v2702_v2, %v4994_v21 }
0x13bb   :  { %v2497_v23 = vpack.c.bf16 %v2496_v59, %v2495_v54  ;;  %v2703_v3 = vmul.f32 %v2701_v0, %v4988_v13  ;;  %v1398_v13 = vld [vmem:[%s5623_s5 + $0x30] sm:$0xff] }
0x13bd   :  { %4292 = vmatmul.mubr.msk.bf16.vlgmr.msra.gmra.mxu0 %vm103_vm4, %v2497_v23  ;;  %v2705_v9 = vadd.f32 %v2703_v3, %v4994_v21  ;;  %v1399_v21 = vld [vmem:[%s5623_s5 + $0x38] sm:$0xff] }
0x13be   :  { %4309 = vmatprep.mubr.msk.bf16.mxu0 %vm103_vm4, %v5006_v29  ;;  %v5366_v29 = vpack.c.bf16 %v1399_v21, %v1398_v13 }
0x13bf   :  { %v2706_v7 = vpack.c.bf16 %v2705_v9, %v2704_v30 }
0x13c0   :  { %4296 = vmatpush3.bf16.msra.mxu1 %v5366_v29 }
0x13c1   :  { %4420 = vmatprep.subr.msk.bf16.mxu0 %vm103_vm4, %v2706_v7  ;;  %v2708_v41 = vsel %vm103_vm4, %v2706_v7, 0  ;;  %4297 = vmatprep.subr.bf16.mxu1 %v4550_v17 }
0x13c2   :  { %4308 = vmatpush3.bf16.xpose.msra.mxu0 %v2708_v41 }
0x13c3   :  { %4333 = vmatprep.subr.bf16.mxu0 %v4550_v17 }
0x13c9   :  { %4310 = vmatmul.mubr.msk.bf16.vlgmr.msra.gmra.mxu0 %vm103_vm4, %v5020_v36  ;;  %v1396_v36 = vld [vmem:[%s5623_s5 + $0x20] sm:$0xff] }
0x13ca   :  { %4313 = vmatprep.mubr.msk.bf16.mxu0 %vm103_vm4, %v5023_v39  ;;  %v1397_v39 = vld [vmem:[%s5623_s5 + $0x28] sm:$0xff] }
0x13d1   :  { %4314 = vmatmul.mubr.msk.bf16.gmra.mxu0 %vm103_vm4, %v5029_v38  ;;  %v5376_v38 = vpack.c.bf16 %v1397_v39, %v1396_v36 }
0x13d2   :  { %4317 = vmatprep.mubr.msk.bf16.mxu0 %vm103_vm4, %v5056_v11  ;;  %v1394_v11 = vld [vmem:[%s5623_s5 + $0x10] sm:$0xff] }
0x13d3   :  { %4298 = vmatpush3.bf16.msra.mxu1 %v5376_v38 }
0x13d4   :  { %4299 = vmatprep.subr.bf16.mxu1 %v4550_v17 }
0x13d9   :  { %4318 = vmatmul.mubr.msk.bf16.gmra.mxu0 %vm103_vm4, %v5061_v51  ;;  %v1395_v51 = vld [vmem:[%s5623_s5 + $0x18] sm:$0xff] }
0x13da   :  { %4335 = vmatprep.mubr.msk.bf16.mxu0 %vm4551_vm11, %v4550_v17  ;;  %v5386_v1 = vpack.c.bf16 %v1395_v51, %v1394_v11 }
0x13dc   :  { %4300 = vmatpush3.bf16.msra.mxu1 %v5386_v1 }
0x13dd   :  { %4301 = vmatprep.subr.bf16.mxu1 %v4550_v17 }
0x13e0   :  { %4302 = vmatpush3.bf16.msra.mxu1 %v5396_v18 }
0x13e1   :  { %4321 = vmatprep.subr.bf16.mxu1 %v4550_v17 }
0x147d   :  { %v2541_v26 = vpop.f32.mrf.mxu0 }
0x147e   :  { %v2542_v63 = vadd.f32 %v2541_v26, %v5407_v48 }
0x147f   :  { %v4293_v44 = vpop.f32.mrf.mxu0 }
0x1480   :  { %v2550_v46 = vmul.f32 0.044715, %v2542_v63 }
0x1481   :  { %v2544_v47 = vpop.f32.mrf.mxu0 }
0x1482   :  { %v2552_v14 = vmul.f32 %v2550_v46, %v2542_v63  ;;  %v2545_v31 = vadd.f32 %v2544_v47, %v5407_v48 }
0x1483   :  { %v4294_v34 = vpop.f32.mrf.mxu0 }
0x1484   :  { %v2554_v19 = vmul.f32 %v2552_v14, %v2542_v63  ;;  %v2551_v49 = vmul.f32 0.044715, %v2545_v31  ;;  %v2548_v14 = vmul.f32 0.5, %v2542_v63  ;;  %v2549_v34 = vmul.f32 0.5, %v2545_v31 }
0x1486   :  { %v2556_v54 = vadd.f32 %v2554_v19, %v2542_v63  ;;  %v2553_v59 = vmul.f32 %v2551_v49, %v2545_v31 }
0x1488   :  { %v2558_v0 = vmul.f32 0.7978846, %v2556_v54  ;;  %v2555_v2 = vmul.f32 %v2553_v59, %v2545_v31 }
0x1489   :  { %v5411_v23 = vpop.f32.mrf.mxu0 }
0x148a   :  { %4494 = vtanh.f32 %v2558_v0  ;;  %v2557_v3 = vadd.f32 %v2555_v2, %v2545_v31 }
0x148b   :  { %v2744_v30 = vpop.f32.mrf.mxu0 }
0x148c   :  { %v2559_v9 = vmul.f32 0.7978846, %v2557_v3  ;;  %v2745_v7 = vadd.f32 %v2744_v30, %v5038_v58 }
0x148d   :  { %v5414_v41 = vpop.f32.mrf.mxu0 }
0x148e   :  { %4496 = vtanh.f32 %v2559_v9  ;;  %v2791_v13 = vpack.c.bf16 %v2745_v7, %v2745_v7 }
0x148f   :  { %v2747_v21 = vpop.f32.mrf.mxu0 }
0x1490   :  { %v2748_v36 = vadd.f32 %v2747_v21, %v5090_v4  ;;  %2793 = vxpose.xlu0.c.b16.start.end [1/1] (short) (narrow) %v2791_v13, 16 }
0x1491   :  { %v5417_v39 = vpop.f32.mrf.mxu0 }
0x1492   :  { %v2929_v11 = vpack.c.bf16 %v2748_v36, %v2748_v36 }
0x1493   :  { %v2760_v51 = vpop.f32.mrf.mxu0 }
0x1494   :  { %2931 = vxpose.xlu1.c.b16.start.end [1/1] (short) (narrow) %v2929_v11, 16  ;;  %v2761_v58 = vadd.f32 %v2760_v51, %v5047_v22 }
0x1495   :  { %v5419_v5 = vpop.f32.mrf.mxu0 }
0x1496   :  { %v2792_v49 = vpack.c.bf16 %v2761_v58, %v2761_v58 }
0x1497   :  { %v4495_v10 = vpop.eup %4494  ;;  %v2763_v57 = vpop.f32.mrf.mxu0 }
0x1498   :  { %v2764_v26 = vadd.f32 %v2763_v57, %v5096_v28  ;;  %v2562_v46 = vadd.f32 1.0, %v4495_v10  ;;  %v2813_v28 = vsel %vm170_vm1, %v2792_v49, 0 }
0x1499   :  { %v5442_v9 = vpop.f32.mrf.mxu0 }
0x149a   :  { %v2930_v44 = vpack.c.bf16 %v2764_v26, %v2764_v26  ;;  %v2564_v54 = vmul.f32 %v2562_v46, %v2548_v14 }
0x149b   :  { %v4497_v47 = vpop.eup %4496  ;;  %v5444_v7 = vpop.f32.mrf.mxu0 }
0x149c   :  { %v2951_v4 = vsel %vm170_vm1, %v2930_v44, 0  ;;  %v2563_v19 = vadd.f32 1.0, %v4497_v47 }
0x149d   :  { %4334 = vmatpush3.bf16.msra.mxu0 %v2951_v4  ;;  %v5446_v13 = vpop.f32.mrf.mxu0 }
0x149e   :  { %v2565_v59 = vmul.f32 %v2563_v19, %v2549_v34  ;;  %4345 = vmatprep.subr.bf16.mxu0 %v4550_v17 }
0x14a0   :  { %v2566_v0 = vpack.c.bf16 %v2565_v59, %v2564_v54 }
0x14a2   :  { %4304 = vmatmul.mubr.msk.bf16.vlgmr.msra.gmra.mxu1 %vm2571_vm5, %v2566_v0 }
0x14a3   :  { %4322 = vmatpush3.bf16.msra.mxu1 %v2813_v28  ;;  %4323 = vmatprep.mubr.msk.bf16.mxu1 %vm4551_vm11, %v4550_v17 }
0x14a4   :  { %4327 = vmatprep.subr.bf16.mxu1 %v4550_v17 }
0x14f2   :  { %v2801_v22 = vpop.trf.xlu0 }
0x14f3   :  { %4324 = vmatmul.mubr.msk.bf16.vlgmr.msra.gmra.mxu1 %vm163_vm6, %v2801_v22 }
0x14f4   :  { %4329 = vmatprep.mubr.msk.bf16.mxu1 %vm4551_vm11, %v4550_v17 }
0x14f6   :  { %v2939_v63 = vpop.trf.xlu1 }
0x14f7   :  { %4336 = vmatmul.mubr.msk.bf16.vlgmr.msra.gmra.mxu0 %vm163_vm6, %v2939_v63 }
0x14f8   :  { %4346 = vmatpush3.bf16.msra.mxu0 %v5147_v42  ;;  %4347 = vmatprep.mubr.msk.bf16.mxu0 %vm4551_vm11, %v4550_v17  ;;  %v5448_v42 = vpop.f32.mrf.mxu0 }
0x14f9   :  { %4357 = vmatprep.subr.bf16.mxu0 %v4550_v17 }
0x1562   :  { %v5438_v31 = vpop.f32.mrf.mxu1 }
0x1564   :  { %v4305_v2 = vpop.f32.mrf.mxu1 }
0x1566   :  { %v5440_v3 = vpop.f32.mrf.mxu1 }
0x1568   :  { %v4306_v30 = vpop.f32.mrf.mxu1 }
0x15b3   :  { %v2849_v21 = vpop.f32.mrf.mxu1 }
0x15b4   :  { %v2856_v36 = vmul.f32 0.35355338, %v2849_v21 }
0x15b5   :  { %v4325_v11 = vpop.f32.mrf.mxu1 }
0x15b6   :  { %v2858_v51 = vsel %vm1705_vm3, %v2856_v36, -inf }
0x15b7   :  { %v2987_v10 = vpop.f32.mrf.mxu0  ;;  %2859 = vmax.xlane.f32.xlu0 %v2858_v51  ;;  %v2852_v57 = vpop.f32.mrf.mxu1 }
0x15b8   :  { %v2994_v26 = vmul.f32 0.35355338, %v2987_v10  ;;  %v2857_v58 = vmul.f32 0.35355338, %v2852_v57 }
0x15b9   :  { %v4337_v44 = vpop.f32.mrf.mxu0  ;;  %v4326_v46 = vpop.f32.mrf.mxu1 }
0x15ba   :  { %v2996_v47 = vsel %vm1705_vm3, %v2994_v26, -inf  ;;  %v2861_v14 = vsel %vm1705_vm3, %v2857_v58, -inf }
0x15bb   :  { %v2990_v34 = vpop.f32.mrf.mxu0  ;;  %2997 = vmax.xlane.f32.xlu0 %v2996_v47  ;;  %2862 = vmax.xlane.f32.xlu1 %v2861_v14 }
0x15bc   :  { %v2995_v4 = vmul.f32 0.35355338, %v2990_v34  ;;  %v2753_v34 = vadd.f32 %v5411_v23, %v5129_v50  ;;  %v2777_v23 = vadd.f32 %v5444_v7, %v5100_v16 }
0x15bd   :  { %v4338_v19 = vpop.f32.mrf.mxu0 }
0x15be   :  { %v2999_v49 = vsel %vm1705_vm3, %v2995_v4, -inf }
0x15bf   :  { %3000 = vmax.xlane.f32.xlu1 %v2999_v49 }
0x1640   :  { %v2860_v54 = vpop.xlane.xlu0 %2859 }
0x1641   :  { %v2864_v59 = vsub.f32 %v2856_v36, %v2860_v54 }
0x1643   :  { %v2866_v0 = vmul.f32 1.442695, %v2864_v59 }
0x1644   :  { %v2998_v28 = vpop.xlane.xlu0 %2997  ;;  %v2863_v22 = vpop.xlane.xlu1 %2862 }
0x1645   :  { %4498 = vpow2.f32 %v2866_v0  ;;  %v3002_v63 = vsub.f32 %v2994_v26, %v2998_v28  ;;  %v2865_v2 = vsub.f32 %v2857_v58, %v2863_v22 }
0x1647   :  { %v3004_v30 = vmul.f32 1.442695, %v3002_v63  ;;  %v2868_v21 = vmul.f32 1.442695, %v2865_v2 }
0x1648   :  { %v3001_v11 = vpop.xlane.xlu1 %3000 }
0x1649   :  { %4500 = vpow2.f32 %v3004_v30  ;;  %v3003_v51 = vsub.f32 %v2995_v4, %v3001_v11  ;;  %v3187_v4 = vpack.c.bf16 %v2753_v34, %v2753_v34 }
0x164a   :  { %4502 = vpow2.f32 %v2868_v21 }
0x164b   :  { %v3006_v10 = vmul.f32 1.442695, %v3003_v51 }
0x164d   :  { %4504 = vpow2.f32 %v3006_v10 }
0x1652   :  { %v4499_v57 = vpop.eup %4498 }
0x1653   :  { %v2870_v44 = vsel %vm1705_vm3, %v4499_v57, 0.0 }
0x1654   :  { %2871 = vadd.xlane.f32.xlu0 %v2870_v44  ;;  %v2880_v44 = vpack.c.bf16 %v2777_v23, %v2777_v23 }
0x1656   :  { %v4501_v46 = vpop.eup %4500 }
0x1657   :  { %v4503_v36 = vpop.eup %4502  ;;  %v3008_v47 = vsel %vm1705_vm3, %v4501_v46, 0.0 }
0x1658   :  { %3009 = vadd.xlane.f32.xlu0 %v3008_v47  ;;  %v2873_v26 = vsel %vm1705_vm3, %v4503_v36, 0.0 }
0x1659   :  { %2874 = vadd.xlane.f32.xlu1 %v2873_v26 }
0x165a   :  { %v4505_v58 = vpop.eup %4504 }
0x165b   :  { %v3011_v14 = vsel %vm1705_vm3, %v4505_v58, 0.0 }
0x165d   :  { %3012 = vadd.xlane.f32.xlu1 %v3011_v14 }
0x168a   :  { %3189 = vxpose.xlu1.c.b16.start.end [1/1] (short) (narrow) %v3187_v4, 16  ;;  %v2769_v4 = vadd.f32 %v5417_v39, %v5151_v35 }
0x16dd   :  { %v2872_v19 = vpop.xlane.xlu0 %2871 }
0x16de   :  { %4506 = vrcp.f32 %v2872_v19  ;;  %v3188_v19 = vpack.c.bf16 %v2769_v4, %v2769_v4 }
0x16e1   :  { %v3010_v54 = vpop.xlane.xlu0 %3009 }
0x16e2   :  { %v2875_v49 = vpop.xlane.xlu1 %2874 }
0x16e3   :  { %4508 = vrcp.f32 %v2875_v49  ;;  %v3209_v49 = vsel %vm170_vm1, %v3188_v19, 0 }
0x16e4   :  { %4510 = vrcp.f32 %v3010_v54 }
0x16e6   :  { %v3013_v59 = vpop.xlane.xlu1 %3012 }
0x16e7   :  { %4512 = vrcp.f32 %v3013_v59 }
0x16eb   :  { %v4507_v0 = vpop.eup %4506 }
0x16ec   :  { %v2878_v22 = vmul.f32 %v4507_v0, %v4499_v57  ;;  %v3197_v54 = vpop.trf.xlu1 }
0x16f0   :  { %v4509_v28 = vpop.eup %4508 }
0x16f1   :  { %v2879_v63 = vmul.f32 %v4509_v28, %v4503_v36  ;;  %v4511_v2 = vpop.eup %4510  ;;  %v2780_v36 = vadd.f32 %v5448_v42, %v5135_v61 }
0x16f2   :  { %v3016_v51 = vmul.f32 %v4511_v2, %v4501_v46 }
0x16f3   :  { %v2881_v30 = vpack.c.bf16 %v2879_v63, %v2878_v22  ;;  %v3018_v47 = vpack.c.bf16 %v2780_v36, %v2780_v36 }
0x16f4   :  { %v4513_v21 = vpop.eup %4512 }
0x16f5   :  { %v2886_v11 = vsel %vm1705_vm3, %v2881_v30, 0  ;;  %v3017_v50 = vmul.f32 %v4513_v21, %v4505_v58 }
0x16f6   :  { %4328 = vmatpush3.bf16.xpose.msra.mxu1 %v2886_v11 }
0x16f7   :  { %4339 = vmatprep.subr.bf16.mxu1 %v4550_v17  ;;  %v3019_v10 = vpack.c.bf16 %v3017_v50, %v3016_v51 }
0x16f9   :  { %v3024_v57 = vsel %vm1705_vm3, %v3019_v10, 0 }
0x16fd   :  { %4330 = vmatmul.mubr.msk.bf16.vlgmr.msra.gmra.mxu1 %vm1705_vm3, %v2880_v44 }
0x16fe   :  { %4340 = vmatpush3.bf16.xpose.msra.mxu1 %v3024_v57  ;;  %4341 = vmatprep.mubr.msk.bf16.mxu1 %vm4551_vm11, %v4550_v17 }
0x16ff   :  { %4351 = vmatprep.subr.bf16.mxu1 %v4550_v17 }
0x1705   :  { %4342 = vmatmul.mubr.msk.bf16.vlgmr.msra.gmra.mxu1 %vm1705_vm3, %v3018_v47 }
0x1706   :  { %4352 = vmatpush3.bf16.msra.mxu1 %v5179_v12  ;;  %4353 = vmatprep.mubr.msk.bf16.mxu1 %vm4551_vm11, %v4550_v17 }
0x1707   :  { %4363 = vmatprep.subr.bf16.mxu1 %v4550_v17 }
0x17bd   :  { %v2922_v16 = vpop.f32.mrf.mxu1 }
0x17bf   :  { %v4331_v7 = vpop.f32.mrf.mxu1 }
0x17c1   :  { %v2925_v46 = vpop.f32.mrf.mxu1 }
0x17c3   :  { %v4332_v26 = vpop.f32.mrf.mxu1 }
0x17c4   :  { %v2756_v26 = vadd.f32 %v5414_v41, %v5185_v32  ;;  %v2772_v32 = vadd.f32 %v5419_v5, %v5187_v33 }
0x17c5   :  { %v3060_v58 = vpop.f32.mrf.mxu1 }
0x17c6   :  { %v3066_v14 = vpack.c.bf16 %v3060_v58, %v3060_v58  ;;  %v2928_v58 = vpack.c.bf16 %v2922_v16, %v2922_v16  ;;  %v2785_v16 = vadd.f32 %v5442_v9, %v5199_v53 }
0x17c7   :  { %v4343_v34 = vpop.f32.mrf.mxu1 }
0x17c8   :  { %3067 = vxpose.xlu0.c.b16.start.end [1/1] (short) (narrow) %v3066_v14, 16  ;;  %v3387_v14 = vpack.c.bf16 %v2756_v26, %v2756_v26 }
0x17c9   :  { %v3063_v61 = vpop.f32.mrf.mxu1 }
0x17cb   :  { %v4344_v42 = vpop.f32.mrf.mxu1 }
0x182a   :  { %v3075_v12 = vpop.trf.xlu0 }
0x182b   :  { %4348 = vmatmul.mubr.msk.bf16.vlgmr.msra.gmra.mxu0 %vm163_vm6, %v3075_v12 }
0x182c   :  { %4358 = vmatpush3.bf16.msra.mxu0 %v3209_v49  ;;  %4359 = vmatprep.mubr.msk.bf16.mxu0 %vm4551_vm11, %v4550_v17 }
0x182d   :  { %4369 = vmatprep.subr.bf16.mxu0 %v4550_v17 }
0x1833   :  { %4360 = vmatmul.mubr.msk.bf16.vlgmr.msra.gmra.mxu0 %vm163_vm6, %v3197_v54 }
0x1834   :  { %4370 = vmatpush3.bf16.msra.mxu0 %v5227_v62  ;;  %4371 = vmatprep.mubr.msk.bf16.mxu0 %vm4551_vm11, %v4550_v17 }
0x1835   :  { %4381 = vmatprep.subr.bf16.mxu0 %v4550_v17 }
0x18eb   :  { %v5488_v35 = vpop.f32.mrf.mxu0 }
0x18ed   :  { %v4349_v39 = vpop.f32.mrf.mxu0 }
0x18ee   :  { %v3388_v39 = vpack.c.bf16 %v2772_v32, %v2772_v32 }
0x18ef   :  { %v5490_v59 = vpop.f32.mrf.mxu0 }
0x18f1   :  { %v4350_v0 = vpop.f32.mrf.mxu0 }
0x18f2   :  { %v3276_v0 = vpack.c.bf16 %v2785_v16, %v2785_v16 }
0x18f3   :  { %v3245_v28 = vpop.f32.mrf.mxu0 }
0x18f4   :  { %v3252_v22 = vmul.f32 0.35355338, %v3245_v28  ;;  %v3409_v28 = vsel %vm170_vm1, %v3388_v39, 0 }
0x18f5   :  { %v4361_v63 = vpop.f32.mrf.mxu0 }
0x18f6   :  { %v3254_v2 = vsel %vm1705_vm3, %v3252_v22, -inf }
0x18f7   :  { %3255 = vmax.xlane.f32.xlu0 %v3254_v2  ;;  %v3248_v30 = vpop.f32.mrf.mxu0 }
0x18f8   :  { %v3253_v21 = vmul.f32 0.35355338, %v3248_v30 }
0x18f9   :  { %v4362_v62 = vpop.f32.mrf.mxu0 }
0x18fa   :  { %v3257_v11 = vsel %vm1705_vm3, %v3253_v21, -inf }
0x18fb   :  { %3258 = vmax.xlane.f32.xlu1 %v3257_v11 }
0x1980   :  { %v3256_v50 = vpop.xlane.xlu0 %3255 }
0x1981   :  { %v3260_v23 = vsub.f32 %v3252_v22, %v3256_v50 }
0x1983   :  { %v3262_v51 = vmul.f32 1.442695, %v3260_v23 }
0x1984   :  { %v3259_v10 = vpop.xlane.xlu1 %3258 }
0x1985   :  { %4514 = vpow2.f32 %v3262_v51  ;;  %v3261_v44 = vsub.f32 %v3253_v21, %v3259_v10 }
0x1987   :  { %v3264_v57 = vmul.f32 1.442695, %v3261_v44 }
0x1989   :  { %4516 = vpow2.f32 %v3264_v57 }
0x1992   :  { %v4515_v36 = vpop.eup %4514 }
0x1993   :  { %v3266_v47 = vsel %vm1705_vm3, %v4515_v36, 0.0 }
0x1994   :  { %3267 = vadd.xlane.f32.xlu0 %v3266_v47 }
0x1996   :  { %v4517_v7 = vpop.eup %4516 }
0x1997   :  { %v3269_v46 = vsel %vm1705_vm3, %v4517_v7, 0.0 }
0x1998   :  { %3270 = vadd.xlane.f32.xlu1 %v3269_v46 }
0x19c1   :  { %3127 = vxpose.xlu0.c.b16.start.end [1/1] (short) (narrow) %v2928_v58, 16 }
0x19c5   :  { %3389 = vxpose.xlu1.c.b16.start.end [1/1] (short) (narrow) %v3387_v14, 16 }
0x1a1d   :  { %v3268_v34 = vpop.xlane.xlu0 %3267 }
0x1a1e   :  { %4518 = vrcp.f32 %v3268_v34 }
0x1a21   :  { %v3271_v61 = vpop.xlane.xlu1 %3270 }
0x1a22   :  { %4520 = vrcp.f32 %v3271_v61 }
0x1a23   :  { %v3135_v42 = vpop.trf.xlu0 }
0x1a24   :  { %4354 = vmatmul.mubr.msk.bf16.vlgmr.msra.gmra.mxu1 %vm163_vm6, %v3135_v42 }
0x1a25   :  { %4365 = vmatprep.mubr.msk.bf16.mxu1 %vm4551_vm11, %v4550_v17 }
0x1a27   :  { %v3397_v33 = vpop.trf.xlu1 }
0x1a2b   :  { %v4519_v4 = vpop.eup %4518 }
0x1a2c   :  { %v3274_v12 = vmul.f32 %v4519_v4, %v4515_v36 }
0x1a2f   :  { %v4521_v19 = vpop.eup %4520 }
0x1a30   :  { %v3275_v49 = vmul.f32 %v4521_v19, %v4517_v7 }
0x1a32   :  { %v3277_v54 = vpack.c.bf16 %v3275_v49, %v3274_v12 }
0x1a34   :  { %v3282_v41 = vsel %vm1705_vm3, %v3277_v54, 0 }
0x1a35   :  { %4364 = vmatpush3.bf16.xpose.msra.mxu1 %v3282_v41 }
0x1a36   :  { %4375 = vmatprep.subr.bf16.mxu1 %v4550_v17 }
0x1a3c   :  { %4366 = vmatmul.mubr.msk.bf16.vlgmr.msra.gmra.mxu1 %vm1705_vm3, %v3276_v0  ;;  %v2788_v0 = vadd.f32 %v5446_v13, %v5237_v40 }
0x1a3d   :  { %4376 = vmatpush3.bf16.msra.mxu1 %v3409_v28  ;;  %4377 = vmatprep.mubr.msk.bf16.mxu1 %vm4551_vm11, %v4550_v17 }
0x1a3e   :  { %4387 = vmatprep.subr.bf16.mxu1 %v4550_v17  ;;  %v3476_v28 = vpack.c.bf16 %v2788_v0, %v2788_v0 }
0x1a44   :  { %4378 = vmatmul.mubr.msk.bf16.vlgmr.msra.gmra.mxu1 %vm163_vm6, %v3397_v33 }
0x1a45   :  { %4388 = vmatpush3.bf16.msra.mxu1 %v5250_v15  ;;  %4389 = vmatprep.mubr.msk.bf16.mxu1 %vm4551_vm11, %v4550_v17 }
0x1a46   :  { %4401 = vmatprep.subr.bf16.mxu1 %v4550_v17 }
0x1ae4   :  { %v3180_v53 = vpop.f32.mrf.mxu1 }
0x1ae5   :  { %v3181_v33 = vadd.f32 %v3180_v53, %v5488_v35 }
0x1ae6   :  { %v4355_v5 = vpop.f32.mrf.mxu1 }
0x1ae8   :  { %v3183_v9 = vpop.f32.mrf.mxu1 }
0x1ae9   :  { %v3184_v40 = vadd.f32 %v3183_v9, %v5490_v59 }
0x1aea   :  { %v4356_v22 = vpop.f32.mrf.mxu1 }
0x1afc   :  { %v3318_v63 = vpop.f32.mrf.mxu1 }
0x1afd   :  { %v3324_v42 = vpack.c.bf16 %v3318_v63, %v3318_v63 }
0x1afe   :  { %v4367_v2 = vpop.f32.mrf.mxu1 }
0x1b00   :  { %v3321_v30 = vpop.f32.mrf.mxu1 }
0x1b02   :  { %v4368_v21 = vpop.f32.mrf.mxu1 }
0x1b04   :  { %v3445_v62 = vpop.f32.mrf.mxu1 }
0x1b05   :  { %v3452_v11 = vmul.f32 0.35355338, %v3445_v62 }
0x1b06   :  { %v4379_v50 = vpop.f32.mrf.mxu1 }
0x1b07   :  { %v3454_v23 = vsel %vm1705_vm3, %v3452_v11, -inf }
0x1b08   :  { %3455 = vmax.xlane.f32.xlu0 %v3454_v23  ;;  %v3448_v15 = vpop.f32.mrf.mxu1 }
0x1b09   :  { %v3453_v51 = vmul.f32 0.35355338, %v3448_v15 }
0x1b0a   :  { %v4380_v10 = vpop.f32.mrf.mxu1 }
0x1b0b   :  { %v3457_v44 = vsel %vm1705_vm3, %v3453_v51, -inf }
0x1b0c   :  { %3458 = vmax.xlane.f32.xlu1 %v3457_v44 }
0x1b91   :  { %v3456_v57 = vpop.xlane.xlu0 %3455 }
0x1b92   :  { %v3460_v36 = vsub.f32 %v3452_v11, %v3456_v57  ;;  %v2616_v57 = vadd.f32 %v5438_v31, %v5269_v37 }
0x1b94   :  { %v3462_v47 = vmul.f32 1.442695, %v3460_v36 }
0x1b95   :  { %v3459_v7 = vpop.xlane.xlu1 %3458 }
0x1b96   :  { %4522 = vpow2.f32 %v3462_v47  ;;  %v3461_v46 = vsub.f32 %v3453_v51, %v3459_v7 }
0x1b98   :  { %v3464_v26 = vmul.f32 1.442695, %v3461_v46  ;;  %v2617_v46 = vadd.f32 %v5440_v3, %v5282_v55 }
0x1b9a   :  { %4524 = vpow2.f32 %v3464_v26 }
0x1ba3   :  { %v4523_v58 = vpop.eup %4522 }
0x1ba4   :  { %v3466_v14 = vsel %vm1705_vm3, %v4523_v58, 0.0 }
0x1ba5   :  { %3467 = vadd.xlane.f32.xlu0 %v3466_v14 }
0x1ba7   :  { %v4525_v34 = vpop.eup %4524 }
0x1ba8   :  { %v3469_v61 = vsel %vm1705_vm3, %v4525_v34, 0.0 }
0x1ba9   :  { %3470 = vadd.xlane.f32.xlu1 %v3469_v61 }
0x1bd2   :  { %3325 = vxpose.xlu0.c.b16.start.end [1/1] (short) (narrow) %v3324_v42, 16 }
0x1c2e   :  { %v3468_v4 = vpop.xlane.xlu0 %3467 }
0x1c2f   :  { %4526 = vrcp.f32 %v3468_v4 }
0x1c32   :  { %v3471_v19 = vpop.xlane.xlu1 %3470 }
0x1c33   :  { %4528 = vrcp.f32 %v3471_v19 }
0x1c34   :  { %v3333_v12 = vpop.trf.xlu0 }
0x1c35   :  { %4372 = vmatmul.mubr.msk.bf16.vlgmr.msra.gmra.mxu0 %vm163_vm6, %v3333_v12 }
0x1c36   :  { %4383 = vmatprep.mubr.msk.bf16.mxu0 %vm4551_vm11, %v4550_v17 }
0x1c3c   :  { %v4527_v49 = vpop.eup %4526 }
0x1c3d   :  { %v3474_v32 = vmul.f32 %v4527_v49, %v4523_v58 }
0x1c40   :  { %v4529_v54 = vpop.eup %4528 }
0x1c41   :  { %v3475_v41 = vmul.f32 %v4529_v54, %v4525_v34 }
0x1c43   :  { %v3477_v16 = vpack.c.bf16 %v3475_v41, %v3474_v32 }
0x1c45   :  { %v3482_v39 = vsel %vm1705_vm3, %v3477_v16, 0 }
0x1c46   :  { %4382 = vmatpush3.bf16.xpose.msra.mxu0 %v3482_v39 }
0x1c47   :  { %4393 = vmatprep.subr.bf16.mxu0 %v4550_v17 }
0x1c4d   :  { %4384 = vmatmul.mubr.msk.bf16.vlgmr.msra.gmra.mxu0 %vm1705_vm3, %v3476_v28 }
0x1c4e   :  { %4394 = vmatpush3.bf16.msra.mxu0 %v5309_v52  ;;  %4397 = vmatprep.mubr.msk.bf16.mxu0 %vm4551_vm11, %v4550_v17 }
0x1c4f   :  { %4395 = vmatprep.subr.bf16.mxu0 %v4550_v17 }
0x1c52   :  { %4396 = vmatpush3.bf16.msra.mxu0 %v5318_v60 }
0x1cf5   :  { %v3378_v5 = vpop.f32.mrf.mxu0 }
0x1cf6   :  { %v3385_v22 = vadd.f32 %v3378_v5, %v3181_v33 }
0x1cf7   :  { %v4373_v63 = vpop.f32.mrf.mxu0 }
0x1cf9   :  { %v3381_v13 = vpop.f32.mrf.mxu0 }
0x1cfa   :  { %v3386_v2 = vadd.f32 %v3381_v13, %v3184_v40 }
0x1cfb   :  { %v4374_v30 = vpop.f32.mrf.mxu0 }
0x1d0d   :  { %v3518_v21 = vpop.f32.mrf.mxu0 }
0x1d0e   :  { %v3524_v62 = vpack.c.bf16 %v3518_v21, %v3518_v21 }
0x1d0f   :  { %v4385_v52 = vpop.f32.mrf.mxu0 }
0x1d10   :  { %3525 = vxpose.xlu1.c.b16.start.end [1/1] (short) (narrow) %v3524_v62, 16 }
0x1d11   :  { %v3521_v11 = vpop.f32.mrf.mxu0 }
0x1d13   :  { %v4386_v50 = vpop.f32.mrf.mxu0 }
0x1d72   :  { %v3533_v23 = vpop.trf.xlu1 }
0x1d73   :  { %4390 = vmatmul.mubr.msk.bf16.vlgmr.msra.gmra.mxu1 %vm163_vm6, %v3533_v23 }
0x1d74   :  { %4402 = vmatpush3.bf16.msra.mxu1 %v5366_v29  ;;  %4409 = vmatprep.mubr.msk.bf16.mxu1 %vm4551_vm11, %v4550_v17 }
0x1d75   :  { %4403 = vmatprep.subr.bf16.mxu1 %v4550_v17 }
0x1d78   :  { %4404 = vmatpush3.bf16.msra.mxu1 %v5376_v38 }
0x1d79   :  { %4405 = vmatprep.subr.bf16.mxu1 %v4550_v17 }
0x1d7c   :  { %4406 = vmatpush3.bf16.msra.mxu1 %v5386_v1 }
0x1d7d   :  { %4407 = vmatprep.subr.bf16.mxu1 %v4550_v17 }
0x1d80   :  { %4408 = vmatpush3.bf16.msra.mxu1 %v5396_v18 }
0x1e33   :  { %v3578_v60 = vpop.f32.mrf.mxu1 }
0x1e34   :  { %v3585_v35 = vadd.f32 %v3578_v60, %v3385_v22 }
0x1e35   :  { %v4391_v59 = vpop.f32.mrf.mxu1 }
0x1e36   :  { %v3587_v29 = vadd.f32 %v5279_v25, %v3585_v35  ;;  %v2620_v25 = vsub.s32 6, %v4610_v6 }
0x1e37   :  { %v3581_v53 = vpop.f32.mrf.mxu1 }
0x1e38   :  { %v5548_v9 = vadd.f32 %v3587_v29, %v5263_v56  ;;  %v3586_v15 = vadd.f32 %v3581_v53, %v3386_v2  ;;  %v5563_v36 = vrot.slane %v5404_v20, %v2620_v25 }
0x1e39   :  { %v4392_v51 = vpop.f32.mrf.mxu1 }
0x1e3a   :  { %v3588_v38 = vadd.f32 %v5291_v24, %v3586_v15  ;;  %v3591_v1 = vsel %vm103_vm4, %v5548_v9, 0.0  ;;  %v2622_v14 = vadd.f32 %v5563_v36, %v2616_v57  ;;  %v2623_v20 = vadd.f32 %v5563_v36, %v2617_v46 }
0x1e3b   :  { %3592 = vadd.xlane.f32.xlu0 %v3591_v1 }
0x1e3c   :  { %v5554_v17 = vadd.f32 %v3588_v38, %v5263_v56  ;;  %v2627_v37 = vsel %vm103_vm4, %v2622_v14, 0.0  ;;  %v2630_v61 = vsel %vm103_vm4, %v2623_v20, 0.0 }
0x1e3e   :  { %v3594_v18 = vsel %vm103_vm4, %v5554_v17, 0.0 }
0x1e3f   :  { %3595 = vadd.xlane.f32.xlu1 %v3594_v18 }
0x1ec4   :  { %v3593_v10 = vpop.xlane.xlu0 %3592 }
0x1ec5   :  { %v3597_v44 = vmul.f32 0.03125, %v3593_v10 }
0x1ec7   :  { %v3599_v24 = vsub.f32 %v5548_v9, %v3597_v44 }
0x1ec8   :  { %v3596_v47 = vpop.xlane.xlu1 %3595 }
0x1ec9   :  { %v3598_v7 = vmul.f32 0.03125, %v3596_v47  ;;  %v3601_v56 = vmul.f32 %v3599_v24, %v3599_v24 }
0x1ecb   :  { %v3600_v26 = vsub.f32 %v5554_v17, %v3598_v7  ;;  %v3603_v58 = vsel %vm103_vm4, %v3601_v56, 0.0 }
0x1ecc   :  { %3604 = vadd.xlane.f32.xlu0 %v3603_v58 }
0x1ecd   :  { %v3602_v34 = vmul.f32 %v3600_v26, %v3600_v26 }
0x1ecf   :  { %v3606_v31 = vsel %vm103_vm4, %v3602_v34, 0.0 }
0x1ed0   :  { %2628 = vadd.xlane.f32.xlu0 %v2627_v37  ;;  %3607 = vadd.xlane.f32.xlu1 %v3606_v31 }
0x1ed4   :  { %2631 = vadd.xlane.f32.xlu1 %v2630_v61 }
0x1f55   :  { %v3605_v55 = vpop.xlane.xlu0 %3604 }
0x1f56   :  { %v3609_v3 = vmul.f32 0.03125, %v3605_v55 }
0x1f58   :  { %v3611_v42 = vadd.f32 1e-05, %v3609_v3 }
0x1f59   :  { %v3608_v4 = vpop.xlane.xlu1 %3607  ;;  %v2629_v18 = vpop.xlane.xlu0 %2628 }
0x1f5a   :  { %4530 = vrsqrt.f32 %v3611_v42  ;;  %v3610_v19 = vmul.f32 0.03125, %v3608_v4  ;;  %v2633_v25 = vmul.f32 0.03125, %v2629_v18 }
0x1f5c   :  { %v3612_v12 = vadd.f32 1e-05, %v3610_v19  ;;  %v2635_v57 = vsub.f32 %v2622_v14, %v2633_v25 }
0x1f5d   :  { %v2632_v10 = vpop.xlane.xlu1 %2631 }
0x1f5e   :  { %4532 = vrsqrt.f32 %v3612_v12  ;;  %v2637_v37 = vmul.f32 %v2635_v57, %v2635_v57 }
0x1f60   :  { %v2639_v55 = vsel %vm103_vm4, %v2637_v37, 0.0 }
0x1f67   :  { %v4531_v49 = vpop.eup %4530 }
0x1f68   :  { %v3615_v54 = vmul.f32 %v4531_v49, %v3599_v24  ;;  %v2634_v24 = vmul.f32 0.03125, %v2632_v10 }
0x1f6a   :  { %v3617_v41 = vmul.f32 %v3615_v54, %v5326_v43 }
0x1f6b   :  { %v4533_v32 = vpop.eup %4532 }
0x1f6c   :  { %v3616_v16 = vmul.f32 %v4533_v32, %v3600_v26  ;;  %v3619_v0 = vadd.f32 %v3617_v41, %v5333_v8  ;;  %v2636_v26 = vsub.f32 %v2623_v20, %v2634_v24 }
0x1f6e   :  { %v3618_v39 = vmul.f32 %v3616_v16, %v5326_v43  ;;  %v2638_v3 = vmul.f32 %v2636_v26, %v2636_v26 }
0x1f70   :  { %v3620_v28 = vadd.f32 %v3618_v39, %v5333_v8 }
0x1f72   :  { %v3621_v33 = vpack.c.bf16 %v3620_v28, %v3619_v0 }
0x1f74   :  { %4398 = vmatmul.mubr.msk.bf16.vlgmr.msra.gmra.mxu0 %vm103_vm4, %v3621_v33 }
0x2034   :  { %v3659_v5 = vpop.f32.mrf.mxu0 }
0x2035   :  { %v3660_v22 = vadd.f32 %v3659_v5, %v5407_v48  ;;  %v4549_v5 = vld [vmem:[%s5616_s1 + $0x88] sm:$0xf] }
0x2036   :  { %v4399_v63 = vpop.f32.mrf.mxu0 }
0x2037   :  { %v3668_v40 = vmul.f32 0.044715, %v3660_v22  ;;  %v3666_v53 = vmul.f32 0.5, %v3660_v22 }
0x2038   :  { %v3662_v13 = vpop.f32.mrf.mxu0 }
0x2039   :  { %v3670_v2 = vmul.f32 %v3668_v40, %v3660_v22  ;;  %v3663_v30 = vadd.f32 %v3662_v13, %v5407_v48  ;;  %v2662_v40 = vrot.slane %v4549_v5, %v2493_v45 }
0x203a   :  { %v4400_v21 = vpop.f32.mrf.mxu0 }
0x203b   :  { %v3672_v62 = vmul.f32 %v3670_v2, %v3660_v22  ;;  %v3669_v52 = vmul.f32 0.044715, %v3663_v30  ;;  %v3667_v15 = vmul.f32 0.5, %v3663_v30 }
0x203d   :  { %v3674_v43 = vadd.f32 %v3672_v62, %v3660_v22  ;;  %v3671_v11 = vmul.f32 %v3669_v52, %v3663_v30  ;;  %v2656_v22 = vrot.slane %v4549_v5, %v2487_v27 }
0x203f   :  { %v3676_v50 = vmul.f32 0.7978846, %v3674_v43  ;;  %v3673_v23 = vmul.f32 %v3671_v11, %v3663_v30 }
0x2041   :  { %4534 = vtanh.f32 %v3676_v50  ;;  %v3675_v8 = vadd.f32 %v3673_v23, %v3663_v30 }
0x2043   :  { %v3677_v60 = vmul.f32 0.7978846, %v3675_v8 }
0x2045   :  { %4536 = vtanh.f32 %v3677_v60 }
0x204e   :  { %v4535_v35 = vpop.eup %4534 }
0x204f   :  { %v3680_v59 = vadd.f32 1.0, %v4535_v35 }
0x2051   :  { %v3682_v38 = vmul.f32 %v3680_v59, %v3666_v53 }
0x2052   :  { %v4537_v29 = vpop.eup %4536 }
0x2053   :  { %v3681_v51 = vadd.f32 1.0, %v4537_v29 }
0x2055   :  { %v3683_v1 = vmul.f32 %v3681_v51, %v3667_v15 }
0x2057   :  { %v3684_v48 = vpack.c.bf16 %v3683_v1, %v3682_v38 }
0x2059   :  { %4410 = vmatmul.mubr.msk.bf16.vlgmr.msra.gmra.mxu1 %vm2571_vm5, %v3684_v48 }
0x2119   :  { %v3722_v44 = vpop.f32.mrf.mxu1 }
0x211a   :  { %v3729_v47 = vadd.f32 %v3722_v44, %v5548_v9  ;;  %v2642_v9 = vsel %vm103_vm4, %v2638_v3, 0.0 }
0x211b   :  { %v4411_v7 = vpop.f32.mrf.mxu1 }
0x211c   :  { %v3731_v56 = vadd.f32 %v3729_v47, %v5563_v36 }
0x211d   :  { %v3725_v46 = vpop.f32.mrf.mxu1 }
0x211e   :  { %v3730_v58 = vadd.f32 %v3725_v46, %v5554_v17  ;;  %v3736_v34 = vsel %vm103_vm4, %v3731_v56, 0.0 }
0x211f   :  { %3737 = vadd.xlane.f32.xlu0 %v3736_v34  ;;  %v4412_v31 = vpop.f32.mrf.mxu1 }
0x2120   :  { %v3732_v61 = vadd.f32 %v3730_v58, %v5563_v36 }
0x2122   :  { %v3739_v14 = vsel %vm103_vm4, %v3732_v61, 0.0 }
0x2123   :  { %2640 = vadd.xlane.f32.xlu0 %v2639_v55  ;;  %3740 = vadd.xlane.f32.xlu1 %v3739_v14 }
0x2127   :  { %2643 = vadd.xlane.f32.xlu1 %v2642_v9 }
0x21a8   :  { %v3738_v20 = vpop.xlane.xlu0 %3737 }
0x21a9   :  { %v3742_v42 = vmul.f32 0.03125, %v3738_v20 }
0x21ab   :  { %v3744_v17 = vsub.f32 %v3731_v56, %v3742_v42 }
0x21ac   :  { %v2641_v4 = vpop.xlane.xlu0 %2640  ;;  %v3741_v19 = vpop.xlane.xlu1 %3740 }
0x21ad   :  { %v2645_v12 = vmul.f32 0.03125, %v2641_v4  ;;  %v3743_v49 = vmul.f32 0.03125, %v3741_v19  ;;  %v3746_v54 = vmul.f32 %v3744_v17, %v3744_v17 }
0x21af   :  { %v2647_v32 = vadd.f32 1e-05, %v2645_v12  ;;  %v3745_v36 = vsub.f32 %v3732_v61, %v3743_v49  ;;  %v3748_v41 = vsel %vm103_vm4, %v3746_v54, 0.0 }
0x21b0   :  { %3749 = vadd.xlane.f32.xlu0 %v3748_v41  ;;  %v2644_v16 = vpop.xlane.xlu1 %2643 }
0x21b1   :  { %4538 = vrsqrt.f32 %v2647_v32  ;;  %v2646_v39 = vmul.f32 0.03125, %v2644_v16  ;;  %v3747_v0 = vmul.f32 %v3745_v36, %v3745_v36 }
0x21b3   :  { %v2648_v28 = vadd.f32 1e-05, %v2646_v39  ;;  %v3751_v33 = vsel %vm103_vm4, %v3747_v0, 0.0 }
0x21b4   :  { %3752 = vadd.xlane.f32.xlu1 %v3751_v33 }
0x21b5   :  { %4540 = vrsqrt.f32 %v2648_v28 }
0x21be   :  { %v4539_v63 = vpop.eup %4538 }
0x21bf   :  { %v2651_v13 = vmul.f32 %v4539_v63, %v2635_v57 }
0x21c1   :  { %v2657_v2 = vmul.f32 %v2656_v22, %v2651_v13 }
0x21c2   :  { %v4541_v30 = vpop.eup %4540 }
0x21c3   :  { %v2663_v21 = vadd.f32 %v2662_v40, %v2657_v2  ;;  %v2652_v62 = vmul.f32 %v4541_v30, %v2636_v26 }
0x21c5   :  { %2665 = vst.msk [vmem:[%s5617_s8] sm:$0xff] %vm103_vm4, %v2663_v21  ;;  %v2658_v52 = vmul.f32 %v2656_v22, %v2652_v62 }
0x21c7   :  { %v2664_v43 = vadd.f32 %v2662_v40, %v2658_v52 }
0x21c9   :  { %2666 = vst.msk [vmem:[%s5617_s8 + $0x8] sm:$0xff] %vm103_vm4, %v2664_v43 }
0x2239   :  { %v3750_v27 = vpop.xlane.xlu0 %3749 }
0x223a   :  { %v3754_v6 = vmul.f32 0.03125, %v3750_v27 }
0x223c   :  { %v3756_v45 = vadd.f32 1e-05, %v3754_v6 }
0x223d   :  { %v3753_v11 = vpop.xlane.xlu1 %3752 }
0x223e   :  { %4542 = vrsqrt.f32 %v3756_v45  ;;  %v3755_v50 = vmul.f32 0.03125, %v3753_v11 }
0x2240   :  { %v3757_v23 = vadd.f32 1e-05, %v3755_v50 }
0x2242   :  { %4544 = vrsqrt.f32 %v3757_v23 }
0x224b   :  { %v4543_v8 = vpop.eup %4542 }
0x224c   :  { %v3760_v60 = vmul.f32 %v4543_v8, %v3744_v17 }
0x224e   :  { %v3766_v35 = vmul.f32 %v3760_v60, %v2656_v22 }
0x224f   :  { %v4545_v59 = vpop.eup %4544 }
0x2250   :  { %v3772_v29 = vadd.f32 %v3766_v35, %v2662_v40  ;;  %v3761_v53 = vmul.f32 %v4545_v59, %v3745_v36 }
0x2252   :  { %3885 = vst.msk [vmem:[%s5617_s8 + $0x10] sm:$0xff] %vm103_vm4, %v3772_v29  ;;  %v3767_v15 = vmul.f32 %v3761_v53, %v2656_v22 }
0x2254   :  { %v3773_v51 = vadd.f32 %v3767_v15, %v2662_v40 }
0x2256   :  { %3886 = vst.msk [vmem:[%s5617_s8 + $0x18] sm:$0xff] %vm103_vm4, %v3773_v51 }

// kernel: whisper_asr_wrapper_forward.3
= control target key start
LH: loop header
LB: loop body
LE: loop exit
PB: predicated region body
PF: predicated region fallthrough
CT: control target
= control target key end

     0   :  { %vm57_vm0 = vcmask 261120   ;;  %s6782_s0 = inlined_call_operand.vmem [shape: f32[2,8,32], index: 0, kind: input, shape index: {}]   ;;  %s6783_s1 = inlined_call_operand.vmem [shape: f32[2,16,32], index: 1, kind: input, shape index: {}]   ;;  %s6784_s2 = inlined_call_operand.vmem [shape: f32[1,32,96], index: 2, kind: input, shape index: {}]   ;;  %s6785_s3 = inlined_call_operand.vmem [shape: f32[1,32,32], index: 3, kind: input, shape index: {}]   ;;  %s6786_s4 = inlined_call_operand.vmem [shape: f32[1,32,32], index: 4, kind: input, shape index: {}]   ;;  %s6787_s5 = inlined_call_operand.vmem [shape: f32[1,32,64], index: 5, kind: input, shape index: {}]   ;;  %s6788_s6 = inlined_call_operand.vmem [shape: f32[1,32,32], index: 6, kind: input, shape index: {}]   ;;  %s6789_s7 = inlined_call_operand.vmem [shape: f32[1,32,64], index: 7, kind: input, shape index: {}]   ;;  %s6790_s8 = inlined_call_operand.vmem [shape: f32[1,64,32], index: 8, kind: input, shape index: {}]   ;;  %s6791_s9 = inlined_call_operand.vmem [shape: f32[1,16,64], index: 9, kind: input, shape index: {}]   ;;  %s6792_s10 = inlined_call_operand.vmem [shape: f32[1,192,1], index: 10, kind: input, shape index: {}]   ;;  %s6793_s11 = inlined_call_operand.vmem [shape: f32[2,32], index: 11, kind: input, shape index: {}]   ;;  %s6794_s12 = inlined_call_operand.vmem [shape: f32[32,128], index: 12, kind: input, shape index: {}]   ;;  %s6795_s13 = inlined_call_operand.vmem [shape: s32[1,16], index: 13, kind: input, shape index: {}]   ;;  %s6796_s14 = inlined_call_operand.hbm [shape: f32[1,1], index: 14, kind: output, shape index: {0}]   ;;  %s6797_s15 = inlined_call_operand.vmem [shape: s32[1,16], index: 15, kind: output, shape index: {1}]  }
   0x1   :  { %v55_v0 = vld [vmem:[%s6782_s0] sm:$0xff] }
   0x2   :  { %21 = vsyncpa [#allocation4], 0  ;;  %58 = vst.msk [vmem:[#allocation2] sm:$0xff] %vm57_vm0, %v55_v0  ;;  %v60_v3 = vld [vmem:[%s6784_s2] sm:$0xff]  ;;  %v61_v4 = vld [vmem:[%s6784_s2 + $0x8] sm:$0xff]  ;;  %v5461_v16 = vmov 0   ;;  %v136_v21 = vlaneseq }
   0x3   :  { %v62_v5 = vld [vmem:[%s6784_s2 + $0x10] sm:$0xff]  ;;  %v146_v6 = vpack.c.bf16 %v61_v4, %v60_v3  ;;  %v63_v7 = vld [vmem:[%s6784_s2 + $0x18] sm:$0xff]  ;;  %v94_v15 = vld [vmem:[%s6792_s10] sm:$0xff]  ;;  %5330 = vset.pattern.permute.xlu0 %v5461_v16  ;;  %v6803_v39 = vmov 0.0   ;;  %vm5463_vm1 = vmmov 0   ;;  %vm355_vm2 = vcmask 1043456  }
   0x4   :  { %v147_v8 = vpack.c.bf16 %v63_v7, %v62_v5  ;;  %v98_v17 = vld [vmem:[%s6792_s10 + $0x20] sm:$0xff]  ;;  %v5579_v22 = vshrl.u32 %v136_v21, 7  ;;  %v95_v47 = vld [vmem:[%s6792_s10 + $0x8] sm:$0xff]  ;;  %vm351_vm3 = vcmask 64512   ;;  %v330_v57 = vand.u32 127, %v136_v21 }
   0x5   :  { %209 = vxpose.xlu1.c.b16.start [1/2] (short) (narrow) %v146_v6, 96  ;;  %v5587_v24 = vld [vmem:[%s6791_s9] sm:$0xff]  ;;  %v5464_v61 = vmov -1e+09   ;;  %vm1423_vm5 = vcmask 130048   ;;  %vm2206_vm6 = vcmask 523264  }
   0x6   :  { %6814 = vst [vmem:[#allocation6_spill] sm:$0xff] %v5579_v22  ;;  %v5582_v23 = vsub.s32 0, %v5579_v22  ;;  %v6798_v25 = vsub.s32 1, %v5579_v22  ;;  %vm331_vm4 = vcmp.ge.s32.totalorder %v5579_v22, %v330_v57  ;;  %v102_v6 = vld [vmem:[%s6792_s10 + $0x40] sm:$0xff]  ;;  %vm4461_vm8 = vcmask 122880  }
   0x7   :  { %v5657_v62 = vsel %vm331_vm4, 0.0, %v5464_v61 }
   0x8   :  { %6815 = vst [vmem:[#allocation7_spill] sm:$0xff] %v5582_v23  ;;  %v5592_v26 = vrot.slane %v5587_v24, %v5582_v23  ;;  %v5597_v29 = vrot.slane %v5587_v24, %v6798_v25 }
   0x9   :  { %v5551_v1 = vld [vmem:[#allocation2] sm:$0xff]  ;;  %210 = vxpose.xlu1.c.b16.end [2/2] (short) (narrow) %v147_v8, 96 }
   0xa   :  { %v122_v2 = vsel %vm57_vm0, %v5551_v1, 0.0 }
   0xb   :  { %123 = vadd.xlane.f32.xlu0 %v122_v2 }
   0xd   :  { %5331 = vset.pattern.permute.xlu1 %v5461_v16 }
  0x1d   :  { %171 = vperm.xlu1 %5331, %v98_v17  }
  0x67   :  { %v5569_v14 = vpop.trf.xlu1 }
  0x68   :  { %4910 = vmatprep.mubr.msk.bf16.mxu0 %vm57_vm0, %v5569_v14 }
  0x6b   :  { %v5604_v34 = vpop.trf.xlu1 }
  0x6f   :  { %v5606_v35 = vpop.trf.xlu1 }
  0x73   :  { %v5612_v36 = vpop.trf.xlu1 }
  0x77   :  { %v5616_v37 = vpop.trf.xlu1 }
  0x78   :  { %4918 = vmatprep.mubr.msk.bf16.mxu1 %vm57_vm0, %v5616_v37 }
  0x7b   :  { %v5620_v38 = vpop.trf.xlu1 }
  0x94   :  { %v124_v9 = vpop.xlane.xlu0 %123 }
  0x95   :  { %v126_v10 = vmul.f32 0.03125, %v124_v9 }
  0x97   :  { %v127_v11 = vsub.f32 %v5551_v1, %v126_v10 }
  0x98   :  { %v5642_v49 = vpop.permute.xlu1 %171 }
  0x99   :  { %v128_v12 = vmul.f32 %v127_v11, %v127_v11 }
  0x9b   :  { %v129_v13 = vsel %vm57_vm0, %v128_v12, 0.0  ;;  %v99_v12 = vld [vmem:[%s6792_s10 + $0x28] sm:$0xff] }
  0x9c   :  { %130 = vadd.xlane.f32.xlu0 %v129_v13 }
  0xb2   :  { %151 = vperm.xlu0 %5330, %v94_v15  }
 0x125   :  { %v131_v18 = vpop.xlane.xlu0 %130 }
 0x126   :  { %v132_v19 = vmul.f32 0.03125, %v131_v18 }
 0x128   :  { %v133_v20 = vadd.f32 1e-05, %v132_v19 }
 0x12a   :  { %5332 = vrsqrt.f32 %v133_v20 }
 0x12d   :  { %v5632_v41 = vpop.permute.xlu0 %151 }
 0x137   :  { %v5333_v27 = vpop.eup %5332 }
 0x138   :  { %v135_v28 = vmul.f32 %v5333_v27, %v127_v11 }
 0x13a   :  { %v140_v30 = vmul.f32 %v5592_v26, %v135_v28 }
 0x13c   :  { %v145_v31 = vadd.f32 %v5597_v29, %v140_v30 }
 0x13e   :  { %v148_v32 = vpack.c.bf16 %v145_v31, %v145_v31 }
 0x140   :  { %5316 = vmatprep.subr.msk.bf16.mxu0 %vm57_vm0, %v148_v32  ;;  %5317 = vmatprep.subr.msk.bf16.mxu1 %vm57_vm0, %v148_v32  ;;  %v244_v33 = vsel %vm57_vm0, %v148_v32, 0 }
 0x141   :  { %4909 = vmatpush3.bf16.xpose.msra.mxu0 %v244_v33  ;;  %5315 = vmatpush3.bf16.xpose.msra.mxu1 %v244_v33 }
 0x142   :  { %4922 = vmatprep.subr.bf16.mxu1 %v6803_v39  ;;  %4946 = vmatprep.subr.bf16.mxu0 %v6803_v39 }
 0x148   :  { %4911 = vmatmul.mubr.msk.bf16.vlgmr.msra.gmra.mxu0 %vm57_vm0, %v5604_v34  ;;  %4919 = vmatmul.mubr.msk.bf16.vlgmr.msra.gmra.mxu1 %vm57_vm0, %v5620_v38 }
 0x149   :  { %4914 = vmatprep.mubr.msk.bf16.mxu0 %vm57_vm0, %v5606_v35  ;;  %4924 = vmatprep.mubr.msk.bf16.mxu1 %vm5463_vm1, %v6803_v39 }
 0x150   :  { %4915 = vmatmul.mubr.msk.bf16.gmra.mxu0 %vm57_vm0, %v5612_v36 }
 0x151   :  { %4948 = vmatprep.mubr.msk.bf16.mxu0 %vm5463_vm1, %v6803_v39 }
 0x208   :  { %v5630_v40 = vpop.f32.mrf.mxu0  ;;  %v5650_v55 = vpop.f32.mrf.mxu1 }
 0x20a   :  { %v280_v42 = vpop.f32.mrf.mxu0  ;;  %v312_v56 = vpop.f32.mrf.mxu1 }
 0x20b   :  { %v281_v43 = vadd.f32 %v280_v42, %v5632_v41 }
 0x20c   :  { %v5635_v44 = vpop.f32.mrf.mxu0  ;;  %v5652_v58 = vpop.f32.mrf.mxu1 }
 0x20d   :  { %v333_v45 = vpack.c.bf16 %v281_v43, %v281_v43 }
 0x20e   :  { %v283_v46 = vpop.f32.mrf.mxu0  ;;  %v5655_v59 = vpop.f32.mrf.mxu1 }
 0x20f   :  { %335 = vxpose.xlu1.c.b16.start.end [1/1] (short) (narrow) %v333_v45, 16 }
 0x210   :  { %v5640_v48 = vpop.f32.mrf.mxu0 }
 0x212   :  { %v296_v50 = vpop.f32.mrf.mxu0 }
 0x213   :  { %156 = vperm.xlu1 %5331, %v95_v47   ;;  %v297_v51 = vadd.f32 %v296_v50, %v5642_v49 }
 0x214   :  { %v5671_v19 = vpop.f32.mrf.mxu0 }
 0x215   :  { %v334_v52 = vpack.c.bf16 %v297_v51, %v297_v51 }
 0x216   :  { %v299_v28 = vpop.f32.mrf.mxu0 }
 0x217   :  { %v357_v53 = vsel %vm355_vm2, %v334_v52, 0 }
 0x218   :  { %4923 = vmatpush3.bf16.msra.mxu1 %v357_v53 }
 0x219   :  { %4928 = vmatprep.subr.bf16.mxu1 %v6803_v39 }
 0x271   :  { %v343_v54 = vpop.trf.xlu1 }
 0x272   :  { %4925 = vmatmul.mubr.msk.bf16.vlgmr.msra.gmra.mxu1 %vm351_vm3, %v343_v54 }
 0x273   :  { %4930 = vmatprep.mubr.msk.bf16.mxu1 %vm5463_vm1, %v6803_v39 }
 0x28e   :  { %v5668_v13 = vpop.permute.xlu1 %156 }
 0x28f   :  { %v284_v15 = vadd.f32 %v283_v46, %v5668_v13 }
 0x291   :  { %v462_v16 = vpack.c.bf16 %v284_v15, %v284_v15 }
 0x332   :  { %v393_v60 = vpop.f32.mrf.mxu1 }
 0x333   :  { %v399_v63 = vmul.f32 0.35355338, %v393_v60 }
 0x334   :  { %v4926_v0 = vpop.f32.mrf.mxu1 }
 0x335   :  { %v400_v2 = vadd.f32 %v399_v63, %v5657_v62  ;;  %v103_v0 = vld [vmem:[%s6792_s10 + $0x48] sm:$0xff] }
 0x336   :  { %v396_v3 = vpop.f32.mrf.mxu1 }
 0x337   :  { %v401_v4 = vsel %vm351_vm3, %v400_v2, -inf }
 0x338   :  { %402 = vmax.xlane.f32.xlu0 %v401_v4  ;;  %v4927_v5 = vpop.f32.mrf.mxu1 }
 0x34e   :  { %191 = vperm.xlu0 %5330, %v102_v6  }
 0x3c1   :  { %v403_v7 = vpop.xlane.xlu0 %402 }
 0x3c2   :  { %v404_v8 = vsub.f32 %v400_v2, %v403_v7  ;;  %v100_v2 = vld [vmem:[%s6792_s10 + $0x30] sm:$0xff] }
 0x3c4   :  { %v405_v9 = vmul.f32 1.442695, %v404_v8  ;;  %v96_v8 = vld [vmem:[%s6792_s10 + $0x10] sm:$0xff] }
 0x3c6   :  { %5334 = vpow2.f32 %v405_v9 }
 0x3c9   :  { %v5675_v30 = vpop.permute.xlu0 %191 }
 0x3ca   :  { %v313_v33 = vadd.f32 %v312_v56, %v5675_v30 }
 0x3cc   :  { %v412_v43 = vpack.c.bf16 %v313_v33, %v313_v33 }
 0x3d3   :  { %v5335_v10 = vpop.eup %5334 }
 0x3d4   :  { %v407_v11 = vsel %vm351_vm3, %v5335_v10, 0.0 }
 0x3d5   :  { %408 = vadd.xlane.f32.xlu1 %v407_v11 }
 0x3e6   :  { %176 = vperm.xlu1 %5331, %v99_v12  }
 0x409   :  { %464 = vxpose.xlu1.c.b16.start.end [1/1] (short) (narrow) %v462_v16, 16 }
 0x45e   :  { %v409_v17 = vpop.xlane.xlu1 %408 }
 0x45f   :  { %5336 = vrcp.f32 %v409_v17 }
 0x462   :  { %v5673_v21 = vpop.permute.xlu1 %176 }
 0x463   :  { %v300_v31 = vadd.f32 %v299_v28, %v5673_v21 }
 0x465   :  { %v463_v42 = vpack.c.bf16 %v300_v31, %v300_v31 }
 0x467   :  { %v484_v45 = vsel %vm355_vm2, %v463_v42, 0 }
 0x46b   :  { %v472_v46 = vpop.trf.xlu1 }
 0x46c   :  { %v5337_v18 = vpop.eup %5336 }
 0x46d   :  { %v411_v20 = vmul.f32 %v5337_v18, %v5335_v10 }
 0x46f   :  { %v413_v27 = vpack.c.bf16 %v411_v20, %v411_v20 }
 0x471   :  { %v418_v32 = vsel %vm351_vm3, %v413_v27, 0 }
 0x472   :  { %4929 = vmatpush3.bf16.xpose.msra.mxu1 %v418_v32 }
 0x473   :  { %4934 = vmatprep.subr.bf16.mxu1 %v6803_v39 }
 0x479   :  { %4931 = vmatmul.mubr.msk.bf16.vlgmr.msra.gmra.mxu1 %vm351_vm3, %v412_v43 }
 0x47a   :  { %4935 = vmatpush3.bf16.msra.mxu1 %v484_v45  ;;  %4936 = vmatprep.mubr.msk.bf16.mxu1 %vm5463_vm1, %v6803_v39 }
 0x47b   :  { %4940 = vmatprep.subr.bf16.mxu1 %v6803_v39 }
 0x481   :  { %4937 = vmatmul.mubr.msk.bf16.vlgmr.msra.gmra.mxu1 %vm351_vm3, %v472_v46 }
 0x482   :  { %4942 = vmatprep.mubr.msk.bf16.mxu1 %vm5463_vm1, %v6803_v39 }
 0x539   :  { %v5689_v47 = vpop.f32.mrf.mxu1 }
 0x53b   :  { %v4932_v50 = vpop.f32.mrf.mxu1 }
 0x53d   :  { %v457_v51 = vpop.f32.mrf.mxu1 }
 0x53f   :  { %v4933_v52 = vpop.f32.mrf.mxu1 }
 0x541   :  { %v520_v53 = vpop.f32.mrf.mxu1 }
 0x542   :  { %v526_v54 = vmul.f32 0.35355338, %v520_v53 }
 0x543   :  { %v4938_v56 = vpop.f32.mrf.mxu1 }
 0x544   :  { %v527_v57 = vadd.f32 %v526_v54, %v5657_v62 }
 0x545   :  { %v523_v60 = vpop.f32.mrf.mxu1 }
 0x546   :  { %v528_v61 = vsel %vm351_vm3, %v527_v57, -inf }
 0x547   :  { %529 = vmax.xlane.f32.xlu0 %v528_v61  ;;  %v4939_v63 = vpop.f32.mrf.mxu1 }
 0x55d   :  { %196 = vperm.xlu0 %5330, %v103_v0  }
 0x561   :  { %181 = vperm.xlu0 %5330, %v100_v2  }
 0x5d0   :  { %v530_v3 = vpop.xlane.xlu0 %529 }
 0x5d1   :  { %v531_v4 = vsub.f32 %v527_v57, %v530_v3 }
 0x5d3   :  { %v532_v5 = vmul.f32 1.442695, %v531_v4 }
 0x5d5   :  { %5338 = vpow2.f32 %v532_v5 }
 0x5d8   :  { %v5707_v18 = vpop.permute.xlu0 %196 }
 0x5d9   :  { %v316_v27 = vadd.f32 %v5655_v59, %v5707_v18 }
 0x5db   :  { %v539_v28 = vpack.c.bf16 %v316_v27, %v316_v27  ;;  %v104_v27 = vld [vmem:[%s6792_s10 + $0x50] sm:$0xff] }
 0x5dc   :  { %v5724_v46 = vpop.permute.xlu0 %181 }
 0x5dd   :  { %v305_v50 = vadd.f32 %v5640_v48, %v5724_v46 }
 0x5df   :  { %v714_v51 = vpack.c.bf16 %v305_v50, %v305_v50 }
 0x5e1   :  { %v735_v53 = vsel %vm355_vm2, %v714_v51, 0 }
 0x5e2   :  { %v5339_v6 = vpop.eup %5338 }
 0x5e3   :  { %v534_v7 = vsel %vm351_vm3, %v5339_v6, 0.0 }
 0x5e4   :  { %535 = vadd.xlane.f32.xlu1 %v534_v7  ;;  %v101_v7 = vld [vmem:[%s6792_s10 + $0x38] sm:$0xff] }
 0x5f5   :  { %161 = vperm.xlu1 %5331, %v96_v8  }
 0x66d   :  { %v536_v9 = vpop.xlane.xlu1 %535 }
 0x66e   :  { %5340 = vrcp.f32 %v536_v9 }
 0x671   :  { %v5703_v10 = vpop.permute.xlu1 %161 }
 0x672   :  { %v289_v11 = vadd.f32 %v5630_v40, %v5703_v10  ;;  %v65_v40 = vld [vmem:[%s6785_s3 + $0x8] sm:$0xff] }
 0x673   :  { %v588_v31 = vpack.c.bf16 %v65_v40, %v65_v40 }
 0x674   :  { %v713_v12 = vpack.c.bf16 %v289_v11, %v289_v11 }
 0x675   :  { %v5720_v32 = vsel %vm355_vm2, %v588_v31, 0 }
 0x676   :  { %715 = vxpose.xlu1.c.b16.start.end [1/1] (short) (narrow) %v713_v12, 16  ;;  %4947 = vmatpush3.bf16.msra.mxu0 %v5720_v32 }
 0x677   :  { %4958 = vmatprep.subr.bf16.mxu0 %v6803_v39 }
 0x67b   :  { %v5341_v15 = vpop.eup %5340 }
 0x67c   :  { %v538_v16 = vmul.f32 %v5341_v15, %v5339_v6  ;;  %v97_v6 = vld [vmem:[%s6792_s10 + $0x18] sm:$0xff] }
 0x67e   :  { %v540_v17 = vpack.c.bf16 %v538_v16, %v538_v16 }
 0x680   :  { %v545_v20 = vsel %vm351_vm3, %v540_v17, 0 }
 0x681   :  { %4941 = vmatpush3.bf16.xpose.msra.mxu1 %v545_v20 }
 0x682   :  { %4952 = vmatprep.subr.bf16.mxu1 %v6803_v39 }
 0x688   :  { %4943 = vmatmul.mubr.msk.bf16.vlgmr.msra.gmra.mxu1 %vm351_vm3, %v539_v28  ;;  %v64_v28 = vld [vmem:[%s6785_s3] sm:$0xff] }
 0x689   :  { %4954 = vmatprep.mubr.msk.bf16.mxu1 %vm5463_vm1, %v6803_v39  ;;  %v461_v40 = vpack.c.bf16 %v64_v28, %v64_v28 }
 0x68b   :  { %v5758_v31 = vsel %vm355_vm2, %v461_v40, 0 }
 0x68c   :  { %4953 = vmatpush3.bf16.msra.mxu1 %v5758_v31 }
 0x68d   :  { %4964 = vmatprep.subr.bf16.mxu1 %v6803_v39 }
 0x6d8   :  { %v723_v54 = vpop.trf.xlu1 }
 0x748   :  { %v581_v59 = vpop.f32.mrf.mxu1 }
 0x749   :  { %v587_v33 = vpack.c.bf16 %v581_v59, %v581_v59 }
 0x74a   :  { %v4944_v42 = vpop.f32.mrf.mxu1 }
 0x74b   :  { %589 = vxpose.xlu0.c.b16.start.end [1/1] (short) (narrow) %v587_v33, 16 }
 0x74c   :  { %v584_v43 = vpop.f32.mrf.mxu1 }
 0x74e   :  { %v4945_v45 = vpop.f32.mrf.mxu1 }
 0x7ad   :  { %v597_v52 = vpop.trf.xlu0 }
 0x7ae   :  { %4949 = vmatmul.mubr.msk.bf16.vlgmr.msra.gmra.mxu0 %vm351_vm3, %v597_v52 }
 0x7af   :  { %4959 = vmatpush3.bf16.msra.mxu0 %v735_v53  ;;  %4960 = vmatprep.mubr.msk.bf16.mxu0 %vm5463_vm1, %v6803_v39 }
 0x7b0   :  { %4970 = vmatprep.subr.bf16.mxu0 %v6803_v39 }
 0x7b6   :  { %4961 = vmatmul.mubr.msk.bf16.vlgmr.msra.gmra.mxu0 %vm351_vm3, %v723_v54 }
 0x7b7   :  { %4972 = vmatprep.mubr.msk.bf16.mxu0 %vm5463_vm1, %v6803_v39 }
 0x86e   :  { %v5736_v56 = vpop.f32.mrf.mxu0 }
 0x870   :  { %v4950_v48 = vpop.f32.mrf.mxu0 }
 0x872   :  { %v648_v57 = vpop.f32.mrf.mxu0 }
 0x874   :  { %v4951_v60 = vpop.f32.mrf.mxu0 }
 0x876   :  { %v771_v61 = vpop.f32.mrf.mxu0 }
 0x877   :  { %v777_v63 = vmul.f32 0.35355338, %v771_v61 }
 0x878   :  { %v4962_v0 = vpop.f32.mrf.mxu0 }
 0x879   :  { %v778_v2 = vadd.f32 %v777_v63, %v5657_v62 }
 0x87a   :  { %v774_v3 = vpop.f32.mrf.mxu0 }
 0x87b   :  { %v779_v4 = vsel %vm351_vm3, %v778_v2, -inf }
 0x87c   :  { %780 = vmax.xlane.f32.xlu0 %v779_v4  ;;  %v4963_v5 = vpop.f32.mrf.mxu0 }
 0x892   :  { %166 = vperm.xlu0 %5330, %v97_v6  }
 0x896   :  { %186 = vperm.xlu0 %5330, %v101_v7  }
 0x905   :  { %v781_v8 = vpop.xlane.xlu0 %780 }
 0x906   :  { %v782_v9 = vsub.f32 %v778_v2, %v781_v8 }
 0x908   :  { %v783_v11 = vmul.f32 1.442695, %v782_v9 }
 0x90a   :  { %5342 = vpow2.f32 %v783_v11 }
 0x90d   :  { %v5746_v12 = vpop.permute.xlu0 %166 }
 0x90e   :  { %v292_v15 = vadd.f32 %v5635_v44, %v5746_v12  ;;  %v460_v44 = vpack.c.bf16 %v5689_v47, %v5689_v47 }
 0x910   :  { %v903_v16 = vpack.c.bf16 %v292_v15, %v292_v15 }
 0x911   :  { %v5769_v50 = vpop.permute.xlu0 %186 }
 0x912   :  { %905 = vxpose.xlu0.c.b16.start.end [1/1] (short) (narrow) %v903_v16, 16  ;;  %v308_v52 = vadd.f32 %v5671_v19, %v5769_v50  ;;  %v105_v16 = vld [vmem:[%s6792_s10 + $0x58] sm:$0xff] }
 0x914   :  { %v904_v54 = vpack.c.bf16 %v308_v52, %v308_v52 }
 0x916   :  { %v925_v57 = vsel %vm355_vm2, %v904_v54, 0 }
 0x917   :  { %v5343_v17 = vpop.eup %5342 }
 0x918   :  { %v785_v20 = vsel %vm351_vm3, %v5343_v17, 0.0 }
 0x919   :  { %786 = vadd.xlane.f32.xlu1 %v785_v20 }
 0x92a   :  { %201 = vperm.xlu1 %5331, %v104_v27  }
 0x94d   :  { %651 = vxpose.xlu1.c.b16.start.end [1/1] (short) (narrow) %v460_v44, 16  ;;  %v66_v44 = vld [vmem:[%s6785_s3 + $0x10] sm:$0xff] }
 0x974   :  { %v913_v19 = vpop.trf.xlu0 }
 0x9a2   :  { %v787_v59 = vpop.xlane.xlu1 %786 }
 0x9a3   :  { %5344 = vrcp.f32 %v787_v59  ;;  %v839_v59 = vpack.c.bf16 %v66_v44, %v66_v44 }
 0x9a6   :  { %v5764_v33 = vpop.permute.xlu1 %201 }
 0x9a7   :  { %v321_v53 = vadd.f32 %v5650_v55, %v5764_v33 }
 0x9a9   :  { %v790_v48 = vpack.c.bf16 %v321_v53, %v321_v53 }
 0x9af   :  { %v659_v42 = vpop.trf.xlu1 }
 0x9b0   :  { %v5345_v43 = vpop.eup %5344  ;;  %4955 = vmatmul.mubr.msk.bf16.vlgmr.msra.gmra.mxu1 %vm351_vm3, %v659_v42  ;;  %v5795_v42 = vsel %vm355_vm2, %v839_v59, 0 }
 0x9b1   :  { %v789_v45 = vmul.f32 %v5345_v43, %v5343_v17  ;;  %4966 = vmatprep.mubr.msk.bf16.mxu1 %vm5463_vm1, %v6803_v39  ;;  %4971 = vmatpush3.bf16.msra.mxu0 %v5795_v42 }
 0x9b2   :  { %4982 = vmatprep.subr.bf16.mxu0 %v6803_v39 }
 0x9b3   :  { %v791_v51 = vpack.c.bf16 %v789_v45, %v789_v45 }
 0x9b5   :  { %v796_v47 = vsel %vm351_vm3, %v791_v51, 0 }
 0x9b6   :  { %4965 = vmatpush3.bf16.xpose.msra.mxu1 %v796_v47 }
 0x9b7   :  { %4976 = vmatprep.subr.bf16.mxu1 %v6803_v39 }
 0x9bd   :  { %4967 = vmatmul.mubr.msk.bf16.vlgmr.msra.gmra.mxu1 %vm351_vm3, %v790_v48 }
 0x9be   :  { %4977 = vmatpush3.bf16.msra.mxu1 %v925_v57  ;;  %4978 = vmatprep.mubr.msk.bf16.mxu1 %vm5463_vm1, %v6803_v39 }
 0x9bf   :  { %4988 = vmatprep.subr.bf16.mxu1 %v6803_v39 }
 0x9c5   :  { %4979 = vmatmul.mubr.msk.bf16.vlgmr.msra.gmra.mxu1 %vm351_vm3, %v913_v19 }
 0x9c6   :  { %4990 = vmatprep.mubr.msk.bf16.mxu1 %vm5463_vm1, %v6803_v39 }
 0xa70   :  { %v707_v55 = vpop.f32.mrf.mxu1 }
 0xa72   :  { %v4956_v60 = vpop.f32.mrf.mxu1 }
 0xa73   :  { %v67_v60 = vld [vmem:[%s6785_s3 + $0x18] sm:$0xff] }
 0xa74   :  { %v710_v61 = vpop.f32.mrf.mxu1 }
 0xa75   :  { %v1029_v61 = vpack.c.bf16 %v67_v60, %v67_v60 }
 0xa76   :  { %v4957_v63 = vpop.f32.mrf.mxu1 }
 0xa77   :  { %v5812_v63 = vsel %vm355_vm2, %v1029_v61, 0 }
 0xa78   :  { %4989 = vmatpush3.bf16.msra.mxu1 %v5812_v63 }
 0xa7d   :  { %v832_v0 = vpop.f32.mrf.mxu1 }
 0xa7e   :  { %v838_v43 = vpack.c.bf16 %v832_v0, %v832_v0  ;;  %v708_v0 = vadd.f32 %v707_v55, %v5736_v56 }
 0xa7f   :  { %v4968_v2 = vpop.f32.mrf.mxu1 }
 0xa81   :  { %v835_v3 = vpop.f32.mrf.mxu1 }
 0xa83   :  { %v4969_v4 = vpop.f32.mrf.mxu1 }
 0xa85   :  { %v961_v5 = vpop.f32.mrf.mxu1 }
 0xa86   :  { %v967_v6 = vmul.f32 0.35355338, %v961_v5 }
 0xa87   :  { %v4980_v7 = vpop.f32.mrf.mxu1 }
 0xa88   :  { %v968_v8 = vadd.f32 %v967_v6, %v5657_v62 }
 0xa89   :  { %v964_v9 = vpop.f32.mrf.mxu1 }
 0xa8a   :  { %v969_v11 = vsel %vm351_vm3, %v968_v8, -inf }
 0xa8b   :  { %970 = vmax.xlane.f32.xlu0 %v969_v11  ;;  %v4981_v15 = vpop.f32.mrf.mxu1 }
 0xaa1   :  { %206 = vperm.xlu0 %5330, %v105_v16   ;;  %v1096_v16 = vsub.s32 6, %v5579_v22 }
 0xaa3   :  { %v5819_v56 = vrot.slane %v5587_v24, %v1096_v16 }
 0xb14   :  { %v971_v17 = vpop.xlane.xlu0 %970 }
 0xb15   :  { %v972_v20 = vsub.f32 %v968_v8, %v971_v17 }
 0xb17   :  { %v973_v27 = vmul.f32 1.442695, %v972_v20 }
 0xb19   :  { %5346 = vpow2.f32 %v973_v27 }
 0xb1c   :  { %v5802_v54 = vpop.permute.xlu0 %206 }
 0xb1d   :  { %v324_v57 = vadd.f32 %v5652_v58, %v5802_v54 }
 0xb1f   :  { %v980_v19 = vpack.c.bf16 %v324_v57, %v324_v57  ;;  %v111_v57 = vld [vmem:[%s6792_s10 + $0x88] sm:$0xff] }
 0xb26   :  { %v5347_v28 = vpop.eup %5346 }
 0xb27   :  { %v975_v40 = vsel %vm351_vm3, %v5347_v28, 0.0 }
 0xb28   :  { %976 = vadd.xlane.f32.xlu1 %v975_v40 }
 0xb55   :  { %840 = vxpose.xlu1.c.b16.start.end [1/1] (short) (narrow) %v838_v43, 16  ;;  %v68_v43 = vld [vmem:[%s6786_s4] sm:$0xff] }
 0xbb1   :  { %v977_v45 = vpop.xlane.xlu1 %976 }
 0xbb2   :  { %5348 = vrcp.f32 %v977_v45  ;;  %v69_v45 = vld [vmem:[%s6786_s4 + $0x8] sm:$0xff] }
 0xbb7   :  { %v848_v51 = vpop.trf.xlu1 }
 0xbb8   :  { %4973 = vmatmul.mubr.msk.bf16.vlgmr.msra.gmra.mxu0 %vm351_vm3, %v848_v51  ;;  %v1122_v51 = vpack.c.bf16 %v69_v45, %v68_v43  ;;  %v1119_v45 = vsub.s32 3, %v5579_v22 }
 0xbb9   :  { %4984 = vmatprep.mubr.msk.bf16.mxu0 %vm5463_vm1, %v6803_v39 }
 0xbbf   :  { %v5349_v52 = vpop.eup %5348 }
 0xbc0   :  { %v979_v47 = vmul.f32 %v5349_v52, %v5347_v28  ;;  %v71_v52 = vld [vmem:[%s6786_s4 + $0x18] sm:$0xff] }
 0xbc2   :  { %v981_v53 = vpack.c.bf16 %v979_v47, %v979_v47 }
 0xbc4   :  { %v986_v48 = vsel %vm351_vm3, %v981_v53, 0  ;;  %v106_v53 = vld [vmem:[%s6792_s10 + $0x60] sm:$0xff] }
 0xbc5   :  { %4983 = vmatpush3.bf16.xpose.msra.mxu0 %v986_v48  ;;  %v107_v48 = vld [vmem:[%s6792_s10 + $0x68] sm:$0xff] }
 0xbcc   :  { %4985 = vmatmul.mubr.msk.bf16.vlgmr.msra.gmra.mxu0 %vm351_vm3, %v980_v19 }
 0xc78   :  { %v896_v2 = vpop.f32.mrf.mxu0 }
 0xc79   :  { %v902_v3 = vadd.f32 %v896_v2, %v708_v0 }
 0xc7a   :  { %v4974_v4 = vpop.f32.mrf.mxu0 }
 0xc7b   :  { %v119_v4 = vld [vmem:[%s6783_s1] sm:$0xff] }
 0xc7c   :  { %v899_v5 = vpop.f32.mrf.mxu0 }
 0xc7d   :  { %v120_v5 = vld [vmem:[%s6783_s1 + $0x8] sm:$0xff] }
 0xc7e   :  { %v4975_v58 = vpop.f32.mrf.mxu0 }
 0xc7f   :  { %v1221_v58 = vpack.c.bf16 %v120_v5, %v119_v4 }
 0xc81   :  { %5319 = vmatprep.subr.msk.bf16.mxu1 %vm57_vm0, %v1221_v58 }
 0xc8c   :  { %v1022_v6 = vpop.f32.mrf.mxu0 }
 0xc8d   :  { %v1028_v7 = vpack.c.bf16 %v1022_v6, %v1022_v6  ;;  %v1291_v6 = vsel %vm57_vm0, %v1221_v58, 0 }
 0xc8e   :  { %v4986_v8 = vpop.f32.mrf.mxu0 }
 0xc8f   :  { %1030 = vxpose.xlu0.c.b16.start.end [1/1] (short) (narrow) %v1028_v7, 16  ;;  %v72_v7 = vld [vmem:[%s6787_s5] sm:$0xff]  ;;  %v73_v8 = vld [vmem:[%s6787_s5 + $0x8] sm:$0xff] }
 0xc90   :  { %v1025_v9 = vpop.f32.mrf.mxu0 }
 0xc91   :  { %v1219_v9 = vpack.c.bf16 %v73_v8, %v72_v7 }
 0xc92   :  { %v4987_v11 = vpop.f32.mrf.mxu0 }
 0xc93   :  { %v74_v11 = vld [vmem:[%s6787_s5 + $0x10] sm:$0xff] }
 0xcf1   :  { %v1038_v15 = vpop.trf.xlu0 }
 0xcf2   :  { %4991 = vmatmul.mubr.msk.bf16.vlgmr.msra.gmra.mxu1 %vm351_vm3, %v1038_v15  ;;  %v75_v15 = vld [vmem:[%s6787_s5 + $0x18] sm:$0xff] }
 0xcf3   :  { %5001 = vmatpush3.bf16.xpose.msra.mxu1 %v1291_v6  ;;  %v1220_v16 = vpack.c.bf16 %v75_v15, %v74_v11 }
 0xcf4   :  { %5022 = vmatprep.subr.bf16.mxu1 %v6803_v39 }
 0xdb2   :  { %v1086_v17 = vpop.f32.mrf.mxu1 }
 0xdb3   :  { %v1092_v20 = vadd.f32 %v1086_v17, %v902_v3  ;;  %v110_v17 = vld [vmem:[%s6792_s10 + $0x80] sm:$0xff] }
 0xdb4   :  { %v4992_v55 = vpop.f32.mrf.mxu1 }
 0xdb5   :  { %v1093_v27 = vadd.f32 %v1092_v20, %v5551_v1  ;;  %v70_v1 = vld [vmem:[%s6786_s4 + $0x10] sm:$0xff] }
 0xdb6   :  { %v1089_v28 = vpop.f32.mrf.mxu1  ;;  %v1123_v47 = vpack.c.bf16 %v71_v52, %v70_v1 }
 0xdb7   :  { %v5823_v40 = vadd.f32 %v5819_v56, %v1093_v27 }
 0xdb8   :  { %v4993_v44 = vpop.f32.mrf.mxu1 }
 0xdb9   :  { %v1099_v59 = vsel %vm57_vm0, %v5823_v40, 0.0 }
 0xdba   :  { %1100 = vadd.xlane.f32.xlu1 %v1099_v59  ;;  %v1114_v59 = vsub.s32 2, %v5579_v22 }
 0xde7   :  { %1145 = vxpose.xlu1.c.b16.start [1/2] (short) (narrow) %v1122_v51, 32  ;;  %v5893_v51 = vrot.slane %v5587_v24, %v1114_v59 }
 0xdeb   :  { %1146 = vxpose.xlu1.c.b16.end [2/2] (short) (narrow) %v1123_v47, 32 }
 0xdef   :  { %1127 = vperm.xlu1 %5331, %v106_v53   ;;  %v5898_v53 = vrot.slane %v5587_v24, %v1119_v45 }
 0xdf3   :  { %1132 = vperm.xlu1 %5331, %v107_v48  }
 0xdf7   :  { %1229 = vperm.xlu1 %5331, %v111_v57  }
 0xe43   :  { %v1101_v19 = vpop.xlane.xlu1 %1100 }
 0xe44   :  { %v1102_v60 = vmul.f32 0.03125, %v1101_v19 }
 0xe46   :  { %v1103_v61 = vsub.f32 %v5823_v40, %v1102_v60 }
 0xe48   :  { %v1104_v0 = vmul.f32 %v1103_v61, %v1103_v61 }
 0xe49   :  { %v5849_v2 = vpop.trf.xlu1 }
 0xe4a   :  { %v1105_v3 = vsel %vm57_vm0, %v1104_v0, 0.0  ;;  %4996 = vmatprep.mubr.msk.bf16.mxu0 %vm57_vm0, %v5849_v2 }
 0xe4b   :  { %1106 = vadd.xlane.f32.xlu0 %v1105_v3 }
 0xe4d   :  { %v5909_v24 = vpop.trf.xlu1 }
 0xe78   :  { %1262 = vxpose.xlu0.c.b16.start [1/2] (short) (narrow) %v1219_v9, 64 }
 0xe7c   :  { %1263 = vxpose.xlu0.c.b16.end [2/2] (short) (narrow) %v1220_v16, 64 }
 0xe8d   :  { %1224 = vperm.xlu0 %5330, %v110_v17  }
 0xed4   :  { %v1107_v20 = vpop.xlane.xlu0 %1106 }
 0xed5   :  { %v1108_v55 = vmul.f32 0.03125, %v1107_v20 }
 0xed7   :  { %v1109_v27 = vadd.f32 1e-05, %v1108_v55 }
 0xed9   :  { %5350 = vrsqrt.f32 %v1109_v27 }
 0xeda   :  { %v5878_v28 = vpop.trf.xlu0 }
 0xedb   :  { %5002 = vmatprep.mubr.msk.bf16.mxu1 %vm57_vm0, %v5878_v28 }
 0xede   :  { %v5882_v44 = vpop.trf.xlu0 }
 0xedf   :  { %5003 = vmatmul.mubr.msk.bf16.vlgmr.msra.gmra.mxu1 %vm57_vm0, %v5882_v44 }
 0xee2   :  { %v5887_v43 = vpop.trf.xlu0 }
 0xee3   :  { %5006 = vmatprep.mubr.msk.bf16.mxu1 %vm57_vm0, %v5887_v43 }
 0xee6   :  { %v5351_v1 = vpop.eup %5350  ;;  %v5895_v52 = vpop.trf.xlu0 }
 0xee7   :  { %v1111_v47 = vmul.f32 %v5351_v1, %v1103_v61  ;;  %5007 = vmatmul.mubr.msk.bf16.gmra.mxu1 %vm57_vm0, %v5895_v52  ;;  %v5915_v61 = vpop.permute.xlu1 %1127 }
 0xee8   :  { %5024 = vmatprep.mubr.msk.bf16.mxu1 %vm5463_vm1, %v6803_v39  ;;  %6816 = vst [vmem:[#allocation8_spill] sm:$0xff] %v5915_v61 }
 0xee9   :  { %v1116_v48 = vmul.f32 %v5893_v51, %v1111_v47 }
 0xeeb   :  { %v1121_v57 = vadd.f32 %v5898_v53, %v1116_v48  ;;  %v5917_v0 = vpop.permute.xlu1 %1132 }
 0xeec   :  { %6817 = vst [vmem:[#allocation9_spill] sm:$0xff] %v5917_v0 }
 0xeed   :  { %v1124_v19 = vpack.c.bf16 %v1121_v57, %v1121_v57 }
 0xeef   :  { %5318 = vmatprep.subr.msk.bf16.mxu0 %vm57_vm0, %v1124_v19  ;;  %v1168_v60 = vsel %vm57_vm0, %v1124_v19, 0  ;;  %v5926_v8 = vpop.permute.xlu1 %1229 }
 0xef0   :  { %4995 = vmatpush3.bf16.xpose.msra.mxu0 %v1168_v60 }
 0xef1   :  { %5010 = vmatprep.subr.bf16.mxu0 %v6803_v39 }
 0xef7   :  { %4997 = vmatmul.mubr.msk.bf16.vlgmr.msra.gmra.mxu0 %vm57_vm0, %v5909_v24 }
 0xef8   :  { %5012 = vmatprep.mubr.msk.bf16.mxu0 %vm5463_vm1, %v6803_v39 }
 0xf08   :  { %v5921_v4 = vpop.permute.xlu0 %1224 }
 0xf9f   :  { %v5919_v3 = vpop.f32.mrf.mxu1 }
 0xfa1   :  { %v1327_v5 = vpop.f32.mrf.mxu1 }
 0xfa2   :  { %v1328_v58 = vadd.f32 %v1327_v5, %v5921_v4 }
 0xfa3   :  { %v5924_v6 = vpop.f32.mrf.mxu1 }
 0xfa4   :  { %v1359_v7 = vpack.c.bf16 %v1328_v58, %v1328_v58 }
 0xfa5   :  { %v1330_v9 = vpop.f32.mrf.mxu1 }
 0xfa6   :  { %v1380_v11 = vsel %vm355_vm2, %v1359_v7, 0  ;;  %v1331_v15 = vadd.f32 %v1330_v9, %v5926_v8 }
 0xfa7   :  { %5011 = vmatpush3.bf16.msra.mxu0 %v1380_v11  ;;  %v5945_v60 = vpop.f32.mrf.mxu1 }
 0xfa8   :  { %v1486_v16 = vpack.c.bf16 %v1331_v15, %v1331_v15  ;;  %5016 = vmatprep.subr.bf16.mxu0 %v6803_v39 }
 0xfa9   :  { %v1343_v5 = vpop.f32.mrf.mxu1 }
 0xfaa   :  { %v1507_v17 = vsel %vm355_vm2, %v1486_v16, 0 }
 0xfab   :  { %5023 = vmatpush3.bf16.msra.mxu1 %v1507_v17  ;;  %v5947_v58 = vpop.f32.mrf.mxu1 }
 0xfac   :  { %5034 = vmatprep.subr.bf16.mxu1 %v6803_v39 }
 0xfad   :  { %v1346_v11 = vpop.f32.mrf.mxu1 }
 0xfb7   :  { %v5933_v20 = vpop.f32.mrf.mxu0 }
 0xfb9   :  { %v1204_v55 = vpop.f32.mrf.mxu0 }
 0xfba   :  { %v1205_v27 = vadd.f32 %v1204_v55, %v5915_v61 }
 0xfbb   :  { %v5936_v59 = vpop.f32.mrf.mxu0 }
 0xfbc   :  { %v1358_v45 = vpack.c.bf16 %v1205_v27, %v1205_v27 }
 0xfbd   :  { %v1207_v1 = vpop.f32.mrf.mxu0 }
 0xfbe   :  { %v1208_v47 = vadd.f32 %v1207_v1, %v5917_v0  ;;  %1360 = vxpose.xlu1.c.b16.start.end [1/1] (short) (narrow) %v1358_v45, 16 }
 0xfc0   :  { %v1485_v48 = vpack.c.bf16 %v1208_v47, %v1208_v47 }
 0xfc2   :  { %1487 = vxpose.xlu0.c.b16.start.end [1/1] (short) (narrow) %v1485_v48, 16 }
0x1020   :  { %v1368_v57 = vpop.trf.xlu1 }
0x1021   :  { %5013 = vmatmul.mubr.msk.bf16.vlgmr.msra.gmra.mxu0 %vm351_vm3, %v1368_v57 }
0x1022   :  { %5018 = vmatprep.mubr.msk.bf16.mxu0 %vm5463_vm1, %v6803_v39 }
0x1024   :  { %v1495_v19 = vpop.trf.xlu0 }
0x1025   :  { %5025 = vmatmul.mubr.msk.bf16.vlgmr.msra.gmra.mxu1 %vm351_vm3, %v1495_v19  ;;  %v114_v19 = vld [vmem:[%s6792_s10 + $0xa0] sm:$0xff] }
0x1026   :  { %5036 = vmatprep.mubr.msk.bf16.mxu1 %vm5463_vm1, %v6803_v39 }
0x10e1   :  { %v1416_v7 = vpop.f32.mrf.mxu0 }
0x10e2   :  { %v1422_v9 = vmul.f32 0.35355338, %v1416_v7  ;;  %v112_v7 = vld [vmem:[%s6792_s10 + $0x90] sm:$0xff] }
0x10e3   :  { %v5014_v15 = vpop.f32.mrf.mxu0 }
0x10e4   :  { %v1424_v16 = vsel %vm1423_vm5, %v1422_v9, -inf }
0x10e5   :  { %v1543_v17 = vpop.f32.mrf.mxu1  ;;  %1425 = vmax.xlane.f32.xlu1 %v1424_v16  ;;  %v1419_v55 = vpop.f32.mrf.mxu0 }
0x10e6   :  { %v1549_v27 = vmul.f32 0.35355338, %v1543_v17 }
0x10e7   :  { %v5015_v45 = vpop.f32.mrf.mxu0  ;;  %v5026_v1 = vpop.f32.mrf.mxu1 }
0x10e8   :  { %v1550_v47 = vsel %vm1423_vm5, %v1549_v27, -inf }
0x10e9   :  { %1551 = vmax.xlane.f32.xlu0 %v1550_v47  ;;  %v1546_v48 = vpop.f32.mrf.mxu1 }
0x10eb   :  { %v5027_v57 = vpop.f32.mrf.mxu1 }
0x10ff   :  { %1244 = vperm.xlu0 %5330, %v114_v19  }
0x1103   :  { %1234 = vperm.xlu0 %5330, %v112_v7   ;;  %v115_v7 = vld [vmem:[%s6792_s10 + $0xa8] sm:$0xff] }
0x116e   :  { %v1426_v15 = vpop.xlane.xlu1 %1425 }
0x116f   :  { %v1427_v16 = vsub.f32 %v1422_v9, %v1426_v15  ;;  %v108_v9 = vld [vmem:[%s6792_s10 + $0x70] sm:$0xff] }
0x1171   :  { %v1428_v17 = vmul.f32 1.442695, %v1427_v16 }
0x1172   :  { %v1552_v55 = vpop.xlane.xlu0 %1551 }
0x1173   :  { %5352 = vpow2.f32 %v1428_v17  ;;  %v1553_v45 = vsub.f32 %v1549_v27, %v1552_v55 }
0x1175   :  { %v1554_v1 = vmul.f32 1.442695, %v1553_v45 }
0x1177   :  { %5354 = vpow2.f32 %v1554_v1 }
0x117a   :  { %v5971_v25 = vpop.permute.xlu0 %1244 }
0x1180   :  { %v5353_v47 = vpop.eup %5352 }
0x1181   :  { %v1430_v48 = vsel %vm1423_vm5, %v5353_v47, 0.0 }
0x1182   :  { %1431 = vadd.xlane.f32.xlu1 %v1430_v48 }
0x1184   :  { %v5355_v57 = vpop.eup %5354 }
0x1185   :  { %v1556_v19 = vsel %vm1423_vm5, %v5355_v57, 0.0 }
0x1186   :  { %1557 = vadd.xlane.f32.xlu1 %v1556_v19 }
0x1197   :  { %1249 = vperm.xlu1 %5331, %v115_v7  }
0x119b   :  { %1137 = vperm.xlu1 %5331, %v108_v9  }
0x120b   :  { %v1432_v27 = vpop.xlane.xlu1 %1431 }
0x120c   :  { %5356 = vrcp.f32 %v1432_v27 }
0x120f   :  { %v1558_v15 = vpop.xlane.xlu1 %1557 }
0x1210   :  { %5358 = vrcp.f32 %v1558_v15  ;;  %v1344_v15 = vadd.f32 %v1343_v5, %v5971_v25 }
0x1212   :  { %v1435_v61 = vpack.c.bf16 %v1344_v15, %v1344_v15 }
0x1213   :  { %v5965_v16 = vpop.permute.xlu1 %1249 }
0x1217   :  { %v5967_v17 = vpop.permute.xlu1 %1137 }
0x1218   :  { %v1213_v55 = vadd.f32 %v5933_v20, %v5967_v17 }
0x1219   :  { %v5357_v45 = vpop.eup %5356 }
0x121a   :  { %v1735_v1 = vpack.c.bf16 %v1213_v55, %v1213_v55  ;;  %v1434_v48 = vmul.f32 %v5357_v45, %v5353_v47  ;;  %v1347_v47 = vadd.f32 %v1346_v11, %v5965_v16 }
0x121c   :  { %1737 = vxpose.xlu0.c.b16.start.end [1/1] (short) (narrow) %v1735_v1, 16  ;;  %v1436_v19 = vpack.c.bf16 %v1434_v48, %v1434_v48 }
0x121d   :  { %v5359_v7 = vpop.eup %5358 }
0x121e   :  { %v1441_v9 = vsel %vm1423_vm5, %v1436_v19, 0  ;;  %v1560_v27 = vmul.f32 %v5359_v7, %v5355_v57  ;;  %v1561_v57 = vpack.c.bf16 %v1347_v47, %v1347_v47 }
0x121f   :  { %5017 = vmatpush3.bf16.xpose.msra.mxu0 %v1441_v9 }
0x1220   :  { %5028 = vmatprep.subr.bf16.mxu0 %v6803_v39  ;;  %v1562_v0 = vpack.c.bf16 %v1560_v27, %v1560_v27  ;;  %v116_v27 = vld [vmem:[%s6792_s10 + $0xb0] sm:$0xff] }
0x1222   :  { %v1567_v20 = vsel %vm1423_vm5, %v1562_v0, 0 }
0x1226   :  { %5019 = vmatmul.mubr.msk.bf16.vlgmr.msra.gmra.mxu0 %vm1423_vm5, %v1435_v61  ;;  %v77_v61 = vld [vmem:[%s6788_s6 + $0x8] sm:$0xff] }
0x1227   :  { %5029 = vmatpush3.bf16.xpose.msra.mxu0 %v1567_v20  ;;  %5030 = vmatprep.mubr.msk.bf16.mxu0 %vm5463_vm1, %v6803_v39  ;;  %v1610_v5 = vpack.c.bf16 %v77_v61, %v77_v61  ;;  %v5996_v20 = vpop.permute.xlu0 %1234 }
0x1228   :  { %5040 = vmatprep.subr.bf16.mxu0 %v6803_v39  ;;  %v1336_v47 = vadd.f32 %v5919_v3, %v5996_v20 }
0x1229   :  { %v5989_v0 = vsel %vm355_vm2, %v1610_v5, 0 }
0x122a   :  { %5035 = vmatpush3.bf16.msra.mxu1 %v5989_v0 }
0x122b   :  { %5046 = vmatprep.subr.bf16.mxu1 %v6803_v39 }
0x122e   :  { %5031 = vmatmul.mubr.msk.bf16.vlgmr.msra.gmra.mxu0 %vm1423_vm5, %v1561_v57  ;;  %v1736_v57 = vpack.c.bf16 %v1336_v47, %v1336_v47 }
0x122f   :  { %5042 = vmatprep.mubr.msk.bf16.mxu0 %vm5463_vm1, %v6803_v39 }
0x1230   :  { %v1757_v5 = vsel %vm355_vm2, %v1736_v57, 0  ;;  %v76_v57 = vld [vmem:[%s6788_s6] sm:$0xff] }
0x12e6   :  { %v1477_v11 = vpop.f32.mrf.mxu0 }
0x12e8   :  { %v5020_v55 = vpop.f32.mrf.mxu0 }
0x12e9   :  { %v1745_v55 = vpop.trf.xlu0 }
0x12ea   :  { %v1480_v45 = vpop.f32.mrf.mxu0 }
0x12ec   :  { %v5021_v1 = vpop.f32.mrf.mxu0 }
0x12ee   :  { %v1603_v48 = vpop.f32.mrf.mxu0 }
0x12ef   :  { %v1609_v19 = vpack.c.bf16 %v1603_v48, %v1603_v48 }
0x12f0   :  { %v5032_v7 = vpop.f32.mrf.mxu0 }
0x12f1   :  { %1611 = vxpose.xlu1.c.b16.start.end [1/1] (short) (narrow) %v1609_v19, 16 }
0x12f2   :  { %v1606_v9 = vpop.f32.mrf.mxu0 }
0x12f4   :  { %v5033_v15 = vpop.f32.mrf.mxu0 }
0x12f5   :  { %1254 = vperm.xlu1 %5331, %v116_v27  }
0x1353   :  { %v1619_v61 = vpop.trf.xlu1 }
0x1354   :  { %5037 = vmatmul.mubr.msk.bf16.vlgmr.msra.gmra.mxu1 %vm351_vm3, %v1619_v61  ;;  %v1484_v61 = vpack.c.bf16 %v76_v57, %v76_v57 }
0x1355   :  { %5047 = vmatpush3.bf16.msra.mxu1 %v1757_v5  ;;  %5048 = vmatprep.mubr.msk.bf16.mxu1 %vm5463_vm1, %v6803_v39  ;;  %v109_v5 = vld [vmem:[%s6792_s10 + $0x78] sm:$0xff] }
0x1356   :  { %5058 = vmatprep.subr.bf16.mxu1 %v6803_v39 }
0x135c   :  { %5049 = vmatmul.mubr.msk.bf16.vlgmr.msra.gmra.mxu1 %vm351_vm3, %v1745_v55  ;;  %v6018_v55 = vsel %vm355_vm2, %v1484_v61, 0 }
0x135d   :  { %5060 = vmatprep.mubr.msk.bf16.mxu1 %vm5463_vm1, %v6803_v39  ;;  %5041 = vmatpush3.bf16.msra.mxu0 %v6018_v55 }
0x135e   :  { %5052 = vmatprep.subr.bf16.mxu0 %v6803_v39 }
0x1370   :  { %v6033_v61 = vpop.permute.xlu1 %1254 }
0x1371   :  { %6818 = vst [vmem:[#allocation10_spill] sm:$0xff] %v6033_v61 }
0x1414   :  { %v6008_v45 = vpop.f32.mrf.mxu1 }
0x1416   :  { %v5038_v3 = vpop.f32.mrf.mxu1 }
0x1417   :  { %v1483_v3 = vpack.c.bf16 %v1477_v11, %v1477_v11  ;;  %v113_v11 = vld [vmem:[%s6792_s10 + $0x98] sm:$0xff] }
0x1418   :  { %v1670_v1 = vpop.f32.mrf.mxu1 }
0x141a   :  { %v5039_v48 = vpop.f32.mrf.mxu1 }
0x141c   :  { %v1793_v19 = vpop.f32.mrf.mxu1 }
0x141d   :  { %v1799_v7 = vmul.f32 0.35355338, %v1793_v19 }
0x141e   :  { %v5050_v9 = vpop.f32.mrf.mxu1 }
0x141f   :  { %v1800_v27 = vsel %vm1423_vm5, %v1799_v7, -inf }
0x1420   :  { %1801 = vmax.xlane.f32.xlu0 %v1800_v27  ;;  %v1796_v15 = vpop.f32.mrf.mxu1 }
0x1422   :  { %v5051_v47 = vpop.f32.mrf.mxu1 }
0x1436   :  { %1142 = vperm.xlu0 %5330, %v109_v5  }
0x1454   :  { %1673 = vxpose.xlu0.c.b16.start.end [1/1] (short) (narrow) %v1483_v3, 16 }
0x14a9   :  { %v1802_v1 = vpop.xlane.xlu0 %1801 }
0x14aa   :  { %v1803_v48 = vsub.f32 %v1799_v7, %v1802_v1 }
0x14ac   :  { %v1804_v19 = vmul.f32 1.442695, %v1803_v48 }
0x14ae   :  { %5360 = vpow2.f32 %v1804_v19 }
0x14b1   :  { %v6022_v9 = vpop.permute.xlu0 %1142 }
0x14b2   :  { %v1216_v7 = vadd.f32 %v5936_v59, %v6022_v9  ;;  %v1352_v59 = vadd.f32 %v5945_v60, %v6033_v61 }
0x14b4   :  { %v1924_v57 = vpack.c.bf16 %v1216_v7, %v1216_v7  ;;  %v1811_v7 = vpack.c.bf16 %v1352_v59, %v1352_v59 }
0x14b6   :  { %v1681_v27 = vpop.trf.xlu0 }
0x14b7   :  { %5043 = vmatmul.mubr.msk.bf16.vlgmr.msra.gmra.mxu0 %vm351_vm3, %v1681_v27 }
0x14b8   :  { %5054 = vmatprep.mubr.msk.bf16.mxu0 %vm5463_vm1, %v6803_v39 }
0x14bb   :  { %v5361_v15 = vpop.eup %5360 }
0x14bc   :  { %v1806_v47 = vsel %vm1423_vm5, %v5361_v15, 0.0 }
0x14bd   :  { %1807 = vadd.xlane.f32.xlu1 %v1806_v47 }
0x14ce   :  { %1239 = vperm.xlu1 %5331, %v113_v11  }
0x14f1   :  { %1926 = vxpose.xlu1.c.b16.start.end [1/1] (short) (narrow) %v1924_v57, 16 }
0x1546   :  { %v1808_v5 = vpop.xlane.xlu1 %1807 }
0x1547   :  { %5362 = vrcp.f32 %v1808_v5 }
0x154a   :  { %v6035_v48 = vpop.permute.xlu1 %1239 }
0x154b   :  { %6819 = vst [vmem:[#allocation11_spill] sm:$0xff] %v6035_v48  ;;  %v1339_v27 = vadd.f32 %v5924_v6, %v6035_v48 }
0x154d   :  { %v1925_v11 = vpack.c.bf16 %v1339_v27, %v1339_v27 }
0x1553   :  { %v1934_v6 = vpop.trf.xlu1 }
0x1554   :  { %v5363_v3 = vpop.eup %5362 }
0x1555   :  { %v1810_v1 = vmul.f32 %v5363_v3, %v5361_v15  ;;  %v1946_v15 = vsel %vm355_vm2, %v1925_v11, 0 }
0x1557   :  { %v1812_v19 = vpack.c.bf16 %v1810_v1, %v1810_v1 }
0x1559   :  { %v1817_v47 = vsel %vm1423_vm5, %v1812_v19, 0 }
0x155a   :  { %5053 = vmatpush3.bf16.xpose.msra.mxu0 %v1817_v47 }
0x155b   :  { %5064 = vmatprep.subr.bf16.mxu0 %v6803_v39 }
0x1561   :  { %5055 = vmatmul.mubr.msk.bf16.vlgmr.msra.gmra.mxu0 %vm1423_vm5, %v1811_v7 }
0x1562   :  { %5065 = vmatpush3.bf16.msra.mxu0 %v1946_v15  ;;  %5066 = vmatprep.mubr.msk.bf16.mxu0 %vm5463_vm1, %v6803_v39 }
0x1563   :  { %5076 = vmatprep.subr.bf16.mxu0 %v6803_v39 }
0x1569   :  { %5067 = vmatmul.mubr.msk.bf16.vlgmr.msra.gmra.mxu0 %vm351_vm3, %v1934_v6  ;;  %v117_v6 = vld [vmem:[%s6792_s10 + $0xb8] sm:$0xff] }
0x156a   :  { %5078 = vmatprep.mubr.msk.bf16.mxu0 %vm5463_vm1, %v6803_v39 }
0x1577   :  { %v1729_v60 = vpop.f32.mrf.mxu0 }
0x1579   :  { %v5044_v57 = vpop.f32.mrf.mxu0 }
0x157b   :  { %v1732_v5 = vpop.f32.mrf.mxu0 }
0x157d   :  { %v5045_v3 = vpop.f32.mrf.mxu0 }
0x1621   :  { %v1853_v1 = vpop.f32.mrf.mxu0 }
0x1623   :  { %v5056_v19 = vpop.f32.mrf.mxu0 }
0x1625   :  { %v1856_v27 = vpop.f32.mrf.mxu0 }
0x1627   :  { %v5057_v47 = vpop.f32.mrf.mxu0 }
0x1628   :  { %v78_v47 = vld [vmem:[%s6788_s6 + $0x10] sm:$0xff] }
0x1629   :  { %v1982_v59 = vpop.f32.mrf.mxu0 }
0x162a   :  { %v1988_v11 = vmul.f32 0.35355338, %v1982_v59  ;;  %v1860_v59 = vpack.c.bf16 %v78_v47, %v78_v47 }
0x162b   :  { %v5068_v7 = vpop.f32.mrf.mxu0 }
0x162c   :  { %v1989_v15 = vsel %vm1423_vm5, %v1988_v11, -inf }
0x162d   :  { %1990 = vmax.xlane.f32.xlu0 %v1989_v15  ;;  %v1985_v61 = vpop.f32.mrf.mxu0 }
0x162e   :  { %v6060_v61 = vsel %vm355_vm2, %v1860_v59, 0 }
0x162f   :  { %v5069_v48 = vpop.f32.mrf.mxu0  ;;  %5059 = vmatpush3.bf16.msra.mxu1 %v6060_v61 }
0x1630   :  { %5070 = vmatprep.subr.bf16.mxu1 %v6803_v39  ;;  %v1859_v48 = vpack.c.bf16 %v1853_v1, %v1853_v1 }
0x1643   :  { %1259 = vperm.xlu0 %5330, %v117_v6  }
0x16b6   :  { %v1991_v57 = vpop.xlane.xlu0 %1990 }
0x16b7   :  { %v1992_v5 = vsub.f32 %v1988_v11, %v1991_v57 }
0x16b9   :  { %v1993_v3 = vmul.f32 1.442695, %v1992_v5 }
0x16bb   :  { %5364 = vpow2.f32 %v1993_v3 }
0x16be   :  { %v6067_v5 = vpop.permute.xlu0 %1259 }
0x16bf   :  { %6820 = vst [vmem:[#allocation12_spill] sm:$0xff] %v6067_v5  ;;  %v1355_v1 = vadd.f32 %v5947_v58, %v6067_v5  ;;  %v56_v58 = vld [vmem:[%s6782_s0 + $0x8] sm:$0xff] }
0x16c0   :  { %59 = vst.msk [vmem:[#allocation2 + $0x8] sm:$0xff] %vm57_vm0, %v56_v58 }
0x16c8   :  { %v5365_v19 = vpop.eup %5364 }
0x16c9   :  { %v1995_v27 = vsel %vm1423_vm5, %v5365_v19, 0.0 }
0x16ca   :  { %1996 = vadd.xlane.f32.xlu1 %v1995_v27  ;;  %v2000_v27 = vpack.c.bf16 %v1355_v1, %v1355_v1 }
0x16f7   :  { %1861 = vxpose.xlu1.c.b16.start.end [1/1] (short) (narrow) %v1859_v48, 16  ;;  %v1730_v48 = vadd.f32 %v1729_v60, %v6008_v45  ;;  %v6822_v45 = vmov 0.0  }
0x1753   :  { %v1997_v11 = vpop.xlane.xlu1 %1996 }
0x1754   :  { %5366 = vrcp.f32 %v1997_v11 }
0x1759   :  { %v1869_v7 = vpop.trf.xlu1 }
0x175a   :  { %5061 = vmatmul.mubr.msk.bf16.vlgmr.msra.gmra.mxu1 %vm351_vm3, %v1869_v7 }
0x175b   :  { %5072 = vmatprep.mubr.msk.bf16.mxu1 %vm5463_vm1, %v6803_v39 }
0x1761   :  { %v5367_v15 = vpop.eup %5366 }
0x1762   :  { %v1999_v6 = vmul.f32 %v5367_v15, %v5365_v19  ;;  %v79_v19 = vld [vmem:[%s6788_s6 + $0x18] sm:$0xff] }
0x1763   :  { %v2049_v47 = vpack.c.bf16 %v79_v19, %v79_v19 }
0x1764   :  { %v2001_v57 = vpack.c.bf16 %v1999_v6, %v1999_v6 }
0x1765   :  { %v6080_v59 = vsel %vm355_vm2, %v2049_v47, 0 }
0x1766   :  { %v2006_v3 = vsel %vm1423_vm5, %v2001_v57, 0  ;;  %6821 = vst [vmem:[#allocation13_spill] sm:$0xff] %v6080_v59  ;;  %5077 = vmatpush3.bf16.msra.mxu0 %v6080_v59 }
0x1767   :  { %5071 = vmatpush3.bf16.xpose.msra.mxu1 %v2006_v3  ;;  %5090 = vmatprep.subr.bf16.mxu0 %v6803_v39 }
0x1768   :  { %5082 = vmatprep.subr.bf16.mxu1 %v6803_v39 }
0x176e   :  { %5073 = vmatmul.mubr.msk.bf16.vlgmr.msra.gmra.mxu1 %vm1423_vm5, %v2000_v27 }
0x176f   :  { %5086 = vmatprep.mubr.msk.bf16.mxu1 %vm5463_vm1, %v6803_v39  ;;  %v6089_v39 = vld [vmem:[#allocation2 + $0x8] sm:$0xff] }
0x1770   :  { %v2262_v5 = vsel %vm57_vm0, %v6089_v39, 0.0 }
0x181a   :  { %v1917_v11 = vpop.f32.mrf.mxu1 }
0x181b   :  { %v1923_v7 = vadd.f32 %v1917_v11, %v1730_v48 }
0x181c   :  { %v5062_v15 = vpop.f32.mrf.mxu1 }
0x181e   :  { %v1920_v6 = vpop.f32.mrf.mxu1 }
0x1820   :  { %v5063_v57 = vpop.f32.mrf.mxu1 }
0x1821   :  { %v2116_v57 = vsub.s32 7, %v5579_v22 }
0x182e   :  { %v2042_v3 = vpop.f32.mrf.mxu1 }
0x182f   :  { %v2048_v1 = vpack.c.bf16 %v2042_v3, %v2042_v3 }
0x1830   :  { %v5074_v27 = vpop.f32.mrf.mxu1 }
0x1831   :  { %2050 = vxpose.xlu0.c.b16.start.end [1/1] (short) (narrow) %v2048_v1, 16 }
0x1832   :  { %v2045_v19 = vpop.f32.mrf.mxu1 }
0x1834   :  { %v5075_v47 = vpop.f32.mrf.mxu1 }
0x183e   :  { %2263 = vadd.xlane.f32.xlu0 %v2262_v5  ;;  %v5438_v5 = vld [vmem:[%s6791_s9] sm:$0xff] }
0x183f   :  { %v6102_v27 = vrot.slane %v5438_v5, %v2116_v57  ;;  %v82_v57 = vld [vmem:[%s6789_s7 + $0x10] sm:$0xff] }
0x1841   :  { %6823 = vst [vmem:[#allocation14_spill] sm:$0xff] %v6102_v27 }
0x1893   :  { %v2058_v58 = vpop.trf.xlu0 }
0x1894   :  { %5079 = vmatmul.mubr.msk.bf16.vlgmr.msra.gmra.mxu0 %vm351_vm3, %v2058_v58 }
0x1895   :  { %5098 = vmatprep.mubr.msk.bf16.mxu0 %vm5463_vm1, %v6822_v45 }
0x18c7   :  { %v2264_v60 = vpop.xlane.xlu0 %2263 }
0x18c8   :  { %v2265_v48 = vmul.f32 0.03125, %v2264_v60 }
0x18ca   :  { %v2266_v11 = vsub.f32 %v6089_v39, %v2265_v48 }
0x18cc   :  { %v2267_v15 = vmul.f32 %v2266_v11, %v2266_v11 }
0x18ce   :  { %v2268_v6 = vsel %vm57_vm0, %v2267_v15, 0.0 }
0x18cf   :  { %2269 = vadd.xlane.f32.xlu0 %v2268_v6 }
0x1954   :  { %v2106_v3 = vpop.f32.mrf.mxu0 }
0x1955   :  { %v2112_v1 = vadd.f32 %v2106_v3, %v1923_v7 }
0x1956   :  { %v5080_v19 = vpop.f32.mrf.mxu0 }
0x1957   :  { %v2113_v47 = vadd.f32 %v2112_v1, %v5823_v40  ;;  %v83_v40 = vld [vmem:[%s6789_s7 + $0x18] sm:$0xff] }
0x1958   :  { %v2109_v58 = vpop.f32.mrf.mxu0  ;;  %v2270_v60 = vpop.xlane.xlu0 %2269  ;;  %v6116_v3 = vpack.c.bf16 %v83_v40, %v82_v57 }
0x1959   :  { %v6106_v48 = vadd.f32 %v6102_v27, %v2113_v47  ;;  %v2271_v15 = vmul.f32 0.03125, %v2270_v60  ;;  %v81_v47 = vld [vmem:[%s6789_s7 + $0x8] sm:$0xff] }
0x195a   :  { %v5081_v6 = vpop.f32.mrf.mxu0  ;;  %6824 = vst [vmem:[#allocation15_spill] sm:$0xff] %v6116_v3  ;;  %5083 = vmatpush3.bf16.msra.mxu1 %v6116_v3 }
0x195b   :  { %v2119_v59 = vsel %vm57_vm0, %v6106_v48, 0.0  ;;  %v2272_v7 = vadd.f32 1e-05, %v2271_v15  ;;  %5084 = vmatprep.subr.bf16.mxu1 %v6822_v45 }
0x195c   :  { %2120 = vadd.xlane.f32.xlu1 %v2119_v59  ;;  %v80_v59 = vld [vmem:[%s6789_s7] sm:$0xff] }
0x195d   :  { %5368 = vrsqrt.f32 %v2272_v7  ;;  %v6127_v60 = vpack.c.bf16 %v81_v47, %v80_v59 }
0x195f   :  { %5085 = vmatpush3.bf16.msra.mxu1 %v6127_v60 }
0x196a   :  { %v5369_v1 = vpop.eup %5368 }
0x196b   :  { %v2274_v19 = vmul.f32 %v5369_v1, %v2266_v11 }
0x196d   :  { %v2275_v58 = vmul.f32 %v2274_v19, %v5592_v26  ;;  %v2134_v19 = vsub.s32 4, %v5579_v22 }
0x196f   :  { %v2276_v15 = vadd.f32 %v2275_v58, %v5597_v29  ;;  %v2139_v29 = vsub.s32 5, %v5579_v22  ;;  %v6136_v59 = vrot.slane %v5438_v5, %v2134_v19  ;;  %v93_v19 = vld [vmem:[%s6791_s9 + $0x8] sm:$0xff] }
0x1971   :  { %v2277_v6 = vpack.c.bf16 %v2276_v15, %v2276_v15  ;;  %v6138_v15 = vrot.slane %v5438_v5, %v2139_v29  ;;  %v86_v5 = vld [vmem:[%s6790_s8 + $0x10] sm:$0xff]  ;;  %v6203_v29 = vrot.slane %v93_v19, %v5582_v23 }
0x1973   :  { %5320 = vmatprep.subr.msk.bf16.mxu1 %vm57_vm0, %v2277_v6  ;;  %6825 = vst [vmem:[#allocation16_spill] sm:$0xff] %v6138_v15  ;;  %6826 = vst [vmem:[#allocation17_spill] sm:$0xff] %v6203_v29 }
0x19e5   :  { %v2121_v11 = vpop.xlane.xlu1 %2120 }
0x19e6   :  { %v2122_v7 = vmul.f32 0.03125, %v2121_v11 }
0x19e8   :  { %v2123_v57 = vsub.f32 %v6106_v48, %v2122_v7 }
0x19ea   :  { %v2124_v40 = vmul.f32 %v2123_v57, %v2123_v57 }
0x19ec   :  { %v2125_v1 = vsel %vm57_vm0, %v2124_v40, 0.0 }
0x19ed   :  { %2126 = vadd.xlane.f32.xlu1 %v2125_v1  ;;  %v85_v1 = vld [vmem:[%s6790_s8 + $0x8] sm:$0xff] }
0x1a76   :  { %v2127_v27 = vpop.xlane.xlu1 %2126 }
0x1a77   :  { %v2128_v3 = vmul.f32 0.03125, %v2127_v27  ;;  %v2279_v27 = vsel %vm57_vm0, %v2277_v6, 0 }
0x1a79   :  { %v2129_v26 = vadd.f32 1e-05, %v2128_v3  ;;  %v87_v3 = vld [vmem:[%s6790_s8 + $0x18] sm:$0xff] }
0x1a7a   :  { %v6185_v6 = vpack.c.bf16 %v87_v3, %v86_v5 }
0x1a7b   :  { %5370 = vrsqrt.f32 %v2129_v26 }
0x1a88   :  { %v5371_v47 = vpop.eup %5370 }
0x1a89   :  { %v2131_v58 = vmul.f32 %v5371_v47, %v2123_v57  ;;  %v84_v57 = vld [vmem:[%s6790_s8] sm:$0xff] }
0x1a8a   :  { %v6195_v26 = vpack.c.bf16 %v85_v1, %v84_v57 }
0x1a8b   :  { %v2136_v11 = vmul.f32 %v6136_v59, %v2131_v58 }
0x1a8d   :  { %v2141_v7 = vadd.f32 %v6138_v15, %v2136_v11 }
0x1a8f   :  { %v2142_v40 = vpack.c.bf16 %v2141_v7, %v2141_v7 }
0x1a91   :  { %5087 = vmatmul.mubr.msk.bf16.vlgmr.msra.gmra.mxu1 %vm57_vm0, %v2142_v40 }
0x1a92   :  { %5103 = vmatpush3.bf16.xpose.msra.mxu1 %v2279_v27  ;;  %5104 = vmatprep.mubr.msk.bf16.mxu1 %vm57_vm0, %v5569_v14  ;;  %v90_v14 = vld [vmem:[%s6790_s8 + $0x30] sm:$0xff] }
0x1a93   :  { %5128 = vmatprep.subr.bf16.mxu1 %v6822_v45 }
0x1a99   :  { %5105 = vmatmul.mubr.msk.bf16.vlgmr.msra.gmra.mxu1 %vm57_vm0, %v5604_v34  ;;  %v91_v34 = vld [vmem:[%s6790_s8 + $0x38] sm:$0xff] }
0x1a9a   :  { %5108 = vmatprep.mubr.msk.bf16.mxu1 %vm57_vm0, %v5606_v35  ;;  %v6165_v35 = vpack.c.bf16 %v91_v34, %v90_v14 }
0x1a9c   :  { %5091 = vmatpush3.bf16.msra.mxu0 %v6165_v35 }
0x1a9d   :  { %5092 = vmatprep.subr.bf16.mxu0 %v6822_v45 }
0x1aa1   :  { %5109 = vmatmul.mubr.msk.bf16.gmra.mxu1 %vm57_vm0, %v5612_v36  ;;  %v88_v36 = vld [vmem:[%s6790_s8 + $0x20] sm:$0xff] }
0x1aa2   :  { %5112 = vmatprep.mubr.msk.bf16.mxu1 %vm57_vm0, %v5616_v37  ;;  %v89_v37 = vld [vmem:[%s6790_s8 + $0x28] sm:$0xff] }
0x1aa9   :  { %5113 = vmatmul.mubr.msk.bf16.gmra.mxu1 %vm57_vm0, %v5620_v38  ;;  %v6175_v38 = vpack.c.bf16 %v89_v37, %v88_v36 }
0x1aaa   :  { %5130 = vmatprep.mubr.msk.bf16.mxu1 %vm5463_vm1, %v6822_v45 }
0x1aab   :  { %5093 = vmatpush3.bf16.msra.mxu0 %v6175_v38 }
0x1aac   :  { %5094 = vmatprep.subr.bf16.mxu0 %v6822_v45 }
0x1aaf   :  { %5095 = vmatpush3.bf16.msra.mxu0 %v6185_v6 }
0x1ab0   :  { %5096 = vmatprep.subr.bf16.mxu0 %v6822_v45 }
0x1ab3   :  { %5097 = vmatpush3.bf16.msra.mxu0 %v6195_v26 }
0x1ab4   :  { %5116 = vmatprep.subr.bf16.mxu0 %v6822_v45 }
0x1b51   :  { %v2186_v47 = vpop.f32.mrf.mxu1 }
0x1b52   :  { %v2187_v58 = vadd.f32 %v2186_v47, %v6203_v29 }
0x1b53   :  { %v5088_v11 = vpop.f32.mrf.mxu1 }
0x1b54   :  { %v2193_v7 = vmul.f32 0.044715, %v2187_v58 }
0x1b55   :  { %v2189_v40 = vpop.f32.mrf.mxu1 }
0x1b56   :  { %v2194_v27 = vmul.f32 %v2193_v7, %v2187_v58 }
0x1b57   :  { %v5089_v14 = vpop.f32.mrf.mxu1 }
0x1b58   :  { %v2195_v34 = vmul.f32 %v2194_v27, %v2187_v58 }
0x1b59   :  { %v6206_v36 = vpop.f32.mrf.mxu1 }
0x1b5a   :  { %v2196_v37 = vadd.f32 %v2195_v34, %v2187_v58 }
0x1b5b   :  { %v2315_v5 = vpop.f32.mrf.mxu1 }
0x1b5c   :  { %v2197_v3 = vmul.f32 0.7978846, %v2196_v37  ;;  %v2316_v57 = vadd.f32 %v2315_v5, %v5632_v41 }
0x1b5d   :  { %v6209_v1 = vpop.f32.mrf.mxu1 }
0x1b5e   :  { %5372 = vtanh.f32 %v2197_v3  ;;  %v2362_v23 = vpack.c.bf16 %v2316_v57, %v2316_v57  ;;  %v2192_v3 = vmul.f32 0.5, %v2187_v58 }
0x1b5f   :  { %v2318_v15 = vpop.f32.mrf.mxu1 }
0x1b60   :  { %v2319_v47 = vadd.f32 %v2318_v15, %v5668_v13  ;;  %2364 = vxpose.xlu1.c.b16.start.end [1/1] (short) (narrow) %v2362_v23, 16 }
0x1b61   :  { %v6212_v11 = vpop.f32.mrf.mxu1 }
0x1b62   :  { %v2488_v7 = vpack.c.bf16 %v2319_v47, %v2319_v47 }
0x1b63   :  { %v2331_v40 = vpop.f32.mrf.mxu1 }
0x1b64   :  { %2490 = vxpose.xlu0.c.b16.start.end [1/1] (short) (narrow) %v2488_v7, 16  ;;  %v2332_v41 = vadd.f32 %v2331_v40, %v5642_v49 }
0x1b65   :  { %v6214_v27 = vpop.f32.mrf.mxu1 }
0x1b66   :  { %v2363_v23 = vpack.c.bf16 %v2332_v41, %v2332_v41 }
0x1b67   :  { %v2334_v14 = vpop.f32.mrf.mxu1 }
0x1b68   :  { %v2335_v34 = vadd.f32 %v2334_v14, %v5673_v21  ;;  %v2384_v47 = vsel %vm355_vm2, %v2363_v23, 0 }
0x1b6a   :  { %v2489_v37 = vpack.c.bf16 %v2335_v34, %v2335_v34 }
0x1b6b   :  { %v5373_v5 = vpop.eup %5372 }
0x1b6c   :  { %v2510_v57 = vsel %vm355_vm2, %v2489_v37, 0  ;;  %v2199_v29 = vadd.f32 1.0, %v5373_v5 }
0x1b6d   :  { %5129 = vmatpush3.bf16.msra.mxu1 %v2510_v57 }
0x1b6e   :  { %v2200_v13 = vmul.f32 %v2199_v29, %v2192_v3  ;;  %5140 = vmatprep.subr.bf16.mxu1 %v6822_v45  ;;  %v6827_v29 = vsub.s32 1, %v5579_v22 }
0x1b70   :  { %v2201_v15 = vpack.c.bf16 %v2200_v13, %v2200_v13  ;;  %v6235_v58 = vrot.slane %v93_v19, %v6827_v29 }
0x1b72   :  { %5099 = vmatmul.mubr.msk.bf16.vlgmr.msra.gmra.mxu0 %vm2206_vm6, %v2201_v15 }
0x1b73   :  { %5117 = vmatpush3.bf16.msra.mxu0 %v2384_v47  ;;  %5118 = vmatprep.mubr.msk.bf16.mxu0 %vm5463_vm1, %v6822_v45 }
0x1b74   :  { %5122 = vmatprep.subr.bf16.mxu0 %v6822_v45 }
0x1bc2   :  { %v2372_v49 = vpop.trf.xlu1 }
0x1bc3   :  { %5119 = vmatmul.mubr.msk.bf16.vlgmr.msra.gmra.mxu0 %vm351_vm3, %v2372_v49 }
0x1bc4   :  { %5124 = vmatprep.mubr.msk.bf16.mxu0 %vm5463_vm1, %v6822_v45 }
0x1bc6   :  { %v2498_v21 = vpop.trf.xlu0 }
0x1bc7   :  { %5131 = vmatmul.mubr.msk.bf16.vlgmr.msra.gmra.mxu1 %vm351_vm3, %v2498_v21 }
0x1bc8   :  { %5141 = vmatpush3.bf16.msra.mxu1 %v5720_v32  ;;  %5142 = vmatprep.mubr.msk.bf16.mxu1 %vm5463_vm1, %v6822_v45  ;;  %v6240_v32 = vpop.f32.mrf.mxu1 }
0x1bc9   :  { %5152 = vmatprep.subr.bf16.mxu1 %v6822_v45 }
0x1bca   :  { %v2347_v5 = vpop.f32.mrf.mxu1 }
0x1bcc   :  { %v6242_v3 = vpop.f32.mrf.mxu1 }
0x1bce   :  { %v2350_v13 = vpop.f32.mrf.mxu1 }
0x1c32   :  { %v2244_v7 = vpop.f32.mrf.mxu0 }
0x1c33   :  { %v2250_v40 = vadd.f32 %v2244_v7, %v6106_v48 }
0x1c34   :  { %v5100_v14 = vpop.f32.mrf.mxu0 }
0x1c35   :  { %v2255_v34 = vadd.f32 %v6235_v58, %v2250_v40 }
0x1c36   :  { %v2247_v41 = vpop.f32.mrf.mxu0 }
0x1c37   :  { %2256 = vst.msk [vmem:[#allocation2] sm:$0xff] %vm57_vm0, %v2255_v34 }
0x1c38   :  { %v5101_v37 = vpop.f32.mrf.mxu0 }
0x1c83   :  { %v2420_v57 = vpop.f32.mrf.mxu0 }
0x1c84   :  { %v2426_v23 = vmul.f32 0.35355338, %v2420_v57 }
0x1c85   :  { %v5120_v19 = vpop.f32.mrf.mxu0 }
0x1c86   :  { %v2427_v15 = vadd.f32 %v2426_v23, %v5657_v62 }
0x1c87   :  { %v2423_v47 = vpop.f32.mrf.mxu0  ;;  %v2546_v48 = vpop.f32.mrf.mxu1 }
0x1c88   :  { %v2552_v49 = vmul.f32 0.35355338, %v2546_v48  ;;  %v2428_v21 = vsel %vm351_vm3, %v2427_v15, -inf }
0x1c89   :  { %v5132_v29 = vpop.f32.mrf.mxu1  ;;  %2429 = vmax.xlane.f32.xlu1 %v2428_v21  ;;  %v5121_v7 = vpop.f32.mrf.mxu0 }
0x1c8a   :  { %v2553_v40 = vadd.f32 %v2552_v49, %v5657_v62  ;;  %v2324_v7 = vadd.f32 %v6206_v36, %v5703_v10 }
0x1c8b   :  { %v2549_v14 = vpop.f32.mrf.mxu1 }
0x1c8c   :  { %v2554_v34 = vsel %vm351_vm3, %v2553_v40, -inf  ;;  %v2732_v14 = vpack.c.bf16 %v2324_v7, %v2324_v7 }
0x1c8d   :  { %2555 = vmax.xlane.f32.xlu0 %v2554_v34  ;;  %v5133_v41 = vpop.f32.mrf.mxu1 }
0x1d12   :  { %v2430_v37 = vpop.xlane.xlu1 %2429 }
0x1d13   :  { %v2431_v57 = vsub.f32 %v2427_v15, %v2430_v37 }
0x1d15   :  { %v2432_v19 = vmul.f32 1.442695, %v2431_v57 }
0x1d16   :  { %v2556_v22 = vpop.xlane.xlu0 %2555 }
0x1d17   :  { %5374 = vpow2.f32 %v2432_v19  ;;  %v2557_v23 = vsub.f32 %v2553_v40, %v2556_v22 }
0x1d19   :  { %v2558_v47 = vmul.f32 1.442695, %v2557_v23  ;;  %v2348_v23 = vadd.f32 %v2347_v5, %v5675_v30 }
0x1d1b   :  { %5376 = vpow2.f32 %v2558_v47  ;;  %v2439_v10 = vpack.c.bf16 %v2348_v23, %v2348_v23 }
0x1d24   :  { %v5375_v48 = vpop.eup %5374 }
0x1d25   :  { %v2434_v29 = vsel %vm351_vm3, %v5375_v48, 0.0 }
0x1d26   :  { %2435 = vadd.xlane.f32.xlu1 %v2434_v29 }
0x1d28   :  { %v5377_v21 = vpop.eup %5376 }
0x1d29   :  { %v2560_v49 = vsel %vm351_vm3, %v5377_v21, 0.0 }
0x1d2a   :  { %2561 = vadd.xlane.f32.xlu0 %v2560_v49 }
0x1d57   :  { %2734 = vxpose.xlu0.c.b16.start.end [1/1] (short) (narrow) %v2732_v14, 16 }
0x1daf   :  { %v2436_v15 = vpop.xlane.xlu1 %2435 }
0x1db0   :  { %5378 = vrcp.f32 %v2436_v15 }
0x1db3   :  { %v2562_v34 = vpop.xlane.xlu0 %2561 }
0x1db4   :  { %5380 = vrcp.f32 %v2562_v34  ;;  %v2340_v34 = vadd.f32 %v6212_v11, %v5724_v46 }
0x1dbd   :  { %v5379_v22 = vpop.eup %5378 }
0x1dbe   :  { %v2438_v40 = vmul.f32 %v5379_v22, %v5375_v48  ;;  %v2351_v48 = vadd.f32 %v2350_v13, %v5707_v18  ;;  %v2733_v22 = vpack.c.bf16 %v2340_v34, %v2340_v34 }
0x1dc0   :  { %v2440_v41 = vpack.c.bf16 %v2438_v40, %v2438_v40  ;;  %v2565_v29 = vpack.c.bf16 %v2351_v48, %v2351_v48  ;;  %v2754_v40 = vsel %vm355_vm2, %v2733_v22, 0 }
0x1dc1   :  { %v5381_v37 = vpop.eup %5380 }
0x1dc2   :  { %v2445_v57 = vsel %vm351_vm3, %v2440_v41, 0  ;;  %v2564_v19 = vmul.f32 %v5381_v37, %v5377_v21  ;;  %v2742_v41 = vpop.trf.xlu0 }
0x1dc3   :  { %5123 = vmatpush3.bf16.xpose.msra.mxu0 %v2445_v57 }
0x1dc4   :  { %5134 = vmatprep.subr.bf16.mxu0 %v6822_v45  ;;  %v2566_v47 = vpack.c.bf16 %v2564_v19, %v2564_v19 }
0x1dc6   :  { %v2571_v36 = vsel %vm351_vm3, %v2566_v47, 0 }
0x1dca   :  { %5125 = vmatmul.mubr.msk.bf16.vlgmr.msra.gmra.mxu0 %vm351_vm3, %v2439_v10 }
0x1dcb   :  { %5135 = vmatpush3.bf16.xpose.msra.mxu0 %v2571_v36  ;;  %5136 = vmatprep.mubr.msk.bf16.mxu0 %vm5463_vm1, %v6822_v45 }
0x1dcc   :  { %5146 = vmatprep.subr.bf16.mxu0 %v6822_v45 }
0x1dd2   :  { %5137 = vmatmul.mubr.msk.bf16.vlgmr.msra.gmra.mxu0 %vm351_vm3, %v2565_v29 }
0x1dd3   :  { %5147 = vmatpush3.bf16.msra.mxu0 %v5758_v31  ;;  %5148 = vmatprep.mubr.msk.bf16.mxu0 %vm5463_vm1, %v6822_v45 }
0x1dd4   :  { %5158 = vmatprep.subr.bf16.mxu0 %v6822_v45 }
0x1e8a   :  { %v2481_v30 = vpop.f32.mrf.mxu0 }
0x1e8b   :  { %v2487_v29 = vpack.c.bf16 %v2481_v30, %v2481_v30 }
0x1e8c   :  { %v5126_v5 = vpop.f32.mrf.mxu0 }
0x1e8e   :  { %v2484_v21 = vpop.f32.mrf.mxu0 }
0x1e90   :  { %v5127_v49 = vpop.f32.mrf.mxu0 }
0x1e92   :  { %v2607_v7 = vpop.f32.mrf.mxu0 }
0x1e93   :  { %v2613_v14 = vpack.c.bf16 %v2607_v7, %v2607_v7 }
0x1e94   :  { %v5138_v15 = vpop.f32.mrf.mxu0 }
0x1e95   :  { %2614 = vxpose.xlu1.c.b16.start.end [1/1] (short) (narrow) %v2613_v14, 16 }
0x1e96   :  { %v2610_v18 = vpop.f32.mrf.mxu0 }
0x1e97   :  { %v2327_v18 = vadd.f32 %v6209_v1, %v5746_v12 }
0x1e98   :  { %v5139_v13 = vpop.f32.mrf.mxu0 }
0x1e99   :  { %v2918_v13 = vpack.c.bf16 %v2327_v18, %v2327_v18 }
0x1ef7   :  { %v2622_v31 = vpop.trf.xlu1 }
0x1ef8   :  { %5143 = vmatmul.mubr.msk.bf16.vlgmr.msra.gmra.mxu1 %vm351_vm3, %v2622_v31 }
0x1ef9   :  { %5153 = vmatpush3.bf16.msra.mxu1 %v2754_v40  ;;  %5154 = vmatprep.mubr.msk.bf16.mxu1 %vm5463_vm1, %v6822_v45  ;;  %v2343_v40 = vadd.f32 %v6214_v27, %v5769_v50 }
0x1efa   :  { %5164 = vmatprep.subr.bf16.mxu1 %v6822_v45 }
0x1f00   :  { %5155 = vmatmul.mubr.msk.bf16.vlgmr.msra.gmra.mxu1 %vm351_vm3, %v2742_v41 }
0x1f01   :  { %5165 = vmatpush3.bf16.msra.mxu1 %v5795_v42  ;;  %5166 = vmatprep.mubr.msk.bf16.mxu1 %vm5463_vm1, %v6822_v45 }
0x1f02   :  { %5176 = vmatprep.subr.bf16.mxu1 %v6822_v45 }
0x1fb8   :  { %v6278_v46 = vpop.f32.mrf.mxu1 }
0x1fba   :  { %v5144_v11 = vpop.f32.mrf.mxu1 }
0x1fbb   :  { %v2356_v11 = vadd.f32 %v6240_v32, %v5764_v33 }
0x1fbc   :  { %v2670_v37 = vpop.f32.mrf.mxu1 }
0x1fbd   :  { %v2919_v37 = vpack.c.bf16 %v2343_v40, %v2343_v40  ;;  %v2809_v12 = vpack.c.bf16 %v2356_v11, %v2356_v11 }
0x1fbe   :  { %v5145_v57 = vpop.f32.mrf.mxu1 }
0x1fbf   :  { %v2940_v1 = vsel %vm355_vm2, %v2919_v37, 0 }
0x1fc0   :  { %v2790_v19 = vpop.f32.mrf.mxu1 }
0x1fc1   :  { %v2796_v23 = vmul.f32 0.35355338, %v2790_v19 }
0x1fc2   :  { %v5156_v47 = vpop.f32.mrf.mxu1 }
0x1fc3   :  { %v2797_v10 = vadd.f32 %v2796_v23, %v5657_v62 }
0x1fc4   :  { %v2793_v36 = vpop.f32.mrf.mxu1 }
0x1fc5   :  { %v2798_v48 = vsel %vm351_vm3, %v2797_v10, -inf }
0x1fc6   :  { %2799 = vmax.xlane.f32.xlu1 %v2798_v48  ;;  %v5157_v42 = vpop.f32.mrf.mxu1 }
0x1ff3   :  { %2673 = vxpose.xlu1.c.b16.start.end [1/1] (short) (narrow) %v2487_v29, 16 }
0x204f   :  { %v2800_v5 = vpop.xlane.xlu1 %2799 }
0x2050   :  { %v2801_v21 = vsub.f32 %v2797_v10, %v2800_v5 }
0x2052   :  { %v2802_v49 = vmul.f32 1.442695, %v2801_v21 }
0x2054   :  { %5382 = vpow2.f32 %v2802_v49 }
0x2055   :  { %v2681_v7 = vpop.trf.xlu1 }
0x2056   :  { %5149 = vmatmul.mubr.msk.bf16.vlgmr.msra.gmra.mxu0 %vm351_vm3, %v2681_v7 }
0x2057   :  { %5160 = vmatprep.mubr.msk.bf16.mxu0 %vm5463_vm1, %v6822_v45 }
0x2061   :  { %v5383_v14 = vpop.eup %5382 }
0x2062   :  { %v2804_v15 = vsel %vm351_vm3, %v5383_v14, 0.0 }
0x2063   :  { %2805 = vadd.xlane.f32.xlu0 %v2804_v15 }
0x2090   :  { %2920 = vxpose.xlu0.c.b16.start.end [1/1] (short) (narrow) %v2918_v13, 16 }
0x20ec   :  { %v2806_v30 = vpop.xlane.xlu0 %2805 }
0x20ed   :  { %5384 = vrcp.f32 %v2806_v30 }
0x20f2   :  { %v2928_v50 = vpop.trf.xlu0 }
0x20fa   :  { %v5385_v34 = vpop.eup %5384 }
0x20fb   :  { %v2808_v22 = vmul.f32 %v5385_v34, %v5383_v14 }
0x20fd   :  { %v2810_v31 = vpack.c.bf16 %v2808_v22, %v2808_v22 }
0x20ff   :  { %v2815_v41 = vsel %vm351_vm3, %v2810_v31, 0 }
0x2100   :  { %5159 = vmatpush3.bf16.xpose.msra.mxu0 %v2815_v41  ;;  %v2359_v41 = vadd.f32 %v6242_v3, %v5802_v54  ;;  %v4699_v54 = vld [vmem:[%s6783_s1 + $0x18] sm:$0xff] }
0x2101   :  { %5170 = vmatprep.subr.bf16.mxu0 %v6822_v45 }
0x2102   :  { %v2995_v11 = vpack.c.bf16 %v2359_v41, %v2359_v41 }
0x2107   :  { %5161 = vmatmul.mubr.msk.bf16.vlgmr.msra.gmra.mxu0 %vm351_vm3, %v2809_v12 }
0x2108   :  { %5171 = vmatpush3.bf16.msra.mxu0 %v2940_v1  ;;  %5172 = vmatprep.mubr.msk.bf16.mxu0 %vm5463_vm1, %v6822_v45 }
0x2109   :  { %5182 = vmatprep.subr.bf16.mxu0 %v6822_v45 }
0x210f   :  { %5173 = vmatmul.mubr.msk.bf16.vlgmr.msra.gmra.mxu0 %vm351_vm3, %v2928_v50 }
0x2110   :  { %5183 = vmatpush3.bf16.msra.mxu0 %v5812_v63  ;;  %5184 = vmatprep.mubr.msk.bf16.mxu0 %vm5463_vm1, %v6822_v45 }
0x2116   :  { %v2726_v33 = vpop.f32.mrf.mxu0 }
0x2117   :  { %v2727_v37 = vadd.f32 %v2726_v33, %v6278_v46 }
0x2118   :  { %v5150_v27 = vpop.f32.mrf.mxu0 }
0x211a   :  { %v2729_v32 = vpop.f32.mrf.mxu0 }
0x211c   :  { %v5151_v57 = vpop.f32.mrf.mxu0 }
0x211d   :  { %v4698_v57 = vld [vmem:[%s6783_s1 + $0x10] sm:$0xff] }
0x211e   :  { %v3174_v3 = vpack.c.bf16 %v4699_v54, %v4698_v57 }
0x2120   :  { %5322 = vmatprep.subr.msk.bf16.mxu0 %vm57_vm0, %v3174_v3 }
0x21c7   :  { %v2851_v19 = vpop.f32.mrf.mxu0 }
0x21c8   :  { %v2857_v49 = vpack.c.bf16 %v2851_v19, %v2851_v19 }
0x21c9   :  { %v5162_v23 = vpop.f32.mrf.mxu0 }
0x21cb   :  { %v2854_v47 = vpop.f32.mrf.mxu0 }
0x21cc   :  { %v3176_v47 = vsel %vm57_vm0, %v3174_v3, 0  ;;  %v6829_v3 = vld [vmem:[#allocation9_spill] sm:$0xff] }
0x21cd   :  { %v5163_v10 = vpop.f32.mrf.mxu0 }
0x21cf   :  { %v2976_v36 = vpop.f32.mrf.mxu0 }
0x21d0   :  { %v2982_v48 = vmul.f32 0.35355338, %v2976_v36 }
0x21d1   :  { %v5174_v42 = vpop.f32.mrf.mxu0 }
0x21d2   :  { %v2983_v29 = vadd.f32 %v2982_v48, %v5657_v62 }
0x21d3   :  { %v2979_v5 = vpop.f32.mrf.mxu0 }
0x21d4   :  { %v2984_v21 = vsel %vm351_vm3, %v2983_v29, -inf }
0x21d5   :  { %2985 = vmax.xlane.f32.xlu1 %v2984_v21  ;;  %v5175_v63 = vpop.f32.mrf.mxu0 }
0x2202   :  { %2858 = vxpose.xlu1.c.b16.start.end [1/1] (short) (narrow) %v2857_v49, 16 }
0x225e   :  { %v2986_v7 = vpop.xlane.xlu1 %2985 }
0x225f   :  { %v2987_v14 = vsub.f32 %v2983_v29, %v2986_v7 }
0x2261   :  { %v2988_v15 = vmul.f32 1.442695, %v2987_v14 }
0x2263   :  { %5386 = vpow2.f32 %v2988_v15 }
0x2264   :  { %v2866_v18 = vpop.trf.xlu1 }
0x2265   :  { %5167 = vmatmul.mubr.msk.bf16.vlgmr.msra.gmra.mxu1 %vm351_vm3, %v2866_v18 }
0x2266   :  { %5178 = vmatprep.mubr.msk.bf16.mxu1 %vm5463_vm1, %v6822_v45 }
0x2270   :  { %v5387_v13 = vpop.eup %5386 }
0x2271   :  { %v2990_v62 = vsel %vm351_vm3, %v5387_v13, 0.0 }
0x2272   :  { %2991 = vadd.xlane.f32.xlu0 %v2990_v62 }
0x22fb   :  { %v2992_v30 = vpop.xlane.xlu0 %2991 }
0x22fc   :  { %5388 = vrcp.f32 %v2992_v30 }
0x2309   :  { %v5389_v34 = vpop.eup %5388 }
0x230a   :  { %v2994_v22 = vmul.f32 %v5389_v34, %v5387_v13 }
0x230c   :  { %v2996_v31 = vpack.c.bf16 %v2994_v22, %v2994_v22 }
0x230e   :  { %v3001_v40 = vsel %vm351_vm3, %v2996_v31, 0 }
0x230f   :  { %5177 = vmatpush3.bf16.xpose.msra.mxu1 %v3001_v40 }
0x2316   :  { %5179 = vmatmul.mubr.msk.bf16.vlgmr.msra.gmra.mxu1 %vm351_vm3, %v2995_v11 }
0x2317   :  { %5190 = vmatprep.mubr.msk.bf16.mxu1 %vm57_vm0, %v5849_v2 }
0x2325   :  { %v2911_v12 = vpop.f32.mrf.mxu1 }
0x2326   :  { %v2917_v1 = vadd.f32 %v2911_v12, %v2727_v37 }
0x2327   :  { %v5168_v50 = vpop.f32.mrf.mxu1 }
0x2329   :  { %v2914_v27 = vpop.f32.mrf.mxu1 }
0x232b   :  { %v5169_v32 = vpop.f32.mrf.mxu1 }
0x23d6   :  { %v3037_v19 = vpop.f32.mrf.mxu1 }
0x23d7   :  { %v3043_v2 = vpack.c.bf16 %v3037_v19, %v3037_v19 }
0x23d8   :  { %v5180_v23 = vpop.f32.mrf.mxu1 }
0x23d9   :  { %3044 = vxpose.xlu0.c.b16.start.end [1/1] (short) (narrow) %v3043_v2, 16 }
0x23da   :  { %v3040_v46 = vpop.f32.mrf.mxu1 }
0x23dc   :  { %v5181_v33 = vpop.f32.mrf.mxu1 }
0x243b   :  { %v3052_v10 = vpop.trf.xlu0 }
0x243c   :  { %5185 = vmatmul.mubr.msk.bf16.vlgmr.msra.gmra.mxu0 %vm351_vm3, %v3052_v10 }
0x243d   :  { %5195 = vmatpush3.bf16.xpose.msra.mxu0 %v3176_v47  ;;  %5196 = vmatprep.mubr.msk.bf16.mxu0 %vm57_vm0, %v5878_v28 }
0x243e   :  { %5216 = vmatprep.subr.bf16.mxu0 %v6822_v45 }
0x2444   :  { %5197 = vmatmul.mubr.msk.bf16.vlgmr.msra.gmra.mxu0 %vm57_vm0, %v5882_v44 }
0x2445   :  { %5200 = vmatprep.mubr.msk.bf16.mxu0 %vm57_vm0, %v5887_v43 }
0x244c   :  { %5201 = vmatmul.mubr.msk.bf16.gmra.mxu0 %vm57_vm0, %v5895_v52 }
0x244d   :  { %5218 = vmatprep.mubr.msk.bf16.mxu0 %vm5463_vm1, %v6822_v45 }
0x24fc   :  { %v3097_v36 = vpop.f32.mrf.mxu0 }
0x24fd   :  { %v3103_v48 = vadd.f32 %v3097_v36, %v2917_v1 }
0x24fe   :  { %v5186_v42 = vpop.f32.mrf.mxu0 }
0x24ff   :  { %v3104_v29 = vadd.f32 %v3103_v48, %v6089_v39 }
0x2500   :  { %v3100_v28 = vpop.f32.mrf.mxu0 }
0x2501   :  { %v6338_v5 = vadd.f32 %v3104_v29, %v5819_v56 }
0x2502   :  { %v5187_v21 = vpop.f32.mrf.mxu0 }
0x2503   :  { %v3106_v44 = vsel %vm57_vm0, %v6338_v5, 0.0 }
0x2504   :  { %3107 = vadd.xlane.f32.xlu1 %v3106_v44  ;;  %v6342_v43 = vpop.f32.mrf.mxu0 }
0x2506   :  { %v3212_v52 = vpop.f32.mrf.mxu0 }
0x2507   :  { %v3213_v37 = vadd.f32 %v3212_v52, %v5921_v4  ;;  %v6828_v4 = vld [vmem:[#allocation8_spill] sm:$0xff] }
0x2508   :  { %v6344_v63 = vpop.f32.mrf.mxu0 }
0x2509   :  { %v3244_v1 = vpack.c.bf16 %v3213_v37, %v3213_v37 }
0x250a   :  { %v3215_v49 = vpop.f32.mrf.mxu0 }
0x250b   :  { %v3216_v7 = vadd.f32 %v3215_v49, %v5926_v8  ;;  %v3265_v50 = vsel %vm355_vm2, %v3244_v1, 0 }
0x250c   :  { %v6375_v46 = vpop.f32.mrf.mxu0 }
0x250d   :  { %v3369_v14 = vpack.c.bf16 %v3216_v7, %v3216_v7 }
0x250e   :  { %v3228_v33 = vpop.f32.mrf.mxu0 }
0x250f   :  { %v3390_v39 = vsel %vm355_vm2, %v3369_v14, 0 }
0x2510   :  { %5217 = vmatpush3.bf16.msra.mxu0 %v3390_v39  ;;  %v6377_v47 = vpop.f32.mrf.mxu0 }
0x2511   :  { %5228 = vmatprep.subr.bf16.mxu0 %v6822_v45 }
0x2512   :  { %v3231_v48 = vpop.f32.mrf.mxu0 }
0x258d   :  { %v3108_v56 = vpop.xlane.xlu1 %3107 }
0x258e   :  { %v3109_v15 = vmul.f32 0.03125, %v3108_v56 }
0x2590   :  { %v3110_v18 = vsub.f32 %v6338_v5, %v3109_v15 }
0x2592   :  { %v3111_v13 = vmul.f32 %v3110_v18, %v3110_v18 }
0x2594   :  { %v3112_v62 = vsel %vm57_vm0, %v3111_v13, 0.0 }
0x2595   :  { %3113 = vadd.xlane.f32.xlu0 %v3112_v62 }
0x261e   :  { %v3114_v30 = vpop.xlane.xlu0 %3113 }
0x261f   :  { %v3115_v34 = vmul.f32 0.03125, %v3114_v30 }
0x2621   :  { %v3116_v22 = vadd.f32 1e-05, %v3115_v34 }
0x2623   :  { %5390 = vrsqrt.f32 %v3116_v22 }
0x2630   :  { %v5391_v31 = vpop.eup %5390 }
0x2631   :  { %v3118_v8 = vmul.f32 %v5391_v31, %v3110_v18 }
0x2633   :  { %v3119_v40 = vmul.f32 %v3118_v8, %v5893_v51 }
0x2635   :  { %v3120_v41 = vadd.f32 %v3119_v40, %v5898_v53 }
0x2637   :  { %v3121_v11 = vpack.c.bf16 %v3120_v41, %v3120_v41 }
0x2639   :  { %5321 = vmatprep.subr.msk.bf16.mxu1 %vm57_vm0, %v3121_v11  ;;  %v3123_v12 = vsel %vm57_vm0, %v3121_v11, 0 }
0x263a   :  { %5189 = vmatpush3.bf16.xpose.msra.mxu1 %v3123_v12 }
0x263b   :  { %5204 = vmatprep.subr.bf16.mxu1 %v6822_v45 }
0x2641   :  { %5191 = vmatmul.mubr.msk.bf16.vlgmr.msra.gmra.mxu1 %vm57_vm0, %v5909_v24 }
0x2642   :  { %5205 = vmatpush3.bf16.msra.mxu1 %v3265_v50  ;;  %5206 = vmatprep.mubr.msk.bf16.mxu1 %vm5463_vm1, %v6822_v45 }
0x2643   :  { %5210 = vmatprep.subr.bf16.mxu1 %v6822_v45 }
0x2701   :  { %v5192_v51 = vpop.f32.mrf.mxu1 }
0x2702   :  { %v3168_v8 = vadd.f32 %v5192_v51, %v5967_v17 }
0x2703   :  { %v3159_v53 = vpop.f32.mrf.mxu1 }
0x2704   :  { %v3160_v27 = vadd.f32 %v3159_v53, %v6828_v4  ;;  %v3611_v40 = vpack.c.bf16 %v3168_v8, %v3168_v8 }
0x2705   :  { %v6364_v32 = vpop.f32.mrf.mxu1 }
0x2706   :  { %v3243_v57 = vpack.c.bf16 %v3160_v27, %v3160_v27  ;;  %v3229_v27 = vadd.f32 %v3228_v33, %v5971_v25 }
0x2707   :  { %v3162_v54 = vpop.f32.mrf.mxu1 }
0x2708   :  { %v3163_v19 = vadd.f32 %v3162_v54, %v6829_v3  ;;  %3245 = vxpose.xlu1.c.b16.start.end [1/1] (short) (narrow) %v3243_v57, 16  ;;  %v3319_v17 = vpack.c.bf16 %v3229_v27, %v3229_v27  ;;  %v3232_v54 = vadd.f32 %v3231_v48, %v5965_v16  ;;  %v3221_v48 = vadd.f32 %v6342_v43, %v5996_v20 }
0x270a   :  { %v3368_v2 = vpack.c.bf16 %v3163_v19, %v3163_v19  ;;  %v3444_v3 = vpack.c.bf16 %v3232_v54, %v3232_v54 }
0x270c   :  { %3370 = vxpose.xlu0.c.b16.start.end [1/1] (short) (narrow) %v3368_v2, 16 }
0x276a   :  { %v3253_v24 = vpop.trf.xlu1 }
0x276b   :  { %5207 = vmatmul.mubr.msk.bf16.vlgmr.msra.gmra.mxu1 %vm351_vm3, %v3253_v24 }
0x276c   :  { %5212 = vmatprep.mubr.msk.bf16.mxu1 %vm5463_vm1, %v6822_v45 }
0x276e   :  { %v3378_v23 = vpop.trf.xlu0 }
0x276f   :  { %5219 = vmatmul.mubr.msk.bf16.vlgmr.msra.gmra.mxu0 %vm351_vm3, %v3378_v23 }
0x2770   :  { %5229 = vmatpush3.bf16.msra.mxu0 %v5989_v0  ;;  %5230 = vmatprep.mubr.msk.bf16.mxu0 %vm5463_vm1, %v6822_v45 }
0x2771   :  { %5240 = vmatprep.subr.bf16.mxu0 %v6822_v45 }
0x282b   :  { %v3301_v10 = vpop.f32.mrf.mxu1 }
0x282c   :  { %v3307_v36 = vmul.f32 0.35355338, %v3301_v10 }
0x282d   :  { %v5208_v42 = vpop.f32.mrf.mxu1 }
0x282e   :  { %v3308_v29 = vsel %vm1423_vm5, %v3307_v36, -inf  ;;  %v3612_v42 = vpack.c.bf16 %v3221_v48, %v3221_v48 }
0x282f   :  { %v3426_v28 = vpop.f32.mrf.mxu0  ;;  %3309 = vmax.xlane.f32.xlu1 %v3308_v29  ;;  %v3304_v21 = vpop.f32.mrf.mxu1 }
0x2830   :  { %v3432_v0 = vmul.f32 0.35355338, %v3426_v28  ;;  %v3633_v29 = vsel %vm355_vm2, %v3612_v42, 0 }
0x2831   :  { %v5209_v44 = vpop.f32.mrf.mxu1  ;;  %v5220_v52 = vpop.f32.mrf.mxu0 }
0x2832   :  { %v3433_v49 = vsel %vm1423_vm5, %v3432_v0, -inf }
0x2833   :  { %3434 = vmax.xlane.f32.xlu0 %v3433_v49  ;;  %v3429_v7 = vpop.f32.mrf.mxu0 }
0x2835   :  { %v5221_v14 = vpop.f32.mrf.mxu0 }
0x28b8   :  { %v3310_v39 = vpop.xlane.xlu1 %3309 }
0x28b9   :  { %v3311_v56 = vsub.f32 %v3307_v36, %v3310_v39 }
0x28bb   :  { %v3312_v15 = vmul.f32 1.442695, %v3311_v56 }
0x28bc   :  { %v3435_v18 = vpop.xlane.xlu0 %3434 }
0x28bd   :  { %5392 = vpow2.f32 %v3312_v15  ;;  %v3436_v13 = vsub.f32 %v3432_v0, %v3435_v18 }
0x28bf   :  { %v3437_v62 = vmul.f32 1.442695, %v3436_v13 }
0x28c1   :  { %5394 = vpow2.f32 %v3437_v62 }
0x28ca   :  { %v5393_v30 = vpop.eup %5392 }
0x28cb   :  { %v3314_v34 = vsel %vm1423_vm5, %v5393_v30, 0.0 }
0x28cc   :  { %3315 = vadd.xlane.f32.xlu1 %v3314_v34  ;;  %v3171_v34 = vadd.f32 %v6364_v32, %v6022_v9 }
0x28ce   :  { %v5395_v22 = vpop.eup %5394 }
0x28cf   :  { %v3439_v31 = vsel %vm1423_vm5, %v5395_v22, 0.0 }
0x28d0   :  { %3440 = vadd.xlane.f32.xlu0 %v3439_v31 }
0x28fd   :  { %3613 = vxpose.xlu0.c.b16.start.end [1/1] (short) (narrow) %v3611_v40, 16 }
0x2955   :  { %v3316_v41 = vpop.xlane.xlu1 %3315 }
0x2956   :  { %5396 = vrcp.f32 %v3316_v41 }
0x2959   :  { %v3441_v11 = vpop.xlane.xlu0 %3440 }
0x295a   :  { %5398 = vrcp.f32 %v3441_v11  ;;  %v6830_v11 = vld [vmem:[#allocation11_spill] sm:$0xff] }
0x295f   :  { %v3621_v28 = vpop.trf.xlu0 }
0x2963   :  { %v5397_v37 = vpop.eup %5396 }
0x2964   :  { %v3318_v12 = vmul.f32 %v5397_v37, %v5393_v30  ;;  %v3224_v37 = vadd.f32 %v6344_v63, %v6830_v11  ;;  %v6835_v11 = vld [vmem:[#allocation14_spill] sm:$0xff] }
0x2966   :  { %v3320_v1 = vpack.c.bf16 %v3318_v12, %v3318_v12 }
0x2967   :  { %v5399_v50 = vpop.eup %5398 }
0x2968   :  { %v3325_v53 = vsel %vm1423_vm5, %v3320_v1, 0  ;;  %v3443_v4 = vmul.f32 %v5399_v50, %v5395_v22  ;;  %v3796_v22 = vpack.c.bf16 %v3171_v34, %v3171_v34  ;;  %v6831_v1 = vld [vmem:[#allocation10_spill] sm:$0xff] }
0x2969   :  { %5211 = vmatpush3.bf16.xpose.msra.mxu1 %v3325_v53  ;;  %v3237_v50 = vadd.f32 %v6375_v46, %v6831_v1  ;;  %v3797_v53 = vpack.c.bf16 %v3224_v37, %v3224_v37 }
0x296a   :  { %5222 = vmatprep.subr.bf16.mxu1 %v6822_v45  ;;  %v3445_v57 = vpack.c.bf16 %v3443_v4, %v3443_v4  ;;  %v6832_v4 = vld [vmem:[#allocation13_spill] sm:$0xff] }
0x296b   :  { %v3687_v9 = vpack.c.bf16 %v3237_v50, %v3237_v50  ;;  %v3818_v32 = vsel %vm355_vm2, %v3797_v53, 0 }
0x296c   :  { %v3450_v51 = vsel %vm1423_vm5, %v3445_v57, 0 }
0x2970   :  { %5213 = vmatmul.mubr.msk.bf16.vlgmr.msra.gmra.mxu1 %vm1423_vm5, %v3319_v17 }
0x2971   :  { %5223 = vmatpush3.bf16.xpose.msra.mxu1 %v3450_v51  ;;  %5224 = vmatprep.mubr.msk.bf16.mxu1 %vm5463_vm1, %v6822_v45 }
0x2972   :  { %5234 = vmatprep.subr.bf16.mxu1 %v6822_v45 }
0x2978   :  { %5225 = vmatmul.mubr.msk.bf16.vlgmr.msra.gmra.mxu1 %vm1423_vm5, %v3444_v3 }
0x2979   :  { %5235 = vmatpush3.bf16.msra.mxu1 %v6018_v55  ;;  %5236 = vmatprep.mubr.msk.bf16.mxu1 %vm5463_vm1, %v6822_v45 }
0x297a   :  { %5246 = vmatprep.subr.bf16.mxu1 %v6822_v45 }
0x2a30   :  { %v3361_v25 = vpop.f32.mrf.mxu1 }
0x2a31   :  { %v3367_v56 = vpack.c.bf16 %v3361_v25, %v3361_v25 }
0x2a32   :  { %v5214_v19 = vpop.f32.mrf.mxu1 }
0x2a34   :  { %v3364_v2 = vpop.f32.mrf.mxu1 }
0x2a36   :  { %v5215_v24 = vpop.f32.mrf.mxu1 }
0x2a38   :  { %v3486_v23 = vpop.f32.mrf.mxu1 }
0x2a39   :  { %v3492_v33 = vpack.c.bf16 %v3486_v23, %v3486_v23 }
0x2a3a   :  { %v5226_v10 = vpop.f32.mrf.mxu1 }
0x2a3b   :  { %3493 = vxpose.xlu1.c.b16.start.end [1/1] (short) (narrow) %v3492_v33, 16 }
0x2a3c   :  { %v3489_v16 = vpop.f32.mrf.mxu1 }
0x2a3e   :  { %v5227_v36 = vpop.f32.mrf.mxu1 }
0x2a9d   :  { %v3501_v55 = vpop.trf.xlu1 }
0x2a9e   :  { %5231 = vmatmul.mubr.msk.bf16.vlgmr.msra.gmra.mxu0 %vm351_vm3, %v3501_v55 }
0x2a9f   :  { %5241 = vmatpush3.bf16.msra.mxu0 %v3633_v29  ;;  %5242 = vmatprep.mubr.msk.bf16.mxu0 %vm5463_vm1, %v6822_v45 }
0x2aa0   :  { %5252 = vmatprep.subr.bf16.mxu0 %v6822_v45 }
0x2aa6   :  { %5243 = vmatmul.mubr.msk.bf16.vlgmr.msra.gmra.mxu0 %vm351_vm3, %v3621_v28 }
0x2aa7   :  { %5253 = vmatpush3.bf16.msra.mxu0 %v6060_v61  ;;  %5254 = vmatprep.mubr.msk.bf16.mxu0 %vm5463_vm1, %v6822_v45 }
0x2aa8   :  { %5264 = vmatprep.subr.bf16.mxu0 %v6822_v45 }
0x2b5e   :  { %v6410_v20 = vpop.f32.mrf.mxu0 }
0x2b60   :  { %v5232_v43 = vpop.f32.mrf.mxu0 }
0x2b62   :  { %v3549_v21 = vpop.f32.mrf.mxu0 }
0x2b64   :  { %v5233_v0 = vpop.f32.mrf.mxu0 }
0x2b66   :  { %v3669_v44 = vpop.f32.mrf.mxu0 }
0x2b67   :  { %v3675_v52 = vmul.f32 0.35355338, %v3669_v44 }
0x2b68   :  { %v5244_v49 = vpop.f32.mrf.mxu0 }
0x2b69   :  { %v3676_v7 = vsel %vm1423_vm5, %v3675_v52, -inf  ;;  %v6833_v49 = vld [vmem:[#allocation12_spill] sm:$0xff] }
0x2b6a   :  { %3677 = vmax.xlane.f32.xlu1 %v3676_v7  ;;  %v3672_v14 = vpop.f32.mrf.mxu0  ;;  %v3240_v7 = vadd.f32 %v6377_v47, %v6833_v49 }
0x2b6c   :  { %v5245_v39 = vpop.f32.mrf.mxu0  ;;  %v3872_v14 = vpack.c.bf16 %v3240_v7, %v3240_v7 }
0x2b6d   :  { %v6834_v39 = vld [vmem:[#allocation15_spill] sm:$0xff] }
0x2b97   :  { %3552 = vxpose.xlu1.c.b16.start.end [1/1] (short) (narrow) %v3367_v56, 16 }
0x2bf3   :  { %v3678_v61 = vpop.xlane.xlu1 %3677 }
0x2bf4   :  { %v3679_v15 = vsub.f32 %v3675_v52, %v3678_v61 }
0x2bf6   :  { %v3680_v18 = vmul.f32 1.442695, %v3679_v15 }
0x2bf8   :  { %5400 = vpow2.f32 %v3680_v18 }
0x2bf9   :  { %v3560_v13 = vpop.trf.xlu1 }
0x2bfa   :  { %5237 = vmatmul.mubr.msk.bf16.vlgmr.msra.gmra.mxu1 %vm351_vm3, %v3560_v13 }
0x2bfb   :  { %5248 = vmatprep.mubr.msk.bf16.mxu1 %vm5463_vm1, %v6822_v45 }
0x2c05   :  { %v5401_v62 = vpop.eup %5400 }
0x2c06   :  { %v3682_v30 = vsel %vm1423_vm5, %v5401_v62, 0.0 }
0x2c07   :  { %3683 = vadd.xlane.f32.xlu0 %v3682_v30 }
0x2c34   :  { %3798 = vxpose.xlu0.c.b16.start.end [1/1] (short) (narrow) %v3796_v22, 16 }
0x2c90   :  { %v3684_v31 = vpop.xlane.xlu0 %3683 }
0x2c91   :  { %5402 = vrcp.f32 %v3684_v31 }
0x2c96   :  { %v3806_v63 = vpop.trf.xlu0 }
0x2c9e   :  { %v5403_v8 = vpop.eup %5402 }
0x2c9f   :  { %v3686_v40 = vmul.f32 %v5403_v8, %v5401_v62 }
0x2ca1   :  { %v3688_v41 = vpack.c.bf16 %v3686_v40, %v3686_v40 }
0x2ca3   :  { %v3693_v12 = vsel %vm1423_vm5, %v3688_v41, 0 }
0x2ca4   :  { %5247 = vmatpush3.bf16.xpose.msra.mxu1 %v3693_v12 }
0x2ca5   :  { %5258 = vmatprep.subr.bf16.mxu1 %v6822_v45 }
0x2cab   :  { %5249 = vmatmul.mubr.msk.bf16.vlgmr.msra.gmra.mxu1 %vm1423_vm5, %v3687_v9 }
0x2cac   :  { %5259 = vmatpush3.bf16.msra.mxu1 %v3818_v32  ;;  %5260 = vmatprep.mubr.msk.bf16.mxu1 %vm5463_vm1, %v6822_v45 }
0x2cad   :  { %5270 = vmatprep.subr.bf16.mxu1 %v6822_v45 }
0x2cb3   :  { %5261 = vmatmul.mubr.msk.bf16.vlgmr.msra.gmra.mxu1 %vm351_vm3, %v3806_v63 }
0x2cb4   :  { %5271 = vmatpush3.bf16.msra.mxu1 %v6832_v4  ;;  %5272 = vmatprep.mubr.msk.bf16.mxu1 %vm5463_vm1, %v6822_v45 }
0x2cb5   :  { %5284 = vmatprep.subr.bf16.mxu1 %v6822_v45 }
0x2cba   :  { %v3605_v46 = vpop.f32.mrf.mxu1 }
0x2cbb   :  { %v3606_v56 = vadd.f32 %v3605_v46, %v6410_v20 }
0x2cbc   :  { %v5238_v27 = vpop.f32.mrf.mxu1 }
0x2cbe   :  { %v3608_v57 = vpop.f32.mrf.mxu1 }
0x2cc0   :  { %v5239_v17 = vpop.f32.mrf.mxu1 }
0x2d6b   :  { %v3729_v51 = vpop.f32.mrf.mxu1 }
0x2d6c   :  { %v3735_v16 = vpack.c.bf16 %v3729_v51, %v3729_v51 }
0x2d6d   :  { %v5250_v54 = vpop.f32.mrf.mxu1 }
0x2d6f   :  { %v3732_v3 = vpop.f32.mrf.mxu1 }
0x2d71   :  { %v5251_v25 = vpop.f32.mrf.mxu1 }
0x2d73   :  { %v3854_v19 = vpop.f32.mrf.mxu1 }
0x2d74   :  { %v3860_v2 = vmul.f32 0.35355338, %v3854_v19  ;;  %v6836_v19 = vld [vmem:[#allocation16_spill] sm:$0xff] }
0x2d75   :  { %v5262_v24 = vpop.f32.mrf.mxu1 }
0x2d76   :  { %v3861_v23 = vsel %vm1423_vm5, %v3860_v2, -inf }
0x2d77   :  { %3862 = vmax.xlane.f32.xlu1 %v3861_v23  ;;  %v3857_v33 = vpop.f32.mrf.mxu1 }
0x2d78   :  { %v6837_v33 = vld [vmem:[#allocation17_spill] sm:$0xff] }
0x2d79   :  { %v5263_v10 = vpop.f32.mrf.mxu1 }
0x2da4   :  { %3736 = vxpose.xlu1.c.b16.start.end [1/1] (short) (narrow) %v3735_v16, 16 }
0x2e00   :  { %v3863_v36 = vpop.xlane.xlu1 %3862 }
0x2e01   :  { %v3864_v48 = vsub.f32 %v3860_v2, %v3863_v36 }
0x2e03   :  { %v3865_v42 = vmul.f32 1.442695, %v3864_v48 }
0x2e05   :  { %5404 = vpow2.f32 %v3865_v42 }
0x2e06   :  { %v3744_v55 = vpop.trf.xlu1 }
0x2e07   :  { %5255 = vmatmul.mubr.msk.bf16.vlgmr.msra.gmra.mxu0 %vm351_vm3, %v3744_v55 }
0x2e08   :  { %5266 = vmatprep.mubr.msk.bf16.mxu0 %vm5463_vm1, %v6822_v45 }
0x2e12   :  { %v5405_v29 = vpop.eup %5404 }
0x2e13   :  { %v3867_v28 = vsel %vm1423_vm5, %v5405_v29, 0.0 }
0x2e14   :  { %3868 = vadd.xlane.f32.xlu0 %v3867_v28 }
0x2e9d   :  { %v3869_v43 = vpop.xlane.xlu0 %3868 }
0x2e9e   :  { %5406 = vrcp.f32 %v3869_v43 }
0x2eab   :  { %v5407_v21 = vpop.eup %5406 }
0x2eac   :  { %v3871_v0 = vmul.f32 %v5407_v21, %v5405_v29 }
0x2eae   :  { %v3873_v44 = vpack.c.bf16 %v3871_v0, %v3871_v0 }
0x2eb0   :  { %v3878_v52 = vsel %vm1423_vm5, %v3873_v44, 0 }
0x2eb1   :  { %5265 = vmatpush3.bf16.xpose.msra.mxu0 %v3878_v52 }
0x2eb2   :  { %5276 = vmatprep.subr.bf16.mxu0 %v6822_v45 }
0x2eb8   :  { %5267 = vmatmul.mubr.msk.bf16.vlgmr.msra.gmra.mxu0 %vm1423_vm5, %v3872_v14 }
0x2eb9   :  { %5277 = vmatpush3.bf16.msra.mxu0 %v6834_v39  ;;  %5280 = vmatprep.mubr.msk.bf16.mxu0 %vm5463_vm1, %v6822_v45 }
0x2eba   :  { %5278 = vmatprep.subr.bf16.mxu0 %v6822_v45 }
0x2ebd   :  { %5279 = vmatpush3.bf16.msra.mxu0 %v6127_v60 }
0x2ec7   :  { %v3789_v61 = vpop.f32.mrf.mxu0 }
0x2ec8   :  { %v3795_v15 = vadd.f32 %v3789_v61, %v3606_v56 }
0x2ec9   :  { %v5256_v18 = vpop.f32.mrf.mxu0 }
0x2ecb   :  { %v3792_v47 = vpop.f32.mrf.mxu0 }
0x2ecc   :  { %v4143_v47 = vld [vmem:[%s6794_s12] sm:$0xff] }
0x2ecd   :  { %v5257_v13 = vpop.f32.mrf.mxu0 }
0x2ece   :  { %v4144_v13 = vld [vmem:[%s6794_s12 + $0x8] sm:$0xff] }
0x2f78   :  { %v3914_v62 = vpop.f32.mrf.mxu0 }
0x2f79   :  { %v3920_v30 = vpack.c.bf16 %v3914_v62, %v3914_v62  ;;  %v4147_v62 = vpack.c.bf16 %v4144_v13, %v4143_v47 }
0x2f7a   :  { %v5268_v34 = vpop.f32.mrf.mxu0 }
0x2f7b   :  { %3921 = vxpose.xlu0.c.b16.start.end [1/1] (short) (narrow) %v3920_v30, 16  ;;  %v4146_v30 = vld [vmem:[%s6794_s12 + $0x18] sm:$0xff] }
0x2f7c   :  { %v3917_v22 = vpop.f32.mrf.mxu0 }
0x2f7e   :  { %v5269_v31 = vpop.f32.mrf.mxu0 }
0x2fdd   :  { %v3929_v8 = vpop.trf.xlu0 }
0x2fde   :  { %5273 = vmatmul.mubr.msk.bf16.vlgmr.msra.gmra.mxu1 %vm351_vm3, %v3929_v8 }
0x2fdf   :  { %5285 = vmatpush3.bf16.msra.mxu1 %v6165_v35  ;;  %5292 = vmatprep.mubr.msk.bf16.mxu1 %vm5463_vm1, %v6822_v45 }
0x2fe0   :  { %5286 = vmatprep.subr.bf16.mxu1 %v6822_v45 }
0x2fe3   :  { %5287 = vmatpush3.bf16.msra.mxu1 %v6175_v38  ;;  %v4101_v38 = vld [vmem:[#allocation2] sm:$0xff] }
0x2fe4   :  { %5288 = vmatprep.subr.bf16.mxu1 %v6822_v45  ;;  %v4105_v50 = vsel %vm57_vm0, %v4101_v38, 0.0 }
0x2fe7   :  { %5289 = vmatpush3.bf16.msra.mxu1 %v6185_v6 }
0x2fe8   :  { %5290 = vmatprep.subr.bf16.mxu1 %v6822_v45 }
0x2feb   :  { %5291 = vmatpush3.bf16.msra.mxu1 %v6195_v26 }
0x309e   :  { %v3974_v60 = vpop.f32.mrf.mxu1 }
0x309f   :  { %v3980_v20 = vadd.f32 %v3974_v60, %v3795_v15 }
0x30a0   :  { %v5274_v40 = vpop.f32.mrf.mxu1 }
0x30a1   :  { %v3981_v35 = vadd.f32 %v3980_v20, %v6338_v5 }
0x30a2   :  { %v3977_v41 = vpop.f32.mrf.mxu1 }
0x30a3   :  { %v3982_v37 = vadd.f32 %v3981_v35, %v6835_v11 }
0x30a4   :  { %v5275_v12 = vpop.f32.mrf.mxu1 }
0x30a5   :  { %v3983_v1 = vsel %vm57_vm0, %v3982_v37, 0.0 }
0x30a6   :  { %3984 = vadd.xlane.f32.xlu1 %v3983_v1 }
0x30aa   :  { %4106 = vadd.xlane.f32.xlu1 %v4105_v50 }
0x312f   :  { %v3985_v6 = vpop.xlane.xlu1 %3984 }
0x3130   :  { %v3986_v53 = vmul.f32 0.03125, %v3985_v6  ;;  %v4738_v6 = vld [vmem:[%s6793_s11] ss:$0 sm:$0xff] }
0x3132   :  { %v3987_v9 = vsub.f32 %v3982_v37, %v3986_v53 }
0x3133   :  { %v4107_v26 = vpop.xlane.xlu1 %4106 }
0x3134   :  { %v4111_v32 = vmul.f32 0.03125, %v4107_v26  ;;  %v3988_v63 = vmul.f32 %v3987_v9, %v3987_v9 }
0x3136   :  { %v6465_v4 = vsub.f32 %v4101_v38, %v4111_v32  ;;  %v3989_v5 = vsel %vm57_vm0, %v3988_v63, 0.0  ;;  %v4739_v32 = vld [vmem:[%s6793_s11 + $0x1] ss:$0 sm:$0xff] }
0x3137   :  { %3990 = vadd.xlane.f32.xlu0 %v3989_v5 }
0x3138   :  { %v4115_v46 = vmul.f32 %v6465_v4, %v6465_v4 }
0x313a   :  { %v4117_v27 = vsel %vm57_vm0, %v4115_v46, 0.0 }
0x313b   :  { %4118 = vadd.xlane.f32.xlu1 %v4117_v27 }
0x3168   :  { %4150 = vxpose.xlu1.c.b16.start [1/2] (short) %v4147_v62, 128 }
0x31c0   :  { %v3991_v57 = vpop.xlane.xlu0 %3990 }
0x31c1   :  { %v3992_v17 = vmul.f32 0.03125, %v3991_v57 }
0x31c3   :  { %v3993_v51 = vadd.f32 1e-05, %v3992_v17 }
0x31c4   :  { %v4119_v40 = vpop.xlane.xlu1 %4118 }
0x31c5   :  { %5408 = vrsqrt.f32 %v3993_v51  ;;  %v4123_v41 = vmul.f32 0.03125, %v4119_v40 }
0x31c7   :  { %v4125_v11 = vadd.f32 1e-05, %v4123_v41 }
0x31d2   :  { %v5409_v54 = vpop.eup %5408 }
0x31d3   :  { %v3995_v3 = vmul.f32 %v5409_v54, %v3987_v9 }
0x31d5   :  { %v3996_v25 = vmul.f32 %v3995_v3, %v6136_v59 }
0x31d7   :  { %v3997_v2 = vadd.f32 %v3996_v25, %v6836_v19 }
0x31d9   :  { %v3998_v24 = vpack.c.bf16 %v3997_v2, %v3997_v2  ;;  %v4551_v2 = vld [vmem:[%s6795_s13] sm:$0x1] }
0x31da   :  { %vm4552_vm7 = vcmp.ne.s32.totalorder %v4551_v2, 4294967196 }
0x31db   :  { %5281 = vmatmul.mubr.msk.bf16.vlgmr.msra.gmra.mxu0 %vm57_vm0, %v3998_v24  ;;  %v6513_v24 = vsel %vm4552_vm7, 1.0, %v6822_v45 }
0x329b   :  { %v4036_v23 = vpop.f32.mrf.mxu0 }
0x329c   :  { %v4037_v10 = vadd.f32 %v4036_v23, %v6837_v33  ;;  %v4634_v23 = vsel %vm4461_vm8, %v6513_v24, 0.0  ;;  %v4553_v33 = vsel %vm4552_vm7, %v4551_v2, 0 }
0x329d   :  { %v5282_v16 = vpop.f32.mrf.mxu0 }
0x329e   :  { %v4043_v36 = vmul.f32 0.044715, %v4037_v10  ;;  %v4042_v0 = vmul.f32 0.5, %v4037_v10 }
0x329f   :  { %v4039_v48 = vpop.f32.mrf.mxu0 }
0x32a0   :  { %v4044_v42 = vmul.f32 %v4043_v36, %v4037_v10  ;;  %v6839_v36 = vld [vmem:[#allocation7_spill] sm:$0xff] }
0x32a1   :  { %v5283_v55 = vpop.f32.mrf.mxu0  ;;  %v6521_v48 = vrot.slane %v4553_v33, %v6839_v36 }
0x32a2   :  { %v4045_v29 = vmul.f32 %v4044_v42, %v4037_v10 }
0x32a4   :  { %v4046_v28 = vadd.f32 %v4045_v29, %v4037_v10  ;;  %v6838_v10 = vld [vmem:[#allocation6_spill] sm:$0xff] }
0x32a5   :  { %v6518_v16 = vadd.s32 16, %v6838_v10  ;;  %v6524_v42 = vadd.s32 24, %v6838_v10  ;;  %v6531_v29 = vadd.s32 8, %v6838_v10  ;;  %vm4558_vm10 = vcmp.eq.s32.totalorder %v6838_v10, %v6521_v48 }
0x32a6   :  { %v4047_v43 = vmul.f32 0.7978846, %v4046_v28 }
0x32a7   :  { %vm4560_vm9 = vcmp.eq.s32.totalorder %v6518_v16, %v6521_v48  ;;  %vm4561_vm11 = vcmp.eq.s32.totalorder %v6524_v42, %v6521_v48  ;;  %vm4559_vm12 = vcmp.eq.s32.totalorder %v6531_v29, %v6521_v48 }
0x32a8   :  { %5410 = vtanh.f32 %v4047_v43 }
0x32a9   :  { %5412 = vrsqrt.f32 %v4125_v11 }
0x32b5   :  { %v5411_v21 = vpop.eup %5410 }
0x32b6   :  { %v4049_v59 = vadd.f32 1.0, %v5411_v21  ;;  %v5413_v38 = vpop.eup %5412  ;;  %v6539_v21 = vadd.s32 48, %v6838_v10 }
0x32b7   :  { %v4129_v50 = vmul.f32 %v5413_v38, %v6465_v4 }
0x32b8   :  { %v4050_v44 = vmul.f32 %v4049_v59, %v4042_v0  ;;  %v6544_v0 = vadd.s32 56, %v6838_v10  ;;  %vm4564_vm13 = vcmp.eq.s32.totalorder %v6539_v21, %v6521_v48 }
0x32b9   :  { %v4135_v26 = vmul.f32 %v4738_v6, %v4129_v50 }
0x32ba   :  { %v4051_v52 = vpack.c.bf16 %v4050_v44, %v4050_v44  ;;  %vm4565_vm14 = vcmp.eq.s32.totalorder %v6544_v0, %v6521_v48 }
0x32bb   :  { %v4141_v5 = vadd.f32 %v4739_v32, %v4135_v26 }
0x32bc   :  { %5293 = vmatmul.mubr.msk.bf16.vlgmr.msra.gmra.mxu1 %vm2206_vm6, %v4051_v52  ;;  %v6550_v52 = vadd.s32 32, %v6838_v10 }
0x32be   :  { %vm4562_vm15 = vcmp.eq.s32.totalorder %v6550_v52, %v6521_v48 }
0x337c   :  { %v4089_v49 = vpop.f32.mrf.mxu1 }
0x337d   :  { %v4095_v7 = vadd.f32 %v4089_v49, %v3982_v37  ;;  %v6553_v49 = vadd.s32 40, %v6838_v10 }
0x337e   :  { %v5294_v14 = vpop.f32.mrf.mxu1 }
0x337f   :  { %v4096_v39 = vadd.f32 %v4095_v7, %v6235_v58  ;;  %v4145_v58 = vld [vmem:[%s6794_s12 + $0x10] sm:$0xff]  ;;  %v6558_v7 = vadd.s32 64, %v6838_v10 }
0x3380   :  { %v4092_v56 = vpop.f32.mrf.mxu1  ;;  %v4148_v34 = vpack.c.bf16 %v4146_v30, %v4145_v58 }
0x3381   :  { %4097 = vst.msk [vmem:[#allocation2 + $0x8] sm:$0xff] %vm57_vm0, %v4096_v39  ;;  %v5465_v56 = vmov -inf   ;;  %vm4566_vm1 = vcmp.eq.s32.totalorder %v6558_v7, %v6521_v48 }
0x3382   :  { %v5295_v61 = vpop.f32.mrf.mxu1  ;;  %4151 = vxpose.xlu1.c.b16.end [2/2] (short) %v4148_v34, 128  ;;  %v4582_v38 = vsel %vm4566_vm1, -1e+30, %v6822_v45 }
0x3383   :  { %v6566_v61 = vsel %vm1423_vm5, -1e+30, %v5465_v56  ;;  %v4605_v56 = vsel %vm1423_vm5, %v4582_v38, 0.0 }
0x3388   :  { %v4102_v15 = vld [vmem:[#allocation2 + $0x8] sm:$0xff] }
0x3389   :  { %v4108_v18 = vsel %vm57_vm0, %v4102_v15, 0.0 }
0x338a   :  { %4109 = vadd.xlane.f32.xlu0 %v4108_v18 }
0x33e0   :  { %v4158_v35 = vpop.trf.xlu1 }
0x33e1   :  { %5298 = vmatprep.mubr.msk.bf16.mxu0 %vm57_vm0, %v4158_v35 }
0x33e4   :  { %v4159_v4 = vpop.trf.xlu1 }
0x33e8   :  { %v4160_v17 = vpop.trf.xlu1 }
0x33ec   :  { %v4161_v51 = vpop.trf.xlu1 }
0x33f0   :  { %v4162_v54 = vpop.trf.xlu1 }
0x33f4   :  { %v4163_v3 = vpop.trf.xlu1 }
0x33f8   :  { %v4164_v25 = vpop.trf.xlu1 }
0x33fc   :  { %v4165_v19 = vpop.trf.xlu1 }
0x3413   :  { %v4110_v22 = vpop.xlane.xlu0 %4109 }
0x3414   :  { %v4112_v31 = vmul.f32 0.03125, %v4110_v22 }
0x3416   :  { %v4114_v8 = vsub.f32 %v4102_v15, %v4112_v31  ;;  %v6569_v15 = vadd.s32 72, %v6838_v10 }
0x3418   :  { %v4116_v60 = vmul.f32 %v4114_v8, %v4114_v8  ;;  %vm4567_vm2 = vcmp.eq.s32.totalorder %v6569_v15, %v6521_v48 }
0x3419   :  { %v4583_v2 = vsel %vm4567_vm2, -1e+30, %v6822_v45 }
0x341a   :  { %v4120_v20 = vsel %vm57_vm0, %v4116_v60, 0.0  ;;  %v6594_v60 = vadd.s32 80, %v6838_v10 }
0x341b   :  { %4121 = vadd.xlane.f32.xlu0 %v4120_v20 }
0x341c   :  { %vm4568_vm3 = vcmp.eq.s32.totalorder %v6594_v60, %v6521_v48 }
0x341f   :  { %4635 = vadd.xlane.f32.xlu0 %v4634_v23 }
0x34a4   :  { %v4122_v37 = vpop.xlane.xlu0 %4121 }
0x34a5   :  { %v4124_v12 = vmul.f32 0.03125, %v4122_v37 }
0x34a7   :  { %v4126_v1 = vadd.f32 1e-05, %v4124_v12 }
0x34a9   :  { %5414 = vrsqrt.f32 %v4126_v1  ;;  %v6603_v1 = vadd.s32 88, %v6838_v10 }
0x34ab   :  { %vm4569_vm4 = vcmp.eq.s32.totalorder %v6603_v1, %v6521_v48 }
0x34b6   :  { %v5415_v53 = vpop.eup %5414 }
0x34b7   :  { %v4130_v9 = vmul.f32 %v5415_v53, %v4114_v8 }
0x34b9   :  { %v4136_v63 = vmul.f32 %v4738_v6, %v4130_v9 }
0x34bb   :  { %v4142_v46 = vadd.f32 %v4739_v32, %v4136_v63 }
0x34bd   :  { %v4149_v27 = vpack.c.bf16 %v4142_v46, %v4141_v5 }
0x34bf   :  { %5323 = vmatprep.subr.msk.bf16.mxu0 %vm57_vm0, %v4149_v27  ;;  %v4191_v57 = vsel %vm57_vm0, %v4149_v27, 0 }
0x34c0   :  { %5297 = vmatpush3.bf16.xpose.msra.mxu0 %v4191_v57 }
0x34c7   :  { %5299 = vmatmul.mubr.msk.bf16.vlgmr.msra.gmra.mxu0 %vm57_vm0, %v4159_v4 }
0x34c8   :  { %5302 = vmatprep.mubr.msk.bf16.mxu0 %vm57_vm0, %v4160_v17 }
0x34cf   :  { %5303 = vmatmul.mubr.msk.bf16.gmra.mxu0 %vm57_vm0, %v4161_v51 }
0x34d0   :  { %5306 = vmatprep.mubr.msk.bf16.mxu0 %vm57_vm0, %v4162_v54 }
0x34d7   :  { %5307 = vmatmul.mubr.msk.bf16.gmra.mxu0 %vm57_vm0, %v4163_v3 }
0x34d8   :  { %5310 = vmatprep.mubr.msk.bf16.mxu0 %vm57_vm0, %v4164_v25 }
0x34df   :  { %5311 = vmatmul.mubr.msk.bf16.gmra.mxu0 %vm57_vm0, %v4165_v19  ;;  %vm4563_vm0 = vcmp.eq.s32.totalorder %v6553_v49, %v6521_v48  ;;  %v6633_v19 = vadd.s32 96, %v6838_v10 }
0x34e1   :  { %vm4570_vm6 = vcmp.eq.s32.totalorder %v6633_v19, %v6521_v48 }
0x34e2   :  { %v4586_v38 = vsel %vm4570_vm6, -1e+30, %v6822_v45 }
0x3587   :  { %v6528_v55 = vpop.f32.mrf.mxu0 }
0x3588   :  { %v4576_v28 = vsel %vm4560_vm9, %v6528_v55, 0.0  ;;  %v4339_v22 = vsel %vm1423_vm5, %v6528_v55, -inf }
0x3589   :  { %v6536_v43 = vpop.f32.mrf.mxu0  ;;  %v4593_v20 = vsel %vm1423_vm5, %v4576_v28, 0.0 }
0x358a   :  { %v4574_v59 = vsel %vm4558_vm10, %v6536_v43, 0.0  ;;  %v4337_v31 = vsel %vm1423_vm5, %v6536_v43, -inf }
0x358b   :  { %v6547_v44 = vpop.f32.mrf.mxu0  ;;  %v4590_v13 = vsel %vm1423_vm5, %v4574_v59, 0.0  ;;  %v4302_v59 = vadd.s32 104, %v6838_v10 }
0x358c   :  { %v4577_v14 = vsel %vm4561_vm11, %v6547_v44, 0.0  ;;  %v4340_v6 = vsel %vm1423_vm5, %v6547_v44, -inf }
0x358d   :  { %v6561_v39 = vpop.f32.mrf.mxu0  ;;  %v4595_v50 = vsel %vm1423_vm5, %v4577_v14, 0.0  ;;  %vm4571_vm7 = vcmp.eq.s32.totalorder %v4302_v59, %v6521_v48 }
0x358e   :  { %v4575_v18 = vsel %vm4559_vm12, %v6561_v39, 0.0  ;;  %v4338_v32 = vsel %vm1423_vm5, %v6561_v39, -inf }
0x358f   :  { %v6574_v47 = vpop.f32.mrf.mxu0  ;;  %v4591_v58 = vsel %vm1423_vm5, %v4575_v18, 0.0 }
0x3590   :  { %v4345_v62 = vsel %vm1423_vm5, %v6574_v47, -inf  ;;  %v4580_v30 = vsel %vm4564_vm13, %v6574_v47, 0.0  ;;  %v4592_v34 = vadd.f32 %v4591_v58, %v4590_v13 }
0x3591   :  { %v6591_v8 = vpop.f32.mrf.mxu0  ;;  %v4346_v40 = vmax.f32 %v4339_v22, %v4345_v62  ;;  %v4601_v28 = vsel %vm1423_vm5, %v4580_v30, 0.0  ;;  %v4607_v30 = vsel %vm1423_vm5, %v4583_v2, 0.0 }
0x3592   :  { %v4341_v35 = vsel %vm1423_vm5, %v6591_v8, -inf  ;;  %v4578_v41 = vsel %vm4562_vm15, %v6591_v8, 0.0  ;;  %v4594_v11 = vadd.f32 %v4593_v20, %v4592_v34  ;;  %v4584_v34 = vsel %vm4568_vm3, -1e+30, %v6822_v45 }
0x3593   :  { %v4342_v37 = vmax.f32 %v4337_v31, %v4341_v35  ;;  %v6600_v12 = vpop.f32.mrf.mxu0  ;;  %v4597_v46 = vsel %vm1423_vm5, %v4578_v41, 0.0  ;;  %v4354_v27 = vmax.f32 %v4346_v40, %v6566_v61  ;;  %v6652_v40 = vadd.s32 112, %v6838_v10 }
0x3594   :  { %v4347_v53 = vsel %vm1423_vm5, %v6600_v12, -inf  ;;  %v4581_v9 = vsel %vm4565_vm14, %v6600_v12, 0.0  ;;  %v4596_v26 = vadd.f32 %v4595_v50, %v4594_v11  ;;  %v4585_v35 = vsel %vm4569_vm4, -1e+30, %v6822_v45 }
0x3595   :  { %v4348_v63 = vmax.f32 %v4340_v6, %v4347_v53  ;;  %v6617_v5 = vpop.f32.mrf.mxu0  ;;  %v4350_v51 = vmax.f32 %v4342_v37, %v6566_v61  ;;  %v4362_v18 = vmax.f32 %v4354_v27, %v6566_v61  ;;  %v4603_v62 = vsel %vm1423_vm5, %v4581_v9, 0.0 }
0x3596   :  { %v4343_v57 = vsel %vm1423_vm5, %v6617_v5, -inf  ;;  %v4579_v4 = vsel %vm4563_vm0, %v6617_v5, 0.0  ;;  %v4598_v17 = vadd.f32 %v4597_v46, %v4596_v26  ;;  %v4609_v37 = vsel %vm1423_vm5, %v4584_v34, 0.0 }
0x3597   :  { %v4356_v54 = vmax.f32 %v4348_v63, %v6566_v61  ;;  %v4344_v3 = vmax.f32 %v4338_v32, %v4343_v57  ;;  %v4599_v25 = vsel %vm1423_vm5, %v4579_v4, 0.0  ;;  %v4358_v13 = vmax.f32 %v4350_v51, %v6566_v61 }
0x3598   :  { %v4600_v23 = vadd.f32 %v4599_v25, %v4598_v17  ;;  %vm4572_vm9 = vcmp.eq.s32.totalorder %v6652_v40, %v6521_v48  ;;  %v4611_v53 = vsel %vm1423_vm5, %v4585_v35, 0.0  ;;  %v4587_v9 = vsel %vm4571_vm7, -1e+30, %v6822_v45 }
0x3599   :  { %v4364_v33 = vmax.f32 %v4356_v54, %v6566_v61  ;;  %v4352_v36 = vmax.f32 %v4344_v3, %v6566_v61  ;;  %v4613_v63 = vsel %vm1423_vm5, %v4586_v38, 0.0  ;;  %v4588_v46 = vsel %vm4572_vm9, -1e+30, %v6822_v45 }
0x359a   :  { %v4602_v14 = vadd.f32 %v4601_v28, %v4600_v23  ;;  %v4615_v4 = vsel %vm1423_vm5, %v4587_v9, 0.0  ;;  %v4617_v3 = vsel %vm1423_vm5, %v4588_v46, 0.0 }
0x359b   :  { %v4360_v58 = vmax.f32 %v4352_v36, %v6566_v61  ;;  %v4366_v31 = vmax.f32 %v4362_v18, %v4364_v33  ;;  %v6658_v61 = vadd.s32 120, %v6838_v10 }
0x359c   :  { %v4604_v22 = vadd.f32 %v4603_v62, %v4602_v14 }
0x359d   :  { %v4365_v20 = vmax.f32 %v4358_v13, %v4360_v58  ;;  %vm4573_vm10 = vcmp.eq.s32.totalorder %v6658_v61, %v6521_v48 }
0x359e   :  { %v4606_v41 = vadd.f32 %v4605_v56, %v4604_v22  ;;  %v4589_v17 = vsel %vm4573_vm10, -1e+30, %v6822_v45 }
0x359f   :  { %v4367_v11 = vmax.f32 %v4365_v20, %v4366_v31  ;;  %v4619_v23 = vsel %vm1423_vm5, %v4589_v17, 0.0 }
0x35a0   :  { %v4608_v50 = vadd.f32 %v4607_v30, %v4606_v41 }
0x35a1   :  { %v4368_v6 = vrot.slane %v4367_v11, 4 }
0x35a2   :  { %v4610_v26 = vadd.f32 %v4609_v37, %v4608_v50 }
0x35a3   :  { %v4369_v32 = vmax.f32 %v4367_v11, %v4368_v6 }
0x35a4   :  { %v4612_v27 = vadd.f32 %v4611_v53, %v4610_v26 }
0x35a5   :  { %v4370_v57 = vrot.slane %v4369_v32, 2 }
0x35a6   :  { %v4614_v51 = vadd.f32 %v4613_v63, %v4612_v27 }
0x35a7   :  { %v4371_v54 = vmax.f32 %v4369_v32, %v4370_v57 }
0x35a8   :  { %v4616_v25 = vadd.f32 %v4615_v4, %v4614_v51 }
0x35a9   :  { %v4372_v2 = vrot.slane %v4371_v54, 1 }
0x35aa   :  { %v4618_v33 = vadd.f32 %v4617_v3, %v4616_v25 }
0x35ab   :  { %v6675_v48 = vmax.f32 %v4371_v54, %v4372_v2 }
0x35ac   :  { %v6677_v36 = vadd.f32 %v4619_v23, %v4618_v33 }
0x35ad   :  { %vm4374_vm11 = vcmp.eq.f32.partialorder %v6536_v43, %v6675_v48  ;;  %vm4375_vm12 = vcmp.eq.f32.partialorder %v6561_v39, %v6675_v48  ;;  %vm4378_vm13 = vcmp.eq.f32.partialorder %v6591_v8, %v6675_v48  ;;  %vm4379_vm14 = vcmp.eq.f32.partialorder %v6617_v5, %v6675_v48 }
0x35ae   :  { %vm4748_vm15 = vcmp.eq.f32.partialorder %v6675_v48, -1e+30  ;;  %v4390_v45 = vsel %vm4374_vm11, %v6838_v10, 128  ;;  %v4391_v28 = vsel %vm4375_vm12, %v6531_v29, 128  ;;  %v4394_v14 = vsel %vm4378_vm13, %v6550_v52, 128 }
0x35af   :  { %v4395_v56 = vsel %vm4379_vm14, %v6553_v49, 128  ;;  %v4398_v18 = vsel %vm4748_vm15, %v6558_v7, 128  ;;  %v4399_v13 = vsel %vm4748_vm15, %v6569_v15, 128  ;;  %v4402_v58 = vsel %vm4748_vm15, %v6633_v19, 128 }
0x35b0   :  { %v4406_v10 = vsel %vm1423_vm5, %v4390_v45, 2147483647  ;;  %v4407_v29 = vsel %vm1423_vm5, %v4391_v28, 2147483647  ;;  %v4403_v52 = vsel %vm4748_vm15, %v4302_v59, 128  ;;  %v4463_v7 = vsub.f32 %v6536_v43, %v6675_v48 }
0x35b1   :  { %v4410_v49 = vsel %vm1423_vm5, %v4394_v14, 2147483647  ;;  %v4413_v62 = vsel %vm1423_vm5, %v4395_v56, 2147483647  ;;  %v4422_v15 = vsel %vm1423_vm5, %v4398_v18, 2147483647  ;;  %v4464_v19 = vsub.f32 %v6561_v39, %v6675_v48 }
0x35b2   :  { %vm4411_vm0 = vcmp.lt.s32.totalorder %v4406_v10, %v4410_v49  ;;  %vm4414_vm1 = vcmp.lt.s32.totalorder %v4407_v29, %v4413_v62  ;;  %v4425_v30 = vsel %vm1423_vm5, %v4399_v13, 2147483647  ;;  %v4434_v59 = vsel %vm1423_vm5, %v4402_v58, 2147483647 }
0x35b3   :  { %v4412_v34 = vsel %vm4411_vm0, %v4406_v10, %v4410_v49  ;;  %v4415_v22 = vsel %vm4414_vm1, %v4407_v29, %v4413_v62  ;;  %v4465_v31 = vsub.f32 %v6528_v55, %v6675_v48  ;;  %v4466_v43 = vsub.f32 %v6547_v44, %v6675_v48 }
0x35b4   :  { %vm4423_vm2 = vcmp.lt.s32.totalorder %v4412_v34, %v4422_v15  ;;  %vm4426_vm3 = vcmp.lt.s32.totalorder %v4415_v22, %v4425_v30  ;;  %v4437_v41 = vsel %vm1423_vm5, %v4403_v52, 2147483647  ;;  %v4467_v39 = vsub.f32 %v6591_v8, %v6675_v48 }
0x35b5   :  { %v4424_v20 = vsel %vm4423_vm2, %v4412_v34, %v4422_v15  ;;  %v4427_v35 = vsel %vm4426_vm3, %v4415_v22, %v4425_v30  ;;  %v4468_v11 = vsub.f32 %v6617_v5, %v6675_v48  ;;  %v4479_v37 = vmul.f32 1.442695, %v4463_v7 }
0x35b6   :  { %vm4435_vm4 = vcmp.lt.s32.totalorder %v4424_v20, %v4434_v59  ;;  %vm4438_vm6 = vcmp.lt.s32.totalorder %v4427_v35, %v4437_v41  ;;  %v4481_v38 = vmul.f32 1.442695, %v4464_v19  ;;  %v4469_v50 = vsub.f32 %v6574_v47, %v6675_v48 }
0x35b7   :  { %v4470_v6 = vsub.f32 %v6600_v12, %v6675_v48  ;;  %v4483_v53 = vmul.f32 1.442695, %v4465_v31  ;;  %v4485_v9 = vmul.f32 1.442695, %v4466_v43  ;;  %v4436_v26 = vsel %vm4435_vm4, %v4424_v20, %v4434_v59 }
0x35b8   :  { %v4439_v32 = vsel %vm4438_vm6, %v4427_v35, %v4437_v41  ;;  %5416 = vpow2.f32 %v4479_v37  ;;  %v4487_v63 = vmul.f32 1.442695, %v4467_v39  ;;  %v4489_v8 = vmul.f32 1.442695, %v4468_v11 }
0x35b9   :  { %5418 = vpow2.f32 %v4481_v38  ;;  %vm4376_vm7 = vcmp.eq.f32.partialorder %v6528_v55, %v6675_v48  ;;  %vm4377_vm9 = vcmp.eq.f32.partialorder %v6547_v44, %v6675_v48  ;;  %vm4380_vm10 = vcmp.eq.f32.partialorder %v6574_v47, %v6675_v48 }
0x35ba   :  { %5420 = vpow2.f32 %v4483_v53  ;;  %vm4381_vm11 = vcmp.eq.f32.partialorder %v6600_v12, %v6675_v48  ;;  %v4392_v5 = vsel %vm4376_vm7, %v6518_v16, 128  ;;  %v4393_v46 = vsel %vm4377_vm9, %v6524_v42, 128 }
0x35bb   :  { %5422 = vpow2.f32 %v4485_v9  ;;  %v4396_v27 = vsel %vm4380_vm10, %v6539_v21, 128  ;;  %v4397_v57 = vsel %vm4381_vm11, %v6544_v0, 128  ;;  %v4471_v55 = vsub.f32 -1e+30, %v6675_v48 }
0x35bc   :  { %5424 = vpow2.f32 %v4487_v63  ;;  %v4491_v44 = vmul.f32 1.442695, %v4469_v50  ;;  %v4493_v4 = vmul.f32 1.442695, %v4470_v6  ;;  %v4400_v47 = vsel %vm4748_vm15, %v6594_v60, 128 }
0x35bd   :  { %v4401_v16 = vsel %vm4748_vm15, %v6603_v1, 128  ;;  %v4408_v12 = vsel %vm1423_vm5, %v4392_v5, 2147483647  ;;  %v4409_v42 = vsel %vm1423_vm5, %v4393_v46, 2147483647  ;;  %vm4446_vm12 = vcmp.lt.s32.totalorder %v4436_v26, %v4439_v32 }
0x35be   :  { %v4404_v21 = vsel %vm4748_vm15, %v6652_v40, 128  ;;  %v4416_v0 = vsel %vm1423_vm5, %v4396_v27, 2147483647  ;;  %v4419_v17 = vsel %vm1423_vm5, %v4397_v57, 2147483647  ;;  %5426 = vpow2.f32 %v4489_v8 }
0x35bf   :  { %v4405_v60 = vsel %vm4748_vm15, %v6658_v61, 128  ;;  %vm4417_vm13 = vcmp.lt.s32.totalorder %v4408_v12, %v4416_v0  ;;  %vm4420_vm14 = vcmp.lt.s32.totalorder %v4409_v42, %v4419_v17  ;;  %v4428_v54 = vsel %vm1423_vm5, %v4400_v47, 2147483647 }
0x35c0   :  { %v4418_v1 = vsel %vm4417_vm13, %v4408_v12, %v4416_v0  ;;  %v4421_v51 = vsel %vm4420_vm14, %v4409_v42, %v4419_v17  ;;  %v4431_v3 = vsel %vm1423_vm5, %v4401_v16, 2147483647  ;;  %5428 = vpow2.f32 %v4491_v44 }
0x35c1   :  { %v4495_v25 = vmul.f32 1.442695, %v4471_v55  ;;  %vm4429_vm0 = vcmp.lt.s32.totalorder %v4418_v1, %v4428_v54  ;;  %vm4432_vm1 = vcmp.lt.s32.totalorder %v4421_v51, %v4431_v3  ;;  %v4440_v23 = vsel %vm1423_vm5, %v4404_v21, 2147483647 }
0x35c2   :  { %v4430_v40 = vsel %vm4429_vm0, %v4418_v1, %v4428_v54  ;;  %v4433_v2 = vsel %vm4432_vm1, %v4421_v51, %v4431_v3  ;;  %v4443_v33 = vsel %vm1423_vm5, %v4405_v60, 2147483647  ;;  %5430 = vpow2.f32 %v4493_v4 }
0x35c3   :  { %vm4441_vm15 = vcmp.lt.s32.totalorder %v4430_v40, %v4440_v23  ;;  %vm4444_vm2 = vcmp.lt.s32.totalorder %v4433_v2, %v4443_v33  ;;  %v4447_v28 = vsel %vm4446_vm12, %v4436_v26, %v4439_v32  ;;  %5432 = vpow2.f32 %v4495_v25 }
0x35c4   :  { %v4442_v61 = vsel %vm4441_vm15, %v4430_v40, %v4440_v23  ;;  %v4445_v45 = vsel %vm4444_vm2, %v4433_v2, %v4443_v33  ;;  %v4621_v0 = vrot.slane %v6677_v36, 4 }
0x35c5   :  { %v5417_v14 = vpop.eup %5416  ;;  %vm4448_vm3 = vcmp.lt.s32.totalorder %v4442_v61, %v4445_v45 }
0x35c6   :  { %v5419_v56 = vpop.eup %5418  ;;  %v4511_v18 = vsel %vm1423_vm5, %v5417_v14, 0.0  ;;  %v4449_v13 = vsel %vm4448_vm3, %v4442_v61, %v4445_v45  ;;  %v4622_v60 = vadd.f32 %v4621_v0, %v6677_v36  ;;  %v5308_v45 = vpop.f32.mrf.mxu0 }
0x35c7   :  { %v5421_v58 = vpop.eup %5420  ;;  %v4512_v10 = vsel %vm1423_vm5, %v5419_v56, 0.0  ;;  %vm4450_vm4 = vcmp.lt.s32.totalorder %v4447_v28, %v4449_v13 }
0x35c8   :  { %v5423_v29 = vpop.eup %5422  ;;  %v4513_v52 = vadd.f32 %v4512_v10, %v4511_v18  ;;  %v4451_v49 = vsel %vm4450_vm4, %v4447_v28, %v4449_v13  ;;  %v4514_v7 = vsel %vm1423_vm5, %v5421_v58, 0.0  ;;  %v4623_v1 = vrot.slane %v4622_v60, 2  ;;  %v4259_v28 = vpop.f32.mrf.mxu0 }
0x35c9   :  { %v5425_v62 = vpop.eup %5424  ;;  %v4452_v15 = vrot.slane %v4451_v49, 4  ;;  %v4516_v34 = vsel %vm1423_vm5, %v5423_v29, 0.0  ;;  %v4636_v10 = vpop.xlane.xlu0 %4635 }
0x35ca   :  { %v4515_v19 = vadd.f32 %v4514_v7, %v4513_v52  ;;  %v4518_v31 = vsel %vm1423_vm5, %v5425_v62, 0.0  ;;  %v4624_v51 = vadd.f32 %v4623_v1, %v4622_v60  ;;  %v5309_v14 = vpop.f32.mrf.mxu0  ;;  %v4637_v29 = vmax.f32 %v4636_v10, 1.0 }
0x35cb   :  { %vm4453_vm6 = vcmp.lt.s32.totalorder %v4451_v49, %v4452_v15  ;;  %v5427_v22 = vpop.eup %5426 }
0x35cc   :  { %v4517_v30 = vadd.f32 %v4516_v34, %v4515_v19  ;;  %v4454_v59 = vsel %vm4453_vm6, %v4451_v49, %v4452_v15  ;;  %v4520_v41 = vsel %vm1423_vm5, %v5427_v22, 0.0  ;;  %v4625_v54 = vrot.slane %v4624_v51, 1  ;;  %v4262_v56 = vpop.f32.mrf.mxu0 }
0x35cd   :  { %v4455_v43 = vrot.slane %v4454_v59, 2  ;;  %v5429_v20 = vpop.eup %5428 }
0x35ce   :  { %v4519_v35 = vadd.f32 %v4518_v31, %v4517_v30  ;;  %v4522_v38 = vsel %vm1423_vm5, %v5429_v20, 0.0  ;;  %v4626_v2 = vadd.f32 %v4625_v54, %v4624_v51  ;;  %v5312_v18 = vpop.f32.mrf.mxu0 }
0x35cf   :  { %vm4456_vm7 = vcmp.lt.s32.totalorder %v4454_v59, %v4455_v43  ;;  %v5431_v39 = vpop.eup %5430 }
0x35d0   :  { %v4521_v11 = vadd.f32 %v4520_v41, %v4519_v35  ;;  %v4457_v37 = vsel %vm4456_vm7, %v4454_v59, %v4455_v43  ;;  %v5433_v6 = vpop.eup %5432  ;;  %v4524_v9 = vsel %vm1423_vm5, %v5431_v39, 0.0  ;;  %v4275_v36 = vpop.f32.mrf.mxu0 }
0x35d1   :  { %v4458_v50 = vrot.slane %v4457_v37, 1  ;;  %v4526_v63 = vsel %vm1423_vm5, %v5433_v6, 0.0  ;;  %vm4640_vm5 = vcmask 0  }
0x35d2   :  { %v4523_v53 = vadd.f32 %v4522_v38, %v4521_v11  ;;  %v5313_v13 = vpop.f32.mrf.mxu0 }
0x35d3   :  { %vm4459_vm9 = vcmp.lt.s32.totalorder %v4457_v37, %v4458_v50 }
0x35d4   :  { %v4525_v26 = vadd.f32 %v4524_v9, %v4523_v53  ;;  %v4460_v32 = vsel %vm4459_vm9, %v4457_v37, %v4458_v50  ;;  %v4278_v58 = vpop.f32.mrf.mxu0 }
0x35d5   :  { %4462 = vst.msk [vmem:[%s6797_s15] sm:$0x1] %vm4461_vm8, %v4460_v32  ;;  %s5466_s15 = smov [#allocation3]  }
0x35d6   :  { %v4527_v8 = vadd.f32 %v4526_v63, %v4525_v26  ;;  %s4648_s10 = sshll.u32 %s5466_s15, 4  ;;  %s4649_s10 = int_to_ptr.vmem [resolvable:$true] %s4648_s10 }
0x35d7   :  { %s5439_s25 = scalar_lea.vmem %s4649_s10, 16  ;;  %s5443_s26 = scalar_lea.vmem %s4649_s10, 32 }
0x35d8   :  { %v4529_v5 = vadd.f32 %v4527_v8, %v4526_v63  ;;  %p5440_p0 = scmp.ne.s32.totalorder %s4649_s10, %s5439_s25  ;;  %p5444_p1 = scmp.lt.s32.totalorder %s4649_s10, %s4649_s10 }
0x35d9   :  { %p5445_p2 = scmp.lt.s32.totalorder %s5443_s26, %s5439_s25 }
0x35da   :  { %v4531_v46 = vadd.f32 %v4529_v5, %v4526_v63 }
0x35db   :  { %p5446_p3 = por %p5445_p2, %p5444_p1 }
0x35dc   :  { %v4533_v27 = vadd.f32 %v4531_v46, %v4526_v63 }
0x35dd   :  { %p5447_p4 = pnand %p5446_p3, %p5440_p0 }
0x35de   :  { %v4535_v57 = vadd.f32 %v4533_v27, %v4526_v63 }
0x35e0   :  { %v4537_v55 = vadd.f32 %v4535_v57, %v4526_v63 }
0x35e2   :  { %v4539_v44 = vadd.f32 %v4537_v55, %v4526_v63 }
0x35e4   :  { %v4541_v4 = vadd.f32 %v4539_v44, %v4526_v63 }
0x35e6   :  { %v4542_v47 = vrot.slane %v4541_v4, 4 }
0x35e8   :  { %v4543_v16 = vadd.f32 %v4542_v47, %v4541_v4 }
0x35ea   :  { %v4544_v12 = vrot.slane %v4543_v16, 2 }
0x35ec   :  { %v4545_v42 = vadd.f32 %v4544_v12, %v4543_v16 }
0x35ee   :  { %v4546_v21 = vrot.slane %v4545_v42, 1 }
0x35f0   :  { %v4547_v17 = vadd.f32 %v4546_v21, %v4545_v42 }
0x35f2   :  { %5434 = vlog2.f32 %v4547_v17 }
0x35f3   :  { %5436 = vrcp.f32 %v4637_v29 }
0x35ff   :  { %v5435_v3 = vpop.eup %5434 }
0x3600   :  { %v4549_v25 = vmul.f32 0.6931472, %v5435_v3  ;;  %v5437_v52 = vpop.eup %5436 }
0x3602   :  { %v4550_v40 = vadd.f32 %v4549_v25, %v6675_v48 }
0x3604   :  { %v4627_v23 = vsub.f32 %v4550_v40, %v4626_v2 }
0x3606   :  { %v4630_v33 = vmul.f32 %v6513_v24, %v4627_v23 }
0x3608   :  { %v4631_v61 = vsel %vm4461_vm8, %v4630_v33, 0.0 }
0x3609   :  { %4632 = vadd.xlane.f32.xlu0 %v4631_v61 }
0x3692   :  { %v4633_v48 = vpop.xlane.xlu0 %4632 }
0x3693   :  { %v4639_v24 = vmul.f32 %v5437_v52, %v4633_v48 }
0x3695   :  { %4641 = vst.msk [vmem:[#allocation3] sm:$0x1] %vm4640_vm5, %v4639_v24 }
0x3696   :  { %5450 = shalt.err (!%p5447_p4)
}
0x3697   :  { %4651 = dma.vmem_to_hbm [thread:$0]  %s4649_s10, 16, %s6796_s14, [#allocation4]  }
0x3698   :  { %5459 = dma.done.wait [#allocation4], 16  }
0x3699   :  { %5460 = vsyncadd [#allocation4], 4294967280 }
0x369a   :  { %4659 = vsyncpa [#allocation4], 1 }

</bundles_post_ra>
